<compile_context>
chip_gen: v7x
topology: tpu7x:2x2x1
jax: 0.10.0
libtpu: 0.0.40
codegen_flags: <defaults>
</compile_context>

<pallas_src>
import jax
import jax.numpy as jnp
from jax.experimental import pallas as pl
from jax.experimental.pallas import tpu as pltpu

# ---------------- static model config (small, consistent with the module) ---
DIM = 32                 # channels ("dim" of SeaNetEncoder)
KSIZE = 3                # all convs use kernel_size=3
STRIDES = (4, 5, 6, 8)   # ConvBlock strides
DILATIONS = (1, 2, 4)    # dilation_growth=2, num_conv_layers=3
BATCH = 2
T_IN = 960               # input samples (total downsample factor is 4*5*6*8*2)


def _encoder_out_len(t):
    l = t
    for s in STRIDES:
        l = (l - 1) // s + 1        # pad(1,1) + k=3, stride s
    return (l + 1) // 2 + 1         # final conv: pad=2, k=3, stride 2


# ----------------------------- kernel helpers -------------------------------
def _pad_time(x, left, right):
    """Zero-pad a (C, L) value along the time/lane axis (static amounts)."""
    c = x.shape[0]
    parts = []
    if left:
        parts.append(jnp.zeros((c, left), x.dtype))
    parts.append(x)
    if right:
        parts.append(jnp.zeros((c, right), x.dtype))
    return jnp.concatenate(parts, axis=1) if len(parts) > 1 else x


def _conv_stride1(xp, w_cat, b, dilation, l_out):
    """Stride-1 'valid' Conv1d on pre-padded xp: one fused MXU matmul.

    xp:    (C_in, L_pad)   pre-padded input
    w_cat: (C_out, K*C_in) taps concatenated along the contraction axis
    b:     (C_out, 1)
    """
    cols = jnp.concatenate(
        [xp[:, j * dilation: j * dilation + l_out] for j in range(KSIZE)],
        axis=0)                                            # (K*C_in, l_out)
    return jnp.dot(w_cat, cols, preferred_element_type=jnp.float32) + b


def _select_stride(z, stride):
    """Pick columns 0, s, 2s, ... of z (C, L) via a one-hot matmul."""
    if stride == 1:
        return z
    l_in = z.shape[1]
    l_out = (l_in - 1) // stride + 1
    rows = jax.lax.broadcasted_iota(jnp.int32, (l_in, l_out), 0)
    cols = jax.lax.broadcasted_iota(jnp.int32, (l_in, l_out), 1)
    sel = (rows == cols * stride).astype(z.dtype)          # (l_in, l_out)
    return jnp.dot(z, sel, preferred_element_type=jnp.float32)


# ------------------------------- the kernel ---------------------------------
def seanet_encoder_kernel(x_ref, w_in_ref, b_in_ref,
                          w_dil_ref, b_dil_ref,
                          w_ds_ref, b_ds_ref,
                          w_fin_ref, b_fin_ref,
                          o_ref):
    x = x_ref[0]                                           # (1, T_IN)
    l = x.shape[1]

    # ---- input_proj: Conv1d(1, D, k=3, padding=1) + bias ----
    h = _conv_stride1(_pad_time(x, 1, 1), w_in_ref[...], b_in_ref[...], 1, l)

    # ---- 4 ConvBlocks ----
    for blk, stride in enumerate(STRIDES):
        # 3 dilated residual layers: x = SiLU(conv(pad(x))) + x
        for lyr, dil in enumerate(DILATIONS):
            res = h
            l = h.shape[1]
            idx = blk * len(DILATIONS) + lyr
            y = _conv_stride1(_pad_time(h, dil, dil),
                              w_dil_ref[idx], b_dil_ref[idx], dil, l)
            h = y * jax.nn.sigmoid(y) + res                # SiLU + residual

        # downsample: pad(1,1) + Conv1d(k=3, stride=s)
        #   = stride-1 conv over padded input, then keep every s-th column.
        l = h.shape[1]
        z = _conv_stride1(_pad_time(h, 1, 1), w_ds_ref[blk], b_ds_ref[blk], 1, l)
        h = _select_stride(z, stride)

    # ---- final_conv: Conv1d(D, D, k=3, stride=2, padding=2) ----
    l = h.shape[1]
    z = _conv_stride1(_pad_time(h, 2, 2), w_fin_ref[...], b_fin_ref[...], 1, l + 2)
    h = _select_stride(z, 2)                               # (D, T_OUT)

    o_ref[0] = h


# ------------------------------- wrapper -------------------------------------
def seanet_encoder(x, kp):
    """x: (B, 1, T) float32 -> (B, T_out, DIM) float32."""
    b, cin, t = x.shape
    assert cin == 1
    t_out = _encoder_out_len(t)

    def full(arr):
        shape = arr.shape
        n = len(shape)
        return pl.BlockSpec(shape, lambda i, n=n: (0,) * n)

    out = pl.pallas_call(
        seanet_encoder_kernel,
        out_shape=jax.ShapeDtypeStruct((b, DIM, t_out), jnp.float32),
        grid=(b,),
        in_specs=[
            pl.BlockSpec((1, 1, t), lambda i: (i, 0, 0)),  # x (per batch elem)
            full(kp["w_in"]), full(kp["b_in"]),
            full(kp["w_dil"]), full(kp["b_dil"]),
            full(kp["w_ds"]), full(kp["b_ds"]),
            full(kp["w_fin"]), full(kp["b_fin"]),
        ],
        out_specs=pl.BlockSpec((1, DIM, t_out), lambda i: (i, 0, 0)),
        compiler_params=pltpu.CompilerParams(
            dimension_semantics=("parallel",)),
    )(x, kp["w_in"], kp["b_in"], kp["w_dil"], kp["b_dil"],
      kp["w_ds"], kp["b_ds"], kp["w_fin"], kp["b_fin"])

    return jnp.transpose(out, (0, 2, 1))                   # (B, T_out, DIM)


# --------------------- parameters (weight_norm materialized) -----------------
def make_params(key):
    keys = iter(jax.random.split(key, 64))

    def wn_conv(cout, cin, k):
        # weight_norm: effective weight = g * v / ||v|| (norm over dims 1,2)
        v = jax.random.normal(next(keys), (cout, cin, k), jnp.float32)
        v = v / jnp.sqrt(cin * k)
        g = 1.0 + 0.05 * jax.random.normal(next(keys), (cout, 1, 1), jnp.float32)
        w = g * v / jnp.sqrt(jnp.sum(v * v, axis=(1, 2), keepdims=True))
        bias = 0.05 * jax.random.normal(next(keys), (cout,), jnp.float32)
        return w, bias

    p = {"w_dil": [], "b_dil": [], "w_ds": [], "b_ds": []}
    p["w_in"], p["b_in"] = wn_conv(DIM, 1, KSIZE)
    for _ in STRIDES:
        ws, bs = [], []
        for _ in DILATIONS:
            w, bb = wn_conv(DIM, DIM, KSIZE)
            ws.append(w)
            bs.append(bb)
        p["w_dil"].append(ws)
        p["b_dil"].append(bs)
        w, bb = wn_conv(DIM, DIM, KSIZE)
        p["w_ds"].append(w)
        p["b_ds"].append(bb)
    p["w_fin"], p["b_fin"] = wn_conv(DIM, DIM, KSIZE)
    return p


def pack_kernel_params(p):
    """Repack (O, I, K) conv weights into tap-concatenated (O, K*I) matrices."""
    def cat(w):                                  # (O, I, K) -> (O, K*I)
        o, i, k = w.shape
        return jnp.transpose(w, (0, 2, 1)).reshape(o, k * i)

    return {
        "w_in": cat(p["w_in"]),                                    # (D, 3)
        "b_in": p["b_in"][:, None],                                # (D, 1)
        "w_dil": jnp.stack([cat(p["w_dil"][b][l])
                            for b in range(len(STRIDES))
                            for l in range(len(DILATIONS))]),      # (12, D, 3D)
        "b_dil": jnp.stack([p["b_dil"][b][l][:, None]
                            for b in range(len(STRIDES))
                            for l in range(len(DILATIONS))]),      # (12, D, 1)
        "w_ds": jnp.stack([cat(w) for w in p["w_ds"]]),            # (4, D, 3D)
        "b_ds": jnp.stack([b[:, None] for b in p["b_ds"]]),        # (4, D, 1)
        "w_fin": cat(p["w_fin"]),                                  # (D, 3D)
        "b_fin": p["b_fin"][:, None],                              # (D, 1)
    }


# ----------------------------- pure-JAX reference ----------------------------
def _conv1d_ref(x, w, b, *, stride=1, padding=(0, 0), dilation=1):
    y = jax.lax.conv_general_dilated(
        x, w, window_strides=(stride,), padding=[padding],
        rhs_dilation=(dilation,),
        dimension_numbers=("NCH", "OIH", "NCH"),
        precision=jax.lax.Precision.HIGHEST)
    return y + b[None, :, None]


def seanet_encoder_ref(x, p):
    h = _conv1d_ref(x, p["w_in"], p["b_in"], padding=(1, 1))
    for blk, stride in enumerate(STRIDES):
        for lyr, d in enumerate(DILATIONS):
            res = h
            h = _conv1d_ref(h, p["w_dil"][blk][lyr], p["b_dil"][blk][lyr],
                            padding=(d, d), dilation=d)
            h = jax.nn.silu(h) + res
        h = _conv1d_ref(h, p["w_ds"][blk], p["b_ds"][blk],
                        stride=stride, padding=(1, 1))
    h = _conv1d_ref(h, p["w_fin"], p["b_fin"], stride=2, padding=(2, 2))
    return jnp.transpose(h, (0, 2, 1))


# ---------------------------------- main --------------------------------------
if __name__ == "__main__":
    key = jax.random.PRNGKey(0)
    kx, kparams_key = jax.random.split(key)
    x = jax.random.normal(kx, (BATCH, 1, T_IN), jnp.float32)

    params = make_params(kparams_key)
    kparams = pack_kernel_params(params)

    out = jax.block_until_ready(seanet_encoder(x, kparams))

    ref = seanet_encoder_ref(x, params)
    assert out.shape == ref.shape, (out.shape, ref.shape)
    assert jnp.allclose(out, ref, atol=1e-3, rtol=1e-3), "mismatch vs reference"

    print("KERNEL_OK")
</pallas_src>

<mosaic_0001>
module attributes {stable_mosaic.version = 11 : i64} {
  func.func @seanet_encoder_kernel(%arg0: i32, %arg1: memref<1x1x960xf32, #tpu.memory_space<vmem>>, %arg2: memref<32x3xf32, #tpu.memory_space<vmem>>, %arg3: memref<32x1xf32, #tpu.memory_space<vmem>>, %arg4: memref<12x32x96xf32, #tpu.memory_space<vmem>>, %arg5: memref<12x32x1xf32, #tpu.memory_space<vmem>>, %arg6: memref<4x32x96xf32, #tpu.memory_space<vmem>>, %arg7: memref<4x32x1xf32, #tpu.memory_space<vmem>>, %arg8: memref<32x96xf32, #tpu.memory_space<vmem>>, %arg9: memref<32x1xf32, #tpu.memory_space<vmem>>, %arg10: memref<1x32x2xf32, #tpu.memory_space<vmem>>) attributes {dimension_semantics = [#tpu.dimension_semantics<parallel>], iteration_bounds = array<i64: 2>, scalar_prefetch = 0 : i64, scratch_operands = 0 : i64, tpu.core_type = #tpu.core_type<tc>, window_params = [{transform_indices = @transform_0, window_bounds = array<i64: 1, 1, 960>}, {pipeline_mode = #tpu.pipeline_mode<synchronous>, transform_indices = @transform_1, window_bounds = array<i64: 32, 3>}, {pipeline_mode = #tpu.pipeline_mode<synchronous>, transform_indices = @transform_2, window_bounds = array<i64: 32, 1>}, {pipeline_mode = #tpu.pipeline_mode<synchronous>, transform_indices = @transform_3, window_bounds = array<i64: 12, 32, 96>}, {pipeline_mode = #tpu.pipeline_mode<synchronous>, transform_indices = @transform_4, window_bounds = array<i64: 12, 32, 1>}, {pipeline_mode = #tpu.pipeline_mode<synchronous>, transform_indices = @transform_5, window_bounds = array<i64: 4, 32, 96>}, {pipeline_mode = #tpu.pipeline_mode<synchronous>, transform_indices = @transform_6, window_bounds = array<i64: 4, 32, 1>}, {pipeline_mode = #tpu.pipeline_mode<synchronous>, transform_indices = @transform_7, window_bounds = array<i64: 32, 96>}, {pipeline_mode = #tpu.pipeline_mode<synchronous>, transform_indices = @transform_8, window_bounds = array<i64: 32, 1>}, {transform_indices = @transform_9, window_bounds = array<i64: 1, 32, 2>}]} {
    %c0 = arith.constant 0 : index
    %c0_0 = arith.constant 0 : index
    %c0_1 = arith.constant 0 : index
    %0 = vector.load %arg1[%c0, %c0_0, %c0_1] : memref<1x1x960xf32, #tpu.memory_space<vmem>>, vector<1x1x960xf32>
    %1 = vector.shape_cast %0 : vector<1x1x960xf32> to vector<1x960xf32>
    %cst = arith.constant 0.000000e+00 : f32
    %2 = vector.broadcast %cst : f32 to vector<1x1xf32>
    %cst_2 = arith.constant 0.000000e+00 : f32
    %3 = vector.broadcast %cst_2 : f32 to vector<1x1xf32>
    %4 = tpu.concatenate %2, %1, %3 in 1 : vector<1x1xf32>, vector<1x960xf32>, vector<1x1xf32> -> vector<1x962xf32>
    %c0_3 = arith.constant 0 : index
    %c0_4 = arith.constant 0 : index
    %5 = vector.load %arg2[%c0_3, %c0_4] : memref<32x3xf32, #tpu.memory_space<vmem>>, vector<32x3xf32>
    %c0_5 = arith.constant 0 : index
    %c0_6 = arith.constant 0 : index
    %6 = vector.load %arg3[%c0_5, %c0_6] : memref<32x1xf32, #tpu.memory_space<vmem>>, vector<32x1xf32>
    %7 = vector.extract_strided_slice %4 {offsets = [0, 0], sizes = [1, 960], strides = [1, 1]} : vector<1x962xf32> to vector<1x960xf32>
    %8 = vector.extract_strided_slice %4 {offsets = [0, 1], sizes = [1, 960], strides = [1, 1]} : vector<1x962xf32> to vector<1x960xf32>
    %9 = vector.extract_strided_slice %4 {offsets = [0, 2], sizes = [1, 960], strides = [1, 1]} : vector<1x962xf32> to vector<1x960xf32>
    %10 = tpu.concatenate %7, %8, %9 in 0 : vector<1x960xf32>, vector<1x960xf32>, vector<1x960xf32> -> vector<3x960xf32>
    %cst_7 = arith.constant dense<0.000000e+00> : vector<32x960xf32>
    %11 = tpu.matmul %5, %10, %cst_7 {dimension_numbers = #tpu.dot_dimension_numbers<[1], [0], [0], [1], [0, 0, 1, 1], [], []>} : vector<32x3xf32>, vector<3x960xf32>, vector<32x960xf32> -> vector<32x960xf32>
    %12 = vector.broadcast %6 : vector<32x1xf32> to vector<32x960xf32>
    %13 = arith.addf %11, %12 : vector<32x960xf32>
    %cst_8 = arith.constant 0.000000e+00 : f32
    %14 = vector.broadcast %cst_8 : f32 to vector<32x1xf32>
    %cst_9 = arith.constant 0.000000e+00 : f32
    %15 = vector.broadcast %cst_9 : f32 to vector<32x1xf32>
    %16 = tpu.concatenate %14, %13, %15 in 1 : vector<32x1xf32>, vector<32x960xf32>, vector<32x1xf32> -> vector<32x962xf32>
    %c0_10 = arith.constant 0 : index
    %c0_11 = arith.constant 0 : index
    %c0_12 = arith.constant 0 : index
    %17 = vector.load %arg4[%c0_10, %c0_11, %c0_12] : memref<12x32x96xf32, #tpu.memory_space<vmem>>, vector<1x32x96xf32>
    %18 = vector.shape_cast %17 : vector<1x32x96xf32> to vector<32x96xf32>
    %c0_13 = arith.constant 0 : index
    %c0_14 = arith.constant 0 : index
    %c0_15 = arith.constant 0 : index
    %19 = vector.load %arg5[%c0_13, %c0_14, %c0_15] : memref<12x32x1xf32, #tpu.memory_space<vmem>>, vector<1x32x1xf32>
    %20 = vector.shape_cast %19 : vector<1x32x1xf32> to vector<32x1xf32>
    %21 = vector.extract_strided_slice %16 {offsets = [0, 0], sizes = [32, 960], strides = [1, 1]} : vector<32x962xf32> to vector<32x960xf32>
    %22 = vector.extract_strided_slice %16 {offsets = [0, 1], sizes = [32, 960], strides = [1, 1]} : vector<32x962xf32> to vector<32x960xf32>
    %23 = vector.extract_strided_slice %16 {offsets = [0, 2], sizes = [32, 960], strides = [1, 1]} : vector<32x962xf32> to vector<32x960xf32>
    %24 = tpu.concatenate %21, %22, %23 in 0 : vector<32x960xf32>, vector<32x960xf32>, vector<32x960xf32> -> vector<96x960xf32>
    %cst_16 = arith.constant dense<0.000000e+00> : vector<32x960xf32>
    %25 = tpu.matmul %18, %24, %cst_16 {dimension_numbers = #tpu.dot_dimension_numbers<[1], [0], [0], [1], [0, 0, 1, 1], [], []>} : vector<32x96xf32>, vector<96x960xf32>, vector<32x960xf32> -> vector<32x960xf32>
    %26 = vector.broadcast %20 : vector<32x1xf32> to vector<32x960xf32>
    %27 = arith.addf %25, %26 : vector<32x960xf32>
    %28 = arith.negf %27 : vector<32x960xf32>
    %29 = math.exp %28 : vector<32x960xf32>
    %cst_17 = arith.constant 1.000000e+00 : f32
    %30 = vector.broadcast %cst_17 : f32 to vector<32x960xf32>
    %31 = arith.addf %30, %29 : vector<32x960xf32>
    %32 = arith.divf %30, %31 : vector<32x960xf32>
    %33 = arith.mulf %27, %32 : vector<32x960xf32>
    %34 = arith.addf %33, %13 : vector<32x960xf32>
    %cst_18 = arith.constant 0.000000e+00 : f32
    %35 = vector.broadcast %cst_18 : f32 to vector<32x2xf32>
    %cst_19 = arith.constant 0.000000e+00 : f32
    %36 = vector.broadcast %cst_19 : f32 to vector<32x2xf32>
    %37 = tpu.concatenate %35, %34, %36 in 1 : vector<32x2xf32>, vector<32x960xf32>, vector<32x2xf32> -> vector<32x964xf32>
    %c1 = arith.constant 1 : index
    %c0_20 = arith.constant 0 : index
    %c0_21 = arith.constant 0 : index
    %38 = vector.load %arg4[%c1, %c0_20, %c0_21] : memref<12x32x96xf32, #tpu.memory_space<vmem>>, vector<1x32x96xf32>
    %39 = vector.shape_cast %38 : vector<1x32x96xf32> to vector<32x96xf32>
    %c1_22 = arith.constant 1 : index
    %c0_23 = arith.constant 0 : index
    %c0_24 = arith.constant 0 : index
    %40 = vector.load %arg5[%c1_22, %c0_23, %c0_24] : memref<12x32x1xf32, #tpu.memory_space<vmem>>, vector<1x32x1xf32>
    %41 = vector.shape_cast %40 : vector<1x32x1xf32> to vector<32x1xf32>
    %42 = vector.extract_strided_slice %37 {offsets = [0, 0], sizes = [32, 960], strides = [1, 1]} : vector<32x964xf32> to vector<32x960xf32>
    %43 = vector.extract_strided_slice %37 {offsets = [0, 2], sizes = [32, 960], strides = [1, 1]} : vector<32x964xf32> to vector<32x960xf32>
    %44 = vector.extract_strided_slice %37 {offsets = [0, 4], sizes = [32, 960], strides = [1, 1]} : vector<32x964xf32> to vector<32x960xf32>
    %45 = tpu.concatenate %42, %43, %44 in 0 : vector<32x960xf32>, vector<32x960xf32>, vector<32x960xf32> -> vector<96x960xf32>
    %cst_25 = arith.constant dense<0.000000e+00> : vector<32x960xf32>
    %46 = tpu.matmul %39, %45, %cst_25 {dimension_numbers = #tpu.dot_dimension_numbers<[1], [0], [0], [1], [0, 0, 1, 1], [], []>} : vector<32x96xf32>, vector<96x960xf32>, vector<32x960xf32> -> vector<32x960xf32>
    %47 = vector.broadcast %41 : vector<32x1xf32> to vector<32x960xf32>
    %48 = arith.addf %46, %47 : vector<32x960xf32>
    %49 = arith.negf %48 : vector<32x960xf32>
    %50 = math.exp %49 : vector<32x960xf32>
    %cst_26 = arith.constant 1.000000e+00 : f32
    %51 = vector.broadcast %cst_26 : f32 to vector<32x960xf32>
    %52 = arith.addf %51, %50 : vector<32x960xf32>
    %53 = arith.divf %51, %52 : vector<32x960xf32>
    %54 = arith.mulf %48, %53 : vector<32x960xf32>
    %55 = arith.addf %54, %34 : vector<32x960xf32>
    %cst_27 = arith.constant 0.000000e+00 : f32
    %56 = vector.broadcast %cst_27 : f32 to vector<32x4xf32>
    %cst_28 = arith.constant 0.000000e+00 : f32
    %57 = vector.broadcast %cst_28 : f32 to vector<32x4xf32>
    %58 = tpu.concatenate %56, %55, %57 in 1 : vector<32x4xf32>, vector<32x960xf32>, vector<32x4xf32> -> vector<32x968xf32>
    %c2 = arith.constant 2 : index
    %c0_29 = arith.constant 0 : index
    %c0_30 = arith.constant 0 : index
    %59 = vector.load %arg4[%c2, %c0_29, %c0_30] : memref<12x32x96xf32, #tpu.memory_space<vmem>>, vector<1x32x96xf32>
    %60 = vector.shape_cast %59 : vector<1x32x96xf32> to vector<32x96xf32>
    %c2_31 = arith.constant 2 : index
    %c0_32 = arith.constant 0 : index
    %c0_33 = arith.constant 0 : index
    %61 = vector.load %arg5[%c2_31, %c0_32, %c0_33] : memref<12x32x1xf32, #tpu.memory_space<vmem>>, vector<1x32x1xf32>
    %62 = vector.shape_cast %61 : vector<1x32x1xf32> to vector<32x1xf32>
    %63 = vector.extract_strided_slice %58 {offsets = [0, 0], sizes = [32, 960], strides = [1, 1]} : vector<32x968xf32> to vector<32x960xf32>
    %64 = vector.extract_strided_slice %58 {offsets = [0, 4], sizes = [32, 960], strides = [1, 1]} : vector<32x968xf32> to vector<32x960xf32>
    %65 = vector.extract_strided_slice %58 {offsets = [0, 8], sizes = [32, 960], strides = [1, 1]} : vector<32x968xf32> to vector<32x960xf32>
    %66 = tpu.concatenate %63, %64, %65 in 0 : vector<32x960xf32>, vector<32x960xf32>, vector<32x960xf32> -> vector<96x960xf32>
    %cst_34 = arith.constant dense<0.000000e+00> : vector<32x960xf32>
    %67 = tpu.matmul %60, %66, %cst_34 {dimension_numbers = #tpu.dot_dimension_numbers<[1], [0], [0], [1], [0, 0, 1, 1], [], []>} : vector<32x96xf32>, vector<96x960xf32>, vector<32x960xf32> -> vector<32x960xf32>
    %68 = vector.broadcast %62 : vector<32x1xf32> to vector<32x960xf32>
    %69 = arith.addf %67, %68 : vector<32x960xf32>
    %70 = arith.negf %69 : vector<32x960xf32>
    %71 = math.exp %70 : vector<32x960xf32>
    %cst_35 = arith.constant 1.000000e+00 : f32
    %72 = vector.broadcast %cst_35 : f32 to vector<32x960xf32>
    %73 = arith.addf %72, %71 : vector<32x960xf32>
    %74 = arith.divf %72, %73 : vector<32x960xf32>
    %75 = arith.mulf %69, %74 : vector<32x960xf32>
    %76 = arith.addf %75, %55 : vector<32x960xf32>
    %cst_36 = arith.constant 0.000000e+00 : f32
    %77 = vector.broadcast %cst_36 : f32 to vector<32x1xf32>
    %cst_37 = arith.constant 0.000000e+00 : f32
    %78 = vector.broadcast %cst_37 : f32 to vector<32x1xf32>
    %79 = tpu.concatenate %77, %76, %78 in 1 : vector<32x1xf32>, vector<32x960xf32>, vector<32x1xf32> -> vector<32x962xf32>
    %c0_38 = arith.constant 0 : index
    %c0_39 = arith.constant 0 : index
    %c0_40 = arith.constant 0 : index
    %80 = vector.load %arg6[%c0_38, %c0_39, %c0_40] : memref<4x32x96xf32, #tpu.memory_space<vmem>>, vector<1x32x96xf32>
    %81 = vector.shape_cast %80 : vector<1x32x96xf32> to vector<32x96xf32>
    %c0_41 = arith.constant 0 : index
    %c0_42 = arith.constant 0 : index
    %c0_43 = arith.constant 0 : index
    %82 = vector.load %arg7[%c0_41, %c0_42, %c0_43] : memref<4x32x1xf32, #tpu.memory_space<vmem>>, vector<1x32x1xf32>
    %83 = vector.shape_cast %82 : vector<1x32x1xf32> to vector<32x1xf32>
    %84 = vector.extract_strided_slice %79 {offsets = [0, 0], sizes = [32, 960], strides = [1, 1]} : vector<32x962xf32> to vector<32x960xf32>
    %85 = vector.extract_strided_slice %79 {offsets = [0, 1], sizes = [32, 960], strides = [1, 1]} : vector<32x962xf32> to vector<32x960xf32>
    %86 = vector.extract_strided_slice %79 {offsets = [0, 2], sizes = [32, 960], strides = [1, 1]} : vector<32x962xf32> to vector<32x960xf32>
    %87 = tpu.concatenate %84, %85, %86 in 0 : vector<32x960xf32>, vector<32x960xf32>, vector<32x960xf32> -> vector<96x960xf32>
    %cst_44 = arith.constant dense<0.000000e+00> : vector<32x960xf32>
    %88 = tpu.matmul %81, %87, %cst_44 {dimension_numbers = #tpu.dot_dimension_numbers<[1], [0], [0], [1], [0, 0, 1, 1], [], []>} : vector<32x96xf32>, vector<96x960xf32>, vector<32x960xf32> -> vector<32x960xf32>
    %89 = vector.broadcast %83 : vector<32x1xf32> to vector<32x960xf32>
    %90 = arith.addf %88, %89 : vector<32x960xf32>
    %91 = tpu.iota {dimensions = array<i32: 0>} : vector<960x240xi32>
    %92 = tpu.iota {dimensions = array<i32: 1>} : vector<960x240xi32>
    %c4_i32 = arith.constant 4 : i32
    %93 = vector.broadcast %c4_i32 : i32 to vector<960x240xi32>
    %94 = arith.muli %92, %93 : vector<960x240xi32>
    %95 = arith.cmpi eq, %91, %94 : vector<960x240xi32>
    %96 = arith.extui %95 : vector<960x240xi1> to vector<960x240xi32>
    %97 = arith.sitofp %96 : vector<960x240xi32> to vector<960x240xf32>
    %cst_45 = arith.constant dense<0.000000e+00> : vector<32x240xf32>
    %98 = tpu.matmul %90, %97, %cst_45 {dimension_numbers = #tpu.dot_dimension_numbers<[1], [0], [0], [1], [0, 0, 1, 1], [], []>} : vector<32x960xf32>, vector<960x240xf32>, vector<32x240xf32> -> vector<32x240xf32>
    %cst_46 = arith.constant 0.000000e+00 : f32
    %99 = vector.broadcast %cst_46 : f32 to vector<32x1xf32>
    %cst_47 = arith.constant 0.000000e+00 : f32
    %100 = vector.broadcast %cst_47 : f32 to vector<32x1xf32>
    %101 = tpu.concatenate %99, %98, %100 in 1 : vector<32x1xf32>, vector<32x240xf32>, vector<32x1xf32> -> vector<32x242xf32>
    %c3 = arith.constant 3 : index
    %c0_48 = arith.constant 0 : index
    %c0_49 = arith.constant 0 : index
    %102 = vector.load %arg4[%c3, %c0_48, %c0_49] : memref<12x32x96xf32, #tpu.memory_space<vmem>>, vector<1x32x96xf32>
    %103 = vector.shape_cast %102 : vector<1x32x96xf32> to vector<32x96xf32>
    %c3_50 = arith.constant 3 : index
    %c0_51 = arith.constant 0 : index
    %c0_52 = arith.constant 0 : index
    %104 = vector.load %arg5[%c3_50, %c0_51, %c0_52] : memref<12x32x1xf32, #tpu.memory_space<vmem>>, vector<1x32x1xf32>
    %105 = vector.shape_cast %104 : vector<1x32x1xf32> to vector<32x1xf32>
    %106 = vector.extract_strided_slice %101 {offsets = [0, 0], sizes = [32, 240], strides = [1, 1]} : vector<32x242xf32> to vector<32x240xf32>
    %107 = vector.extract_strided_slice %101 {offsets = [0, 1], sizes = [32, 240], strides = [1, 1]} : vector<32x242xf32> to vector<32x240xf32>
    %108 = vector.extract_strided_slice %101 {offsets = [0, 2], sizes = [32, 240], strides = [1, 1]} : vector<32x242xf32> to vector<32x240xf32>
    %109 = tpu.concatenate %106, %107, %108 in 0 : vector<32x240xf32>, vector<32x240xf32>, vector<32x240xf32> -> vector<96x240xf32>
    %cst_53 = arith.constant dense<0.000000e+00> : vector<32x240xf32>
    %110 = tpu.matmul %103, %109, %cst_53 {dimension_numbers = #tpu.dot_dimension_numbers<[1], [0], [0], [1], [0, 0, 1, 1], [], []>} : vector<32x96xf32>, vector<96x240xf32>, vector<32x240xf32> -> vector<32x240xf32>
    %111 = vector.broadcast %105 : vector<32x1xf32> to vector<32x240xf32>
    %112 = arith.addf %110, %111 : vector<32x240xf32>
    %113 = arith.negf %112 : vector<32x240xf32>
    %114 = math.exp %113 : vector<32x240xf32>
    %cst_54 = arith.constant 1.000000e+00 : f32
    %115 = vector.broadcast %cst_54 : f32 to vector<32x240xf32>
    %116 = arith.addf %115, %114 : vector<32x240xf32>
    %117 = arith.divf %115, %116 : vector<32x240xf32>
    %118 = arith.mulf %112, %117 : vector<32x240xf32>
    %119 = arith.addf %118, %98 : vector<32x240xf32>
    %cst_55 = arith.constant 0.000000e+00 : f32
    %120 = vector.broadcast %cst_55 : f32 to vector<32x2xf32>
    %cst_56 = arith.constant 0.000000e+00 : f32
    %121 = vector.broadcast %cst_56 : f32 to vector<32x2xf32>
    %122 = tpu.concatenate %120, %119, %121 in 1 : vector<32x2xf32>, vector<32x240xf32>, vector<32x2xf32> -> vector<32x244xf32>
    %c4 = arith.constant 4 : index
    %c0_57 = arith.constant 0 : index
    %c0_58 = arith.constant 0 : index
    %123 = vector.load %arg4[%c4, %c0_57, %c0_58] : memref<12x32x96xf32, #tpu.memory_space<vmem>>, vector<1x32x96xf32>
    %124 = vector.shape_cast %123 : vector<1x32x96xf32> to vector<32x96xf32>
    %c4_59 = arith.constant 4 : index
    %c0_60 = arith.constant 0 : index
    %c0_61 = arith.constant 0 : index
    %125 = vector.load %arg5[%c4_59, %c0_60, %c0_61] : memref<12x32x1xf32, #tpu.memory_space<vmem>>, vector<1x32x1xf32>
    %126 = vector.shape_cast %125 : vector<1x32x1xf32> to vector<32x1xf32>
    %127 = vector.extract_strided_slice %122 {offsets = [0, 0], sizes = [32, 240], strides = [1, 1]} : vector<32x244xf32> to vector<32x240xf32>
    %128 = vector.extract_strided_slice %122 {offsets = [0, 2], sizes = [32, 240], strides = [1, 1]} : vector<32x244xf32> to vector<32x240xf32>
    %129 = vector.extract_strided_slice %122 {offsets = [0, 4], sizes = [32, 240], strides = [1, 1]} : vector<32x244xf32> to vector<32x240xf32>
    %130 = tpu.concatenate %127, %128, %129 in 0 : vector<32x240xf32>, vector<32x240xf32>, vector<32x240xf32> -> vector<96x240xf32>
    %cst_62 = arith.constant dense<0.000000e+00> : vector<32x240xf32>
    %131 = tpu.matmul %124, %130, %cst_62 {dimension_numbers = #tpu.dot_dimension_numbers<[1], [0], [0], [1], [0, 0, 1, 1], [], []>} : vector<32x96xf32>, vector<96x240xf32>, vector<32x240xf32> -> vector<32x240xf32>
    %132 = vector.broadcast %126 : vector<32x1xf32> to vector<32x240xf32>
    %133 = arith.addf %131, %132 : vector<32x240xf32>
    %134 = arith.negf %133 : vector<32x240xf32>
    %135 = math.exp %134 : vector<32x240xf32>
    %cst_63 = arith.constant 1.000000e+00 : f32
    %136 = vector.broadcast %cst_63 : f32 to vector<32x240xf32>
    %137 = arith.addf %136, %135 : vector<32x240xf32>
    %138 = arith.divf %136, %137 : vector<32x240xf32>
    %139 = arith.mulf %133, %138 : vector<32x240xf32>
    %140 = arith.addf %139, %119 : vector<32x240xf32>
    %cst_64 = arith.constant 0.000000e+00 : f32
    %141 = vector.broadcast %cst_64 : f32 to vector<32x4xf32>
    %cst_65 = arith.constant 0.000000e+00 : f32
    %142 = vector.broadcast %cst_65 : f32 to vector<32x4xf32>
    %143 = tpu.concatenate %141, %140, %142 in 1 : vector<32x4xf32>, vector<32x240xf32>, vector<32x4xf32> -> vector<32x248xf32>
    %c5 = arith.constant 5 : index
    %c0_66 = arith.constant 0 : index
    %c0_67 = arith.constant 0 : index
    %144 = vector.load %arg4[%c5, %c0_66, %c0_67] : memref<12x32x96xf32, #tpu.memory_space<vmem>>, vector<1x32x96xf32>
    %145 = vector.shape_cast %144 : vector<1x32x96xf32> to vector<32x96xf32>
    %c5_68 = arith.constant 5 : index
    %c0_69 = arith.constant 0 : index
    %c0_70 = arith.constant 0 : index
    %146 = vector.load %arg5[%c5_68, %c0_69, %c0_70] : memref<12x32x1xf32, #tpu.memory_space<vmem>>, vector<1x32x1xf32>
    %147 = vector.shape_cast %146 : vector<1x32x1xf32> to vector<32x1xf32>
    %148 = vector.extract_strided_slice %143 {offsets = [0, 0], sizes = [32, 240], strides = [1, 1]} : vector<32x248xf32> to vector<32x240xf32>
    %149 = vector.extract_strided_slice %143 {offsets = [0, 4], sizes = [32, 240], strides = [1, 1]} : vector<32x248xf32> to vector<32x240xf32>
    %150 = vector.extract_strided_slice %143 {offsets = [0, 8], sizes = [32, 240], strides = [1, 1]} : vector<32x248xf32> to vector<32x240xf32>
    %151 = tpu.concatenate %148, %149, %150 in 0 : vector<32x240xf32>, vector<32x240xf32>, vector<32x240xf32> -> vector<96x240xf32>
    %cst_71 = arith.constant dense<0.000000e+00> : vector<32x240xf32>
    %152 = tpu.matmul %145, %151, %cst_71 {dimension_numbers = #tpu.dot_dimension_numbers<[1], [0], [0], [1], [0, 0, 1, 1], [], []>} : vector<32x96xf32>, vector<96x240xf32>, vector<32x240xf32> -> vector<32x240xf32>
    %153 = vector.broadcast %147 : vector<32x1xf32> to vector<32x240xf32>
    %154 = arith.addf %152, %153 : vector<32x240xf32>
    %155 = arith.negf %154 : vector<32x240xf32>
    %156 = math.exp %155 : vector<32x240xf32>
    %cst_72 = arith.constant 1.000000e+00 : f32
    %157 = vector.broadcast %cst_72 : f32 to vector<32x240xf32>
    %158 = arith.addf %157, %156 : vector<32x240xf32>
    %159 = arith.divf %157, %158 : vector<32x240xf32>
    %160 = arith.mulf %154, %159 : vector<32x240xf32>
    %161 = arith.addf %160, %140 : vector<32x240xf32>
    %cst_73 = arith.constant 0.000000e+00 : f32
    %162 = vector.broadcast %cst_73 : f32 to vector<32x1xf32>
    %cst_74 = arith.constant 0.000000e+00 : f32
    %163 = vector.broadcast %cst_74 : f32 to vector<32x1xf32>
    %164 = tpu.concatenate %162, %161, %163 in 1 : vector<32x1xf32>, vector<32x240xf32>, vector<32x1xf32> -> vector<32x242xf32>
    %c1_75 = arith.constant 1 : index
    %c0_76 = arith.constant 0 : index
    %c0_77 = arith.constant 0 : index
    %165 = vector.load %arg6[%c1_75, %c0_76, %c0_77] : memref<4x32x96xf32, #tpu.memory_space<vmem>>, vector<1x32x96xf32>
    %166 = vector.shape_cast %165 : vector<1x32x96xf32> to vector<32x96xf32>
    %c1_78 = arith.constant 1 : index
    %c0_79 = arith.constant 0 : index
    %c0_80 = arith.constant 0 : index
    %167 = vector.load %arg7[%c1_78, %c0_79, %c0_80] : memref<4x32x1xf32, #tpu.memory_space<vmem>>, vector<1x32x1xf32>
    %168 = vector.shape_cast %167 : vector<1x32x1xf32> to vector<32x1xf32>
    %169 = vector.extract_strided_slice %164 {offsets = [0, 0], sizes = [32, 240], strides = [1, 1]} : vector<32x242xf32> to vector<32x240xf32>
    %170 = vector.extract_strided_slice %164 {offsets = [0, 1], sizes = [32, 240], strides = [1, 1]} : vector<32x242xf32> to vector<32x240xf32>
    %171 = vector.extract_strided_slice %164 {offsets = [0, 2], sizes = [32, 240], strides = [1, 1]} : vector<32x242xf32> to vector<32x240xf32>
    %172 = tpu.concatenate %169, %170, %171 in 0 : vector<32x240xf32>, vector<32x240xf32>, vector<32x240xf32> -> vector<96x240xf32>
    %cst_81 = arith.constant dense<0.000000e+00> : vector<32x240xf32>
    %173 = tpu.matmul %166, %172, %cst_81 {dimension_numbers = #tpu.dot_dimension_numbers<[1], [0], [0], [1], [0, 0, 1, 1], [], []>} : vector<32x96xf32>, vector<96x240xf32>, vector<32x240xf32> -> vector<32x240xf32>
    %174 = vector.broadcast %168 : vector<32x1xf32> to vector<32x240xf32>
    %175 = arith.addf %173, %174 : vector<32x240xf32>
    %176 = tpu.iota {dimensions = array<i32: 0>} : vector<240x48xi32>
    %177 = tpu.iota {dimensions = array<i32: 1>} : vector<240x48xi32>
    %c5_i32 = arith.constant 5 : i32
    %178 = vector.broadcast %c5_i32 : i32 to vector<240x48xi32>
    %179 = arith.muli %177, %178 : vector<240x48xi32>
    %180 = arith.cmpi eq, %176, %179 : vector<240x48xi32>
    %181 = arith.extui %180 : vector<240x48xi1> to vector<240x48xi32>
    %182 = arith.sitofp %181 : vector<240x48xi32> to vector<240x48xf32>
    %cst_82 = arith.constant dense<0.000000e+00> : vector<32x48xf32>
    %183 = tpu.matmul %175, %182, %cst_82 {dimension_numbers = #tpu.dot_dimension_numbers<[1], [0], [0], [1], [0, 0, 1, 1], [], []>} : vector<32x240xf32>, vector<240x48xf32>, vector<32x48xf32> -> vector<32x48xf32>
    %cst_83 = arith.constant 0.000000e+00 : f32
    %184 = vector.broadcast %cst_83 : f32 to vector<32x1xf32>
    %cst_84 = arith.constant 0.000000e+00 : f32
    %185 = vector.broadcast %cst_84 : f32 to vector<32x1xf32>
    %186 = tpu.concatenate %184, %183, %185 in 1 : vector<32x1xf32>, vector<32x48xf32>, vector<32x1xf32> -> vector<32x50xf32>
    %c6 = arith.constant 6 : index
    %c0_85 = arith.constant 0 : index
    %c0_86 = arith.constant 0 : index
    %187 = vector.load %arg4[%c6, %c0_85, %c0_86] : memref<12x32x96xf32, #tpu.memory_space<vmem>>, vector<1x32x96xf32>
    %188 = vector.shape_cast %187 : vector<1x32x96xf32> to vector<32x96xf32>
    %c6_87 = arith.constant 6 : index
    %c0_88 = arith.constant 0 : index
    %c0_89 = arith.constant 0 : index
    %189 = vector.load %arg5[%c6_87, %c0_88, %c0_89] : memref<12x32x1xf32, #tpu.memory_space<vmem>>, vector<1x32x1xf32>
    %190 = vector.shape_cast %189 : vector<1x32x1xf32> to vector<32x1xf32>
    %191 = vector.extract_strided_slice %186 {offsets = [0, 0], sizes = [32, 48], strides = [1, 1]} : vector<32x50xf32> to vector<32x48xf32>
    %192 = vector.extract_strided_slice %186 {offsets = [0, 1], sizes = [32, 48], strides = [1, 1]} : vector<32x50xf32> to vector<32x48xf32>
    %193 = vector.extract_strided_slice %186 {offsets = [0, 2], sizes = [32, 48], strides = [1, 1]} : vector<32x50xf32> to vector<32x48xf32>
    %194 = tpu.concatenate %191, %192, %193 in 0 : vector<32x48xf32>, vector<32x48xf32>, vector<32x48xf32> -> vector<96x48xf32>
    %cst_90 = arith.constant dense<0.000000e+00> : vector<32x48xf32>
    %195 = tpu.matmul %188, %194, %cst_90 {dimension_numbers = #tpu.dot_dimension_numbers<[1], [0], [0], [1], [0, 0, 1, 1], [], []>} : vector<32x96xf32>, vector<96x48xf32>, vector<32x48xf32> -> vector<32x48xf32>
    %196 = vector.broadcast %190 : vector<32x1xf32> to vector<32x48xf32>
    %197 = arith.addf %195, %196 : vector<32x48xf32>
    %198 = arith.negf %197 : vector<32x48xf32>
    %199 = math.exp %198 : vector<32x48xf32>
    %cst_91 = arith.constant 1.000000e+00 : f32
    %200 = vector.broadcast %cst_91 : f32 to vector<32x48xf32>
    %201 = arith.addf %200, %199 : vector<32x48xf32>
    %202 = arith.divf %200, %201 : vector<32x48xf32>
    %203 = arith.mulf %197, %202 : vector<32x48xf32>
    %204 = arith.addf %203, %183 : vector<32x48xf32>
    %cst_92 = arith.constant 0.000000e+00 : f32
    %205 = vector.broadcast %cst_92 : f32 to vector<32x2xf32>
    %cst_93 = arith.constant 0.000000e+00 : f32
    %206 = vector.broadcast %cst_93 : f32 to vector<32x2xf32>
    %207 = tpu.concatenate %205, %204, %206 in 1 : vector<32x2xf32>, vector<32x48xf32>, vector<32x2xf32> -> vector<32x52xf32>
    %c7 = arith.constant 7 : index
    %c0_94 = arith.constant 0 : index
    %c0_95 = arith.constant 0 : index
    %208 = vector.load %arg4[%c7, %c0_94, %c0_95] : memref<12x32x96xf32, #tpu.memory_space<vmem>>, vector<1x32x96xf32>
    %209 = vector.shape_cast %208 : vector<1x32x96xf32> to vector<32x96xf32>
    %c7_96 = arith.constant 7 : index
    %c0_97 = arith.constant 0 : index
    %c0_98 = arith.constant 0 : index
    %210 = vector.load %arg5[%c7_96, %c0_97, %c0_98] : memref<12x32x1xf32, #tpu.memory_space<vmem>>, vector<1x32x1xf32>
    %211 = vector.shape_cast %210 : vector<1x32x1xf32> to vector<32x1xf32>
    %212 = vector.extract_strided_slice %207 {offsets = [0, 0], sizes = [32, 48], strides = [1, 1]} : vector<32x52xf32> to vector<32x48xf32>
    %213 = vector.extract_strided_slice %207 {offsets = [0, 2], sizes = [32, 48], strides = [1, 1]} : vector<32x52xf32> to vector<32x48xf32>
    %214 = vector.extract_strided_slice %207 {offsets = [0, 4], sizes = [32, 48], strides = [1, 1]} : vector<32x52xf32> to vector<32x48xf32>
    %215 = tpu.concatenate %212, %213, %214 in 0 : vector<32x48xf32>, vector<32x48xf32>, vector<32x48xf32> -> vector<96x48xf32>
    %cst_99 = arith.constant dense<0.000000e+00> : vector<32x48xf32>
    %216 = tpu.matmul %209, %215, %cst_99 {dimension_numbers = #tpu.dot_dimension_numbers<[1], [0], [0], [1], [0, 0, 1, 1], [], []>} : vector<32x96xf32>, vector<96x48xf32>, vector<32x48xf32> -> vector<32x48xf32>
    %217 = vector.broadcast %211 : vector<32x1xf32> to vector<32x48xf32>
    %218 = arith.addf %216, %217 : vector<32x48xf32>
    %219 = arith.negf %218 : vector<32x48xf32>
    %220 = math.exp %219 : vector<32x48xf32>
    %cst_100 = arith.constant 1.000000e+00 : f32
    %221 = vector.broadcast %cst_100 : f32 to vector<32x48xf32>
    %222 = arith.addf %221, %220 : vector<32x48xf32>
    %223 = arith.divf %221, %222 : vector<32x48xf32>
    %224 = arith.mulf %218, %223 : vector<32x48xf32>
    %225 = arith.addf %224, %204 : vector<32x48xf32>
    %cst_101 = arith.constant 0.000000e+00 : f32
    %226 = vector.broadcast %cst_101 : f32 to vector<32x4xf32>
    %cst_102 = arith.constant 0.000000e+00 : f32
    %227 = vector.broadcast %cst_102 : f32 to vector<32x4xf32>
    %228 = tpu.concatenate %226, %225, %227 in 1 : vector<32x4xf32>, vector<32x48xf32>, vector<32x4xf32> -> vector<32x56xf32>
    %c8 = arith.constant 8 : index
    %c0_103 = arith.constant 0 : index
    %c0_104 = arith.constant 0 : index
    %229 = vector.load %arg4[%c8, %c0_103, %c0_104] : memref<12x32x96xf32, #tpu.memory_space<vmem>>, vector<1x32x96xf32>
    %230 = vector.shape_cast %229 : vector<1x32x96xf32> to vector<32x96xf32>
    %c8_105 = arith.constant 8 : index
    %c0_106 = arith.constant 0 : index
    %c0_107 = arith.constant 0 : index
    %231 = vector.load %arg5[%c8_105, %c0_106, %c0_107] : memref<12x32x1xf32, #tpu.memory_space<vmem>>, vector<1x32x1xf32>
    %232 = vector.shape_cast %231 : vector<1x32x1xf32> to vector<32x1xf32>
    %233 = vector.extract_strided_slice %228 {offsets = [0, 0], sizes = [32, 48], strides = [1, 1]} : vector<32x56xf32> to vector<32x48xf32>
    %234 = vector.extract_strided_slice %228 {offsets = [0, 4], sizes = [32, 48], strides = [1, 1]} : vector<32x56xf32> to vector<32x48xf32>
    %235 = vector.extract_strided_slice %228 {offsets = [0, 8], sizes = [32, 48], strides = [1, 1]} : vector<32x56xf32> to vector<32x48xf32>
    %236 = tpu.concatenate %233, %234, %235 in 0 : vector<32x48xf32>, vector<32x48xf32>, vector<32x48xf32> -> vector<96x48xf32>
    %cst_108 = arith.constant dense<0.000000e+00> : vector<32x48xf32>
    %237 = tpu.matmul %230, %236, %cst_108 {dimension_numbers = #tpu.dot_dimension_numbers<[1], [0], [0], [1], [0, 0, 1, 1], [], []>} : vector<32x96xf32>, vector<96x48xf32>, vector<32x48xf32> -> vector<32x48xf32>
    %238 = vector.broadcast %232 : vector<32x1xf32> to vector<32x48xf32>
    %239 = arith.addf %237, %238 : vector<32x48xf32>
    %240 = arith.negf %239 : vector<32x48xf32>
    %241 = math.exp %240 : vector<32x48xf32>
    %cst_109 = arith.constant 1.000000e+00 : f32
    %242 = vector.broadcast %cst_109 : f32 to vector<32x48xf32>
    %243 = arith.addf %242, %241 : vector<32x48xf32>
    %244 = arith.divf %242, %243 : vector<32x48xf32>
    %245 = arith.mulf %239, %244 : vector<32x48xf32>
    %246 = arith.addf %245, %225 : vector<32x48xf32>
    %cst_110 = arith.constant 0.000000e+00 : f32
    %247 = vector.broadcast %cst_110 : f32 to vector<32x1xf32>
    %cst_111 = arith.constant 0.000000e+00 : f32
    %248 = vector.broadcast %cst_111 : f32 to vector<32x1xf32>
    %249 = tpu.concatenate %247, %246, %248 in 1 : vector<32x1xf32>, vector<32x48xf32>, vector<32x1xf32> -> vector<32x50xf32>
    %c2_112 = arith.constant 2 : index
    %c0_113 = arith.constant 0 : index
    %c0_114 = arith.constant 0 : index
    %250 = vector.load %arg6[%c2_112, %c0_113, %c0_114] : memref<4x32x96xf32, #tpu.memory_space<vmem>>, vector<1x32x96xf32>
    %251 = vector.shape_cast %250 : vector<1x32x96xf32> to vector<32x96xf32>
    %c2_115 = arith.constant 2 : index
    %c0_116 = arith.constant 0 : index
    %c0_117 = arith.constant 0 : index
    %252 = vector.load %arg7[%c2_115, %c0_116, %c0_117] : memref<4x32x1xf32, #tpu.memory_space<vmem>>, vector<1x32x1xf32>
    %253 = vector.shape_cast %252 : vector<1x32x1xf32> to vector<32x1xf32>
    %254 = vector.extract_strided_slice %249 {offsets = [0, 0], sizes = [32, 48], strides = [1, 1]} : vector<32x50xf32> to vector<32x48xf32>
    %255 = vector.extract_strided_slice %249 {offsets = [0, 1], sizes = [32, 48], strides = [1, 1]} : vector<32x50xf32> to vector<32x48xf32>
    %256 = vector.extract_strided_slice %249 {offsets = [0, 2], sizes = [32, 48], strides = [1, 1]} : vector<32x50xf32> to vector<32x48xf32>
    %257 = tpu.concatenate %254, %255, %256 in 0 : vector<32x48xf32>, vector<32x48xf32>, vector<32x48xf32> -> vector<96x48xf32>
    %cst_118 = arith.constant dense<0.000000e+00> : vector<32x48xf32>
    %258 = tpu.matmul %251, %257, %cst_118 {dimension_numbers = #tpu.dot_dimension_numbers<[1], [0], [0], [1], [0, 0, 1, 1], [], []>} : vector<32x96xf32>, vector<96x48xf32>, vector<32x48xf32> -> vector<32x48xf32>
    %259 = vector.broadcast %253 : vector<32x1xf32> to vector<32x48xf32>
    %260 = arith.addf %258, %259 : vector<32x48xf32>
    %261 = tpu.iota {dimensions = array<i32: 0>} : vector<48x8xi32>
    %262 = tpu.iota {dimensions = array<i32: 1>} : vector<48x8xi32>
    %c6_i32 = arith.constant 6 : i32
    %263 = vector.broadcast %c6_i32 : i32 to vector<48x8xi32>
    %264 = arith.muli %262, %263 : vector<48x8xi32>
    %265 = arith.cmpi eq, %261, %264 : vector<48x8xi32>
    %266 = arith.extui %265 : vector<48x8xi1> to vector<48x8xi32>
    %267 = arith.sitofp %266 : vector<48x8xi32> to vector<48x8xf32>
    %cst_119 = arith.constant dense<0.000000e+00> : vector<32x8xf32>
    %268 = tpu.matmul %260, %267, %cst_119 {dimension_numbers = #tpu.dot_dimension_numbers<[1], [0], [0], [1], [0, 0, 1, 1], [], []>} : vector<32x48xf32>, vector<48x8xf32>, vector<32x8xf32> -> vector<32x8xf32>
    %cst_120 = arith.constant 0.000000e+00 : f32
    %269 = vector.broadcast %cst_120 : f32 to vector<32x1xf32>
    %cst_121 = arith.constant 0.000000e+00 : f32
    %270 = vector.broadcast %cst_121 : f32 to vector<32x1xf32>
    %271 = tpu.concatenate %269, %268, %270 in 1 : vector<32x1xf32>, vector<32x8xf32>, vector<32x1xf32> -> vector<32x10xf32>
    %c9 = arith.constant 9 : index
    %c0_122 = arith.constant 0 : index
    %c0_123 = arith.constant 0 : index
    %272 = vector.load %arg4[%c9, %c0_122, %c0_123] : memref<12x32x96xf32, #tpu.memory_space<vmem>>, vector<1x32x96xf32>
    %273 = vector.shape_cast %272 : vector<1x32x96xf32> to vector<32x96xf32>
    %c9_124 = arith.constant 9 : index
    %c0_125 = arith.constant 0 : index
    %c0_126 = arith.constant 0 : index
    %274 = vector.load %arg5[%c9_124, %c0_125, %c0_126] : memref<12x32x1xf32, #tpu.memory_space<vmem>>, vector<1x32x1xf32>
    %275 = vector.shape_cast %274 : vector<1x32x1xf32> to vector<32x1xf32>
    %276 = vector.extract_strided_slice %271 {offsets = [0, 0], sizes = [32, 8], strides = [1, 1]} : vector<32x10xf32> to vector<32x8xf32>
    %277 = vector.extract_strided_slice %271 {offsets = [0, 1], sizes = [32, 8], strides = [1, 1]} : vector<32x10xf32> to vector<32x8xf32>
    %278 = vector.extract_strided_slice %271 {offsets = [0, 2], sizes = [32, 8], strides = [1, 1]} : vector<32x10xf32> to vector<32x8xf32>
    %279 = tpu.concatenate %276, %277, %278 in 0 : vector<32x8xf32>, vector<32x8xf32>, vector<32x8xf32> -> vector<96x8xf32>
    %cst_127 = arith.constant dense<0.000000e+00> : vector<32x8xf32>
    %280 = tpu.matmul %273, %279, %cst_127 {dimension_numbers = #tpu.dot_dimension_numbers<[1], [0], [0], [1], [0, 0, 1, 1], [], []>} : vector<32x96xf32>, vector<96x8xf32>, vector<32x8xf32> -> vector<32x8xf32>
    %281 = vector.broadcast %275 : vector<32x1xf32> to vector<32x8xf32>
    %282 = arith.addf %280, %281 : vector<32x8xf32>
    %283 = arith.negf %282 : vector<32x8xf32>
    %284 = math.exp %283 : vector<32x8xf32>
    %cst_128 = arith.constant 1.000000e+00 : f32
    %285 = vector.broadcast %cst_128 : f32 to vector<32x8xf32>
    %286 = arith.addf %285, %284 : vector<32x8xf32>
    %287 = arith.divf %285, %286 : vector<32x8xf32>
    %288 = arith.mulf %282, %287 : vector<32x8xf32>
    %289 = arith.addf %288, %268 : vector<32x8xf32>
    %cst_129 = arith.constant 0.000000e+00 : f32
    %290 = vector.broadcast %cst_129 : f32 to vector<32x2xf32>
    %cst_130 = arith.constant 0.000000e+00 : f32
    %291 = vector.broadcast %cst_130 : f32 to vector<32x2xf32>
    %292 = tpu.concatenate %290, %289, %291 in 1 : vector<32x2xf32>, vector<32x8xf32>, vector<32x2xf32> -> vector<32x12xf32>
    %c10 = arith.constant 10 : index
    %c0_131 = arith.constant 0 : index
    %c0_132 = arith.constant 0 : index
    %293 = vector.load %arg4[%c10, %c0_131, %c0_132] : memref<12x32x96xf32, #tpu.memory_space<vmem>>, vector<1x32x96xf32>
    %294 = vector.shape_cast %293 : vector<1x32x96xf32> to vector<32x96xf32>
    %c10_133 = arith.constant 10 : index
    %c0_134 = arith.constant 0 : index
    %c0_135 = arith.constant 0 : index
    %295 = vector.load %arg5[%c10_133, %c0_134, %c0_135] : memref<12x32x1xf32, #tpu.memory_space<vmem>>, vector<1x32x1xf32>
    %296 = vector.shape_cast %295 : vector<1x32x1xf32> to vector<32x1xf32>
    %297 = vector.extract_strided_slice %292 {offsets = [0, 0], sizes = [32, 8], strides = [1, 1]} : vector<32x12xf32> to vector<32x8xf32>
    %298 = vector.extract_strided_slice %292 {offsets = [0, 2], sizes = [32, 8], strides = [1, 1]} : vector<32x12xf32> to vector<32x8xf32>
    %299 = vector.extract_strided_slice %292 {offsets = [0, 4], sizes = [32, 8], strides = [1, 1]} : vector<32x12xf32> to vector<32x8xf32>
    %300 = tpu.concatenate %297, %298, %299 in 0 : vector<32x8xf32>, vector<32x8xf32>, vector<32x8xf32> -> vector<96x8xf32>
    %cst_136 = arith.constant dense<0.000000e+00> : vector<32x8xf32>
    %301 = tpu.matmul %294, %300, %cst_136 {dimension_numbers = #tpu.dot_dimension_numbers<[1], [0], [0], [1], [0, 0, 1, 1], [], []>} : vector<32x96xf32>, vector<96x8xf32>, vector<32x8xf32> -> vector<32x8xf32>
    %302 = vector.broadcast %296 : vector<32x1xf32> to vector<32x8xf32>
    %303 = arith.addf %301, %302 : vector<32x8xf32>
    %304 = arith.negf %303 : vector<32x8xf32>
    %305 = math.exp %304 : vector<32x8xf32>
    %cst_137 = arith.constant 1.000000e+00 : f32
    %306 = vector.broadcast %cst_137 : f32 to vector<32x8xf32>
    %307 = arith.addf %306, %305 : vector<32x8xf32>
    %308 = arith.divf %306, %307 : vector<32x8xf32>
    %309 = arith.mulf %303, %308 : vector<32x8xf32>
    %310 = arith.addf %309, %289 : vector<32x8xf32>
    %cst_138 = arith.constant 0.000000e+00 : f32
    %311 = vector.broadcast %cst_138 : f32 to vector<32x4xf32>
    %cst_139 = arith.constant 0.000000e+00 : f32
    %312 = vector.broadcast %cst_139 : f32 to vector<32x4xf32>
    %313 = tpu.concatenate %311, %310, %312 in 1 : vector<32x4xf32>, vector<32x8xf32>, vector<32x4xf32> -> vector<32x16xf32>
    %c11 = arith.constant 11 : index
    %c0_140 = arith.constant 0 : index
    %c0_141 = arith.constant 0 : index
    %314 = vector.load %arg4[%c11, %c0_140, %c0_141] : memref<12x32x96xf32, #tpu.memory_space<vmem>>, vector<1x32x96xf32>
    %315 = vector.shape_cast %314 : vector<1x32x96xf32> to vector<32x96xf32>
    %c11_142 = arith.constant 11 : index
    %c0_143 = arith.constant 0 : index
    %c0_144 = arith.constant 0 : index
    %316 = vector.load %arg5[%c11_142, %c0_143, %c0_144] : memref<12x32x1xf32, #tpu.memory_space<vmem>>, vector<1x32x1xf32>
    %317 = vector.shape_cast %316 : vector<1x32x1xf32> to vector<32x1xf32>
    %318 = vector.extract_strided_slice %313 {offsets = [0, 0], sizes = [32, 8], strides = [1, 1]} : vector<32x16xf32> to vector<32x8xf32>
    %319 = vector.extract_strided_slice %313 {offsets = [0, 4], sizes = [32, 8], strides = [1, 1]} : vector<32x16xf32> to vector<32x8xf32>
    %320 = vector.extract_strided_slice %313 {offsets = [0, 8], sizes = [32, 8], strides = [1, 1]} : vector<32x16xf32> to vector<32x8xf32>
    %321 = tpu.concatenate %318, %319, %320 in 0 : vector<32x8xf32>, vector<32x8xf32>, vector<32x8xf32> -> vector<96x8xf32>
    %cst_145 = arith.constant dense<0.000000e+00> : vector<32x8xf32>
    %322 = tpu.matmul %315, %321, %cst_145 {dimension_numbers = #tpu.dot_dimension_numbers<[1], [0], [0], [1], [0, 0, 1, 1], [], []>} : vector<32x96xf32>, vector<96x8xf32>, vector<32x8xf32> -> vector<32x8xf32>
    %323 = vector.broadcast %317 : vector<32x1xf32> to vector<32x8xf32>
    %324 = arith.addf %322, %323 : vector<32x8xf32>
    %325 = arith.negf %324 : vector<32x8xf32>
    %326 = math.exp %325 : vector<32x8xf32>
    %cst_146 = arith.constant 1.000000e+00 : f32
    %327 = vector.broadcast %cst_146 : f32 to vector<32x8xf32>
    %328 = arith.addf %327, %326 : vector<32x8xf32>
    %329 = arith.divf %327, %328 : vector<32x8xf32>
    %330 = arith.mulf %324, %329 : vector<32x8xf32>
    %331 = arith.addf %330, %310 : vector<32x8xf32>
    %cst_147 = arith.constant 0.000000e+00 : f32
    %332 = vector.broadcast %cst_147 : f32 to vector<32x1xf32>
    %cst_148 = arith.constant 0.000000e+00 : f32
    %333 = vector.broadcast %cst_148 : f32 to vector<32x1xf32>
    %334 = tpu.concatenate %332, %331, %333 in 1 : vector<32x1xf32>, vector<32x8xf32>, vector<32x1xf32> -> vector<32x10xf32>
    %c3_149 = arith.constant 3 : index
    %c0_150 = arith.constant 0 : index
    %c0_151 = arith.constant 0 : index
    %335 = vector.load %arg6[%c3_149, %c0_150, %c0_151] : memref<4x32x96xf32, #tpu.memory_space<vmem>>, vector<1x32x96xf32>
    %336 = vector.shape_cast %335 : vector<1x32x96xf32> to vector<32x96xf32>
    %c3_152 = arith.constant 3 : index
    %c0_153 = arith.constant 0 : index
    %c0_154 = arith.constant 0 : index
    %337 = vector.load %arg7[%c3_152, %c0_153, %c0_154] : memref<4x32x1xf32, #tpu.memory_space<vmem>>, vector<1x32x1xf32>
    %338 = vector.shape_cast %337 : vector<1x32x1xf32> to vector<32x1xf32>
    %339 = vector.extract_strided_slice %334 {offsets = [0, 0], sizes = [32, 8], strides = [1, 1]} : vector<32x10xf32> to vector<32x8xf32>
    %340 = vector.extract_strided_slice %334 {offsets = [0, 1], sizes = [32, 8], strides = [1, 1]} : vector<32x10xf32> to vector<32x8xf32>
    %341 = vector.extract_strided_slice %334 {offsets = [0, 2], sizes = [32, 8], strides = [1, 1]} : vector<32x10xf32> to vector<32x8xf32>
    %342 = tpu.concatenate %339, %340, %341 in 0 : vector<32x8xf32>, vector<32x8xf32>, vector<32x8xf32> -> vector<96x8xf32>
    %cst_155 = arith.constant dense<0.000000e+00> : vector<32x8xf32>
    %343 = tpu.matmul %336, %342, %cst_155 {dimension_numbers = #tpu.dot_dimension_numbers<[1], [0], [0], [1], [0, 0, 1, 1], [], []>} : vector<32x96xf32>, vector<96x8xf32>, vector<32x8xf32> -> vector<32x8xf32>
    %344 = vector.broadcast %338 : vector<32x1xf32> to vector<32x8xf32>
    %345 = arith.addf %343, %344 : vector<32x8xf32>
    %346 = tpu.iota {dimensions = array<i32: 0>} : vector<8x1xi32>
    %347 = tpu.iota {dimensions = array<i32: 1>} : vector<8x1xi32>
    %c8_i32 = arith.constant 8 : i32
    %348 = vector.broadcast %c8_i32 : i32 to vector<8x1xi32>
    %349 = arith.muli %347, %348 : vector<8x1xi32>
    %350 = arith.cmpi eq, %346, %349 : vector<8x1xi32>
    %351 = arith.extui %350 : vector<8x1xi1> to vector<8x1xi32>
    %352 = arith.sitofp %351 : vector<8x1xi32> to vector<8x1xf32>
    %cst_156 = arith.constant dense<0.000000e+00> : vector<32x1xf32>
    %353 = tpu.matmul %345, %352, %cst_156 {dimension_numbers = #tpu.dot_dimension_numbers<[1], [0], [0], [1], [0, 0, 1, 1], [], []>} : vector<32x8xf32>, vector<8x1xf32>, vector<32x1xf32> -> vector<32x1xf32>
    %cst_157 = arith.constant 0.000000e+00 : f32
    %354 = vector.broadcast %cst_157 : f32 to vector<32x2xf32>
    %cst_158 = arith.constant 0.000000e+00 : f32
    %355 = vector.broadcast %cst_158 : f32 to vector<32x2xf32>
    %356 = tpu.concatenate %354, %353, %355 in 1 : vector<32x2xf32>, vector<32x1xf32>, vector<32x2xf32> -> vector<32x5xf32>
    %c0_159 = arith.constant 0 : index
    %c0_160 = arith.constant 0 : index
    %357 = vector.load %arg8[%c0_159, %c0_160] : memref<32x96xf32, #tpu.memory_space<vmem>>, vector<32x96xf32>
    %c0_161 = arith.constant 0 : index
    %c0_162 = arith.constant 0 : index
    %358 = vector.load %arg9[%c0_161, %c0_162] : memref<32x1xf32, #tpu.memory_space<vmem>>, vector<32x1xf32>
    %359 = vector.extract_strided_slice %356 {offsets = [0, 0], sizes = [32, 3], strides = [1, 1]} : vector<32x5xf32> to vector<32x3xf32>
    %360 = vector.extract_strided_slice %356 {offsets = [0, 1], sizes = [32, 3], strides = [1, 1]} : vector<32x5xf32> to vector<32x3xf32>
    %361 = vector.extract_strided_slice %356 {offsets = [0, 2], sizes = [32, 3], strides = [1, 1]} : vector<32x5xf32> to vector<32x3xf32>
    %362 = tpu.concatenate %359, %360, %361 in 0 : vector<32x3xf32>, vector<32x3xf32>, vector<32x3xf32> -> vector<96x3xf32>
    %cst_163 = arith.constant dense<0.000000e+00> : vector<32x3xf32>
    %363 = tpu.matmul %357, %362, %cst_163 {dimension_numbers = #tpu.dot_dimension_numbers<[1], [0], [0], [1], [0, 0, 1, 1], [], []>} : vector<32x96xf32>, vector<96x3xf32>, vector<32x3xf32> -> vector<32x3xf32>
    %364 = vector.broadcast %358 : vector<32x1xf32> to vector<32x3xf32>
    %365 = arith.addf %363, %364 : vector<32x3xf32>
    %366 = tpu.iota {dimensions = array<i32: 0>} : vector<3x2xi32>
    %367 = tpu.iota {dimensions = array<i32: 1>} : vector<3x2xi32>
    %c2_i32 = arith.constant 2 : i32
    %368 = vector.broadcast %c2_i32 : i32 to vector<3x2xi32>
    %369 = arith.muli %367, %368 : vector<3x2xi32>
    %370 = arith.cmpi eq, %366, %369 : vector<3x2xi32>
    %371 = arith.extui %370 : vector<3x2xi1> to vector<3x2xi32>
    %372 = arith.sitofp %371 : vector<3x2xi32> to vector<3x2xf32>
    %cst_164 = arith.constant dense<0.000000e+00> : vector<32x2xf32>
    %373 = tpu.matmul %365, %372, %cst_164 {dimension_numbers = #tpu.dot_dimension_numbers<[1], [0], [0], [1], [0, 0, 1, 1], [], []>} : vector<32x3xf32>, vector<3x2xf32>, vector<32x2xf32> -> vector<32x2xf32>
    %c0_165 = arith.constant 0 : index
    %c0_166 = arith.constant 0 : index
    %c0_167 = arith.constant 0 : index
    %374 = vector.load %arg10[%c0_165, %c0_166, %c0_167] : memref<1x32x2xf32, #tpu.memory_space<vmem>>, vector<1x32x2xf32>
    %375 = vector.shape_cast %374 : vector<1x32x2xf32> to vector<32x2xf32>
    %376 = vector.shape_cast %373 : vector<32x2xf32> to vector<1x32x2xf32>
    tpu.vector_store %arg10[%c0_165, %c0_166, %c0_167], %376 {strides = array<i32>} : memref<1x32x2xf32, #tpu.memory_space<vmem>>, vector<1x32x2xf32>,
    return
  }
  func.func @transform_0(%arg0: i32) -> (i32, i32, i32) {
    %c0_i32 = arith.constant 0 : i32
    %c0_i32_0 = arith.constant 0 : i32
    %c0_i32_1 = arith.constant 0 : i32
    return %arg0, %c0_i32, %c0_i32_0 : i32, i32, i32
  }
  func.func @transform_1(%arg0: i32) -> (i32, i32) {
    %c0_i32 = arith.constant 0 : i32
    %c0_i32_0 = arith.constant 0 : i32
    %c0_i32_1 = arith.constant 0 : i32
    return %c0_i32, %c0_i32_0 : i32, i32
  }
  func.func @transform_2(%arg0: i32) -> (i32, i32) {
    %c0_i32 = arith.constant 0 : i32
    %c0_i32_0 = arith.constant 0 : i32
    %c0_i32_1 = arith.constant 0 : i32
    return %c0_i32, %c0_i32_0 : i32, i32
  }
  func.func @transform_3(%arg0: i32) -> (i32, i32, i32) {
    %c0_i32 = arith.constant 0 : i32
    %c0_i32_0 = arith.constant 0 : i32
    %c0_i32_1 = arith.constant 0 : i32
    %c0_i32_2 = arith.constant 0 : i32
    return %c0_i32, %c0_i32_0, %c0_i32_1 : i32, i32, i32
  }
  func.func @transform_4(%arg0: i32) -> (i32, i32, i32) {
    %c0_i32 = arith.constant 0 : i32
    %c0_i32_0 = arith.constant 0 : i32
    %c0_i32_1 = arith.constant 0 : i32
    %c0_i32_2 = arith.constant 0 : i32
    return %c0_i32, %c0_i32_0, %c0_i32_1 : i32, i32, i32
  }
  func.func @transform_5(%arg0: i32) -> (i32, i32, i32) {
    %c0_i32 = arith.constant 0 : i32
    %c0_i32_0 = arith.constant 0 : i32
    %c0_i32_1 = arith.constant 0 : i32
    %c0_i32_2 = arith.constant 0 : i32
    return %c0_i32, %c0_i32_0, %c0_i32_1 : i32, i32, i32
  }
  func.func @transform_6(%arg0: i32) -> (i32, i32, i32) {
    %c0_i32 = arith.constant 0 : i32
    %c0_i32_0 = arith.constant 0 : i32
    %c0_i32_1 = arith.constant 0 : i32
    %c0_i32_2 = arith.constant 0 : i32
    return %c0_i32, %c0_i32_0, %c0_i32_1 : i32, i32, i32
  }
  func.func @transform_7(%arg0: i32) -> (i32, i32) {
    %c0_i32 = arith.constant 0 : i32
    %c0_i32_0 = arith.constant 0 : i32
    %c0_i32_1 = arith.constant 0 : i32
    return %c0_i32, %c0_i32_0 : i32, i32
  }
  func.func @transform_8(%arg0: i32) -> (i32, i32) {
    %c0_i32 = arith.constant 0 : i32
    %c0_i32_0 = arith.constant 0 : i32
    %c0_i32_1 = arith.constant 0 : i32
    return %c0_i32, %c0_i32_0 : i32, i32
  }
  func.func @transform_9(%arg0: i32) -> (i32, i32, i32) {
    %c0_i32 = arith.constant 0 : i32
    %c0_i32_0 = arith.constant 0 : i32
    %c0_i32_1 = arith.constant 0 : i32
    return %arg0, %c0_i32, %c0_i32_0 : i32, i32, i32
  }
}

</mosaic_0001>

<bundles_post_ra>
// kernel: tpu_custom_call.1
= control target key start
LH: loop header
LB: loop body
LE: loop exit
PB: predicated region body
PF: predicated region fallthrough
CT: control target
= control target key end

     0   :  { %s14516_s30 = smov 0   ;;  %s19646_s0 = inlined_call_operand.vmem [shape: f32[2,1,960], index: 0, kind: input, shape index: {}]   ;;  %s19647_s1 = inlined_call_operand.vmem [shape: f32[32,3], index: 1, kind: input, shape index: {}]   ;;  %s19648_s2 = inlined_call_operand.vmem [shape: f32[32,1], index: 2, kind: input, shape index: {}]   ;;  %s19649_s3 = inlined_call_operand.vmem [shape: f32[12,32,96], index: 3, kind: input, shape index: {}]   ;;  %s19650_s4 = inlined_call_operand.vmem [shape: f32[12,32,1], index: 4, kind: input, shape index: {}]   ;;  %s19651_s5 = inlined_call_operand.vmem [shape: f32[4,32,96], index: 5, kind: input, shape index: {}]   ;;  %s19652_s6 = inlined_call_operand.vmem [shape: f32[4,32,1], index: 6, kind: input, shape index: {}]   ;;  %s19653_s7 = inlined_call_operand.vmem [shape: f32[32,96], index: 7, kind: input, shape index: {}]   ;;  %s19654_s8 = inlined_call_operand.vmem [shape: f32[32,1], index: 8, kind: input, shape index: {}]   ;;  %s19655_s9 = inlined_call_operand.vmem [shape: f32[2,32,2], index: 9, kind: output, shape index: {}]  }
   0x1 LB: > { %s9708_s10 = sadd.s32 4294967295, %s14452_s30   ;;  %p9712_p0 = scmp.ge.s32.totalorder %s14452_s30, 1  ;;  %s14452_s30 = sphi %s14516_s30, %s19_s30  }
   0x2   : > { %p286_p1 = scmp.lt.s32.totalorder %s14452_s30, 3 }
   0x4   : > { %p287_p2 = pnand %p9712_p0, %p286_p1 }
   0x6   : > { %290 = sbr.rel (%p287_p2) target bundleno = 10434 (0x28c2), region = 56 }
   0xd   : > { %p321_p3 = scmp.lt.s32.totalorder %s9708_s10, 1  ;;  %v19656_v0 = vlaneseq  ;;  %s14454_s15 = smov 1   ;;  %vm19763_vm0 = vcmask 7168   ;;  %v19657_v28 = vmov 0.0   ;;  %vm397_vm1 = vcmask 531456   ;;  %v403_v53 = vld [vmem:[%s19648_s2] sm:$0xff] }
   0xe   : > { %s14455_s16 = smov 127   ;;  %629 = vmatprep.mubr.f32.mxu0 %v19657_v28  ;;  %647 = vmatprep.mubr.f32.mxu1 %v19657_v28  ;;  %s14457_s17 = smov 126   ;;  %v404_v54 = vld [vmem:[%s19648_s2 + $0x8] sm:$0xff]  ;;  %v14458_v55 = vmov 0   ;;  %v406_v56 = vld [vmem:[%s19648_s2 + $0x18] sm:$0xff]  ;;  %v405_v57 = vld [vmem:[%s19648_s2 + $0x10] sm:$0xff] }
   0xf   : > { %s20180_s10 = smov (!%p321_p3, %s9708_s10), 1  ;;  %v14527_v1 = vshrl.u32 %v19656_v0, 7  ;;  %12398 = vset.pattern.permute.xlu0 %v14458_v55  ;;  %12399 = vset.pattern.permute.xlu1 %v14458_v55  ;;  %vm19762_vm2 = vcmask 1039360   ;;  %vm19761_vm3 = vcmask 1031168   ;;  %vm489_vm4 = vcmask 1040384   ;;  %vm9740_vm8 = vmneg %vm19763_vm0  ;;  %s14459_s18 = smov 2  }
  0x10   : > { %s9713_s11 = sshll.u32 %s20180_s10, 3  ;;  %vm498_vm5 = vcmask 1041408   ;;  %vm19755_vm6 = vcmask 1042432   ;;  %vm19756_vm7 = vcmask 23552   ;;  %vm14884_vm9 = vmpackc.low %vm9740_vm8, %vm9740_vm8  ;;  %vm19764_vm10 = vcmask 785408   ;;  %s14460_s19 = smov 124  }
  0x11   : > { %19773 = vst [vmem:[#allocation2_spill] sm:$0xff] %v14527_v1  ;;  %v342_v2 = vsub.s32 2, %v14527_v1  ;;  %v334_v3 = vsub.s32 0, %v14527_v1  ;;  %s324_s14 = scalar_lea.vmem %s19646_s0, %s9713_s11  ;;  %v346_v4 = vsub.s32 3, %v14527_v1  ;;  %v338_v5 = vsub.s32 1, %v14527_v1  ;;  %vm15169_vm11 = vmpackc.low %vm397_vm1, %vm397_vm1  ;;  %s14461_s22 = smov 4  }
  0x12   : > { %v330_v6 = vld [vmem:[%s324_s14] sm:$0xff]  ;;  %v354_v11 = vsub.s32 5, %v14527_v1  ;;  %v350_v12 = vsub.s32 4, %v14527_v1  ;;  %v362_v15 = vsub.s32 7, %v14527_v1  ;;  %v358_v16 = vsub.s32 6, %v14527_v1  ;;  %s14462_s23 = smov 120  }
  0x13   : > { %v343_v7 = vrot.slane %v330_v6, %v342_v2  ;;  %v335_v8 = vrot.slane %v330_v6, %v334_v3  ;;  %v347_v9 = vrot.slane %v330_v6, %v346_v4  ;;  %v339_v10 = vrot.slane %v330_v6, %v338_v5  ;;  %s10822_s20 = sshll.u32 %s20180_s10, 5 }
  0x14   : > { %v355_v13 = vrot.slane %v330_v6, %v354_v11  ;;  %v351_v14 = vrot.slane %v330_v6, %v350_v12  ;;  %v363_v17 = vrot.slane %v330_v6, %v362_v15  ;;  %v359_v18 = vrot.slane %v330_v6, %v358_v16  ;;  %v14638_v11 = vld [vmem:[%s19647_s1 + $0x18] sm:$0xff] }
  0x15   : > { %368 = vrot.lane.b32.xlu1 %v343_v7, %s14454_s15  ;;  %364 = vrot.lane.b32.xlu0 %v335_v8, %s14454_s15  ;;  %vm19760_vm12 = vcmask 15360   ;;  %vm2155_vm15 = vcmask 539648   ;;  %vm19758_vm8 = vcmask 31744  }
  0x16   : > { %vm9808_vm13 = vmneg %vm19760_vm12 }
  0x17   : > { %vm15659_vm14 = vmpackc.low %vm9808_vm13, %vm9808_vm13 }
  0x18   : > { %vm9876_vm13 = vmneg %vm19758_vm8 }
  0x19   : > { %370 = vrot.lane.b32.xlu1 %v347_v9, %s14454_s15  ;;  %366 = vrot.lane.b32.xlu0 %v339_v10, %s14454_s15  ;;  %v14633_v10 = vld [vmem:[%s19647_s1] sm:$0xff] }
  0x1d   : > { %374 = vrot.lane.b32.xlu1 %v355_v13, %s14454_s15  ;;  %372 = vrot.lane.b32.xlu0 %v351_v14, %s14454_s15  ;;  %v400_v14 = vld [vmem:[%s19647_s1 + $0x8] sm:$0xff] }
  0x21   : > { %378 = vrot.lane.b32.xlu1 %v363_v17, %s14454_s15  ;;  %376 = vrot.lane.b32.xlu0 %v359_v18, %s14454_s15 }
  0x87   : > { %v365_v19 = vpop.permute.xlu0 %364  ;;  %v369_v20 = vpop.permute.xlu1 %368 }
  0x88   : > { %v14558_v26 = vsel %vm19763_vm0, 0.0, %v365_v19 }
  0x89   : > { %v409_v30 = vrot.slane %v14558_v26, 7  ;;  %v449_v33 = vrot.slane %v14558_v26, 6 }
  0x8b   : > { %v367_v21 = vpop.permute.xlu0 %366  ;;  %v371_v31 = vpop.permute.xlu1 %370 }
  0x8c   : > { %v14550_v22 = vsel %vm19763_vm0, %v365_v19, %v367_v21  ;;  %v14553_v23 = vsel %vm19763_vm0, %v367_v21, %v369_v20  ;;  %v14574_v36 = vsel %vm19763_vm0, %v369_v20, %v371_v31  ;;  %v401_v19 = vld [vmem:[%s19647_s1 + $0x10] sm:$0xff] }
  0x8d   : > { %v411_v24 = vrot.slane %v14553_v23, 7  ;;  %v410_v25 = vrot.slane %v14550_v22, 7  ;;  %v450_v29 = vrot.slane %v14550_v22, 6  ;;  %v451_v34 = vrot.slane %v14553_v23, 6 }
  0x8e   : > { %v412_v40 = vrot.slane %v14574_v36, 7  ;;  %v452_v45 = vrot.slane %v14574_v36, 6 }
  0x8f   : > { %421 = vrot.lane.b32.xlu1 %v411_v24, %s14455_s16  ;;  %419 = vrot.lane.b32.xlu0 %v410_v25, %s14455_s16  ;;  %v373_v27 = vpop.permute.xlu0 %372  ;;  %v375_v37 = vpop.permute.xlu1 %374 }
  0x90   : > { %v14569_v32 = vsel %vm19763_vm0, %v371_v31, %v373_v27  ;;  %v14584_v41 = vsel %vm19763_vm0, %v373_v27, %v375_v37 }
  0x91   : > { %v413_v38 = vrot.slane %v14569_v32, 7  ;;  %v414_v43 = vrot.slane %v14584_v41, 7  ;;  %v453_v46 = vrot.slane %v14569_v32, 6  ;;  %v454_v48 = vrot.slane %v14584_v41, 6 }
  0x93   : > { %459 = vrot.lane.b32.xlu1 %v450_v29, %s14457_s17  ;;  %417 = vrot.lane.b32.xlu0 %v409_v30, %s14455_s16  ;;  %v377_v35 = vpop.permute.xlu0 %376  ;;  %v379_v44 = vpop.permute.xlu1 %378 }
  0x94   : > { %v14580_v39 = vsel %vm19763_vm0, %v375_v37, %v377_v35  ;;  %v387_v47 = vsel %vm19763_vm0, %v377_v35, %v379_v44 }
  0x95   : > { %v415_v42 = vrot.slane %v14580_v39, 7  ;;  %v455_v49 = vrot.slane %v14580_v39, 6  ;;  %v14600_v50 = vsel %vm397_vm1, %v387_v47, 0.0 }
  0x96   : > { %v416_v51 = vrot.slane %v14600_v50, 7  ;;  %v456_v52 = vrot.slane %v14600_v50, 6 }
  0x97   : > { %457 = vrot.lane.b32.xlu1 %v449_v33, %s14457_s17  ;;  %461 = vrot.lane.b32.xlu0 %v451_v34, %s14457_s17 }
  0x9b   : > { %423 = vrot.lane.b32.xlu0 %v412_v40, %s14455_s16  ;;  %425 = vrot.lane.b32.xlu1 %v413_v38, %s14455_s16 }
  0x9f   : > { %427 = vrot.lane.b32.xlu0 %v414_v43, %s14455_s16  ;;  %429 = vrot.lane.b32.xlu1 %v415_v42, %s14455_s16 }
  0xa3   : > { %463 = vrot.lane.b32.xlu0 %v452_v45, %s14457_s17  ;;  %465 = vrot.lane.b32.xlu1 %v453_v46, %s14457_s17 }
  0xa7   : > { %467 = vrot.lane.b32.xlu0 %v454_v48, %s14457_s17  ;;  %469 = vrot.lane.b32.xlu1 %v455_v49, %s14457_s17 }
  0xab   : > { %431 = vrot.lane.b32.xlu0 %v416_v51, %s14455_s16  ;;  %471 = vrot.lane.b32.xlu1 %v456_v52, %s14457_s17 }
  0xaf   : > { %509 = vperm.xlu0 %12398, %v403_v53   ;;  %514 = vperm.xlu1 %12399, %v404_v54  }
  0xb3   : > { %524 = vperm.xlu0 %12398, %v406_v56   ;;  %519 = vperm.xlu1 %12399, %v405_v57  }
 0x101   : > { %v422_v58 = vpop.permute.xlu1 %421  ;;  %v420_v59 = vpop.permute.xlu0 %419 }
 0x102   : > { %v435_v62 = vsel %vm19762_vm2, %v420_v59, %v422_v58 }
 0x103   : > { %v491_v6 = vsel %vm489_vm4, %v14550_v22, %v435_v62 }
 0x105   : > { %v460_v60 = vpop.permute.xlu1 %459  ;;  %v418_v61 = vpop.permute.xlu0 %417 }
 0x106   : > { %v434_v63 = vsel %vm19762_vm2, %v418_v61, %v420_v59 }
 0x107   : > { %v490_v7 = vsel %vm489_vm4, %v14558_v26, %v434_v63 }
 0x109   : > { %v458_v2 = vpop.permute.xlu1 %457  ;;  %v462_v3 = vpop.permute.xlu0 %461 }
 0x10a   : > { %v474_v4 = vsel %vm19761_vm3, %v458_v2, %v460_v60  ;;  %v475_v5 = vsel %vm19761_vm3, %v460_v60, %v462_v3 }
 0x10b   : > { %v500_v8 = vsel %vm498_vm5, %v491_v6, %v475_v5  ;;  %v499_v9 = vsel %vm498_vm5, %v490_v7, %v474_v4 }
 0x10c   : > { %9716 = vmatprep.subr.msk.mxu0 %vm19755_vm6, %v500_v8  ;;  %12352 = vmatprep.subr.msk.mxu1 %vm19755_vm6, %v500_v8 }
 0x10d   : > { %v426_v12 = vpop.permute.xlu1 %425  ;;  %9717 = vmatpush1.msk.msra.mxu0 %vm19755_vm6, %v499_v9  ;;  %12353 = vmatpush1.msk.msra.mxu1 %vm19755_vm6, %v499_v9  ;;  %v424_v13 = vpop.permute.xlu0 %423 }
 0x10e   : > { %9718 = vmatmul.mubr.msk.f32.vlgmr.msra.gmra.mrb[0].mxu0 %vm19756_vm7, %v14633_v10  ;;  %9721 = vmatmul.mubr.msk.f32.vlgmr.msra.gmra.mrb[0].mxu1 %vm19756_vm7, %v14638_v11  ;;  %v436_v17 = vsel %vm19762_vm2, %v422_v58, %v424_v13  ;;  %v437_v18 = vsel %vm19762_vm2, %v424_v13, %v426_v12 }
 0x10f   : > { %635 = vmatprep.mubr.f32.mxu0 %v19657_v28  ;;  %718 = vmatprep.mubr.f32.mxu1 %v19657_v28  ;;  %v492_v22 = vsel %vm489_vm4, %v14553_v23, %v436_v17  ;;  %v493_v26 = vsel %vm489_vm4, %v14574_v36, %v437_v18 }
 0x111   : > { %v430_v15 = vpop.permute.xlu1 %429  ;;  %v428_v16 = vpop.permute.xlu0 %427 }
 0x112   : > { %9719 = vmatmul.mubr.msk.f32.gmra.mrb[2].mxu0 %vm19756_vm7, %v400_v14  ;;  %v438_v27 = vsel %vm19762_vm2, %v426_v12, %v428_v16  ;;  %v439_v29 = vsel %vm19762_vm2, %v428_v16, %v430_v15 }
 0x113   : > { %641 = vmatprep.mubr.f32.mxu0 %v19657_v28  ;;  %v494_v34 = vsel %vm489_vm4, %v14569_v32, %v438_v27  ;;  %v495_v37 = vsel %vm489_vm4, %v14584_v41, %v439_v29 }
 0x115   : > { %v466_v20 = vpop.permute.xlu1 %465  ;;  %v464_v21 = vpop.permute.xlu0 %463 }
 0x116   : > { %v476_v24 = vsel %vm19761_vm3, %v462_v3, %v464_v21  ;;  %v477_v25 = vsel %vm19761_vm3, %v464_v21, %v466_v20  ;;  %9720 = vmatmul.mubr.msk.f32.gmra.mrb[4].mxu0 %vm19756_vm7, %v401_v19 }
 0x117   : > { %v502_v30 = vsel %vm498_vm5, %v493_v26, %v477_v25  ;;  %v501_v31 = vsel %vm498_vm5, %v492_v22, %v476_v24  ;;  %807 = vmatprep.mubr.f32.mxu0 %v19657_v28 }
 0x118   : > { %9722 = vmatprep.subr.msk.mxu1 %vm19755_vm6, %v502_v30 }
 0x119   : > { %v470_v23 = vpop.permute.xlu1 %469  ;;  %9723 = vmatpush1.msk.msra.mxu1 %vm19755_vm6, %v501_v31  ;;  %v468_v33 = vpop.permute.xlu0 %467 }
 0x11a   : > { %v478_v35 = vsel %vm19761_vm3, %v466_v20, %v468_v33  ;;  %v479_v36 = vsel %vm19761_vm3, %v468_v33, %v470_v23  ;;  %9724 = vmatmul.mubr.msk.f32.vlgmr.msra.gmra.mrb[2].mxu1 %vm19756_vm7, %v14633_v10 }
 0x11b   : > { %v504_v38 = vsel %vm498_vm5, %v495_v37, %v479_v36  ;;  %724 = vmatprep.mubr.f32.mxu1 %v19657_v28  ;;  %v503_v40 = vsel %vm498_vm5, %v494_v34, %v478_v35 }
 0x11c   : > { %9728 = vmatprep.subr.msk.mxu0 %vm19755_vm6, %v504_v38 }
 0x11d   : > { %v472_v42 = vpop.permute.xlu1 %471  ;;  %9729 = vmatpush1.msk.msra.mxu0 %vm19755_vm6, %v503_v40  ;;  %v432_v32 = vpop.permute.xlu0 %431 }
 0x11e   : > { %v480_v43 = vsel %vm19761_vm3, %v470_v23, %v472_v42  ;;  %v440_v44 = vsel %vm19762_vm2, %v430_v15, %v432_v32  ;;  %v497_v45 = vsel %vm489_vm4, %v14600_v50, %v432_v32  ;;  %9725 = vmatmul.mubr.msk.f32.gmra.mrb[4].mxu1 %vm19756_vm7, %v400_v14  ;;  %9730 = vmatmul.mubr.msk.f32.vlgmr.msra.gmra.mrb[6].mxu0 %vm19756_vm7, %v14633_v10 }
 0x11f   : > { %v496_v41 = vsel %vm489_vm4, %v14580_v39, %v440_v44  ;;  %v506_v46 = vsel %vm498_vm5, %v497_v45, %v472_v42  ;;  %730 = vmatprep.mubr.f32.mxu1 %v19657_v28  ;;  %813 = vmatprep.mubr.f32.mxu0 %v19657_v28  ;;  %vm19759_vm4 = vcmask 1014784  }
 0x120   : > { %9734 = vmatprep.subr.msk.mxu1 %vm19755_vm6, %v506_v46  ;;  %v505_v47 = vsel %vm498_vm5, %v496_v41, %v480_v43  ;;  %vm16040_vm5 = vmpackc.low %vm2155_vm15, %vm2155_vm15 }
 0x121   : > { %9735 = vmatpush1.msk.msra.mxu1 %vm19755_vm6, %v505_v47 }
 0x122   : > { %9726 = vmatmul.mubr.msk.f32.gmra.mrb[6].mxu1 %vm19756_vm7, %v401_v19  ;;  %9731 = vmatmul.mubr.msk.f32.gmra.mrb[8].mxu0 %vm19756_vm7, %v400_v14 }
 0x123   : > { %736 = vmatprep.mubr.f32.mxu1 %v19657_v28  ;;  %819 = vmatprep.mubr.f32.mxu0 %v19657_v28 }
 0x126   : > { %9727 = vmatmul.mubr.msk.f32.gmra.mrb[8].mxu1 %vm19756_vm7, %v14638_v11  ;;  %9732 = vmatmul.mubr.msk.f32.gmra.mrb[10].mxu0 %vm19756_vm7, %v401_v19 }
 0x127   : > { %825 = vmatprep.mubr.f32.mxu0 %v19657_v28  ;;  %896 = vmatprep.mubr.f32.mxu1 %v19657_v28 }
 0x12a   : > { %9733 = vmatmul.mubr.msk.f32.gmra.mrb[12].mxu0 %vm19756_vm7, %v14638_v11  ;;  %9736 = vmatmul.mubr.msk.f32.vlgmr.msra.gmra.mrb[10].mxu1 %vm19756_vm7, %v14633_v10 }
 0x12b   : > { %902 = vmatprep.mubr.f32.mxu1 %v19657_v28  ;;  %1446 = vmatprep.mubr.f32.mxu0 %v19657_v28 }
 0x12e   : > { %9737 = vmatmul.mubr.msk.f32.gmra.mrb[12].mxu1 %vm19756_vm7, %v400_v14  ;;  %v14724_v39 = vpop.permute.xlu0 %509  ;;  %v14734_v57 = vpop.permute.xlu1 %514 }
 0x12f   : > { %908 = vmatprep.mubr.f32.mxu1 %v19657_v28 }
 0x132   : > { %9738 = vmatmul.mubr.msk.f32.gmra.mrb[14].mxu1 %vm19756_vm7, %v401_v19  ;;  %v14740_v62 = vpop.permute.xlu1 %519  ;;  %v14760_v12 = vpop.permute.xlu0 %524 }
 0x133   : > { %914 = vmatprep.mubr.f32.mxu1 %v19657_v28 }
 0x136   : > { %9739 = vmatmul.mubr.msk.f32.gmra.mrb[16].mxu1 %vm19756_vm7, %v14638_v11 }
 0x137   : > { %1535 = vmatprep.mubr.f32.mxu1 %v19657_v28 }
 0x1e1   : > { %v631_v48 = vpop.f32.mrb[0].mxu0  ;;  %v649_v49 = vpop.f32.mrb[0].mxu1 }
 0x1e2   : > { %v14727_v50 = vadd.f32 %v631_v48, %v14724_v39  ;;  %v633_v51 = vpop.f32.mrb[1].mxu0  ;;  %v651_v52 = vpop.f32.mrb[1].mxu1  ;;  %v14773_v19 = vadd.f32 %v649_v49, %v14760_v12 }
 0x1e3   : > { %v14730_v53 = vadd.f32 %v633_v51, %v14724_v39  ;;  %v14791_v31 = vadd.f32 %v651_v52, %v14760_v12 }
 0x1e5   : > { %v12400_v54 = vpack.i.bf16 %v14730_v53, %v14727_v50  ;;  %v637_v55 = vpop.f32.mrb[2].mxu0 }
 0x1e6   : > { %v639_v56 = vpop.f32.mrb[3].mxu0  ;;  %v14738_v60 = vadd.f32 %v637_v55, %v14734_v57 }
 0x1e7   : > { %12401 = vrot.lane.b32.xlu1 %v12400_v54, %s14454_s15  ;;  %v14754_v8 = vadd.f32 %v639_v56, %v14734_v57 }
 0x1e9   : > { %v643_v58 = vpop.f32.mrb[4].mxu0 }
 0x1ea   : > { %v645_v59 = vpop.f32.mrb[5].mxu0  ;;  %v14748_v4 = vadd.f32 %v643_v58, %v14740_v62 }
 0x1eb   : > { %v14751_v5 = vadd.f32 %v645_v59, %v14740_v62 }
 0x1ed   : > { %v720_v61 = vpop.f32.mrb[2].mxu1  ;;  %v12415_v13 = vpack.i.bf16 %v14751_v5, %v14748_v4 }
 0x1ee   : > { %v14743_v63 = vadd.f32 %v720_v61, %v14724_v39  ;;  %v722_v2 = vpop.f32.mrb[3].mxu1 }
 0x1ef   : > { %v14770_v18 = vadd.f32 %v722_v2, %v14724_v39 }
 0x1f0   : > { %v12405_v3 = vpack.i.bf16 %v14738_v60, %v14743_v63 }
 0x1f1   : > { %v726_v6 = vpop.f32.mrb[4].mxu1  ;;  %v809_v7 = vpop.f32.mrb[6].mxu0  ;;  %19775 = vst [vmem:[#allocation4_spill] sm:$0xff] %v14770_v18 }
 0x1f2   : > { %v14757_v9 = vadd.f32 %v726_v6, %v14734_v57  ;;  %12406 = vrot.lane.b32.xlu0 %v12405_v3, %s14454_s15  ;;  %v811_v10 = vpop.f32.mrb[7].mxu0  ;;  %v728_v11 = vpop.f32.mrb[5].mxu1  ;;  %v14767_v15 = vadd.f32 %v809_v7, %v14724_v39 }
 0x1f3   : > { %v14788_v30 = vadd.f32 %v728_v11, %v14734_v57  ;;  %v14824_v49 = vadd.f32 %v811_v10, %v14724_v39 }
 0x1f4   : > { %v12410_v14 = vpack.i.bf16 %v14757_v9, %v14754_v8  ;;  %19774 = vst [vmem:[#allocation3_spill] sm:$0xff] %v14767_v15  ;;  %v12420_v24 = vpack.i.bf16 %v14767_v15, %v14770_v18 }
 0x1f5   : > { %v732_v16 = vpop.f32.mrb[6].mxu1  ;;  %v815_v17 = vpop.f32.mrb[8].mxu0  ;;  %19777 = vst [vmem:[#allocation6_spill] sm:$0xff] %v14788_v30  ;;  %19784 = vst [vmem:[#allocation13_spill] sm:$0xff] %v14824_v49 }
 0x1f6   : > { %v14776_v20 = vadd.f32 %v732_v16, %v14740_v62  ;;  %v734_v21 = vpop.f32.mrb[7].mxu1  ;;  %v817_v22 = vpop.f32.mrb[9].mxu0  ;;  %12416 = vrot.lane.b32.xlu0 %v12415_v13, %s14454_s15  ;;  %12411 = vrot.lane.b32.xlu1 %v12410_v14, %s14454_s15  ;;  %v14785_v26 = vadd.f32 %v815_v17, %v14734_v57 }
 0x1f7   : > { %v14806_v42 = vadd.f32 %v734_v21, %v14740_v62  ;;  %v14827_v51 = vadd.f32 %v817_v22, %v14734_v57 }
 0x1f8   : > { %v12425_v25 = vpack.i.bf16 %v14773_v19, %v14776_v20  ;;  %19776 = vst [vmem:[#allocation5_spill] sm:$0xff] %v14785_v26  ;;  %v12430_v35 = vpack.i.bf16 %v14785_v26, %v14788_v30 }
 0x1f9   : > { %v738_v27 = vpop.f32.mrb[8].mxu1  ;;  %v821_v29 = vpop.f32.mrb[10].mxu0  ;;  %19780 = vst [vmem:[#allocation9_spill] sm:$0xff] %v14806_v42  ;;  %19785 = vst [vmem:[#allocation14_spill] sm:$0xff] %v14827_v51 }
 0x1fa   : > { %v14794_v23 = vadd.f32 %v738_v27, %v14760_v12  ;;  %v740_v33 = vpop.f32.mrb[9].mxu1  ;;  %v823_v34 = vpop.f32.mrb[11].mxu0  ;;  %12421 = vrot.lane.b32.xlu0 %v12420_v24, %s14454_s15  ;;  %12426 = vrot.lane.b32.xlu1 %v12425_v25, %s14454_s15  ;;  %v14803_v37 = vadd.f32 %v821_v29, %v14740_v62 }
 0x1fb   : > { %v14809_v32 = vadd.f32 %v740_v33, %v14760_v12  ;;  %v14842_v61 = vadd.f32 %v823_v34, %v14740_v62 }
 0x1fc   : > { %19778 = vst [vmem:[#allocation7_spill] sm:$0xff] %v14794_v23  ;;  %v12435_v36 = vpack.i.bf16 %v14794_v23, %v14791_v31  ;;  %19779 = vst [vmem:[#allocation8_spill] sm:$0xff] %v14803_v37  ;;  %v12440_v41 = vpack.i.bf16 %v14803_v37, %v14806_v42 }
 0x1fd   : > { %v827_v38 = vpop.f32.mrb[12].mxu0  ;;  %v898_v40 = vpop.f32.mrb[10].mxu1  ;;  %19781 = vst [vmem:[#allocation10_spill] sm:$0xff] %v14809_v32  ;;  %19788 = vst [vmem:[#allocation17_spill] sm:$0xff] %v14842_v61 }
 0x1fe   : > { %v14812_v43 = vadd.f32 %v827_v38, %v14760_v12  ;;  %v829_v44 = vpop.f32.mrb[13].mxu0  ;;  %v900_v45 = vpop.f32.mrb[11].mxu1  ;;  %12436 = vrot.lane.b32.xlu0 %v12435_v36, %s14454_s15  ;;  %12431 = vrot.lane.b32.xlu1 %v12430_v35, %s14454_s15  ;;  %v14821_v47 = vadd.f32 %v898_v40, %v14724_v39 }
 0x1ff   : > { %v14845_v2 = vadd.f32 %v900_v45, %v14724_v39  ;;  %v14857_v11 = vadd.f32 %v829_v44, %v14760_v12 }
 0x200   : > { %19782 = vst [vmem:[#allocation11_spill] sm:$0xff] %v14812_v43  ;;  %v12445_v46 = vpack.i.bf16 %v14812_v43, %v14809_v32  ;;  %19783 = vst [vmem:[#allocation12_spill] sm:$0xff] %v14821_v47  ;;  %v12450_v55 = vpack.i.bf16 %v14821_v47, %v14824_v49 }
 0x201   : > { %v904_v48 = vpop.f32.mrb[12].mxu1  ;;  %19789 = vst [vmem:[#allocation18_spill] sm:$0xff] %v14845_v2  ;;  %19791 = vst [vmem:[#allocation20_spill] sm:$0xff] %v14857_v11 }
 0x202   : > { %v14830_v52 = vadd.f32 %v904_v48, %v14734_v57  ;;  %v906_v54 = vpop.f32.mrb[13].mxu1  ;;  %12446 = vrot.lane.b32.xlu0 %v12445_v46, %s14454_s15  ;;  %12441 = vrot.lane.b32.xlu1 %v12440_v41, %s14454_s15 }
 0x203   : > { %v14839_v58 = vadd.f32 %v906_v54, %v14734_v57 }
 0x204   : > { %19786 = vst [vmem:[#allocation15_spill] sm:$0xff] %v14830_v52  ;;  %v12455_v56 = vpack.i.bf16 %v14830_v52, %v14827_v51 }
 0x205   : > { %19787 = vst [vmem:[#allocation16_spill] sm:$0xff] %v14839_v58  ;;  %v910_v59 = vpop.f32.mrb[14].mxu1  ;;  %v12460_v7 = vpack.i.bf16 %v14839_v58, %v14845_v2 }
 0x206   : > { %v14848_v3 = vadd.f32 %v910_v59, %v14740_v62  ;;  %v912_v6 = vpop.f32.mrb[15].mxu1  ;;  %12456 = vrot.lane.b32.xlu0 %v12455_v56, %s14454_s15  ;;  %12451 = vrot.lane.b32.xlu1 %v12450_v55, %s14454_s15  ;;  %v19795_v55 = vmov 0 }
 0x207   : > { %v14865_v14 = vadd.f32 %v912_v6, %v14740_v62  ;;  %v19796_v55 = vsel %vm14884_vm9, 4294967295, %v19795_v55 }
 0x208   : > { %19790 = vst [vmem:[#allocation19_spill] sm:$0xff] %v14848_v3  ;;  %v12465_v57 = vpack.i.bf16 %v14848_v3, %v14842_v61  ;;  %19797 = vst [vmem:[#allocation24_spill] sm:$0xff] %v19796_v55 }
 0x209   : > { %v916_v10 = vpop.f32.mrb[16].mxu1  ;;  %19793 = vst [vmem:[#allocation22_spill] sm:$0xff] %v14865_v14 }
 0x20a   : > { %v14860_v39 = vadd.f32 %v916_v10, %v14760_v12  ;;  %v918_v13 = vpop.f32.mrb[17].mxu1  ;;  %12466 = vrot.lane.b32.xlu0 %v12465_v57, %s14454_s15  ;;  %12461 = vrot.lane.b32.xlu1 %v12460_v7, %s14454_s15 }
 0x20b   : > { %v14868_v16 = vadd.f32 %v918_v13, %v14760_v12 }
 0x20c   : > { %19792 = vst [vmem:[#allocation21_spill] sm:$0xff] %v14860_v39  ;;  %v12470_v17 = vpack.i.bf16 %v14860_v39, %v14857_v11 }
 0x20d   : > { %19794 = vst [vmem:[#allocation23_spill] sm:$0xff] %v14868_v16  ;;  %v12475_v21 = vpack.i.bf16 %v14868_v16, %v14865_v14 }
 0x20e   : > { %12471 = vrot.lane.b32.xlu1 %v12470_v17, %s14454_s15 }
 0x20f   : > { %12476 = vrot.lane.b32.xlu0 %v12475_v21, %s14454_s15 }
 0x259   : > { %v12402_v22 = vpop.permute.xlu1 %12401 }
 0x25a   : > { %v12404_v24 = vunpack.i.h.bf16 %v12402_v22  ;;  %v12403_v25 = vunpack.i.l.bf16 %v12402_v22 }
 0x25c   : > { %v1017_v62 = vsel %vm19763_vm0, %v12403_v25, %v12404_v24  ;;  %v1077_v13 = vsel %vm19763_vm0, 0.0, %v12403_v25 }
 0x264   : > { %v12407_v27 = vpop.permute.xlu0 %12406 }
 0x265   : > { %v12408_v29 = vunpack.i.l.bf16 %v12407_v27  ;;  %v12409_v36 = vunpack.i.h.bf16 %v12407_v27 }
 0x267   : > { %v1018_v12 = vsel %vm19763_vm0, %v12404_v24, %v12408_v29  ;;  %v11293_v56 = vpack.c.bf16 %v12409_v36, %v12403_v25 }
 0x268   : > { %v12412_v33 = vpop.permute.xlu1 %12411  ;;  %v12417_v34 = vpop.permute.xlu0 %12416  ;;  %v12480_v35 = vpack.i.bf16 %v1018_v12, %v1017_v62 }
 0x269   : > { %v12414_v38 = vunpack.i.h.bf16 %v12412_v33  ;;  %v12413_v40 = vunpack.i.l.bf16 %v12412_v33  ;;  %v12419_v7 = vunpack.i.h.bf16 %v12417_v34  ;;  %v14891_v57 = vunpack.i.l.bf16 %v12417_v34 }
 0x26a   : > { %12481 = vrot.lane.b32.xlu1 %v12480_v35, %s14455_s16 }
 0x26b   : > { %v1024_v44 = vsel %vm19763_vm0, %v12409_v36, %v12413_v40  ;;  %v1025_v45 = vsel %vm19763_vm0, %v12413_v40, %v12414_v38  ;;  %v1031_v25 = vsel %vm19763_vm0, %v14891_v57, %v12419_v7 }
 0x26c   : > { %v12427_v41 = vpop.permute.xlu1 %12426  ;;  %v14882_v46 = vpop.permute.xlu0 %12421  ;;  %v12500_v48 = vpack.i.bf16 %v1025_v45, %v1024_v44  ;;  %v11291_v54 = vpack.c.bf16 %v1024_v44, %v1017_v62 }
 0x26d   : > { %v12424_v59 = vunpack.i.h.bf16 %v14882_v46  ;;  %v12423_v6 = vunpack.i.l.bf16 %v14882_v46  ;;  %v14898_v17 = vunpack.i.h.bf16 %v12427_v41  ;;  %v12428_v27 = vunpack.i.l.bf16 %v12427_v41 }
 0x26e   : > { %12501 = vrot.lane.b32.xlu0 %v12500_v48, %s14455_s16  ;;  %11292 = vmatprep.subr.bf16.mxu0 %v11291_v54 }
 0x26f   : > { %12486 = vrot.lane.b32.xlu1 %v12480_v35, %s14457_s17  ;;  %11295 = vmatpush1.bf16.msk.msra.mxu0 %vm14884_vm9, %v11293_v56  ;;  %v1019_v10 = vsel %vm19763_vm0, %v12408_v29, %v12423_v6  ;;  %v14901_v34 = vsel %vm19763_vm0, %v12423_v6, %v12424_v59  ;;  %v1078_v35 = vsel %vm19763_vm0, 0.0, %v12409_v36 }
 0x270   : > { %v12432_v21 = vpop.permute.xlu1 %12431  ;;  %v12437_v22 = vpop.permute.xlu0 %12436  ;;  %v12490_v24 = vpack.i.bf16 %v1019_v10, %v1077_v13  ;;  %v12510_v56 = vpack.i.bf16 %v1078_v35, %v14901_v34 }
 0x271   : > { %v12433_v62 = vunpack.i.l.bf16 %v12432_v21  ;;  %v12438_v33 = vunpack.i.l.bf16 %v12437_v22  ;;  %v12434_v40 = vunpack.i.h.bf16 %v12432_v21  ;;  %v12439_v44 = vunpack.i.h.bf16 %v12437_v22 }
 0x272   : > { %12506 = vrot.lane.b32.xlu0 %v12500_v48, %s14457_s17  ;;  %v1032_v21 = vsel %vm19763_vm0, %v12419_v7, %v12428_v27  ;;  %v11298_v22 = vpack.c.bf16 %v14898_v17, %v14891_v57 }
 0x273   : > { %12491 = vrot.lane.b32.xlu1 %v12490_v24, %s14455_s16  ;;  %v1038_v29 = vsel %vm19763_vm0, %v14898_v17, %v12438_v33  ;;  %v1026_v41 = vsel %vm19763_vm0, %v12414_v38, %v12433_v62  ;;  %v11319_v38 = vpack.c.bf16 %v1025_v45, %v1018_v12  ;;  %v14923_v0 = vsel %vm19763_vm0, %v12433_v62, %v12434_v40 }
 0x274   : > { %v14911_v46 = vpop.permute.xlu1 %12441  ;;  %v14913_v54 = vpop.permute.xlu0 %12446  ;;  %v11296_v48 = vpack.c.bf16 %v1038_v29, %v1031_v25  ;;  %v11317_v6 = vpack.c.bf16 %v1026_v41, %v1019_v10  ;;  %v1039_v35 = vsel %vm19763_vm0, %v12438_v33, %v12439_v44  ;;  %v12515_v12 = vpack.i.bf16 %v1032_v21, %v1031_v25 }
 0x275   : > { %v12443_v36 = vunpack.i.l.bf16 %v14911_v46  ;;  %v12448_v13 = vunpack.i.l.bf16 %v14913_v54  ;;  %v12535_v33 = vpack.i.bf16 %v14923_v0, %v1026_v41 }
 0x276   : > { %12511 = vrot.lane.b32.xlu0 %v12510_v56, %s14455_s16  ;;  %11297 = vmatprep.subr.bf16.mxu0 %v11296_v48 }
 0x277   : > { %11318 = vmatprep.subr.bf16.mxu1 %v11317_v6  ;;  %12496 = vrot.lane.b32.xlu1 %v12490_v24, %s14457_s17  ;;  %v1033_v10 = vsel %vm19763_vm0, %v12428_v27, %v12443_v36  ;;  %v14929_v28 = vsel %vm19763_vm0, %v12439_v44, %v12448_v13  ;;  %v11323_v24 = vpack.c.bf16 %v1039_v35, %v1032_v21  ;;  %v12444_v27 = vunpack.i.h.bf16 %v14911_v46 }
 0x278   : > { %11300 = vmatpush1.bf16.msk.msra.mxu0 %vm14884_vm9, %v11298_v22  ;;  %11320 = vmatpush1.bf16.msra.mxu1 %v11319_v38  ;;  %v12452_v7 = vpop.permute.xlu1 %12451  ;;  %v12457_v48 = vpop.permute.xlu0 %12456  ;;  %v11321_v45 = vpack.c.bf16 %v14929_v28, %v1033_v10  ;;  %v12449_v44 = vunpack.i.h.bf16 %v14913_v54  ;;  %v12540_v21 = vpack.i.bf16 %v1039_v35, %v1038_v29 }
 0x279   : > { %v12453_v62 = vunpack.i.l.bf16 %v12452_v7  ;;  %v12458_v1 = vunpack.i.l.bf16 %v12457_v48  ;;  %v12454_v25 = vunpack.i.h.bf16 %v12452_v7  ;;  %v12459_v22 = vunpack.i.h.bf16 %v12457_v48 }
 0x27a   : > { %12516 = vrot.lane.b32.xlu0 %v12515_v12, %s14455_s16  ;;  %11322 = vmatprep.subr.bf16.mxu1 %v11321_v45  ;;  %v14952_v54 = vsel %vm19763_vm0, %v12443_v36, %v12444_v27  ;;  %v14955_v7 = vsel %vm19763_vm0, %v12448_v13, %v12449_v44 }
 0x27b   : > { %12536 = vrot.lane.b32.xlu1 %v12535_v33, %s14455_s16  ;;  %v14940_v6 = vsel %vm19763_vm0, %v12424_v59, %v12453_v62  ;;  %v14943_v41 = vsel %vm19763_vm0, %v12434_v40, %v12458_v1  ;;  %v14964_v48 = vsel %vm19763_vm0, %v12453_v62, %v12454_v25 }
 0x27c   : > { %11324 = vmatpush1.bf16.msra.mxu1 %v11323_v24  ;;  %v12462_v38 = vpop.permute.xlu1 %12461  ;;  %v12467_v55 = vpop.permute.xlu0 %12466  ;;  %v14967_v24 = vsel %vm19763_vm0, %v12458_v1, %v12459_v22  ;;  %v1080_v1 = vsel %vm19763_vm0, 0.0, %v14898_v17 }
 0x27d   : > { %v12464_v14 = vunpack.i.h.bf16 %v12462_v38  ;;  %v12463_v45 = vunpack.i.l.bf16 %v12462_v38  ;;  %v12469_v38 = vunpack.i.h.bf16 %v12467_v55  ;;  %v12550_v17 = vpack.i.bf16 %v1080_v1, %v14952_v54 }
 0x27e   : > { %12521 = vrot.lane.b32.xlu0 %v12510_v56, %s14457_s17  ;;  %v12468_v56 = vunpack.i.l.bf16 %v12467_v55 }
 0x27f   : > { %12541 = vrot.lane.b32.xlu1 %v12540_v21, %s14455_s16  ;;  %v14958_v40 = vsel %vm19763_vm0, %v12454_v25, %v12463_v45  ;;  %v14961_v29 = vsel %vm19763_vm0, %v12459_v22, %v12464_v14  ;;  %v1079_v14 = vsel %vm19763_vm0, 0.0, %v14891_v57 }
 0x280   : > { %v12472_v35 = vpop.permute.xlu1 %12471  ;;  %v12530_v22 = vpack.i.bf16 %v1033_v10, %v1079_v14  ;;  %v14988_v57 = vsel %vm19763_vm0, %v12444_v27, %v12468_v56  ;;  %v12560_v27 = vpack.i.bf16 %v14955_v7, %v14929_v28  ;;  %v1081_v28 = vsel %vm397_vm1, %v14958_v40, 0.0 }
 0x281   : > { %v12474_v13 = vunpack.i.h.bf16 %v12472_v35  ;;  %v12473_v59 = vunpack.i.l.bf16 %v12472_v35  ;;  %v12477_v46 = vpop.permute.xlu0 %12476  ;;  %v12590_v35 = vpack.i.bf16 %v14967_v24, %v14943_v41 }
 0x282   : > { %v12479_v45 = vunpack.i.h.bf16 %v12477_v46  ;;  %v12478_v16 = vunpack.i.l.bf16 %v12477_v46  ;;  %12526 = vrot.lane.b32.xlu0 %v12515_v12, %s14457_s17 }
 0x283   : > { %12546 = vrot.lane.b32.xlu1 %v12535_v33, %s14457_s17  ;;  %v14980_v55 = vsel %vm19763_vm0, %v12449_v44, %v12473_v59  ;;  %v14983_v25 = vsel %vm19763_vm0, %v12473_v59, %v12474_v13  ;;  %v14998_v44 = vsel %vm19763_vm0, %v12468_v56, %v12469_v38  ;;  %v12580_v56 = vpack.i.bf16 %v14964_v48, %v14940_v6 }
 0x284   : > { %v14991_v46 = vsel %vm19763_vm0, %v12469_v38, %v12478_v16  ;;  %v14994_v33 = vsel %vm19763_vm0, %v12474_v13, %v12479_v45  ;;  %v12605_v13 = vpack.i.bf16 %v14998_v44, %v14988_v57  ;;  %v12610_v45 = vpack.i.bf16 %v14983_v25, %v14980_v55 }
 0x285   : > { %v1083_v14 = vsel %vm397_vm1, %v14991_v46, 0.0  ;;  %v1084_v1 = vsel %vm397_vm1, %v14994_v33, 0.0 }
 0x286   : > { %12531 = vrot.lane.b32.xlu0 %v12530_v22, %s14455_s16 }
 0x287   : > { %12551 = vrot.lane.b32.xlu1 %v12550_v17, %s14455_s16 }
 0x28a   : > { %12561 = vrot.lane.b32.xlu0 %v12560_v27, %s14455_s16 }
 0x28b   : > { %12556 = vrot.lane.b32.xlu1 %v12540_v21, %s14457_s17  ;;  %v1082_v21 = vsel %vm397_vm1, %v14961_v29, 0.0 }
 0x28c   : > { %v12600_v38 = vpack.i.bf16 %v1082_v21, %v1081_v28 }
 0x28e   : > { %12566 = vrot.lane.b32.xlu0 %v12530_v22, %s14457_s17  ;;  %v12620_v22 = vpack.i.bf16 %v1084_v1, %v1083_v14 }
 0x28f   : > { %12571 = vrot.lane.b32.xlu1 %v12550_v17, %s14457_s17  ;;  %v1089_v17 = vld [vmem:[%s19650_s4] sm:$0xff] }
 0x292   : > { %12576 = vrot.lane.b32.xlu0 %v12560_v27, %s14457_s17  ;;  %v1090_v27 = vld [vmem:[%s19650_s4 + $0x8] sm:$0xff] }
 0x293   : > { %12581 = vrot.lane.b32.xlu1 %v12580_v56, %s14455_s16 }
 0x296   : > { %12591 = vrot.lane.b32.xlu0 %v12590_v35, %s14455_s16 }
 0x297   : > { %12586 = vrot.lane.b32.xlu1 %v12580_v56, %s14457_s17  ;;  %v1091_v56 = vld [vmem:[%s19650_s4 + $0x10] sm:$0xff] }
 0x29a   : > { %12596 = vrot.lane.b32.xlu0 %v12590_v35, %s14457_s17  ;;  %v1092_v35 = vld [vmem:[%s19650_s4 + $0x18] sm:$0xff] }
 0x29b   : > { %12601 = vrot.lane.b32.xlu1 %v12600_v38, %s14455_s16 }
 0x29e   : > { %12606 = vrot.lane.b32.xlu0 %v12605_v13, %s14455_s16 }
 0x29f   : > { %12611 = vrot.lane.b32.xlu1 %v12610_v45, %s14455_s16 }
 0x2a2   : > { %12621 = vrot.lane.b32.xlu0 %v12620_v22, %s14455_s16 }
 0x2a3   : > { %12616 = vrot.lane.b32.xlu1 %v12600_v38, %s14457_s17 }
 0x2a6   : > { %12626 = vrot.lane.b32.xlu0 %v12605_v13, %s14457_s17 }
 0x2a7   : > { %12631 = vrot.lane.b32.xlu1 %v12610_v45, %s14457_s17 }
 0x2aa   : > { %12636 = vrot.lane.b32.xlu0 %v12620_v22, %s14457_s17 }
 0x2ab   : > { %1351 = vperm.xlu1 %12399, %v1089_v17  }
 0x2ae   : > { %1356 = vperm.xlu0 %12398, %v1090_v27  }
 0x2af   : > { %1361 = vperm.xlu1 %12399, %v1091_v56  }
 0x2b2   : > { %1366 = vperm.xlu0 %12398, %v1092_v35  }
 0x2dc   : > { %v12482_v28 = vpop.permute.xlu1 %12481 }
 0x2dd   : > { %v12484_v21 = vunpack.i.h.bf16 %v12482_v28  ;;  %v12483_v38 = vunpack.i.l.bf16 %v12482_v28 }
 0x2df   : > { %v1166_v22 = vsel %vm19762_vm2, %v12483_v38, %v12484_v21 }
 0x2e0   : > { %v12502_v13 = vpop.permute.xlu0 %12501 }
 0x2e1   : > { %v12504_v45 = vunpack.i.h.bf16 %v12502_v13  ;;  %v12503_v14 = vunpack.i.l.bf16 %v12502_v13  ;;  %v15055_v1 = vpop.permute.xlu1 %12486 }
 0x2e3   : > { %v1173_v17 = vsel %vm19762_vm2, %v12503_v14, %v12504_v45 }
 0x2e4   : > { %v15059_v16 = vpop.permute.xlu0 %12506  ;;  %v11301_v27 = vpack.c.bf16 %v1173_v17, %v1166_v22 }
 0x2e5   : > { %v12492_v56 = vpop.permute.xlu1 %12491 }
 0x2e6   : > { %11302 = vmatprep.subr.bf16.mxu0 %v11301_v27  ;;  %v12493_v59 = vunpack.i.l.bf16 %v12492_v56  ;;  %v12494_v62 = vunpack.i.h.bf16 %v12492_v56 }
 0x2e8   : > { %v15061_v12 = vpop.permute.xlu0 %12511  ;;  %v1165_v13 = vsel %vm19762_vm2, %v12493_v59, %v12483_v38  ;;  %v1167_v27 = vsel %vm19762_vm2, %v12484_v21, %v12494_v62  ;;  %v12508_v21 = vunpack.i.l.bf16 %v15059_v16 }
 0x2e9   : > { %v12514_v35 = vunpack.i.h.bf16 %v15061_v12  ;;  %v15064_v28 = vpop.permute.xlu1 %12496  ;;  %v19672_v36 = vunpack.i.l.bf16 %v15061_v12 }
 0x2ea   : > { %v12499_v51 = vunpack.i.h.bf16 %v15064_v28 }
 0x2eb   : > { %v1172_v10 = vsel %vm19762_vm2, %v12514_v35, %v12503_v14  ;;  %v1168_v56 = vsel %vm19762_vm2, %v12494_v62, %v19672_v36  ;;  %v12488_v62 = vunpack.i.l.bf16 %v15055_v1 }
 0x2ec   : > { %v12517_v39 = vpop.permute.xlu0 %12516  ;;  %v11303_v11 = vpack.c.bf16 %v1172_v10, %v1165_v13 }
 0x2ed   : > { %v15069_v2 = vpop.permute.xlu1 %12536  ;;  %v12519_v59 = vunpack.i.h.bf16 %v12517_v39  ;;  %v12518_v38 = vunpack.i.l.bf16 %v12517_v39  ;;  %v19679_v39 = vunpack.i.h.bf16 %v15055_v1 }
 0x2ee   : > { %v19673_v22 = vunpack.i.h.bf16 %v15069_v2  ;;  %v12538_v17 = vunpack.i.l.bf16 %v15069_v2  ;;  %11304 = vmatpush1.bf16.msra.mxu0 %v11303_v11  ;;  %v12509_v11 = vunpack.i.h.bf16 %v15059_v16  ;;  %v12498_v16 = vunpack.i.l.bf16 %v15064_v28 }
 0x2ef   : > { %v1180_v36 = vsel %vm19762_vm2, %v12518_v38, %v12519_v59 }
 0x2f0   : > { %v1174_v58 = vsel %vm19762_vm2, %v12504_v45, %v12538_v17  ;;  %v15078_v14 = vpop.permute.xlu0 %12521  ;;  %v1175_v10 = vsel %vm19762_vm2, %v12538_v17, %v19673_v22  ;;  %v1289_v47 = vsel %vm19761_vm3, %v12498_v16, %v12488_v62 }
 0x2f1   : > { %v12542_v35 = vpop.permute.xlu1 %12541  ;;  %v11325_v13 = vpack.c.bf16 %v1175_v10, %v1168_v56  ;;  %v11327_v3 = vpack.c.bf16 %v1174_v58, %v1167_v27  ;;  %v1297_v27 = vsel %vm19761_vm3, %v12508_v21, %v12509_v11 }
 0x2f2   : > { %v12544_v61 = vunpack.i.h.bf16 %v12542_v35  ;;  %v12543_v43 = vunpack.i.l.bf16 %v12542_v35  ;;  %v1290_v35 = vsel %vm19761_vm3, %v12488_v62, %v19679_v39  ;;  %v19798_v62 = vunpack.i.l.bf16 %v15078_v14 }
 0x2f3   : > { %11326 = vmatprep.subr.bf16.mxu1 %v11325_v13  ;;  %v11309_v32 = vpack.c.bf16 %v1297_v27, %v1290_v35 }
 0x2f4   : > { %11328 = vmatpush1.bf16.msra.mxu1 %v11327_v3  ;;  %v15087_v45 = vpop.permute.xlu0 %12526  ;;  %v1187_v17 = vsel %vm19762_vm2, %v12543_v43, %v12544_v61  ;;  %v12524_v3 = vunpack.i.h.bf16 %v15078_v14  ;;  %v1292_v16 = vsel %vm19761_vm3, %v12499_v51, %v19798_v62 }
 0x2f5   : > { %v15091_v56 = vpop.permute.xlu1 %12546  ;;  %v11305_v58 = vpack.c.bf16 %v1187_v17, %v1180_v36  ;;  %v12529_v49 = vunpack.i.h.bf16 %v15087_v45  ;;  %v12528_v27 = vunpack.i.l.bf16 %v15087_v45 }
 0x2f6   : > { %v12548_v17 = vunpack.i.l.bf16 %v15091_v56  ;;  %v1296_v52 = vsel %vm19761_vm3, %v12524_v3, %v12508_v21  ;;  %v19799_v45 = vunpack.i.h.bf16 %v15091_v56 }
 0x2f7   : > { %11306 = vmatprep.subr.bf16.mxu0 %v11305_v58  ;;  %v1304_v15 = vsel %vm19761_vm3, %v12528_v27, %v12529_v49  ;;  %v11311_v18 = vpack.c.bf16 %v1296_v52, %v1289_v47 }
 0x2f8   : > { %v12532_v10 = vpop.permute.xlu0 %12531 }
 0x2f9   : > { %v12533_v13 = vunpack.i.l.bf16 %v12532_v10  ;;  %v15099_v22 = vpop.permute.xlu1 %12551  ;;  %v12534_v37 = vunpack.i.h.bf16 %v12532_v10 }
 0x2fa   : > { %v12554_v58 = vunpack.i.h.bf16 %v15099_v22  ;;  %v19800_v3 = vunpack.i.l.bf16 %v15099_v22 }
 0x2fb   : > { %v1179_v42 = vsel %vm19762_vm2, %v12533_v13, %v12518_v38 }
 0x2fc   : > { %v1186_v35 = vsel %vm19762_vm2, %v12554_v58, %v12543_v43  ;;  %v15112_v36 = vpop.permute.xlu0 %12561  ;;  %v1299_v43 = vsel %vm19761_vm3, %v12548_v17, %v19799_v45  ;;  %v1181_v58 = vsel %vm19762_vm2, %v12519_v59, %v12534_v37  ;;  %v1182_v26 = vsel %vm19762_vm2, %v12534_v37, %v19800_v3 }
 0x2fd   : > { %v12563_v28 = vunpack.i.l.bf16 %v15112_v36  ;;  %v12557_v10 = vpop.permute.xlu1 %12556  ;;  %v11307_v38 = vpack.c.bf16 %v1186_v35, %v1179_v42  ;;  %v19801_v42 = vunpack.i.h.bf16 %v15112_v36  ;;  %v1298_v59 = vsel %vm19761_vm3, %v12509_v11, %v12548_v17 }
 0x2fe   : > { %v12559_v13 = vunpack.i.h.bf16 %v12557_v10  ;;  %v12558_v39 = vunpack.i.l.bf16 %v12557_v10 }
 0x2ff   : > { %v1188_v21 = vsel %vm19762_vm2, %v12544_v61, %v12563_v28  ;;  %11308 = vmatpush1.bf16.msra.mxu0 %v11307_v38  ;;  %v1189_v35 = vsel %vm19762_vm2, %v12563_v28, %v19801_v42 }
 0x300   : > { %11310 = vmatprep.subr.bf16.mxu0 %v11309_v32  ;;  %v12567_v10 = vpop.permute.xlu0 %12566  ;;  %v11329_v62 = vpack.c.bf16 %v1189_v35, %v1182_v26  ;;  %v1311_v45 = vsel %vm19761_vm3, %v12558_v39, %v12559_v13  ;;  %v11331_v30 = vpack.c.bf16 %v1188_v21, %v1181_v58  ;;  %v11333_v32 = vpack.c.bf16 %v1299_v43, %v1292_v16 }
 0x301   : > { %v12568_v61 = vunpack.i.l.bf16 %v12567_v10  ;;  %v15134_v38 = vpop.permute.xlu1 %12571  ;;  %v11313_v23 = vpack.c.bf16 %v1311_v45, %v1304_v15  ;;  %v12569_v37 = vunpack.i.h.bf16 %v12567_v10  ;;  %v19802_v58 = vunpack.i.h.bf16 %v15055_v1 }
 0x302   : > { %v12574_v3 = vunpack.i.h.bf16 %v15134_v38  ;;  %v12573_v28 = vunpack.i.l.bf16 %v15134_v38  ;;  %11330 = vmatprep.subr.bf16.mxu1 %v11329_v62 }
 0x303   : > { %v1303_v26 = vsel %vm19761_vm3, %v12568_v61, %v12528_v27  ;;  %11312 = vmatpush1.bf16.msra.mxu0 %v11311_v18  ;;  %11332 = vmatpush1.bf16.msra.mxu1 %v11331_v30  ;;  %v1291_v11 = vsel %vm19761_vm3, %v19802_v58, %v12499_v51  ;;  %v1305_v18 = vsel %vm19761_vm3, %v12529_v49, %v12569_v37 }
 0x304   : > { %v1310_v17 = vsel %vm19761_vm3, %v12574_v3, %v12558_v39  ;;  %11314 = vmatprep.subr.bf16.mxu0 %v11313_v23  ;;  %v15143_v47 = vpop.permute.xlu0 %12576  ;;  %11334 = vmatprep.subr.bf16.mxu1 %v11333_v32  ;;  %v11335_v43 = vpack.c.bf16 %v1298_v59, %v1291_v11  ;;  %v1306_v30 = vsel %vm19761_vm3, %v12569_v37, %v12573_v28  ;;  %v15155_v39 = vld [vmem:[%s19649_s3] sm:$0xff]  ;;  %v19804_v59 = vmov 0 }
 0x305   : > { %v12579_v15 = vunpack.i.h.bf16 %v15143_v47  ;;  %v12578_v52 = vunpack.i.l.bf16 %v15143_v47  ;;  %v12582_v21 = vpop.permute.xlu1 %12581  ;;  %v11315_v16 = vpack.c.bf16 %v1310_v17, %v1303_v26  ;;  %v19803_v27 = vpack.c.bf16 %v14943_v41, %v14940_v6  ;;  %v15179_v41 = vld [vmem:[%s19649_s3 + $0x8] sm:$0xff] }
 0x306   : > { %v12584_v23 = vunpack.i.h.bf16 %v12582_v21  ;;  %v12583_v1 = vunpack.i.l.bf16 %v12582_v21  ;;  %v19805_v59 = vsel %vm15169_vm11, 4294967295, %v19804_v59  ;;  %v19807_v6 = vpack.c.bf16 %v14923_v0, %v14901_v34 }
 0x307   : > { %v1312_v51 = vsel %vm19761_vm3, %v12559_v13, %v12578_v52  ;;  %11316 = vmatpush1.bf16.msra.mxu0 %v11315_v16  ;;  %11336 = vmatpush1.bf16.msra.mxu1 %v11335_v43  ;;  %v1313_v49 = vsel %vm19761_vm3, %v12578_v52, %v12579_v15  ;;  %19806 = vst [vmem:[#allocation25_spill] sm:$0xff] %v19805_v59  ;;  %v19809_v26 = vmov 0.0   ;;  %v19810_v34 = vunpack.i.h.bf16 %v15069_v2 }
 0x308   : > { %11342 = vmatprep.subr.bf16.mxu0 %v19803_v27  ;;  %v12592_v42 = vpop.permute.xlu0 %12591  ;;  %v11337_v35 = vpack.c.bf16 %v1313_v49, %v1306_v30  ;;  %v11339_v13 = vpack.c.bf16 %v1312_v51, %v1305_v18  ;;  %v1170_v61 = vsel %vm19762_vm2, %v12583_v1, %v12584_v23  ;;  %v19808_v3 = vpack.c.bf16 %v14980_v55, %v14988_v57  ;;  %v15217_v30 = vld [vmem:[%s19649_s3 + $0x10] sm:$0xff] }
 0x309   : > { %v12594_v10 = vunpack.i.h.bf16 %v12592_v42  ;;  %v12593_v62 = vunpack.i.l.bf16 %v12592_v42  ;;  %v15163_v45 = vpop.permute.xlu1 %12586  ;;  %v19811_v17 = vpack.c.bf16 %v14961_v29, %v14958_v40  ;;  %v19812_v2 = vunpack.i.l.bf16 %v15061_v12 }
 0x30a   : > { %9748 = vmatmul.mubr.msk.f32.vlgmr.msra.gmra.mrb[14].mxu0 %vm19764_vm10, %v15155_v39  ;;  %11338 = vmatprep.subr.bf16.mxu1 %v11337_v35  ;;  %v12589_v52 = vunpack.i.h.bf16 %v15163_v45  ;;  %v12588_v55 = vunpack.i.l.bf16 %v15163_v45  ;;  %v19813_v43 = vpack.c.bf16 %v14955_v7, %v14952_v54  ;;  %v19814_v18 = vpack.c.bf16 %v14967_v24, %v14964_v48 }
 0x30b   : > { %11344 = vmatpush1.bf16.msra.mxu0 %v19807_v6  ;;  %11340 = vmatpush1.bf16.msra.mxu1 %v11339_v13  ;;  %v1177_v37 = vsel %vm19762_vm2, %v12593_v62, %v12594_v10  ;;  %v1176_v58 = vsel %vm19762_vm2, %v19810_v34, %v12593_v62  ;;  %v1169_v16 = vsel %vm19762_vm2, %v19812_v2, %v12583_v1 }
 0x30c   : > { %11346 = vmatprep.subr.bf16.mxu0 %v19808_v3  ;;  %v15186_v32 = vpop.permute.xlu0 %12596  ;;  %1452 = vmatprep.mubr.f32.mxu0 %v19809_v26  ;;  %v11349_v0 = vpack.c.bf16 %v1177_v37, %v1170_v61  ;;  %v11351_v51 = vpack.c.bf16 %v1176_v58, %v1169_v16  ;;  %v19815_v48 = vpack.c.bf16 %v14994_v33, %v14991_v46  ;;  %v19816_v46 = vunpack.i.l.bf16 %v15099_v22 }
 0x30d   : > { %v12602_v11 = vpop.permute.xlu1 %12601  ;;  %11367 = vmatprep.subr.msk.bf16.mxu1 %vm15169_vm11, %v19811_v17  ;;  %v12599_v40 = vunpack.i.h.bf16 %v15186_v32  ;;  %v12598_v29 = vunpack.i.l.bf16 %v15186_v32  ;;  %v1294_v35 = vsel %vm19761_vm3, %v12588_v55, %v12589_v52  ;;  %v19817_v13 = vpack.c.bf16 %v14983_v25, %v14998_v44 }
 0x30e   : > { %v12604_v57 = vunpack.i.h.bf16 %v12602_v11  ;;  %v12603_v21 = vunpack.i.l.bf16 %v12602_v11  ;;  %9749 = vmatmul.mubr.msk.f32.gmra.mrb[16].mxu0 %vm19764_vm10, %v15179_v41  ;;  %9752 = vmatmul.mubr.msk.f32.vlgmr.msra.gmra.mrb[18].mxu1 %vm19764_vm10, %v15155_v39  ;;  %v19818_v61 = vunpack.i.h.bf16 %v15112_v36  ;;  %v19819_v11 = vunpack.i.h.bf16 %v15091_v56 }
 0x30f   : > { %11348 = vmatpush1.bf16.msra.mxu0 %v19813_v43  ;;  %11369 = vmatpush1.bf16.msra.mxu1 %v19814_v18  ;;  %v1301_v6 = vsel %vm19761_vm3, %v12598_v29, %v12599_v40  ;;  %v19820_v56 = vunpack.i.l.bf16 %v15078_v14 }
 0x310   : > { %11350 = vmatprep.subr.bf16.mxu0 %v11349_v0  ;;  %v12607_v12 = vpop.permute.xlu0 %12606  ;;  %1458 = vmatprep.mubr.f32.mxu0 %v19809_v26  ;;  %v1178_v1 = vsel %vm19762_vm2, %v12594_v10, %v12604_v57  ;;  %v1171_v49 = vsel %vm19762_vm2, %v12584_v23, %v12603_v21  ;;  %v11375_v23 = vpack.c.bf16 %v12604_v57, %v12603_v21  ;;  %v15244_v10 = vld [vmem:[%s19649_s3 + $0x18] sm:$0xff] }
 0x311   : > { %v12609_v54 = vunpack.i.h.bf16 %v12607_v12  ;;  %v12608_v7 = vunpack.i.l.bf16 %v12607_v12  ;;  %v12612_v27 = vpop.permute.xlu1 %12611  ;;  %11372 = vmatprep.subr.msk.bf16.mxu1 %vm15169_vm11, %v19815_v48  ;;  %1541 = vmatprep.mubr.f32.mxu1 %v19809_v26  ;;  %v11377_v44 = vpack.c.bf16 %v1178_v1, %v1171_v49  ;;  %v1300_v36 = vsel %vm19761_vm3, %v19819_v11, %v12598_v29 }
 0x312   : > { %v12614_v24 = vunpack.i.h.bf16 %v12612_v27  ;;  %v12613_v42 = vunpack.i.l.bf16 %v12612_v27  ;;  %9750 = vmatmul.mubr.msk.f32.gmra.mrb[18].mxu0 %vm19764_vm10, %v15217_v30  ;;  %9753 = vmatmul.mubr.msk.f32.gmra.mrb[20].mxu1 %vm19764_vm10, %v15179_v41  ;;  %v11357_v21 = vpack.c.bf16 %v1301_v6, %v1294_v35  ;;  %v1293_v29 = vsel %vm19761_vm3, %v19820_v56, %v12588_v55 }
 0x313   : > { %v1183_v33 = vsel %vm19762_vm2, %v19816_v46, %v12608_v7  ;;  %11352 = vmatpush1.bf16.msra.mxu0 %v11351_v51  ;;  %11374 = vmatpush1.bf16.msra.mxu1 %v19817_v13  ;;  %v1184_v62 = vsel %vm19762_vm2, %v12608_v7, %v12609_v54  ;;  %v11359_v55 = vpack.c.bf16 %v1300_v36, %v1293_v29 }
 0x314   : > { %v1190_v22 = vsel %vm19762_vm2, %v19818_v61, %v12613_v42  ;;  %v12622_v37 = vpop.permute.xlu0 %12621  ;;  %1464 = vmatprep.mubr.f32.mxu0 %v19809_v26  ;;  %11376 = vmatprep.subr.bf16.mxu1 %v11375_v23  ;;  %v1191_v25 = vsel %vm19762_vm2, %v12613_v42, %v12614_v24 }
 0x315   : > { %v12624_v3 = vunpack.i.h.bf16 %v12622_v37  ;;  %v12623_v32 = vunpack.i.l.bf16 %v12622_v37  ;;  %v12617_v0 = vpop.permute.xlu1 %12616  ;;  %1547 = vmatprep.mubr.f32.mxu1 %v19809_v26  ;;  %v11353_v34 = vpack.c.bf16 %v1191_v25, %v1184_v62  ;;  %v11355_v58 = vpack.c.bf16 %v1190_v22, %v1183_v33 }
 0x316   : > { %v12619_v17 = vunpack.i.h.bf16 %v12617_v0  ;;  %v12618_v57 = vunpack.i.l.bf16 %v12617_v0  ;;  %9751 = vmatmul.mubr.msk.f32.gmra.mrb[20].mxu0 %vm19764_vm10, %v15244_v10  ;;  %9754 = vmatmul.mubr.msk.f32.gmra.mrb[22].mxu1 %vm19764_vm10, %v15217_v30 }
 0x317   : > { %v1185_v2 = vsel %vm19762_vm2, %v12609_v54, %v12623_v32  ;;  %v1192_v16 = vsel %vm19762_vm2, %v12614_v24, %v12624_v3  ;;  %11354 = vmatprep.subr.bf16.mxu0 %v11353_v34  ;;  %11378 = vmatpush1.bf16.msra.mxu1 %v11377_v44  ;;  %v11379_v43 = vpack.c.bf16 %v12624_v3, %v12623_v32 }
 0x318   : > { %11356 = vmatpush1.bf16.msra.mxu0 %v11355_v58  ;;  %v12627_v18 = vpop.permute.xlu0 %12626  ;;  %1553 = vmatprep.mubr.f32.mxu1 %v19809_v26  ;;  %v11381_v12 = vpack.c.bf16 %v1192_v16, %v1185_v2  ;;  %v1302_v51 = vsel %vm19761_vm3, %v12599_v40, %v12619_v17  ;;  %v1295_v1 = vsel %vm19761_vm3, %v12589_v52, %v12618_v57 }
 0x319   : > { %v12629_v49 = vunpack.i.h.bf16 %v12627_v18  ;;  %v12628_v54 = vunpack.i.l.bf16 %v12627_v18  ;;  %v12632_v7 = vpop.permute.xlu1 %12631  ;;  %11358 = vmatprep.subr.bf16.mxu0 %v11357_v21  ;;  %11380 = vmatprep.subr.bf16.mxu1 %v11379_v43  ;;  %v11383_v48 = vpack.c.bf16 %v12619_v17, %v12618_v57  ;;  %v11385_v23 = vpack.c.bf16 %v1302_v51, %v1295_v1 }
 0x31a   : > { %v12634_v27 = vunpack.i.h.bf16 %v12632_v7  ;;  %v12633_v14 = vunpack.i.l.bf16 %v12632_v7  ;;  %9755 = vmatmul.mubr.msk.f32.gmra.mrb[24].mxu1 %vm19764_vm10, %v15244_v10  ;;  %1624 = vmatprep.mubr.f32.mxu0 %v19809_v26 }
 0x31b   : > { %v1307_v45 = vsel %vm19761_vm3, %v12573_v28, %v12628_v54  ;;  %11382 = vmatpush1.bf16.msra.mxu1 %v11381_v12  ;;  %v1308_v52 = vsel %vm19761_vm3, %v12628_v54, %v12629_v49  ;;  %1713 = vmatprep.mubr.f32.mxu1 %v19809_v26 }
 0x31c   : > { %v1314_v40 = vsel %vm19761_vm3, %v12579_v15, %v12633_v14  ;;  %11360 = vmatpush1.bf16.msra.mxu0 %v11359_v55  ;;  %v12637_v24 = vpop.permute.xlu0 %12636  ;;  %11384 = vmatprep.subr.bf16.mxu1 %v11383_v48  ;;  %v1315_v42 = vsel %vm19761_vm3, %v12633_v14, %v12634_v27 }
 0x31d   : > { %v12639_v35 = vunpack.i.h.bf16 %v12637_v24  ;;  %v12638_v46 = vunpack.i.l.bf16 %v12637_v24  ;;  %v11361_v38 = vpack.c.bf16 %v1315_v42, %v1308_v52  ;;  %v11363_v33 = vpack.c.bf16 %v1314_v40, %v1307_v45 }
 0x31f   : > { %v1309_v28 = vsel %vm19761_vm3, %v12629_v49, %v12638_v46  ;;  %v1316_v13 = vsel %vm19761_vm3, %v12634_v27, %v12639_v35  ;;  %11362 = vmatprep.subr.bf16.mxu0 %v11361_v38  ;;  %11386 = vmatpush1.bf16.msra.mxu1 %v11385_v23  ;;  %v11387_v62 = vpack.c.bf16 %v12639_v35, %v12638_v46 }
 0x320   : > { %11364 = vmatpush1.bf16.msra.mxu0 %v11363_v33  ;;  %v11389_v47 = vpack.c.bf16 %v1316_v13, %v1309_v28 }
 0x321   : > { %11388 = vmatprep.subr.bf16.mxu1 %v11387_v62 }
 0x323   : > { %9756 = vmatmul.mubr.msk.f32.vlgmr.msra.gmra.mrb[22].mxu0 %vm19764_vm10, %v15155_v39  ;;  %11390 = vmatpush1.bf16.msra.mxu1 %v11389_v47 }
 0x324   : > { %1630 = vmatprep.mubr.f32.mxu0 %v19809_v26 }
 0x326   : > { %9764 = vmatmul.mubr.msk.f32.vlgmr.msra.gmra.mrb[26].mxu1 %vm19764_vm10, %v15155_v39 }
 0x327   : > { %9757 = vmatmul.mubr.msk.f32.gmra.mrb[24].mxu0 %vm19764_vm10, %v15179_v41  ;;  %1719 = vmatprep.mubr.f32.mxu1 %v19809_v26 }
 0x328   : > { %1636 = vmatprep.mubr.f32.mxu0 %v19809_v26 }
 0x32a   : > { %9765 = vmatmul.mubr.msk.f32.gmra.mrb[28].mxu1 %vm19764_vm10, %v15179_v41  ;;  %v15309_v15 = vpop.permute.xlu1 %1351 }
 0x32b   : > { %9758 = vmatmul.mubr.msk.f32.gmra.mrb[26].mxu0 %vm19764_vm10, %v15217_v30  ;;  %1725 = vmatprep.mubr.f32.mxu1 %v19809_v26 }
 0x32c   : > { %1642 = vmatprep.mubr.f32.mxu0 %v19809_v26 }
 0x32d   : > { %v15317_v61 = vpop.permute.xlu0 %1356 }
 0x32e   : > { %9766 = vmatmul.mubr.msk.f32.gmra.mrb[30].mxu1 %vm19764_vm10, %v15217_v30  ;;  %v15333_v11 = vpop.permute.xlu1 %1361 }
 0x32f   : > { %9759 = vmatmul.mubr.msk.f32.gmra.mrb[28].mxu0 %vm19764_vm10, %v15244_v10  ;;  %1731 = vmatprep.mubr.f32.mxu1 %v19809_v26 }
 0x330   : > { %2523 = vmatprep.mubr.f32.mxu0 %v19809_v26 }
 0x331   : > { %v15351_v1 = vpop.permute.xlu0 %1366 }
 0x332   : > { %9767 = vmatmul.mubr.msk.f32.gmra.mrb[32].mxu1 %vm19764_vm10, %v15244_v10 }
 0x333   : > { %2612 = vmatprep.mubr.f32.mxu1 %v19809_v26 }
 0x3dd   : > { %v1448_v39 = vpop.f32.mrb[14].mxu0 }
 0x3de   : > { %v15312_v41 = vadd.f32 %v1448_v39, %v15309_v15  ;;  %v1450_v6 = vpop.f32.mrb[15].mxu0 }
 0x3df   : > { %v15315_v30 = vadd.f32 %v1450_v6, %v15309_v15 }
 0x3e0   : > { %v9768_v22 = vmul.f32 -1.442695, %v15312_v41 }
 0x3e1   : > { %v9769_v37 = vmul.f32 -1.442695, %v15315_v30  ;;  %v1454_v25 = vpop.f32.mrb[16].mxu0  ;;  %v1537_v10 = vpop.f32.mrb[18].mxu1 }
 0x3e2   : > { %13870 = vpow2.f32 %v9768_v22  ;;  %v15322_v44 = vadd.f32 %v1454_v25, %v15317_v61  ;;  %v1456_v3 = vpop.f32.mrb[17].mxu0  ;;  %v15325_v32 = vadd.f32 %v1537_v10, %v15309_v15  ;;  %v1539_v0 = vpop.f32.mrb[19].mxu1 }
 0x3e3   : > { %13872 = vpow2.f32 %v9769_v37  ;;  %v15328_v34 = vadd.f32 %v1456_v3, %v15317_v61  ;;  %v15331_v58 = vadd.f32 %v1539_v0, %v15309_v15 }
 0x3e4   : > { %v9776_v36 = vmul.f32 -1.442695, %v15322_v44  ;;  %v9770_v17 = vmul.f32 -1.442695, %v15325_v32 }
 0x3e5   : > { %v9777_v57 = vmul.f32 -1.442695, %v15328_v34  ;;  %v9771_v21 = vmul.f32 -1.442695, %v15331_v58  ;;  %v1460_v2 = vpop.f32.mrb[18].mxu0  ;;  %v1543_v16 = vpop.f32.mrb[20].mxu1 }
 0x3e6   : > { %13874 = vpow2.f32 %v9776_v36  ;;  %v15340_v43 = vadd.f32 %v1460_v2, %v15333_v11  ;;  %v1462_v56 = vpop.f32.mrb[19].mxu0  ;;  %v15343_v29 = vadd.f32 %v1543_v16, %v15317_v61  ;;  %v1545_v18 = vpop.f32.mrb[21].mxu1 }
 0x3e7   : > { %13876 = vpow2.f32 %v9777_v57  ;;  %v15346_v12 = vadd.f32 %v1462_v56, %v15333_v11  ;;  %v15349_v51 = vadd.f32 %v1545_v18, %v15317_v61 }
 0x3e8   : > { %13878 = vpow2.f32 %v9770_v17  ;;  %v9784_v49 = vmul.f32 -1.442695, %v15340_v43  ;;  %v9778_v54 = vmul.f32 -1.442695, %v15343_v29 }
 0x3e9   : > { %13880 = vpow2.f32 %v9771_v21  ;;  %v9785_v7 = vmul.f32 -1.442695, %v15346_v12  ;;  %v9779_v27 = vmul.f32 -1.442695, %v15349_v51  ;;  %v1466_v14 = vpop.f32.mrb[20].mxu0  ;;  %v1549_v55 = vpop.f32.mrb[22].mxu1 }
 0x3ea   : > { %13882 = vpow2.f32 %v9784_v49  ;;  %v15358_v48 = vadd.f32 %v1466_v14, %v15351_v1  ;;  %v1468_v45 = vpop.f32.mrb[21].mxu0  ;;  %v15361_v52 = vadd.f32 %v1549_v55, %v15333_v11  ;;  %v1551_v40 = vpop.f32.mrb[23].mxu1 }
 0x3eb   : > { %13884 = vpow2.f32 %v9785_v7  ;;  %v15364_v24 = vadd.f32 %v1468_v45, %v15351_v1  ;;  %v15370_v36 = vadd.f32 %v1551_v40, %v15333_v11 }
 0x3ec   : > { %v13871_v42 = vpop.eup %13870  ;;  %13886 = vpow2.f32 %v9778_v54  ;;  %v9792_v23 = vmul.f32 -1.442695, %v15358_v48  ;;  %v9786_v13 = vmul.f32 -1.442695, %v15361_v52 }
 0x3ed   : > { %v13873_v35 = vpop.eup %13872  ;;  %v1834_v46 = vadd.f32 1.0, %v13871_v42  ;;  %13888 = vpow2.f32 %v9779_v27  ;;  %v9793_v38 = vmul.f32 -1.442695, %v15364_v24  ;;  %v1555_v33 = vpop.f32.mrb[24].mxu1  ;;  %v9787_v27 = vmul.f32 -1.442695, %v15370_v36 }
 0x3ee   : > { %v1835_v28 = vadd.f32 1.0, %v13873_v35  ;;  %13890 = vpow2.f32 %v9792_v23  ;;  %v1557_v62 = vpop.f32.mrb[25].mxu1  ;;  %v15373_v21 = vadd.f32 %v1555_v33, %v15351_v1 }
 0x3ef   : > { %13892 = vrcp.f32 %v1834_v46 }
 0x3f0   : > { %v13875_v47 = vpop.eup %13874  ;;  %13894 = vrcp.f32 %v1835_v28  ;;  %v9794_v45 = vmul.f32 -1.442695, %v15373_v21 }
 0x3f1   : > { %v13877_v39 = vpop.eup %13876  ;;  %v1842_v6 = vadd.f32 1.0, %v13875_v47  ;;  %13896 = vpow2.f32 %v9793_v38 }
 0x3f2   : > { %v13879_v22 = vpop.eup %13878  ;;  %v1843_v37 = vadd.f32 1.0, %v13877_v39  ;;  %13898 = vpow2.f32 %v9786_v13 }
 0x3f3   : > { %v13881_v25 = vpop.eup %13880  ;;  %v1836_v10 = vadd.f32 1.0, %v13879_v22  ;;  %13900 = vrcp.f32 %v1842_v6 }
 0x3f4   : > { %v13883_v3 = vpop.eup %13882  ;;  %v1837_v0 = vadd.f32 1.0, %v13881_v25  ;;  %13902 = vrcp.f32 %v1843_v37  ;;  %v15390_v25 = vadd.f32 %v1557_v62, %v15351_v1 }
 0x3f5   : > { %v13885_v17 = vpop.eup %13884  ;;  %v1850_v57 = vadd.f32 1.0, %v13883_v3  ;;  %13904 = vrcp.f32 %v1836_v10 }
 0x3f6   : > { %v13887_v2 = vpop.eup %13886  ;;  %v1851_v16 = vadd.f32 1.0, %v13885_v17  ;;  %v1626_v56 = vpop.f32.mrb[22].mxu0  ;;  %13906 = vrcp.f32 %v1837_v0 }
 0x3f7   : > { %v13889_v18 = vpop.eup %13888  ;;  %v1844_v49 = vadd.f32 1.0, %v13887_v2  ;;  %v1628_v54 = vpop.f32.mrb[23].mxu0  ;;  %13908 = vrcp.f32 %v1850_v57  ;;  %v15378_v40 = vadd.f32 %v1626_v56, %v15309_v15 }
 0x3f8   : > { %v13891_v7 = vpop.eup %13890  ;;  %13910 = vrcp.f32 %v1851_v16  ;;  %v1845_v35 = vadd.f32 1.0, %v13889_v18  ;;  %v15381_v46 = vadd.f32 %v1628_v54, %v15309_v15 }
 0x3f9   : > { %v13893_v14 = vpop.eup %13892  ;;  %v1858_v55 = vadd.f32 1.0, %v13891_v7  ;;  %v1715_v42 = vpop.f32.mrb[26].mxu1  ;;  %13912 = vrcp.f32 %v1844_v49  ;;  %v9772_v10 = vmul.f32 -1.442695, %v15378_v40 }
 0x3fa   : > { %v13895_v23 = vpop.eup %13894  ;;  %v1632_v38 = vpop.f32.mrb[24].mxu0  ;;  %v15387_v22 = vadd.f32 %v1715_v42, %v15309_v15  ;;  %v1930_v17 = vmul.f32 %v13893_v14, %v15312_v41  ;;  %v9773_v57 = vmul.f32 -1.442695, %v15381_v46 }
 0x3fb   : > { %v1717_v33 = vpop.f32.mrb[27].mxu1  ;;  %v13897_v28 = vpop.eup %13896  ;;  %13914 = vrcp.f32 %v1858_v55  ;;  %v15384_v13 = vadd.f32 %v1632_v38, %v15317_v61  ;;  %v1931_v49 = vmul.f32 %v13895_v23, %v15315_v30 }
 0x3fc   : > { %v1634_v47 = vpop.f32.mrb[25].mxu0  ;;  %v13899_v39 = vpop.eup %13898  ;;  %v1859_v6 = vadd.f32 1.0, %v13897_v28  ;;  %13916 = vpow2.f32 %v9787_v27  ;;  %v9774_v41 = vmul.f32 -1.442695, %v15387_v22  ;;  %v15411_v30 = vadd.f32 %v1717_v33, %v15309_v15 }
 0x3fd   : > { %v1852_v37 = vadd.f32 1.0, %v13899_v39  ;;  %13918 = vpow2.f32 %v9794_v45  ;;  %v1721_v3 = vpop.f32.mrb[28].mxu1  ;;  %v13901_v0 = vpop.eup %13900  ;;  %v15396_v2 = vadd.f32 %v1634_v47, %v15317_v61  ;;  %v9780_v62 = vmul.f32 -1.442695, %v15384_v13 }
 0x3fe   : > { %13920 = vrcp.f32 %v1845_v35  ;;  %v1638_v16 = vpop.f32.mrb[26].mxu0  ;;  %v1723_v56 = vpop.f32.mrb[29].mxu1  ;;  %v15405_v14 = vadd.f32 %v1721_v3, %v15317_v61  ;;  %v9795_v35 = vmul.f32 -1.442695, %v15390_v25  ;;  %v15421_v39 = vadd.f32 %v1930_v17, %v14727_v50 }
 0x3ff   : > { %v13903_v18 = vpop.eup %13902  ;;  %13922 = vrcp.f32 %v1852_v37  ;;  %v15401_v54 = vadd.f32 %v1638_v16, %v15333_v11  ;;  %v1640_v7 = vpop.f32.mrb[27].mxu0  ;;  %v9781_v45 = vmul.f32 -1.442695, %v15396_v2  ;;  %v15437_v17 = vadd.f32 %v1723_v56, %v15317_v61 }
 0x400   : > { %v13905_v27 = vpop.eup %13904  ;;  %13924 = vrcp.f32 %v1859_v6  ;;  %v15424_v6 = vadd.f32 %v1931_v49, %v14730_v53  ;;  %v9782_v3 = vmul.f32 -1.442695, %v15405_v14  ;;  %v9775_v53 = vmul.f32 -1.442695, %v15411_v30 }
 0x401   : > { %v15407_v55 = vpop.eup %13906  ;;  %13926 = vpow2.f32 %v9772_v10  ;;  %v15413_v42 = vpop.f32.mrb[30].mxu1  ;;  %v9788_v15 = vmul.f32 -1.442695, %v15401_v54  ;;  %v1938_v10 = vmul.f32 %v13901_v0, %v15322_v44  ;;  %v1932_v50 = vmul.f32 %v13905_v27, %v15325_v32 }
 0x402   : > { %v13909_v23 = vpop.eup %13908  ;;  %13928 = vpow2.f32 %v9773_v57  ;;  %v15416_v38 = vpop.f32.mrb[28].mxu0  ;;  %v15432_v57 = vadd.f32 %v1640_v7, %v15333_v11  ;;  %v1939_v44 = vmul.f32 %v13903_v18, %v15328_v34  ;;  %v12640_v61 = vpack.i.bf16 %v15424_v6, %v15421_v39 }
 0x403   : > { %v15418_v28 = vpop.f32.mrb[31].mxu1  ;;  %v13911_v47 = vpop.eup %13910  ;;  %13930 = vpow2.f32 %v9780_v62  ;;  %v1946_v0 = vmul.f32 %v13909_v23, %v15340_v43  ;;  %v15454_v18 = vadd.f32 %v1938_v10, %v14738_v60  ;;  %v15457_v23 = vadd.f32 %v1932_v50, %v14743_v63 }
 0x404   : > { %v15427_v33 = vpop.f32.mrb[29].mxu0  ;;  %v13913_v37 = vpop.eup %13912  ;;  %13932 = vpow2.f32 %v9774_v41  ;;  %v1947_v41 = vmul.f32 %v13911_v47, %v15346_v12  ;;  %v9789_v43 = vmul.f32 -1.442695, %v15432_v57  ;;  %12641 = vrot.lane.b32.xlu1 %v12640_v61, %s14459_s18 }
 0x405   : > { %v13915_v16 = vpop.eup %13914  ;;  %13934 = vpow2.f32 %v9781_v45  ;;  %v15439_v49 = vpop.f32.mrb[32].mxu1  ;;  %v1940_v32 = vmul.f32 %v13913_v37, %v15343_v29  ;;  %v9783_v29 = vmul.f32 -1.442695, %v15437_v17  ;;  %v15463_v47 = vadd.f32 %v1946_v0, %v14748_v4 }
 0x406   : > { %v13917_v62 = vpop.eup %13916  ;;  %13936 = vpow2.f32 %v9795_v35  ;;  %v15444_v7 = vpop.f32.mrb[33].mxu1  ;;  %v1954_v45 = vmul.f32 %v13915_v16, %v15358_v48  ;;  %v15466_v60 = vadd.f32 %v1947_v41, %v14751_v5  ;;  %v15472_v37 = vadd.f32 %v1939_v44, %v14754_v8 }
 0x407   : > { %v13919_v59 = vpop.eup %13918  ;;  %v1853_v27 = vadd.f32 1.0, %v13917_v62  ;;  %13938 = vpow2.f32 %v9788_v15  ;;  %v15469_v63 = vadd.f32 %v1940_v32, %v14757_v9  ;;  %v12645_v5 = vpack.i.bf16 %v15454_v18, %v15457_v23 }
 0x408   : > { %v15449_v56 = vpop.eup %13920  ;;  %v1860_v34 = vadd.f32 1.0, %v13919_v59  ;;  %13940 = vpow2.f32 %v9782_v3  ;;  %v15475_v10 = vadd.f32 %v1954_v45, %v14773_v19  ;;  %v15484_v8 = vadd.f32 %v15416_v38, %v15351_v1 }
 0x409   : > { %v13923_v12 = vpop.eup %13922  ;;  %13942 = vpow2.f32 %v9775_v53  ;;  %v15488_v19 = vadd.f32 %v15413_v42, %v15333_v11  ;;  %12646 = vrot.lane.b32.xlu0 %v12645_v5, %s14459_s18  ;;  %v12655_v62 = vpack.i.bf16 %v15469_v63, %v15472_v37  ;;  %v12650_v44 = vpack.i.bf16 %v15466_v60, %v15463_v47 }
 0x40a   : > { %v13925_v35 = vpop.eup %13924  ;;  %v1948_v48 = vmul.f32 %v13923_v12, %v15361_v52  ;;  %13944 = vrcp.f32 %v1860_v34  ;;  %v9796_v61 = vmul.f32 -1.442695, %v15484_v8  ;;  %v15501_v45 = vadd.f32 %v15427_v33, %v15351_v1 }
 0x40b   : > { %v13927_v59 = vpop.eup %13926  ;;  %13946 = vrcp.f32 %v1853_v27  ;;  %12656 = vrot.lane.b32.xlu1 %v12655_v62, %s14459_s18 }
 0x40c   : > { %v13929_v15 = vpop.eup %13928  ;;  %v1838_v52 = vadd.f32 1.0, %v13927_v59  ;;  %13948 = vpow2.f32 %v9789_v43  ;;  %v15478_v4 = vadd.f32 %v1948_v48, %v14776_v20  ;;  %v1955_v43 = vmul.f32 %v13925_v35, %v15364_v24 }
 0x40d   : > { %v13931_v3 = vpop.eup %13930  ;;  %v1839_v16 = vadd.f32 1.0, %v13929_v15  ;;  %13950 = vpow2.f32 %v9783_v29  ;;  %v9790_v29 = vmul.f32 -1.442695, %v15488_v19  ;;  %v15507_v48 = vadd.f32 %v15418_v28, %v15333_v11  ;;  %12651 = vrot.lane.b32.xlu0 %v12650_v44, %s14459_s18 }
 0x40e   : > { %v13933_v9 = vpop.eup %13932  ;;  %13952 = vrcp.f32 %v1838_v52  ;;  %v1846_v50 = vadd.f32 1.0, %v13931_v3  ;;  %v12660_v42 = vpack.i.bf16 %v15475_v10, %v15478_v4  ;;  %v15512_v15 = vadd.f32 %v15439_v49, %v15351_v1 }
 0x40f   : > { %v13935_v53 = vpop.eup %13934  ;;  %13954 = vrcp.f32 %v1839_v16  ;;  %v1840_v20 = vadd.f32 1.0, %v13933_v9  ;;  %v15517_v24 = vadd.f32 %v15444_v7, %v15351_v1  ;;  %v1933_v28 = vmul.f32 %v15407_v55, %v15331_v58  ;;  %v19821_v16 = vld [vmem:[#allocation7_spill] sm:$0xff] }
 0x410   : > { %v13937_v0 = vpop.eup %13936  ;;  %13956 = vrcp.f32 %v1846_v50  ;;  %v1847_v41 = vadd.f32 1.0, %v13935_v53  ;;  %12661 = vrot.lane.b32.xlu1 %v12660_v42, %s14459_s18  ;;  %v1941_v35 = vmul.f32 %v15449_v56, %v15349_v51  ;;  %v9797_v49 = vmul.f32 -1.442695, %v15501_v45  ;;  %v19825_v42 = vld [vmem:[#allocation3_spill] sm:$0xff] }
 0x411   : > { %v13939_v38 = vpop.eup %13938  ;;  %13958 = vrcp.f32 %v1840_v20  ;;  %v9791_v1 = vmul.f32 -1.442695, %v15507_v48  ;;  %v9798_v9 = vmul.f32 -1.442695, %v15512_v15  ;;  %v9799_v51 = vmul.f32 -1.442695, %v15517_v24 }
 0x412   : > { %v13941_v32 = vpop.eup %13940  ;;  %13960 = vrcp.f32 %v1847_v41  ;;  %v1854_v27 = vadd.f32 1.0, %v13939_v38  ;;  %v19824_v20 = vld [vmem:[#allocation6_spill] sm:$0xff]  ;;  %v1861_v38 = vadd.f32 1.0, %v13937_v0 }
 0x413   : > { %v13943_v34 = vpop.eup %13942  ;;  %v1848_v12 = vadd.f32 1.0, %v13941_v32  ;;  %v15541_v62 = vadd.f32 %v1941_v35, %v19824_v20  ;;  %v19829_v35 = vld [vmem:[#allocation12_spill] sm:$0xff] }
 0x414   : > { %v13945_v59 = vpop.eup %13944  ;;  %13962 = vrcp.f32 %v1854_v27 }
 0x415   : > { %v13947_v33 = vpop.eup %13946  ;;  %v1956_v52 = vmul.f32 %v13945_v59, %v15373_v21  ;;  %13964 = vrcp.f32 %v1848_v12  ;;  %v15526_v21 = vadd.f32 %v1955_v43, %v14791_v31  ;;  %v19823_v31 = vld [vmem:[#allocation4_spill] sm:$0xff]  ;;  %v1841_v43 = vadd.f32 1.0, %v13943_v34 }
 0x416   : > { %v13949_v11 = vpop.eup %13948  ;;  %13966 = vpow2.f32 %v9796_v61  ;;  %v15538_v53 = vadd.f32 %v1933_v28, %v19823_v31 }
 0x417   : > { %v13951_v3 = vpop.eup %13950  ;;  %v15529_v5 = vadd.f32 %v1956_v52, %v19821_v16  ;;  %13968 = vpow2.f32 %v9790_v29  ;;  %v1855_v12 = vadd.f32 1.0, %v13949_v11  ;;  %v1949_v29 = vmul.f32 %v13947_v33, %v15370_v36 }
 0x418   : > { %v13953_v7 = vpop.eup %13952  ;;  %13970 = vpow2.f32 %v9797_v49  ;;  %v1849_v34 = vadd.f32 1.0, %v13951_v3  ;;  %v19833_v3 = vld [vmem:[#allocation8_spill] sm:$0xff] }
 0x419   : > { %19822 = vst [vmem:[#allocation7_spill] sm:$0xff] %v15529_v5  ;;  %v13955_v58 = vpop.eup %13954  ;;  %v1934_v55 = vmul.f32 %v13953_v7, %v15378_v40  ;;  %v12665_v56 = vpack.i.bf16 %v15529_v5, %v15526_v21  ;;  %13972 = vpow2.f32 %v9791_v1 }
 0x41a   : > { %v13957_v50 = vpop.eup %13956  ;;  %v1935_v44 = vmul.f32 %v13955_v58, %v15381_v46  ;;  %13974 = vpow2.f32 %v9798_v9  ;;  %v19826_v46 = vld [vmem:[#allocation5_spill] sm:$0xff] }
 0x41b   : > { %v13959_v41 = vpop.eup %13958  ;;  %v15545_v32 = vadd.f32 %v1934_v55, %v19825_v42  ;;  %v1942_v40 = vmul.f32 %v13957_v50, %v15384_v13  ;;  %12666 = vrot.lane.b32.xlu0 %v12665_v56, %s14459_s18  ;;  %13976 = vpow2.f32 %v9799_v51  ;;  %v19827_v13 = vld [vmem:[#allocation13_spill] sm:$0xff]  ;;  %v19834_v51 = vld [vmem:[#allocation14_spill] sm:$0xff]  ;;  %v19836_v50 = vld [vmem:[#allocation15_spill] sm:$0xff] }
 0x41c   : > { %v13961_v27 = vpop.eup %13960  ;;  %v1936_v61 = vmul.f32 %v13959_v41, %v15387_v22  ;;  %v15557_v28 = vadd.f32 %v1935_v44, %v19827_v13  ;;  %13978 = vrcp.f32 %v1861_v38  ;;  %v19831_v58 = vld [vmem:[#allocation9_spill] sm:$0xff] }
 0x41d   : > { %v15552_v59 = vadd.f32 %v1942_v40, %v19826_v46  ;;  %v12670_v0 = vpack.i.bf16 %v15545_v32, %v15538_v53  ;;  %v1943_v22 = vmul.f32 %v13961_v27, %v15396_v2  ;;  %13980 = vrcp.f32 %v1855_v12 }
 0x41e   : > { %v13963_v52 = vpop.eup %13962  ;;  %19828 = vst [vmem:[#allocation4_spill] sm:$0xff] %v15557_v28  ;;  %v15560_v49 = vadd.f32 %v1936_v61, %v19829_v35  ;;  %v15571_v2 = vadd.f32 %v1949_v29, %v19831_v58  ;;  %13982 = vrcp.f32 %v1841_v43 }
 0x41f   : > { %v13965_v11 = vpop.eup %13964  ;;  %v1950_v36 = vmul.f32 %v13963_v52, %v15401_v54  ;;  %12671 = vrot.lane.b32.xlu1 %v12670_v0, %s14459_s18  ;;  %v12675_v33 = vpack.i.bf16 %v15552_v59, %v15541_v62  ;;  %v15578_v56 = vadd.f32 %v1943_v22, %v19834_v51  ;;  %13984 = vrcp.f32 %v1849_v34 }
 0x420   : > { %19830 = vst [vmem:[#allocation6_spill] sm:$0xff] %v15560_v49  ;;  %v13967_v16 = vpop.eup %13966  ;;  %v1944_v1 = vmul.f32 %v13965_v11, %v15405_v14  ;;  %v12680_v7 = vpack.i.bf16 %v15560_v49, %v15557_v28  ;;  %19832 = vst [vmem:[#allocation3_spill] sm:$0xff] %v15571_v2 }
 0x421   : > { %v13969_v9 = vpop.eup %13968  ;;  %v15574_v55 = vadd.f32 %v1950_v36, %v19833_v3  ;;  %v1862_v54 = vadd.f32 1.0, %v13967_v16  ;;  %12676 = vrot.lane.b32.xlu0 %v12675_v33, %s14459_s18  ;;  %19835 = vst [vmem:[#allocation5_spill] sm:$0xff] %v15578_v56  ;;  %v19838_v16 = vld [vmem:[#allocation10_spill] sm:$0xff] }
 0x422   : > { %v15581_v14 = vadd.f32 %v1944_v1, %v19836_v50  ;;  %v1856_v31 = vadd.f32 1.0, %v13969_v9  ;;  %v13971_v44 = vpop.eup %13970 }
 0x423   : > { %13986 = vrcp.f32 %v1862_v54  ;;  %12681 = vrot.lane.b32.xlu1 %v12680_v7, %s14459_s18  ;;  %v12685_v20 = vpack.i.bf16 %v15574_v55, %v15571_v2  ;;  %v13973_v38 = vpop.eup %13972  ;;  %v1863_v42 = vadd.f32 1.0, %v13971_v44  ;;  %v19840_v7 = vld [vmem:[#allocation11_spill] sm:$0xff] }
 0x424   : > { %19837 = vst [vmem:[#allocation13_spill] sm:$0xff] %v15581_v14  ;;  %13988 = vrcp.f32 %v1856_v31  ;;  %v12690_v41 = vpack.i.bf16 %v15581_v14, %v15578_v56  ;;  %v13975_v40 = vpop.eup %13974  ;;  %v1857_v27 = vadd.f32 1.0, %v13973_v38  ;;  %v19846_v31 = vld [vmem:[#allocation16_spill] sm:$0xff]  ;;  %v19848_v38 = vld [vmem:[#allocation18_spill] sm:$0xff] }
 0x425   : > { %v13977_v61 = vpop.eup %13976  ;;  %13990 = vrcp.f32 %v1863_v42  ;;  %v1864_v43 = vadd.f32 1.0, %v13975_v40  ;;  %v19850_v40 = vld [vmem:[#allocation20_spill] sm:$0xff] }
 0x426   : > { %12691 = vrot.lane.b32.xlu0 %v12690_v41, %s14459_s18  ;;  %13992 = vrcp.f32 %v1857_v27  ;;  %v1865_v12 = vadd.f32 1.0, %v13977_v61  ;;  %v13979_v29 = vpop.eup %13978 }
 0x427   : > { %12686 = vrot.lane.b32.xlu1 %v12685_v20, %s14459_s18  ;;  %13994 = vrcp.f32 %v1864_v43  ;;  %v13981_v46 = vpop.eup %13980  ;;  %v1957_v13 = vmul.f32 %v13979_v29, %v15390_v25  ;;  %v19842_v25 = vld [vmem:[#allocation17_spill] sm:$0xff]  ;;  %v19854_v29 = vld [vmem:[#allocation23_spill] sm:$0xff] }
 0x428   : > { %13996 = vrcp.f32 %v1865_v12  ;;  %v13983_v0 = vpop.eup %13982  ;;  %v1951_v22 = vmul.f32 %v13981_v46, %v15432_v57  ;;  %v19844_v57 = vld [vmem:[#allocation19_spill] sm:$0xff]  ;;  %v19852_v43 = vld [vmem:[#allocation21_spill] sm:$0xff] }
 0x429   : > { %v13985_v52 = vpop.eup %13984  ;;  %v15596_v1 = vadd.f32 %v1957_v13, %v19838_v16  ;;  %v1937_v3 = vmul.f32 %v13983_v0, %v15411_v30 }
 0x42a   : > { %v1945_v36 = vmul.f32 %v13985_v52, %v15437_v17  ;;  %v15603_v54 = vadd.f32 %v1951_v22, %v19842_v25 }
 0x42b   : > { %19839 = vst [vmem:[#allocation12_spill] sm:$0xff] %v15596_v1  ;;  %v15619_v42 = vadd.f32 %v1937_v3, %v19848_v38  ;;  %v19858_v38 = vmov 0 }
 0x42c   : > { %19843 = vst [vmem:[#allocation8_spill] sm:$0xff] %v15603_v54  ;;  %v15612_v20 = vadd.f32 %v1945_v36, %v19846_v31  ;;  %v19859_v38 = vsel %vm15659_vm14, 4294967295, %v19858_v38 }
 0x42d   : > { %v13987_v35 = vpop.eup %13986  ;;  %19849 = vst [vmem:[#allocation10_spill] sm:$0xff] %v15619_v42  ;;  %19860 = vst [vmem:[#allocation18_spill] sm:$0xff] %v19859_v38 }
 0x42e   : > { %v13989_v34 = vpop.eup %13988  ;;  %v1958_v11 = vmul.f32 %v13987_v35, %v15484_v8  ;;  %19847 = vst [vmem:[#allocation15_spill] sm:$0xff] %v15612_v20 }
 0x42f   : > { %v1952_v33 = vmul.f32 %v13989_v34, %v15488_v19  ;;  %v13991_v58 = vpop.eup %13990 }
 0x430   : > { %v15599_v9 = vadd.f32 %v1958_v11, %v19840_v7  ;;  %v13993_v8 = vpop.eup %13992  ;;  %v1959_v17 = vmul.f32 %v13991_v58, %v15501_v45 }
 0x431   : > { %v15606_v51 = vadd.f32 %v1952_v33, %v19844_v57  ;;  %v13995_v50 = vpop.eup %13994  ;;  %v1953_v61 = vmul.f32 %v13993_v8, %v15507_v48 }
 0x432   : > { %19841 = vst [vmem:[#allocation9_spill] sm:$0xff] %v15599_v9  ;;  %v12695_v19 = vpack.i.bf16 %v15599_v9, %v15596_v1  ;;  %v13997_v30 = vpop.eup %13996  ;;  %v1960_v41 = vmul.f32 %v13995_v50, %v15512_v15  ;;  %v15624_v27 = vadd.f32 %v1959_v17, %v19850_v40  ;;  %v12710_v15 = vpack.i.bf16 %v15612_v20, %v15619_v42 }
 0x433   : > { %19845 = vst [vmem:[#allocation14_spill] sm:$0xff] %v15606_v51  ;;  %v12700_v44 = vpack.i.bf16 %v15606_v51, %v15603_v54  ;;  %v1961_v45 = vmul.f32 %v13997_v30, %v15517_v24  ;;  %v19856_v24 = vld [vmem:[#allocation22_spill] sm:$0xff] }
 0x434   : > { %12696 = vrot.lane.b32.xlu0 %v12695_v19, %s14459_s18  ;;  %19851 = vst [vmem:[#allocation11_spill] sm:$0xff] %v15624_v27  ;;  %v15628_v12 = vadd.f32 %v1960_v41, %v19852_v43  ;;  %v15639_v52 = vadd.f32 %v1953_v61, %v19856_v24 }
 0x435   : > { %12701 = vrot.lane.b32.xlu1 %v12700_v44, %s14459_s18  ;;  %v15633_v46 = vadd.f32 %v1961_v45, %v19854_v29 }
 0x436   : > { %19853 = vst [vmem:[#allocation17_spill] sm:$0xff] %v15628_v12  ;;  %v12705_v0 = vpack.i.bf16 %v15628_v12, %v15624_v27  ;;  %19857 = vst [vmem:[#allocation16_spill] sm:$0xff] %v15639_v52 }
 0x437   : > { %19855 = vst [vmem:[#allocation19_spill] sm:$0xff] %v15633_v46  ;;  %v12715_v48 = vpack.i.bf16 %v15633_v46, %v15639_v52 }
 0x438   : > { %12706 = vrot.lane.b32.xlu0 %v12705_v0, %s14459_s18 }
 0x439   : > { %12711 = vrot.lane.b32.xlu1 %v12710_v15, %s14459_s18 }
 0x43c   : > { %12716 = vrot.lane.b32.xlu0 %v12715_v48, %s14459_s18 }
 0x476   : > { %v12642_v13 = vpop.permute.xlu1 %12641 }
 0x477   : > { %v12643_v35 = vunpack.i.l.bf16 %v12642_v13  ;;  %v12644_v36 = vunpack.i.h.bf16 %v12642_v13 }
 0x479   : > { %v2151_v58 = vsel %vm19760_vm12, 0.0, %v12643_v35  ;;  %v2091_v30 = vsel %vm19760_vm12, %v12643_v35, %v12644_v36 }
 0x47b   : > { %v15645_v22 = vpop.permute.xlu0 %12646 }
 0x47c   : > { %v12649_v34 = vunpack.i.h.bf16 %v15645_v22  ;;  %v12648_v8 = vunpack.i.l.bf16 %v15645_v22 }
 0x47d   : > { %v12657_v11 = vpop.permute.xlu1 %12656 }
 0x47e   : > { %v12659_v33 = vunpack.i.h.bf16 %v12657_v11  ;;  %v12658_v16 = vunpack.i.l.bf16 %v12657_v11  ;;  %v2152_v3 = vsel %vm19760_vm12, 0.0, %v12649_v34  ;;  %v11393_v45 = vpack.c.bf16 %v12649_v34, %v12643_v35 }
 0x47f   : > { %v12652_v7 = vpop.permute.xlu0 %12651  ;;  %v12720_v57 = vpack.i.bf16 %v2152_v3, %v2151_v58  ;;  %v2092_v43 = vsel %vm19760_vm12, %v12644_v36, %v12648_v8 }
 0x480   : > { %v12653_v25 = vunpack.i.l.bf16 %v12652_v7  ;;  %v2098_v19 = vsel %vm19760_vm12, %v12649_v34, %v12658_v16  ;;  %v2099_v50 = vsel %vm19760_vm12, %v12658_v16, %v12659_v33  ;;  %v12654_v29 = vunpack.i.h.bf16 %v12652_v7 }
 0x481   : > { %12721 = vrot.lane.b32.xlu1 %v12720_v57, %s14457_s17  ;;  %v12740_v44 = vpack.i.bf16 %v2099_v50, %v2098_v19  ;;  %v11391_v41 = vpack.c.bf16 %v2098_v19, %v2091_v30  ;;  %v12730_v13 = vpack.i.bf16 %v2092_v43, %v2091_v30 }
 0x482   : > { %v15652_v17 = vpop.permute.xlu1 %12661  ;;  %v2153_v40 = vsel %vm19760_vm12, 0.0, %v12653_v25  ;;  %v2105_v35 = vsel %vm19760_vm12, %v12653_v25, %v12654_v29 }
 0x483   : > { %v12664_v31 = vunpack.i.h.bf16 %v15652_v17  ;;  %12741 = vrot.lane.b32.xlu0 %v12740_v44, %s14457_s17  ;;  %11392 = vmatprep.subr.bf16.mxu0 %v11391_v41  ;;  %v12663_v34 = vunpack.i.l.bf16 %v15652_v17 }
 0x484   : > { %11395 = vmatpush1.bf16.msk.msra.mxu0 %vm15659_vm14, %v11393_v45 }
 0x485   : > { %v2154_v61 = vsel %vm19760_vm12, 0.0, %v12664_v31  ;;  %12726 = vrot.lane.b32.xlu1 %v12720_v57, %s14460_s19  ;;  %v11398_v16 = vpack.c.bf16 %v12664_v31, %v12653_v25  ;;  %v15689_v25 = vsel %vm19760_vm12, %v12654_v29, %v12663_v34 }
 0x486   : > { %v12745_v15 = vpack.i.bf16 %v2154_v61, %v2153_v40 }
 0x488   : > { %12746 = vrot.lane.b32.xlu0 %v12745_v15, %s14457_s17 }
 0x489   : > { %12731 = vrot.lane.b32.xlu1 %v12730_v13, %s14457_s17 }
 0x48c   : > { %12751 = vrot.lane.b32.xlu0 %v12740_v44, %s14460_s19 }
 0x48d   : > { %v15670_v0 = vpop.permute.xlu0 %12666  ;;  %12736 = vrot.lane.b32.xlu1 %v12730_v13, %s14460_s19 }
 0x48e   : > { %v12669_v24 = vunpack.i.h.bf16 %v15670_v0  ;;  %v12668_v48 = vunpack.i.l.bf16 %v15670_v0 }
 0x490   : > { %v2112_v22 = vsel %vm19760_vm12, %v12664_v31, %v12668_v48  ;;  %v15682_v7 = vsel %vm19760_vm12, %v12668_v48, %v12669_v24  ;;  %12756 = vrot.lane.b32.xlu0 %v12745_v15, %s14460_s19 }
 0x491   : > { %v11396_v11 = vpack.c.bf16 %v2112_v22, %v2105_v35  ;;  %v12672_v36 = vpop.permute.xlu1 %12671  ;;  %v12770_v31 = vpack.i.bf16 %v15682_v7, %v2112_v22  ;;  %v12760_v22 = vpack.i.bf16 %v15689_v25, %v2105_v35 }
 0x492   : > { %v12674_v58 = vunpack.i.h.bf16 %v12672_v36  ;;  %v12673_v3 = vunpack.i.l.bf16 %v12672_v36 }
 0x493   : > { %11397 = vmatprep.subr.bf16.mxu0 %v11396_v11  ;;  %v12677_v57 = vpop.permute.xlu0 %12676  ;;  %12771 = vrot.lane.b32.xlu1 %v12770_v31, %s14457_s17  ;;  %v11419_v11 = vpack.c.bf16 %v2099_v50, %v2092_v43 }
 0x494   : > { %11400 = vmatpush1.bf16.msk.msra.mxu0 %vm15659_vm14, %v11398_v16  ;;  %v12679_v17 = vunpack.i.h.bf16 %v12677_v57  ;;  %v12678_v19 = vunpack.i.l.bf16 %v12677_v57  ;;  %v15695_v44 = vsel %vm19760_vm12, %v12673_v3, %v12674_v58  ;;  %v2093_v45 = vsel %vm19760_vm12, %v12648_v8, %v12673_v3  ;;  %12761 = vrot.lane.b32.xlu0 %v12760_v22, %s14457_s17 }
 0x495   : > { %v15692_v30 = vpop.permute.xlu1 %12681  ;;  %v12780_v35 = vpack.i.bf16 %v15695_v44, %v2093_v45 }
 0x496   : > { %v15699_v41 = vsel %vm19760_vm12, %v12678_v19, %v12679_v17  ;;  %v2100_v40 = vsel %vm19760_vm12, %v12659_v33, %v12678_v19  ;;  %v12684_v48 = vunpack.i.h.bf16 %v15692_v30  ;;  %v12683_v13 = vunpack.i.l.bf16 %v15692_v30 }
 0x497   : > { %v11417_v61 = vpack.c.bf16 %v2100_v40, %v2093_v45  ;;  %12776 = vrot.lane.b32.xlu1 %v12770_v31, %s14460_s19 }
 0x498   : > { %v12692_v15 = vpop.permute.xlu0 %12691  ;;  %v15717_v3 = vsel %vm19760_vm12, %v12674_v58, %v12683_v13  ;;  %v15720_v57 = vsel %vm19760_vm12, %v12683_v13, %v12684_v48  ;;  %12766 = vrot.lane.b32.xlu0 %v12760_v22, %s14460_s19  ;;  %v12795_v58 = vpack.i.bf16 %v15699_v41, %v2100_v40 }
 0x499   : > { %v12694_v36 = vunpack.i.h.bf16 %v12692_v15  ;;  %v12693_v16 = vunpack.i.l.bf16 %v12692_v15  ;;  %11418 = vmatprep.subr.bf16.mxu1 %v11417_v61  ;;  %v12800_v61 = vpack.i.bf16 %v15720_v57, %v15717_v3 }
 0x49a   : > { %11420 = vmatpush1.bf16.msra.mxu1 %v11419_v11 }
 0x49b   : > { %v15711_v33 = vsel %vm19760_vm12, %v12679_v17, %v12693_v16  ;;  %v15714_v8 = vsel %vm19760_vm12, %v12693_v16, %v12694_v36  ;;  %v12687_v17 = vpop.permute.xlu1 %12686  ;;  %12781 = vrot.lane.b32.xlu1 %v12780_v35, %s14457_s17 }
 0x49c   : > { %12786 = vrot.lane.b32.xlu0 %v12780_v35, %s14460_s19  ;;  %v12689_v19 = vunpack.i.h.bf16 %v12687_v17  ;;  %v12688_v30 = vunpack.i.l.bf16 %v12687_v17  ;;  %v12815_v0 = vpack.i.bf16 %v15714_v8, %v15711_v33 }
 0x49e   : > { %v15737_v13 = vsel %vm19760_vm12, %v12688_v30, %v12689_v19  ;;  %v2107_v11 = vsel %vm19760_vm12, %v12663_v34, %v12688_v30  ;;  %v11423_v34 = vpack.c.bf16 %v15682_v7, %v15689_v25 }
 0x49f   : > { %12796 = vrot.lane.b32.xlu1 %v12795_v58, %s14460_s19  ;;  %v12805_v17 = vpack.i.bf16 %v15737_v13, %v2107_v11 }
 0x4a0   : > { %12791 = vrot.lane.b32.xlu0 %v12795_v58, %s14457_s17 }
 0x4a3   : > { %12801 = vrot.lane.b32.xlu1 %v12800_v61, %s14457_s17 }
 0x4a4   : > { %12811 = vrot.lane.b32.xlu0 %v12800_v61, %s14460_s19 }
 0x4a6   : > { %v12697_v31 = vpop.permute.xlu0 %12696 }
 0x4a7   : > { %v12702_v45 = vpop.permute.xlu1 %12701  ;;  %v12699_v22 = vunpack.i.h.bf16 %v12697_v31  ;;  %v12698_v15 = vunpack.i.l.bf16 %v12697_v31  ;;  %12806 = vrot.lane.b32.xlu1 %v12805_v17, %s14457_s17 }
 0x4a8   : > { %v12704_v58 = vunpack.i.h.bf16 %v12702_v45  ;;  %v12703_v43 = vunpack.i.l.bf16 %v12702_v45  ;;  %12816 = vrot.lane.b32.xlu0 %v12815_v0, %s14457_s17 }
 0x4a9   : > { %v15742_v40 = vsel %vm19760_vm12, %v12698_v15, %v12699_v22  ;;  %v2114_v16 = vsel %vm19760_vm12, %v12669_v24, %v12698_v15 }
 0x4aa   : > { %v11421_v35 = vpack.c.bf16 %v2114_v16, %v2107_v11  ;;  %v12707_v38 = vpop.permute.xlu0 %12706  ;;  %v15764_v25 = vsel %vm19760_vm12, %v12689_v19, %v12703_v43 }
 0x4ab   : > { %v12712_v29 = vpop.permute.xlu1 %12711  ;;  %v12709_v24 = vunpack.i.h.bf16 %v12707_v38  ;;  %v12708_v61 = vunpack.i.l.bf16 %v12707_v38  ;;  %12826 = vrot.lane.b32.xlu1 %v12815_v0, %s14460_s19 }
 0x4ac   : > { %v12714_v31 = vunpack.i.h.bf16 %v12712_v29  ;;  %v12713_v50 = vunpack.i.l.bf16 %v12712_v29  ;;  %11422 = vmatprep.subr.bf16.mxu1 %v11421_v35  ;;  %v15767_v29 = vsel %vm19760_vm12, %v12703_v43, %v12704_v58 }
 0x4ad   : > { %11424 = vmatpush1.bf16.msra.mxu1 %v11423_v34  ;;  %v15770_v15 = vsel %vm19760_vm12, %v12699_v22, %v12708_v61  ;;  %v15773_v38 = vsel %vm19760_vm12, %v12708_v61, %v12709_v24  ;;  %v12830_v22 = vpack.i.bf16 %v15767_v29, %v15764_v25 }
 0x4ae   : > { %v15757_v45 = vsel %vm19760_vm12, %v12684_v48, %v12713_v50  ;;  %v15760_v7 = vsel %vm19760_vm12, %v12694_v36, %v12714_v31  ;;  %v12717_v11 = vpop.permute.xlu0 %12716  ;;  %v12820_v48 = vpack.i.bf16 %v15742_v40, %v2114_v16  ;;  %v12840_v31 = vpack.i.bf16 %v15773_v38, %v15770_v15 }
 0x4af   : > { %v12719_v36 = vunpack.i.h.bf16 %v12717_v11  ;;  %v12718_v50 = vunpack.i.l.bf16 %v12717_v11  ;;  %12831 = vrot.lane.b32.xlu1 %v12830_v22, %s14457_s17 }
 0x4b0   : > { %12821 = vrot.lane.b32.xlu0 %v12820_v48, %s14457_s17 }
 0x4b1   : > { %v15787_v34 = vsel %vm19760_vm12, %v12704_v58, %v12718_v50  ;;  %v15790_v16 = vsel %vm19760_vm12, %v12709_v24, %v12719_v36  ;;  %v2156_v58 = vsel %vm2155_vm15, %v15757_v45, 0.0  ;;  %v2157_v24 = vsel %vm2155_vm15, %v15760_v7, 0.0  ;;  %v9804_v36 = vld [vmem:[%s19650_s4 + $0x20] sm:$0xff]  ;;  %v9805_v50 = vld [vmem:[%s19650_s4 + $0x28] sm:$0xff] }
 0x4b2   : > { %v2158_v61 = vsel %vm2155_vm15, %v15787_v34, 0.0  ;;  %v2159_v11 = vsel %vm2155_vm15, %v15790_v16, 0.0  ;;  %vm16436_vm15 = vmpackc.low %vm9876_vm13, %vm9876_vm13  ;;  %vm3232_vm13 = vcmask 556032  }
 0x4b3   : > { %12836 = vrot.lane.b32.xlu1 %v12805_v17, %s14460_s19  ;;  %v12860_v17 = vpack.i.bf16 %v2157_v24, %v2156_v58  ;;  %vm16752_vm6 = vmpackc.low %vm3232_vm13, %vm3232_vm13 }
 0x4b4   : > { %12841 = vrot.lane.b32.xlu0 %v12840_v31, %s14457_s17 }
 0x4b7   : > { %12851 = vrot.lane.b32.xlu1 %v12830_v22, %s14460_s19  ;;  %v9806_v22 = vld [vmem:[%s19650_s4 + $0x30] sm:$0xff] }
 0x4b8   : > { %12846 = vrot.lane.b32.xlu0 %v12820_v48, %s14460_s19  ;;  %v12865_v48 = vpack.i.bf16 %v2159_v11, %v2158_v61 }
 0x4bb   : > { %12861 = vrot.lane.b32.xlu1 %v12860_v17, %s14457_s17 }
 0x4bc   : > { %12856 = vrot.lane.b32.xlu0 %v12840_v31, %s14460_s19  ;;  %v9807_v31 = vld [vmem:[%s19650_s4 + $0x38] sm:$0xff] }
 0x4bf   : > { %12871 = vrot.lane.b32.xlu1 %v12860_v17, %s14460_s19 }
 0x4c0   : > { %12866 = vrot.lane.b32.xlu0 %v12865_v48, %s14457_s17 }
 0x4c3   : > { %2429 = vperm.xlu1 %12399, %v9804_v36  }
 0x4c4   : > { %12876 = vrot.lane.b32.xlu0 %v12865_v48, %s14460_s19 }
 0x4c7   : > { %2439 = vperm.xlu1 %12399, %v9806_v22  }
 0x4c8   : > { %2434 = vperm.xlu0 %12398, %v9805_v50  }
 0x4cc   : > { %2444 = vperm.xlu0 %12398, %v9807_v31  }
 0x4f3   : > { %v12722_v58 = vpop.permute.xlu1 %12721 }
 0x4f4   : > { %v12724_v35 = vunpack.i.h.bf16 %v12722_v58  ;;  %v12723_v0 = vunpack.i.l.bf16 %v12722_v58 }
 0x4f5   : > { %v15826_v24 = vpop.permute.xlu0 %12741 }
 0x4f6   : > { %v19697_v17 = vunpack.i.h.bf16 %v15826_v24  ;;  %v12743_v48 = vunpack.i.l.bf16 %v15826_v24 }
 0x4f7   : > { %v12727_v61 = vpop.permute.xlu1 %12726 }
 0x4f8   : > { %v2249_v22 = vsel %vm19761_vm3, %v12724_v35, %v12743_v48  ;;  %v2250_v52 = vsel %vm19761_vm3, %v12743_v48, %v19697_v17  ;;  %v12729_v49 = vunpack.i.h.bf16 %v12727_v61  ;;  %v12728_v28 = vunpack.i.l.bf16 %v12727_v61 }
 0x4fa   : > { %v12747_v11 = vpop.permute.xlu0 %12746 }
 0x4fb   : > { %v15830_v36 = vpop.permute.xlu1 %12731 }
 0x4fc   : > { %v19698_v50 = vunpack.i.h.bf16 %v15830_v36  ;;  %v12733_v43 = vunpack.i.l.bf16 %v15830_v36 }
 0x4fe   : > { %v15834_v30 = vpop.permute.xlu0 %12751  ;;  %v2242_v31 = vsel %vm19761_vm3, %v12723_v0, %v12733_v43  ;;  %v2243_v19 = vsel %vm19761_vm3, %v12733_v43, %v19698_v50 }
 0x4ff   : > { %v15844_v46 = vpop.permute.xlu1 %12736  ;;  %v11401_v58 = vpack.c.bf16 %v2250_v52, %v2243_v19  ;;  %v11403_v42 = vpack.c.bf16 %v2249_v22, %v2242_v31  ;;  %v19708_v12 = vunpack.i.h.bf16 %v15834_v30  ;;  %v12753_v35 = vunpack.i.l.bf16 %v15834_v30 }
 0x500   : > { %v19706_v0 = vunpack.i.h.bf16 %v15844_v46  ;;  %v12738_v27 = vunpack.i.l.bf16 %v15844_v46  ;;  %v12749_v19 = vunpack.i.h.bf16 %v12747_v11  ;;  %v12748_v22 = vunpack.i.l.bf16 %v12747_v11 }
 0x501   : > { %11402 = vmatprep.subr.bf16.mxu0 %v11401_v58  ;;  %v2375_v48 = vsel %vm19759_vm4, %v12753_v35, %v19708_v12 }
 0x502   : > { %v12757_v20 = vpop.permute.xlu0 %12756  ;;  %11404 = vmatpush1.bf16.msra.mxu0 %v11403_v42  ;;  %v2368_v50 = vsel %vm19759_vm4, %v12738_v27, %v19706_v0 }
 0x505   : > { %v15850_v43 = vpop.permute.xlu1 %12771 }
 0x506   : > { %v12773_v17 = vunpack.i.l.bf16 %v15850_v43  ;;  %v15854_v52 = vpop.permute.xlu0 %12761  ;;  %v19861_v14 = vunpack.i.h.bf16 %v15850_v43 }
 0x507   : > { %v19710_v42 = vunpack.i.h.bf16 %v15854_v52  ;;  %v12763_v31 = vunpack.i.l.bf16 %v15854_v52 }
 0x508   : > { %v2263_v51 = vsel %vm19761_vm3, %v12749_v19, %v12773_v17  ;;  %v2264_v56 = vsel %vm19761_vm3, %v12773_v17, %v19861_v14  ;;  %v11409_v14 = vpack.c.bf16 %v2375_v48, %v2368_v50 }
 0x509   : > { %v15858_v58 = vpop.permute.xlu1 %12776  ;;  %v2256_v54 = vsel %vm19761_vm3, %v12748_v22, %v12763_v31  ;;  %v2257_v11 = vsel %vm19761_vm3, %v12763_v31, %v19710_v42  ;;  %v2374_v31 = vsel %vm19759_vm4, %v12729_v49, %v12753_v35  ;;  %v2367_v42 = vsel %vm19759_vm4, %v12728_v28, %v12738_v27 }
 0x50a   : > { %v15874_v9 = vpop.permute.xlu0 %12766  ;;  %v11405_v0 = vpack.c.bf16 %v2264_v56, %v2257_v11  ;;  %v11407_v1 = vpack.c.bf16 %v2263_v51, %v2256_v54  ;;  %v19712_v12 = vunpack.i.h.bf16 %v15858_v58  ;;  %v12778_v19 = vunpack.i.l.bf16 %v15858_v58 }
 0x50b   : > { %v19716_v22 = vunpack.i.h.bf16 %v15874_v9  ;;  %v12768_v2 = vunpack.i.l.bf16 %v15874_v9  ;;  %v12758_v54 = vunpack.i.l.bf16 %v12757_v20  ;;  %v11411_v61 = vpack.c.bf16 %v2374_v31, %v2367_v42 }
 0x50c   : > { %11406 = vmatprep.subr.bf16.mxu0 %v11405_v0  ;;  %v2389_v17 = vsel %vm19759_vm4, %v12778_v19, %v19712_v12  ;;  %v12759_v49 = vunpack.i.h.bf16 %v12757_v20  ;;  %v19862_v12 = vunpack.i.h.bf16 %v15830_v36  ;;  %v19864_v36 = vpack.c.bf16 %v15711_v33, %v15717_v3  ;;  %v15924_v33 = vld [vmem:[%s19649_s3 + $0x28] sm:$0xff] }
 0x50d   : > { %v12782_v5 = vpop.permute.xlu1 %12781  ;;  %11408 = vmatpush1.bf16.msra.mxu0 %v11407_v1  ;;  %v2382_v56 = vsel %vm19759_vm4, %v12768_v2, %v19716_v22  ;;  %v2381_v28 = vsel %vm19759_vm4, %v12758_v54, %v12768_v2  ;;  %v19863_v2 = vunpack.i.h.bf16 %v15826_v24 }
 0x50e   : > { %v15885_v51 = vpop.permute.xlu0 %12786  ;;  %11410 = vmatprep.subr.bf16.mxu0 %v11409_v14  ;;  %v11413_v50 = vpack.c.bf16 %v2389_v17, %v2382_v56  ;;  %v12784_v1 = vunpack.i.h.bf16 %v12782_v5  ;;  %v12783_v35 = vunpack.i.l.bf16 %v12782_v5  ;;  %v2388_v0 = vsel %vm19759_vm4, %v12759_v49, %v12778_v19  ;;  %v15905_v5 = vld [vmem:[%s19649_s3 + $0x20] sm:$0xff] }
 0x50f   : > { %v11415_v42 = vpack.c.bf16 %v2388_v0, %v2381_v28  ;;  %v19715_v3 = vunpack.i.h.bf16 %v15885_v51 }
 0x510   : > { %v2244_v20 = vsel %vm19761_vm3, %v19862_v12, %v12783_v35  ;;  %v2245_v19 = vsel %vm19761_vm3, %v12783_v35, %v12784_v1  ;;  %v12788_v35 = vunpack.i.l.bf16 %v15885_v51 }
 0x511   : > { %v15891_v27 = vpop.permute.xlu1 %12796  ;;  %11412 = vmatpush1.bf16.msra.mxu0 %v11411_v61 }
 0x512   : > { %v12792_v48 = vpop.permute.xlu0 %12791  ;;  %11414 = vmatprep.subr.bf16.mxu0 %v11413_v50  ;;  %v19865_v50 = vpack.c.bf16 %v15699_v41, %v15695_v44  ;;  %v19717_v44 = vunpack.i.h.bf16 %v15891_v27  ;;  %v12798_v41 = vunpack.i.l.bf16 %v15891_v27 }
 0x513   : > { %v12794_v11 = vunpack.i.h.bf16 %v12792_v48  ;;  %v12793_v14 = vunpack.i.l.bf16 %v12792_v48  ;;  %v19866_v48 = vpack.c.bf16 %v15770_v15, %v15764_v25  ;;  %v19867_v15 = vpack.c.bf16 %v15742_v40, %v15737_v13 }
 0x515   : > { %v15894_v31 = vpop.permute.xlu1 %12801  ;;  %v2251_v56 = vsel %vm19761_vm3, %v19863_v2, %v12793_v14  ;;  %11416 = vmatpush1.bf16.msra.mxu0 %v11415_v42  ;;  %v2252_v54 = vsel %vm19761_vm3, %v12793_v14, %v12794_v11 }
 0x516   : > { %v15909_v61 = vpop.permute.xlu0 %12811  ;;  %11442 = vmatprep.subr.bf16.mxu0 %v19864_v36  ;;  %v11425_v12 = vpack.c.bf16 %v2252_v54, %v2245_v19  ;;  %v11427_v24 = vpack.c.bf16 %v2251_v56, %v2244_v20  ;;  %v12803_v17 = vunpack.i.l.bf16 %v15894_v31  ;;  %v19713_v28 = vunpack.i.h.bf16 %v15894_v31  ;;  %v15951_v54 = vld [vmem:[%s19649_s3 + $0x30] sm:$0xff] }
 0x518   : > { %9816 = vmatmul.mubr.msk.f32.vlgmr.msra.gmra.mrb[30].mxu0 %vm19764_vm10, %v15905_v5  ;;  %11426 = vmatprep.subr.bf16.mxu1 %v11425_v12  ;;  %v2246_v20 = vsel %vm19761_vm3, %v12784_v1, %v12803_v17  ;;  %v2247_v1 = vsel %vm19761_vm3, %v12803_v17, %v19713_v28  ;;  %v2377_v17 = vsel %vm19759_vm4, %v12798_v41, %v19717_v44 }
 0x519   : > { %v12807_v49 = vpop.permute.xlu1 %12806  ;;  %11428 = vmatpush1.bf16.msra.mxu1 %v11427_v24  ;;  %11444 = vmatpush1.bf16.msra.mxu0 %v19865_v50 }
 0x51a   : > { %v15928_v0 = vpop.permute.xlu0 %12816  ;;  %11446 = vmatprep.subr.bf16.mxu0 %v19866_v48  ;;  %2529 = vmatprep.mubr.f32.mxu0 %v19809_v26  ;;  %v12809_v2 = vunpack.i.h.bf16 %v12807_v49  ;;  %v12808_v56 = vunpack.i.l.bf16 %v12807_v49  ;;  %v2370_v48 = vsel %vm19759_vm4, %v12788_v35, %v19715_v3  ;;  %v12813_v3 = vunpack.i.l.bf16 %v15909_v61 }
 0x51b   : > { %v19714_v14 = vunpack.i.h.bf16 %v15928_v0  ;;  %v12818_v42 = vunpack.i.l.bf16 %v15928_v0 }
 0x51c   : > { %9817 = vmatmul.mubr.msk.f32.gmra.mrb[32].mxu0 %vm19764_vm10, %v15924_v33 }
 0x51d   : > { %v15939_v19 = vpop.permute.xlu1 %12826  ;;  %v2253_v25 = vsel %vm19761_vm3, %v12794_v11, %v12818_v42  ;;  %11448 = vmatpush1.bf16.msra.mxu0 %v19867_v15  ;;  %2535 = vmatprep.mubr.f32.mxu0 %v19809_v26  ;;  %v2254_v36 = vsel %vm19761_vm3, %v12818_v42, %v19714_v14  ;;  %v19868_v11 = vunpack.i.h.bf16 %v15844_v46  ;;  %v19869_v15 = vunpack.i.h.bf16 %v15854_v52 }
 0x51e   : > { %v11449_v12 = vpack.c.bf16 %v2254_v36, %v2247_v1  ;;  %v11451_v24 = vpack.c.bf16 %v2253_v25, %v2246_v20  ;;  %v19870_v20 = vunpack.i.h.bf16 %v15850_v43  ;;  %v11433_v14 = vpack.c.bf16 %v2377_v17, %v2370_v48 }
 0x51f   : > { %v2369_v13 = vsel %vm19759_vm4, %v19868_v11, %v12788_v35  ;;  %v2258_v42 = vsel %vm19761_vm3, %v19869_v15, %v12808_v56  ;;  %v12828_v11 = vunpack.i.l.bf16 %v15939_v19  ;;  %v2259_v35 = vsel %vm19761_vm3, %v12808_v56, %v12809_v2 }
 0x520   : > { %9818 = vmatmul.mubr.msk.f32.gmra.mrb[34].mxu0 %vm19764_vm10, %v15951_v54  ;;  %11450 = vmatprep.subr.bf16.mxu0 %v11449_v12  ;;  %v19871_v56 = vunpack.i.h.bf16 %v15834_v30 }
 0x521   : > { %v15973_v1 = vpop.permute.xlu1 %12831  ;;  %11452 = vmatpush1.bf16.msra.mxu0 %v11451_v24  ;;  %2541 = vmatprep.mubr.f32.mxu0 %v19809_v26  ;;  %v12814_v24 = vunpack.i.h.bf16 %v15909_v61 }
 0x522   : > { %v12822_v40 = vpop.permute.xlu0 %12821  ;;  %v19718_v52 = vunpack.i.h.bf16 %v15973_v1  ;;  %v12833_v36 = vunpack.i.l.bf16 %v15973_v1  ;;  %v2376_v43 = vsel %vm19759_vm4, %v19871_v56, %v12798_v41  ;;  %v19872_v41 = vunpack.i.h.bf16 %v15939_v19 }
 0x523   : > { %v12824_v49 = vunpack.i.h.bf16 %v12822_v40  ;;  %v12823_v50 = vunpack.i.l.bf16 %v12822_v40  ;;  %v15987_v40 = vld [vmem:[%s19649_s3 + $0x38] sm:$0xff] }
 0x524   : > { %v2260_v46 = vsel %vm19761_vm3, %v12809_v2, %v12833_v36  ;;  %9819 = vmatmul.mubr.msk.f32.gmra.mrb[36].mxu0 %vm19764_vm10, %v15987_v40  ;;  %v2261_v30 = vsel %vm19761_vm3, %v12833_v36, %v19718_v52  ;;  %v2379_v48 = vsel %vm19759_vm4, %v12828_v11, %v19872_v41  ;;  %v11435_v52 = vpack.c.bf16 %v2376_v43, %v2369_v13 }
 0x525   : > { %v2265_v25 = vsel %vm19761_vm3, %v19870_v20, %v12823_v50  ;;  %v2266_v12 = vsel %vm19761_vm3, %v12823_v50, %v12824_v49  ;;  %v12837_v50 = vpop.permute.xlu1 %12836  ;;  %2701 = vmatprep.mubr.f32.mxu0 %v19809_v26  ;;  %v19874_v41 = vunpack.i.h.bf16 %v15874_v9  ;;  %v19875_v13 = vunpack.i.h.bf16 %v15858_v58 }
 0x526   : > { %v15993_v15 = vpop.permute.xlu0 %12841  ;;  %v11429_v20 = vpack.c.bf16 %v2266_v12, %v2259_v35  ;;  %v11431_v28 = vpack.c.bf16 %v2265_v25, %v2258_v42  ;;  %v12839_v42 = vunpack.i.h.bf16 %v12837_v50  ;;  %v12838_v35 = vunpack.i.l.bf16 %v12837_v50 }
 0x527   : > { %v19719_v22 = vunpack.i.h.bf16 %v15993_v15  ;;  %v12843_v44 = vunpack.i.l.bf16 %v15993_v15  ;;  %v19873_v50 = vunpack.i.h.bf16 %v15891_v27 }
 0x528   : > { %11430 = vmatprep.subr.bf16.mxu1 %v11429_v20 }
 0x529   : > { %v2267_v17 = vsel %vm19761_vm3, %v12824_v49, %v12843_v44  ;;  %11432 = vmatpush1.bf16.msra.mxu1 %v11431_v28  ;;  %v2268_v2 = vsel %vm19761_vm3, %v12843_v44, %v19719_v22  ;;  %v2372_v49 = vsel %vm19759_vm4, %v12813_v3, %v12814_v24  ;;  %v2378_v28 = vsel %vm19759_vm4, %v19873_v50, %v12828_v11  ;;  %v16022_v22 = vpop.permute.xlu1 %12851 }
 0x52a   : > { %v12847_v25 = vpop.permute.xlu0 %12846  ;;  %11434 = vmatprep.subr.bf16.mxu1 %v11433_v14  ;;  %v11453_v12 = vpack.c.bf16 %v2268_v2, %v2261_v30  ;;  %v11455_v56 = vpack.c.bf16 %v2267_v17, %v2260_v46  ;;  %v2383_v44 = vsel %vm19759_vm4, %v19874_v41, %v12838_v35  ;;  %v11457_v14 = vpack.c.bf16 %v2379_v48, %v2372_v49 }
 0x52b   : > { %v12849_v36 = vunpack.i.h.bf16 %v12847_v25  ;;  %v12848_v20 = vunpack.i.l.bf16 %v12847_v25  ;;  %v2384_v46 = vsel %vm19759_vm4, %v12838_v35, %v12839_v42  ;;  %v12854_v30 = vunpack.i.h.bf16 %v16022_v22 }
 0x52c   : > { %11454 = vmatprep.subr.bf16.mxu0 %v11453_v12  ;;  %v12853_v27 = vunpack.i.l.bf16 %v16022_v22  ;;  %v19876_v11 = vunpack.i.h.bf16 %v15885_v51  ;;  %v19879_v50 = vpack.c.bf16 %v15760_v7, %v15757_v45  ;;  %v19881_v45 = vpack.c.bf16 %v15790_v16, %v15787_v34 }
 0x52d   : > { %v2390_v43 = vsel %vm19759_vm4, %v19875_v13, %v12848_v20  ;;  %11436 = vmatpush1.bf16.msra.mxu1 %v11435_v52  ;;  %11456 = vmatpush1.bf16.msra.mxu0 %v11455_v56  ;;  %v2391_v9 = vsel %vm19759_vm4, %v12848_v20, %v12849_v36  ;;  %v12862_v56 = vpop.permute.xlu1 %12861  ;;  %v19882_v7 = vunpack.i.h.bf16 %v15928_v0  ;;  %v19883_v13 = vunpack.i.h.bf16 %v15894_v31 }
 0x52e   : > { %v2371_v17 = vsel %vm19759_vm4, %v19876_v11, %v12813_v3  ;;  %v16034_v2 = vpop.permute.xlu0 %12856  ;;  %11458 = vmatprep.subr.bf16.mxu0 %v11457_v14  ;;  %v11437_v48 = vpack.c.bf16 %v2391_v9, %v2384_v46  ;;  %v11439_v35 = vpack.c.bf16 %v2390_v43, %v2383_v44  ;;  %v2385_v51 = vsel %vm19759_vm4, %v12839_v42, %v12853_v27 }
 0x52f   : > { %v12859_v58 = vunpack.i.h.bf16 %v16034_v2  ;;  %v12858_v25 = vunpack.i.l.bf16 %v16034_v2  ;;  %v11459_v12 = vpack.c.bf16 %v2378_v28, %v2371_v17  ;;  %v2386_v20 = vsel %vm19759_vm4, %v12853_v27, %v12854_v30 }
 0x530   : > { %11438 = vmatprep.subr.bf16.mxu1 %v11437_v48  ;;  %v12864_v41 = vunpack.i.h.bf16 %v12862_v56  ;;  %v19880_v14 = vpack.c.bf16 %v15714_v8, %v15720_v57  ;;  %v19884_v34 = vpack.c.bf16 %v15773_v38, %v15767_v29  ;;  %v19885_v0 = vunpack.i.h.bf16 %v15973_v1 }
 0x531   : > { %v2392_v3 = vsel %vm19759_vm4, %v12849_v36, %v12858_v25  ;;  %11440 = vmatpush1.bf16.msra.mxu1 %v11439_v35  ;;  %11460 = vmatpush1.bf16.msra.mxu0 %v11459_v12  ;;  %v2393_v49 = vsel %vm19759_vm4, %v12858_v25, %v12859_v58  ;;  %v12863_v36 = vunpack.i.l.bf16 %v12862_v56  ;;  %v12872_v8 = vpop.permute.xlu1 %12871  ;;  %v19886_v17 = vunpack.i.h.bf16 %v15993_v15 }
 0x532   : > { %11467 = vmatprep.subr.msk.bf16.mxu1 %vm16040_vm5, %v19879_v50  ;;  %v11461_v42 = vpack.c.bf16 %v2393_v49, %v2386_v20  ;;  %v11463_v28 = vpack.c.bf16 %v2392_v3, %v2385_v51  ;;  %v12867_v44 = vpop.permute.xlu0 %12866  ;;  %v2255_v46 = vsel %vm19761_vm3, %v19882_v7, %v12864_v41  ;;  %v12873_v16 = vunpack.i.l.bf16 %v12872_v8 }
 0x533   : > { %v2248_v43 = vsel %vm19761_vm3, %v19883_v13, %v12863_v36  ;;  %v12869_v27 = vunpack.i.h.bf16 %v12867_v44  ;;  %v12868_v9 = vunpack.i.l.bf16 %v12867_v44  ;;  %v11475_v57 = vpack.c.bf16 %v12864_v41, %v12863_v36 }
 0x534   : > { %9820 = vmatmul.mubr.msk.f32.vlgmr.msra.gmra.mrb[34].mxu1 %vm19764_vm10, %v15905_v5  ;;  %11462 = vmatprep.subr.bf16.mxu0 %v11461_v42  ;;  %v11477_v31 = vpack.c.bf16 %v2255_v46, %v2248_v43  ;;  %v12874_v35 = vunpack.i.h.bf16 %v12872_v8  ;;  %v2373_v1 = vsel %vm19759_vm4, %v12814_v24, %v12873_v16  ;;  %v19887_v25 = vunpack.i.h.bf16 %v15939_v19 }
 0x535   : > { %11464 = vmatpush1.bf16.msra.mxu0 %v11463_v28  ;;  %11469 = vmatpush1.bf16.msra.mxu1 %v19880_v14  ;;  %v2262_v11 = vsel %vm19761_vm3, %v19885_v0, %v12868_v9  ;;  %v2269_v48 = vsel %vm19761_vm3, %v19886_v17, %v12869_v27  ;;  %v11479_v29 = vpack.c.bf16 %v12869_v27, %v12868_v9 }
 0x536   : > { %11472 = vmatprep.subr.msk.bf16.mxu1 %vm16040_vm5, %v19881_v45  ;;  %2618 = vmatprep.mubr.f32.mxu1 %v19809_v26  ;;  %v12877_v38 = vpop.permute.xlu0 %12876  ;;  %v11481_v15 = vpack.c.bf16 %v2269_v48, %v2262_v11  ;;  %v2380_v12 = vsel %vm19759_vm4, %v19887_v25, %v12874_v35  ;;  %v11483_v56 = vpack.c.bf16 %v12874_v35, %v12873_v16  ;;  %vm19757_vm5 = vcmask 982016  }
 0x537   : > { %v12879_v52 = vunpack.i.h.bf16 %v12877_v38  ;;  %v12878_v51 = vunpack.i.l.bf16 %v12877_v38  ;;  %v11485_v61 = vpack.c.bf16 %v2380_v12, %v2373_v1 }
 0x538   : > { %9821 = vmatmul.mubr.msk.f32.gmra.mrb[36].mxu1 %vm19764_vm10, %v15924_v33  ;;  %9824 = vmatmul.mubr.msk.f32.vlgmr.msra.gmra.mrb[38].mxu0 %vm19764_vm10, %v15905_v5 }
 0x539   : > { %11474 = vmatpush1.bf16.msra.mxu1 %v19884_v34  ;;  %2624 = vmatprep.mubr.f32.mxu1 %v19809_v26  ;;  %v2387_v19 = vsel %vm19759_vm4, %v12854_v30, %v12878_v51  ;;  %v2394_v24 = vsel %vm19759_vm4, %v12859_v58, %v12879_v52  ;;  %v11487_v3 = vpack.c.bf16 %v12879_v52, %v12878_v51 }
 0x53a   : > { %11476 = vmatprep.subr.bf16.mxu1 %v11475_v57  ;;  %2707 = vmatprep.mubr.f32.mxu0 %v19809_v26  ;;  %v11489_v20 = vpack.c.bf16 %v2394_v24, %v2387_v19 }
 0x53c   : > { %9822 = vmatmul.mubr.msk.f32.gmra.mrb[38].mxu1 %vm19764_vm10, %v15951_v54  ;;  %9825 = vmatmul.mubr.msk.f32.gmra.mrb[40].mxu0 %vm19764_vm10, %v15924_v33 }
 0x53d   : > { %11478 = vmatpush1.bf16.msra.mxu1 %v11477_v31  ;;  %2630 = vmatprep.mubr.f32.mxu1 %v19809_v26 }
 0x53e   : > { %11480 = vmatprep.subr.bf16.mxu1 %v11479_v29  ;;  %2713 = vmatprep.mubr.f32.mxu0 %v19809_v26 }
 0x540   : > { %9823 = vmatmul.mubr.msk.f32.gmra.mrb[40].mxu1 %vm19764_vm10, %v15987_v40  ;;  %9826 = vmatmul.mubr.msk.f32.gmra.mrb[42].mxu0 %vm19764_vm10, %v15951_v54 }
 0x541   : > { %11482 = vmatpush1.bf16.msra.mxu1 %v11481_v15  ;;  %2719 = vmatprep.mubr.f32.mxu0 %v19809_v26 }
 0x542   : > { %11484 = vmatprep.subr.bf16.mxu1 %v11483_v56  ;;  %2790 = vmatprep.mubr.f32.mxu1 %v19809_v26  ;;  %v16128_v22 = vpop.permute.xlu1 %2429 }
 0x544   : > { %9827 = vmatmul.mubr.msk.f32.gmra.mrb[44].mxu0 %vm19764_vm10, %v15987_v40 }
 0x545   : > { %11486 = vmatpush1.bf16.msra.mxu1 %v11485_v61  ;;  %3600 = vmatprep.mubr.f32.mxu0 %v19809_v26 }
 0x546   : > { %11488 = vmatprep.subr.bf16.mxu1 %v11487_v3  ;;  %v16143_v41 = vpop.permute.xlu1 %2439 }
 0x547   : > { %v16134_v49 = vpop.permute.xlu0 %2434 }
 0x549   : > { %11490 = vmatpush1.bf16.msra.mxu1 %v11489_v20 }
 0x54b   : > { %v16154_v43 = vpop.permute.xlu0 %2444 }
 0x54c   : > { %9832 = vmatmul.mubr.msk.f32.vlgmr.msra.gmra.mrb[42].mxu1 %vm19764_vm10, %v15905_v5 }
 0x54d   : > { %2796 = vmatprep.mubr.f32.mxu1 %v19809_v26 }
 0x550   : > { %9833 = vmatmul.mubr.msk.f32.gmra.mrb[44].mxu1 %vm19764_vm10, %v15924_v33 }
 0x551   : > { %2802 = vmatprep.mubr.f32.mxu1 %v19809_v26 }
 0x554   : > { %9834 = vmatmul.mubr.msk.f32.gmra.mrb[46].mxu1 %vm19764_vm10, %v15951_v54 }
 0x555   : > { %2808 = vmatprep.mubr.f32.mxu1 %v19809_v26 }
 0x558   : > { %9835 = vmatmul.mubr.msk.f32.gmra.mrb[48].mxu1 %vm19764_vm10, %v15987_v40 }
 0x559   : > { %3689 = vmatprep.mubr.f32.mxu1 %v19809_v26 }
 0x5eb   : > { %v2525_v5 = vpop.f32.mrb[30].mxu0 }
 0x5ec   : > { %v2526_v30 = vadd.f32 %v2525_v5, %v16128_v22  ;;  %v2527_v2 = vpop.f32.mrb[31].mxu0 }
 0x5ed   : > { %v16132_v33 = vadd.f32 %v2527_v2, %v16128_v22 }
 0x5ee   : > { %v9836_v58 = vmul.f32 -1.442695, %v2526_v30 }
 0x5ef   : > { %v9837_v54 = vmul.f32 -1.442695, %v16132_v33  ;;  %v2531_v50 = vpop.f32.mrb[32].mxu0 }
 0x5f0   : > { %13998 = vpow2.f32 %v9836_v58  ;;  %v16138_v40 = vadd.f32 %v2531_v50, %v16134_v49  ;;  %v2533_v42 = vpop.f32.mrb[33].mxu0 }
 0x5f1   : > { %14000 = vpow2.f32 %v9837_v54  ;;  %v16141_v28 = vadd.f32 %v2533_v42, %v16134_v49 }
 0x5f2   : > { %v9844_v36 = vmul.f32 -1.442695, %v16138_v40 }
 0x5f3   : > { %v2537_v44 = vpop.f32.mrb[34].mxu0  ;;  %v9845_v46 = vmul.f32 -1.442695, %v16141_v28 }
 0x5f4   : > { %v16147_v14 = vadd.f32 %v2537_v44, %v16143_v41  ;;  %v2539_v45 = vpop.f32.mrb[35].mxu0  ;;  %14002 = vpow2.f32 %v9844_v36 }
 0x5f5   : > { %v16150_v7 = vadd.f32 %v2539_v45, %v16143_v41 }
 0x5f6   : > { %v9852_v13 = vmul.f32 -1.442695, %v16147_v14 }
 0x5f7   : > { %v9853_v27 = vmul.f32 -1.442695, %v16150_v7  ;;  %v2543_v9 = vpop.f32.mrb[36].mxu0 }
 0x5f8   : > { %14004 = vpow2.f32 %v9852_v13  ;;  %v16158_v8 = vadd.f32 %v2543_v9, %v16154_v43  ;;  %v2545_v57 = vpop.f32.mrb[37].mxu0 }
 0x5f9   : > { %14006 = vpow2.f32 %v9853_v27  ;;  %v16161_v16 = vadd.f32 %v2545_v57, %v16154_v43 }
 0x5fa   : > { %v13999_v34 = vpop.eup %13998  ;;  %14008 = vpow2.f32 %v9845_v46  ;;  %v9860_v11 = vmul.f32 -1.442695, %v16158_v8 }
 0x5fb   : > { %v14001_v31 = vpop.eup %14000  ;;  %v2911_v0 = vadd.f32 1.0, %v13999_v34  ;;  %v9861_v48 = vmul.f32 -1.442695, %v16161_v16 }
 0x5fc   : > { %v2912_v17 = vadd.f32 1.0, %v14001_v31 }
 0x5fd   : > { %14010 = vrcp.f32 %v2911_v0 }
 0x5fe   : > { %14012 = vrcp.f32 %v2912_v17  ;;  %v14003_v35 = vpop.eup %14002 }
 0x5ff   : > { %14014 = vpow2.f32 %v9860_v11  ;;  %v2919_v24 = vadd.f32 1.0, %v14003_v35 }
 0x600   : > { %14016 = vpow2.f32 %v9861_v48 }
 0x602   : > { %v14005_v29 = vpop.eup %14004 }
 0x603   : > { %v14007_v38 = vpop.eup %14006  ;;  %v2927_v1 = vadd.f32 1.0, %v14005_v29 }
 0x604   : > { %v14009_v25 = vpop.eup %14008  ;;  %v2928_v12 = vadd.f32 1.0, %v14007_v38 }
 0x605   : > { %14018 = vrcp.f32 %v2927_v1  ;;  %v2920_v3 = vadd.f32 1.0, %v14009_v25 }
 0x606   : > { %14020 = vrcp.f32 %v2928_v12 }
 0x607   : > { %v2614_v15 = vpop.f32.mrb[34].mxu1  ;;  %v14011_v19 = vpop.eup %14010 }
 0x608   : > { %v16166_v52 = vadd.f32 %v2614_v15, %v16128_v22  ;;  %v2616_v51 = vpop.f32.mrb[35].mxu1  ;;  %v14013_v58 = vpop.eup %14012  ;;  %v3007_v54 = vmul.f32 %v14011_v19, %v2526_v30 }
 0x609   : > { %v16169_v56 = vadd.f32 %v2616_v51, %v16128_v22  ;;  %v14015_v45 = vpop.eup %14014  ;;  %v3008_v46 = vmul.f32 %v14013_v58, %v16132_v33 }
 0x60a   : > { %v9838_v61 = vmul.f32 -1.442695, %v16166_v52  ;;  %v16184_v27 = vadd.f32 %v3007_v54, %v15421_v39  ;;  %v14017_v31 = vpop.eup %14016  ;;  %v2935_v33 = vadd.f32 1.0, %v14015_v45 }
 0x60b   : > { %v9839_v20 = vmul.f32 -1.442695, %v16169_v56  ;;  %v2620_v5 = vpop.f32.mrb[36].mxu1  ;;  %v2703_v2 = vpop.f32.mrb[38].mxu0  ;;  %v16188_v9 = vadd.f32 %v3008_v46, %v15424_v6  ;;  %v2936_v1 = vadd.f32 1.0, %v14017_v31 }
 0x60c   : > { %14022 = vpow2.f32 %v9838_v61  ;;  %v16174_v50 = vadd.f32 %v2620_v5, %v16134_v49  ;;  %v16177_v42 = vadd.f32 %v2703_v2, %v16128_v22  ;;  %v2622_v36 = vpop.f32.mrb[37].mxu1  ;;  %v2705_v44 = vpop.f32.mrb[39].mxu0 }
 0x60d   : > { %v16181_v13 = vadd.f32 %v2622_v36, %v16134_v49  ;;  %14024 = vpow2.f32 %v9839_v20  ;;  %v12880_v39 = vpack.i.bf16 %v16188_v9, %v16184_v27  ;;  %v16210_v2 = vadd.f32 %v2705_v44, %v16128_v22 }
 0x60e   : > { %v9846_v30 = vmul.f32 -1.442695, %v16174_v50  ;;  %14026 = vrcp.f32 %v2919_v24  ;;  %v9840_v57 = vmul.f32 -1.442695, %v16177_v42 }
 0x60f   : > { %v9847_v34 = vmul.f32 -1.442695, %v16181_v13  ;;  %14028 = vrcp.f32 %v2920_v3  ;;  %v2626_v0 = vpop.f32.mrb[38].mxu1  ;;  %v2709_v11 = vpop.f32.mrb[40].mxu0  ;;  %12881 = vrot.lane.b32.xlu1 %v12880_v39, %s14461_s22 }
 0x610   : > { %14030 = vpow2.f32 %v9846_v30  ;;  %v16195_v17 = vadd.f32 %v2626_v0, %v16143_v41  ;;  %v2628_v48 = vpop.f32.mrb[39].mxu1  ;;  %v2711_v6 = vpop.f32.mrb[41].mxu0  ;;  %v16198_v35 = vadd.f32 %v2709_v11, %v16134_v49  ;;  %v9841_v0 = vmul.f32 -1.442695, %v16210_v2 }
 0x611   : > { %14032 = vpow2.f32 %v9840_v57  ;;  %v16201_v29 = vadd.f32 %v2628_v48, %v16143_v41  ;;  %v14019_v38 = vpop.eup %14018 }
 0x612   : > { %14034 = vpow2.f32 %v9847_v34  ;;  %v9854_v15 = vmul.f32 -1.442695, %v16195_v17  ;;  %v14021_v51 = vpop.eup %14020  ;;  %v3023_v61 = vmul.f32 %v14019_v38, %v16147_v14  ;;  %v9848_v19 = vmul.f32 -1.442695, %v16198_v35 }
 0x613   : > { %v2715_v25 = vpop.f32.mrb[42].mxu0  ;;  %v2632_v12 = vpop.f32.mrb[40].mxu1  ;;  %14036 = vrcp.f32 %v2935_v33  ;;  %v9855_v24 = vmul.f32 -1.442695, %v16201_v29  ;;  %v3024_v5 = vmul.f32 %v14021_v51, %v16150_v7 }
 0x614   : > { %v2634_v3 = vpop.f32.mrb[41].mxu1  ;;  %v2717_v20 = vpop.f32.mrb[43].mxu0  ;;  %14038 = vpow2.f32 %v9854_v15  ;;  %v16213_v58 = vadd.f32 %v2715_v25, %v16143_v41  ;;  %v16216_v36 = vadd.f32 %v3023_v61, %v15463_v47  ;;  %v16219_v14 = vadd.f32 %v2632_v12, %v16154_v43 }
 0x615   : > { %14040 = vpow2.f32 %v9848_v19  ;;  %v16222_v45 = vadd.f32 %v3024_v5, %v15466_v60  ;;  %v16227_v34 = vadd.f32 %v2634_v3, %v16154_v43  ;;  %v16238_v19 = vadd.f32 %v2717_v20, %v16143_v41 }
 0x616   : > { %v14023_v54 = vpop.eup %14022  ;;  %14042 = vpow2.f32 %v9855_v24  ;;  %v9856_v7 = vmul.f32 -1.442695, %v16213_v58  ;;  %v9862_v57 = vmul.f32 -1.442695, %v16219_v14 }
 0x617   : > { %v2913_v46 = vadd.f32 1.0, %v14023_v54  ;;  %v2721_v44 = vpop.f32.mrb[44].mxu0  ;;  %v14025_v30 = vpop.eup %14024  ;;  %14044 = vrcp.f32 %v2936_v1  ;;  %v12885_v33 = vpack.i.bf16 %v16222_v45, %v16216_v36  ;;  %v16234_v1 = vadd.f32 %v2711_v6, %v16134_v49 }
 0x618   : > { %v2723_v47 = vpop.f32.mrb[45].mxu0  ;;  %v14027_v31 = vpop.eup %14026  ;;  %v2914_v60 = vadd.f32 1.0, %v14025_v30  ;;  %v9863_v15 = vmul.f32 -1.442695, %v16227_v34 }
 0x619   : > { %14046 = vrcp.f32 %v2913_v46  ;;  %v14029_v11 = vpop.eup %14028  ;;  %12886 = vrot.lane.b32.xlu0 %v12885_v33, %s14461_s22  ;;  %v9849_v6 = vmul.f32 -1.442695, %v16234_v1  ;;  %v16242_v46 = vadd.f32 %v2721_v44, %v16154_v43  ;;  %v3015_v20 = vmul.f32 %v14027_v31, %v16138_v40 }
 0x61a   : > { %14048 = vpow2.f32 %v9856_v7  ;;  %v14031_v39 = vpop.eup %14030 }
 0x61b   : > { %14050 = vrcp.f32 %v2914_v60  ;;  %v14033_v48 = vpop.eup %14032  ;;  %v2921_v38 = vadd.f32 1.0, %v14031_v39 }
 0x61c   : > { %14052 = vpow2.f32 %v9862_v57  ;;  %v14035_v25 = vpop.eup %14034  ;;  %v2915_v12 = vadd.f32 1.0, %v14033_v48  ;;  %v16251_v48 = vadd.f32 %v2723_v47, %v16154_v43 }
 0x61d   : > { %14054 = vpow2.f32 %v9841_v0  ;;  %v14037_v51 = vpop.eup %14036  ;;  %v2922_v61 = vadd.f32 1.0, %v14035_v25  ;;  %v9857_v0 = vmul.f32 -1.442695, %v16238_v19  ;;  %v9864_v25 = vmul.f32 -1.442695, %v16242_v46 }
 0x61e   : > { %14056 = vrcp.f32 %v2921_v38  ;;  %v14039_v24 = vpop.eup %14038 }
 0x61f   : > { %14058 = vrcp.f32 %v2915_v12  ;;  %v2792_v3 = vpop.f32.mrb[42].mxu1  ;;  %v14041_v5 = vpop.eup %14040  ;;  %v2929_v54 = vadd.f32 1.0, %v14039_v24 }
 0x620   : > { %14060 = vpow2.f32 %v9863_v15  ;;  %v16244_v7 = vpop.f32.mrb[43].mxu1  ;;  %v14043_v30 = vpop.eup %14042  ;;  %v2923_v57 = vadd.f32 1.0, %v14041_v5  ;;  %v16256_v12 = vadd.f32 %v2792_v3, %v16128_v22  ;;  %v16261_v5 = vadd.f32 %v3015_v20, %v15454_v18 }
 0x621   : > { %14062 = vrcp.f32 %v2922_v61  ;;  %v16246_v33 = vpop.eup %14044  ;;  %v2930_v60 = vadd.f32 1.0, %v14043_v30  ;;  %v3016_v3 = vmul.f32 %v14029_v11, %v16141_v28  ;;  %v9865_v30 = vmul.f32 -1.442695, %v16251_v48 }
 0x622   : > { %14064 = vrcp.f32 %v2929_v54 }
 0x623   : > { %v14047_v39 = vpop.eup %14046  ;;  %14066 = vrcp.f32 %v2923_v57  ;;  %v2798_v44 = vpop.f32.mrb[44].mxu1 }
 0x624   : > { %v14049_v38 = vpop.eup %14048  ;;  %v3009_v15 = vmul.f32 %v14047_v39, %v16166_v52  ;;  %14068 = vpow2.f32 %v9849_v6  ;;  %v16258_v40 = vpop.f32.mrb[45].mxu1  ;;  %v16267_v52 = vadd.f32 %v2798_v44, %v16134_v49 }
 0x625   : > { %v14051_v31 = vpop.eup %14050  ;;  %14070 = vrcp.f32 %v2930_v60  ;;  %v2931_v61 = vadd.f32 1.0, %v14049_v38 }
 0x626   : > { %v14053_v24 = vpop.eup %14052  ;;  %v16264_v47 = vadd.f32 %v3009_v15, %v15457_v23  ;;  %14072 = vpow2.f32 %v9857_v0  ;;  %v3010_v20 = vmul.f32 %v14051_v31, %v16169_v56  ;;  %v9842_v23 = vmul.f32 -1.442695, %v16256_v12 }
 0x627   : > { %v14055_v54 = vpop.eup %14054  ;;  %14074 = vrcp.f32 %v2931_v61  ;;  %v2937_v6 = vadd.f32 1.0, %v14053_v24  ;;  %v2804_v57 = vpop.f32.mrb[46].mxu1  ;;  %v9850_v15 = vmul.f32 -1.442695, %v16267_v52  ;;  %v3031_v31 = vmul.f32 %v14037_v51, %v16158_v8 }
 0x628   : > { %v14057_v60 = vpop.eup %14056  ;;  %v12890_v18 = vpack.i.bf16 %v16261_v5, %v16264_v47  ;;  %14076 = vpow2.f32 %v9864_v25  ;;  %v16275_v0 = vpop.f32.mrb[47].mxu1  ;;  %v16279_v28 = vadd.f32 %v2804_v57, %v16143_v41  ;;  %v16285_v25 = vadd.f32 %v3016_v3, %v15472_v37 }
 0x629   : > { %v14059_v39 = vpop.eup %14058  ;;  %v3017_v44 = vmul.f32 %v14057_v60, %v16174_v50  ;;  %14078 = vrcp.f32 %v2937_v6  ;;  %v16292_v6 = vadd.f32 %v3010_v20, %v15538_v53  ;;  %v16307_v20 = vadd.f32 %v3031_v31, %v15475_v10 }
 0x62a   : > { %v14061_v11 = vpop.eup %14060  ;;  %v3011_v38 = vmul.f32 %v14059_v39, %v16177_v42  ;;  %12891 = vrot.lane.b32.xlu0 %v12890_v18, %s14461_s22  ;;  %14080 = vpow2.f32 %v9865_v30  ;;  %v9858_v57 = vmul.f32 -1.442695, %v16279_v28  ;;  %v2916_v30 = vadd.f32 1.0, %v14055_v54 }
 0x62b   : > { %v14063_v56 = vpop.eup %14062  ;;  %v16289_v61 = vadd.f32 %v3017_v44, %v15469_v63  ;;  %v2810_v50 = vpop.f32.mrb[48].mxu1  ;;  %19888 = vst [vmem:[#allocation20_spill] sm:$0xff] %v16292_v6  ;;  %14082 = vpow2.f32 %v9842_v23  ;;  %v2938_v51 = vadd.f32 1.0, %v14061_v11  ;;  %19890 = vst [vmem:[#allocation23_spill] sm:$0xff] %v16307_v20 }
 0x62c   : > { %v14065_v24 = vpop.eup %14064  ;;  %v16295_v42 = vadd.f32 %v3011_v38, %v15545_v32  ;;  %v16298_v60 = vpop.f32.mrb[49].mxu1  ;;  %14084 = vpow2.f32 %v9850_v15  ;;  %v3018_v23 = vmul.f32 %v14063_v56, %v16181_v13 }
 0x62d   : > { %v14067_v37 = vpop.eup %14066  ;;  %v12895_v8 = vpack.i.bf16 %v16289_v61, %v16285_v25  ;;  %v3025_v63 = vmul.f32 %v14065_v24, %v16195_v17  ;;  %v16314_v17 = vadd.f32 %v2810_v50, %v16154_v43  ;;  %14086 = vpow2.f32 %v9858_v57 }
 0x62e   : > { %19889 = vst [vmem:[#allocation21_spill] sm:$0xff] %v16295_v42  ;;  %v14069_v3 = vpop.eup %14068  ;;  %v12900_v53 = vpack.i.bf16 %v16295_v42, %v16292_v6  ;;  %v3019_v32 = vmul.f32 %v14067_v37, %v16198_v35  ;;  %14088 = vrcp.f32 %v2938_v51  ;;  %v16328_v56 = vadd.f32 %v3018_v23, %v15541_v62 }
 0x62f   : > { %v14071_v18 = vpop.eup %14070  ;;  %v16311_v39 = vadd.f32 %v3025_v63, %v15478_v4  ;;  %12896 = vrot.lane.b32.xlu1 %v12895_v8, %s14461_s22  ;;  %v3032_v4 = vmul.f32 %v16246_v33, %v16161_v16  ;;  %14090 = vrcp.f32 %v2916_v30  ;;  %v9866_v38 = vmul.f32 -1.442695, %v16314_v17  ;;  %v19898_v63 = vld [vmem:[#allocation3_spill] sm:$0xff] }
 0x630   : > { %v14073_v44 = vpop.eup %14072  ;;  %12901 = vrot.lane.b32.xlu0 %v12900_v53, %s14461_s22  ;;  %v16321_v10 = vadd.f32 %v3019_v32, %v15552_v59  ;;  %19893 = vst [vmem:[#allocation27_spill] sm:$0xff] %v16328_v56  ;;  %v3026_v31 = vmul.f32 %v14071_v18, %v16201_v29  ;;  %v2924_v50 = vadd.f32 1.0, %v14069_v3  ;;  %v19896_v29 = vld [vmem:[#allocation7_spill] sm:$0xff] }
 0x631   : > { %19891 = vst [vmem:[#allocation22_spill] sm:$0xff] %v16311_v39  ;;  %v14075_v35 = vpop.eup %14074  ;;  %v12905_v54 = vpack.i.bf16 %v16307_v20, %v16311_v39  ;;  %v2932_v57 = vadd.f32 1.0, %v14073_v44  ;;  %14092 = vpow2.f32 %v9866_v38  ;;  %v16339_v37 = vadd.f32 %v3032_v4, %v15526_v21 }
 0x632   : > { %19892 = vst [vmem:[#allocation26_spill] sm:$0xff] %v16321_v10  ;;  %v14077_v13 = vpop.eup %14076  ;;  %v3027_v11 = vmul.f32 %v14075_v35, %v16213_v58  ;;  %v12910_v58 = vpack.i.bf16 %v16321_v10, %v16328_v56  ;;  %v16345_v51 = vadd.f32 %v3026_v31, %v19898_v63  ;;  %v19904_v63 = vld [vmem:[#allocation4_spill] sm:$0xff] }
 0x633   : > { %v14079_v15 = vpop.eup %14078  ;;  %v2939_v24 = vadd.f32 1.0, %v14077_v13  ;;  %12906 = vrot.lane.b32.xlu1 %v12905_v54, %s14461_s22  ;;  %19895 = vst [vmem:[#allocation29_spill] sm:$0xff] %v16339_v37 }
 0x634   : > { %v3033_v59 = vmul.f32 %v14079_v15, %v16219_v14  ;;  %v14081_v16 = vpop.eup %14080  ;;  %v16336_v33 = vadd.f32 %v3027_v11, %v15574_v55  ;;  %19899 = vst [vmem:[#allocation3_spill] sm:$0xff] %v16345_v51 }
 0x635   : > { %14094 = vrcp.f32 %v2939_v24  ;;  %v14083_v62 = vpop.eup %14082  ;;  %v2940_v53 = vadd.f32 1.0, %v14081_v16 }
 0x636   : > { %19894 = vst [vmem:[#allocation28_spill] sm:$0xff] %v16336_v33  ;;  %v16342_v8 = vadd.f32 %v3033_v59, %v19896_v29  ;;  %14096 = vrcp.f32 %v2924_v50  ;;  %v2917_v14 = vadd.f32 1.0, %v14083_v62  ;;  %v14085_v3 = vpop.eup %14084  ;;  %v12920_v21 = vpack.i.bf16 %v16336_v33, %v16345_v51  ;;  %v19900_v50 = vld [vmem:[#allocation12_spill] sm:$0xff]  ;;  %v19902_v59 = vld [vmem:[#allocation9_spill] sm:$0xff] }
 0x637   : > { %12911 = vrot.lane.b32.xlu1 %v12910_v58, %s14461_s22  ;;  %14098 = vrcp.f32 %v2932_v57  ;;  %v2925_v30 = vadd.f32 1.0, %v14085_v3  ;;  %v14087_v32 = vpop.eup %14086  ;;  %v19906_v3 = vld [vmem:[#allocation6_spill] sm:$0xff] }
 0x638   : > { %19897 = vst [vmem:[#allocation7_spill] sm:$0xff] %v16342_v8  ;;  %v12915_v55 = vpack.i.bf16 %v16342_v8, %v16339_v37  ;;  %14100 = vrcp.f32 %v2917_v14  ;;  %v14089_v18 = vpop.eup %14088  ;;  %v2933_v23 = vadd.f32 1.0, %v14087_v32  ;;  %v19910_v32 = vld [vmem:[#allocation13_spill] sm:$0xff] }
 0x639   : > { %14102 = vrcp.f32 %v2925_v30  ;;  %v14091_v44 = vpop.eup %14090  ;;  %v3034_v54 = vmul.f32 %v14089_v18, %v16227_v34 }
 0x63a   : > { %12916 = vrot.lane.b32.xlu0 %v12915_v55, %s14461_s22  ;;  %14104 = vrcp.f32 %v2940_v53  ;;  %v3012_v31 = vmul.f32 %v14091_v44, %v16210_v2 }
 0x63b   : > { %12921 = vrot.lane.b32.xlu1 %v12920_v21, %s14461_s22  ;;  %14106 = vrcp.f32 %v2933_v23  ;;  %v14093_v35 = vpop.eup %14092  ;;  %v16358_v24 = vadd.f32 %v3034_v54, %v19900_v50  ;;  %v19908_v21 = vld [vmem:[#allocation5_spill] sm:$0xff]  ;;  %v19914_v54 = vld [vmem:[#allocation14_spill] sm:$0xff] }
 0x63c   : > { %v2941_v4 = vadd.f32 1.0, %v14093_v35  ;;  %v16368_v14 = vadd.f32 %v3012_v31, %v19904_v63 }
 0x63d   : > { %19901 = vst [vmem:[#allocation12_spill] sm:$0xff] %v16358_v24 }
 0x63e   : > { %14108 = vrcp.f32 %v2941_v4  ;;  %19905 = vst [vmem:[#allocation4_spill] sm:$0xff] %v16368_v14 }
 0x63f   : > { %v14095_v13 = vpop.eup %14094 }
 0x640   : > { %v3035_v11 = vmul.f32 %v14095_v13, %v16242_v46  ;;  %v14097_v38 = vpop.eup %14096 }
 0x641   : > { %v14099_v15 = vpop.eup %14098  ;;  %v3020_v58 = vmul.f32 %v14097_v38, %v16234_v1 }
 0x642   : > { %v16361_v57 = vadd.f32 %v3035_v11, %v19902_v59  ;;  %v14101_v16 = vpop.eup %14100  ;;  %v3028_v2 = vmul.f32 %v14099_v15, %v16238_v19  ;;  %v19912_v19 = vld [vmem:[#allocation8_spill] sm:$0xff] }
 0x643   : > { %v3013_v62 = vmul.f32 %v14101_v16, %v16256_v12  ;;  %v14103_v46 = vpop.eup %14102  ;;  %v16377_v30 = vadd.f32 %v3020_v58, %v19908_v21 }
 0x644   : > { %19903 = vst [vmem:[#allocation9_spill] sm:$0xff] %v16361_v57  ;;  %v12925_v34 = vpack.i.bf16 %v16361_v57, %v16358_v24  ;;  %v14105_v29 = vpop.eup %14104  ;;  %v3021_v53 = vmul.f32 %v14103_v46, %v16267_v52  ;;  %v16386_v44 = vadd.f32 %v3028_v2, %v19912_v19 }
 0x645   : > { %v16372_v55 = vadd.f32 %v3013_v62, %v19906_v3  ;;  %v14107_v1 = vpop.eup %14106  ;;  %19909 = vst [vmem:[#allocation5_spill] sm:$0xff] %v16377_v30  ;;  %v3036_v35 = vmul.f32 %v14105_v29, %v16251_v48  ;;  %v19918_v48 = vld [vmem:[#allocation17_spill] sm:$0xff]  ;;  %v16417_v62 = vadd.f32 %v16244_v7, %v16128_v22 }
 0x646   : > { %12926 = vrot.lane.b32.xlu0 %v12925_v34, %s14461_s22  ;;  %v16382_v18 = vadd.f32 %v3021_v53, %v19910_v32  ;;  %v3029_v23 = vmul.f32 %v14107_v1, %v16279_v28  ;;  %19913 = vst [vmem:[#allocation8_spill] sm:$0xff] %v16386_v44  ;;  %v19916_v28 = vld [vmem:[#allocation11_spill] sm:$0xff] }
 0x647   : > { %19907 = vst [vmem:[#allocation6_spill] sm:$0xff] %v16372_v55  ;;  %v12930_v12 = vpack.i.bf16 %v16372_v55, %v16368_v14  ;;  %v16400_v15 = vadd.f32 %v3036_v35, %v19916_v28  ;;  %v9843_v53 = vmul.f32 -1.442695, %v16417_v62 }
 0x648   : > { %19911 = vst [vmem:[#allocation13_spill] sm:$0xff] %v16382_v18  ;;  %v12935_v52 = vpack.i.bf16 %v16382_v18, %v16377_v30  ;;  %v16392_v13 = vadd.f32 %v3029_v23, %v19914_v54  ;;  %v14109_v4 = vpop.eup %14108 }
 0x649   : > { %12931 = vrot.lane.b32.xlu1 %v12930_v12, %s14461_s22  ;;  %v3037_v38 = vmul.f32 %v14109_v4, %v16314_v17  ;;  %19917 = vst [vmem:[#allocation11_spill] sm:$0xff] %v16400_v15  ;;  %v16413_v17 = vadd.f32 %v16258_v40, %v16134_v49  ;;  %v19920_v4 = vmov 0 }
 0x64a   : > { %19915 = vst [vmem:[#allocation14_spill] sm:$0xff] %v16392_v13  ;;  %v12940_v11 = vpack.i.bf16 %v16392_v13, %v16386_v44  ;;  %12936 = vrot.lane.b32.xlu0 %v12935_v52, %s14461_s22  ;;  %v19921_v4 = vsel %vm16436_vm15, 4294967295, %v19920_v4 }
 0x64b   : > { %v16403_v31 = vadd.f32 %v3037_v38, %v19918_v48  ;;  %v9851_v63 = vmul.f32 -1.442695, %v16413_v17  ;;  %19922 = vst [vmem:[#allocation30_spill] sm:$0xff] %v19921_v4 }
 0x64d   : > { %19919 = vst [vmem:[#allocation17_spill] sm:$0xff] %v16403_v31  ;;  %v12945_v50 = vpack.i.bf16 %v16403_v31, %v16400_v15  ;;  %14110 = vpow2.f32 %v9851_v63  ;;  %v16463_v63 = vadd.f32 %v16275_v0, %v16143_v41 }
 0x64e   : > { %12941 = vrot.lane.b32.xlu0 %v12940_v11, %s14461_s22  ;;  %14112 = vpow2.f32 %v9843_v53 }
 0x64f   : > { %12946 = vrot.lane.b32.xlu1 %v12945_v50, %s14461_s22  ;;  %v16448_v50 = vadd.f32 %v16298_v60, %v16154_v43 }
 0x657   : > { %v14111_v53 = vpop.eup %14110 }
 0x681   : > { %v12882_v59 = vpop.permute.xlu1 %12881 }
 0x682   : > { %v12884_v58 = vunpack.i.h.bf16 %v12882_v59  ;;  %v12883_v34 = vunpack.i.l.bf16 %v12882_v59 }
 0x684   : > { %v3168_v2 = vsel %vm19758_vm8, %v12883_v34, %v12884_v58  ;;  %v3228_v28 = vsel %vm19758_vm8, 0.0, %v12883_v34 }
 0x68b   : > { %v16409_v16 = vpop.permute.xlu0 %12886 }
 0x68c   : > { %v12889_v43 = vunpack.i.h.bf16 %v16409_v16  ;;  %v12888_v60 = vunpack.i.l.bf16 %v16409_v16 }
 0x69c   : > { %v12892_v46 = vpop.permute.xlu0 %12891 }
 0x69d   : > { %v12893_v29 = vunpack.i.l.bf16 %v12892_v46  ;;  %v12894_v1 = vunpack.i.h.bf16 %v12892_v46 }
 0x69f   : > { %v16422_v3 = vsel %vm19758_vm8, %v12884_v58, %v12893_v29  ;;  %v11493_v11 = vpack.c.bf16 %v12894_v1, %v12883_v34 }
 0x6a0   : > { %v12950_v49 = vpack.i.bf16 %v16422_v3, %v3168_v2 }
 0x6a1   : > { %v12897_v40 = vpop.permute.xlu1 %12896 }
 0x6a2   : > { %v12899_v21 = vunpack.i.h.bf16 %v12897_v40  ;;  %v12898_v22 = vunpack.i.l.bf16 %v12897_v40  ;;  %v16426_v7 = vpop.permute.xlu0 %12901  ;;  %12951 = vrot.lane.b32.xlu1 %v12950_v49, %s14460_s19 }
 0x6a3   : > { %v12903_v12 = vunpack.i.l.bf16 %v16426_v7  ;;  %v12904_v38 = vunpack.i.h.bf16 %v16426_v7 }
 0x6a4   : > { %v3175_v32 = vsel %vm19758_vm8, %v12894_v1, %v12898_v22  ;;  %v3176_v23 = vsel %vm19758_vm8, %v12898_v22, %v12899_v21 }
 0x6a5   : > { %v3170_v19 = vsel %vm19758_vm8, %v12893_v29, %v12903_v12  ;;  %v16434_v35 = vpop.permute.xlu1 %12906  ;;  %v12970_v52 = vpack.i.bf16 %v3176_v23, %v3175_v32  ;;  %v11491_v54 = vpack.c.bf16 %v3175_v32, %v3168_v2  ;;  %v16455_v58 = vsel %vm19758_vm8, %v12903_v12, %v12904_v38 }
 0x6a6   : > { %12956 = vrot.lane.b32.xlu1 %v12950_v49, %s14462_s23  ;;  %v12960_v48 = vpack.i.bf16 %v3170_v19, %v3228_v28  ;;  %v12908_v34 = vunpack.i.l.bf16 %v16434_v35  ;;  %v3229_v2 = vsel %vm19758_vm8, 0.0, %v12894_v1  ;;  %v12909_v49 = vunpack.i.h.bf16 %v16434_v35 }
 0x6a7   : > { %12971 = vrot.lane.b32.xlu0 %v12970_v52, %s14460_s19  ;;  %11492 = vmatprep.subr.bf16.mxu0 %v11491_v54  ;;  %v12980_v32 = vpack.i.bf16 %v3229_v2, %v16455_v58  ;;  %v14113_v54 = vpop.eup %14112  ;;  %v9867_v1 = vmul.f32 -1.442695, %v16448_v50  ;;  %v11519_v35 = vpack.c.bf16 %v3176_v23, %v16422_v3  ;;  %v2926_v28 = vadd.f32 1.0, %v14111_v53 }
 0x6a8   : > { %11495 = vmatpush1.bf16.msk.msra.mxu0 %vm16436_vm15, %v11493_v11 }
 0x6a9   : > { %v16450_v59 = vpop.permute.xlu1 %12911  ;;  %14114 = vpow2.f32 %v9867_v1 }
 0x6aa   : > { %v19720_v46 = vunpack.i.h.bf16 %v16450_v59  ;;  %v12913_v29 = vunpack.i.l.bf16 %v16450_v59  ;;  %12961 = vrot.lane.b32.xlu1 %v12960_v48, %s14460_s19  ;;  %14116 = vrcp.f32 %v2926_v28  ;;  %v3231_v28 = vsel %vm19758_vm8, 0.0, %v12909_v49 }
 0x6ab   : > { %12976 = vrot.lane.b32.xlu0 %v12970_v52, %s14462_s23  ;;  %v3183_v52 = vsel %vm19758_vm8, %v12889_v43, %v12908_v34 }
 0x6ac   : > { %v16473_v40 = vsel %vm19758_vm8, %v12913_v29, %v19720_v46  ;;  %v12917_v22 = vpop.permute.xlu0 %12916  ;;  %v3177_v41 = vsel %vm19758_vm8, %v12899_v21, %v12913_v29  ;;  %v3182_v21 = vsel %vm19758_vm8, %v12888_v60, %v12889_v43  ;;  %v11498_v46 = vpack.c.bf16 %v12909_v49, %v12888_v60 }
 0x6ad   : > { %v12919_v0 = vunpack.i.h.bf16 %v12917_v22  ;;  %v12918_v12 = vunpack.i.l.bf16 %v12917_v22  ;;  %v11517_v16 = vpack.c.bf16 %v3177_v41, %v3170_v19  ;;  %v9859_v19 = vmul.f32 -1.442695, %v16463_v63  ;;  %v16489_v53 = vpop.permute.xlu1 %12921 }
 0x6ae   : > { %12966 = vrot.lane.b32.xlu1 %v12960_v48, %s14462_s23  ;;  %v13005_v22 = vpack.i.bf16 %v16473_v40, %v3177_v41  ;;  %v2918_v48 = vadd.f32 1.0, %v14113_v54  ;;  %v12985_v23 = vpack.i.bf16 %v3183_v52, %v3182_v21  ;;  %v12924_v41 = vunpack.i.h.bf16 %v16489_v53 }
 0x6af   : > { %12981 = vrot.lane.b32.xlu0 %v12980_v32, %s14460_s19  ;;  %v3189_v29 = vsel %vm19758_vm8, %v12909_v49, %v12918_v12  ;;  %11518 = vmatprep.subr.bf16.mxu1 %v11517_v16  ;;  %v3190_v3 = vsel %vm19758_vm8, %v12918_v12, %v12919_v0  ;;  %14118 = vpow2.f32 %v9859_v19  ;;  %v12923_v12 = vunpack.i.l.bf16 %v16489_v53 }
 0x6b0   : > { %v11496_v2 = vpack.c.bf16 %v3189_v29, %v3182_v21  ;;  %11520 = vmatpush1.bf16.msra.mxu1 %v11519_v35  ;;  %v13010_v43 = vpack.i.bf16 %v3190_v3, %v3189_v29  ;;  %14120 = vrcp.f32 %v2918_v48  ;;  %v3230_v19 = vsel %vm19758_vm8, 0.0, %v12888_v60 }
 0x6b1   : > { %v16500_v54 = vsel %vm19758_vm8, %v12923_v12, %v12924_v41  ;;  %v11523_v49 = vpack.c.bf16 %v3190_v3, %v3183_v52 }
 0x6b2   : > { %11497 = vmatprep.subr.bf16.mxu0 %v11496_v2  ;;  %13006 = vrot.lane.b32.xlu1 %v13005_v22, %s14460_s19  ;;  %v13020_v53 = vpack.i.bf16 %v3231_v28, %v16500_v54 }
 0x6b3   : > { %11500 = vmatpush1.bf16.msk.msra.mxu0 %vm16436_vm15, %v11498_v46  ;;  %12986 = vrot.lane.b32.xlu0 %v12985_v23, %s14460_s19  ;;  %v3184_v46 = vsel %vm19758_vm8, %v12908_v34, %v12923_v12 }
 0x6b6   : > { %13011 = vrot.lane.b32.xlu1 %v13010_v43, %s14460_s19 }
 0x6b7   : > { %12991 = vrot.lane.b32.xlu0 %v12980_v32, %s14462_s23  ;;  %v14115_v32 = vpop.eup %14114 }
 0x6b8   : > { %v12927_v16 = vpop.permute.xlu0 %12926  ;;  %v2942_v3 = vadd.f32 1.0, %v14115_v32 }
 0x6b9   : > { %v12929_v1 = vunpack.i.h.bf16 %v12927_v16  ;;  %v12928_v35 = vunpack.i.l.bf16 %v12927_v16 }
 0x6ba   : > { %13016 = vrot.lane.b32.xlu1 %v13005_v22, %s14462_s23  ;;  %v14117_v22 = vpop.eup %14116  ;;  %14122 = vrcp.f32 %v2942_v3 }
 0x6bb   : > { %v16506_v21 = vsel %vm19758_vm8, %v12928_v35, %v12929_v1  ;;  %v3191_v29 = vsel %vm19758_vm8, %v12919_v0, %v12928_v35  ;;  %12996 = vrot.lane.b32.xlu0 %v12985_v23, %s14462_s23  ;;  %v16511_v48 = vpop.permute.xlu1 %12931  ;;  %v13000_v0 = vpack.i.bf16 %v3184_v46, %v3230_v19  ;;  %v14119_v35 = vpop.eup %14118  ;;  %v3022_v52 = vmul.f32 %v14117_v22, %v16413_v17 }
 0x6bc   : > { %v11521_v2 = vpack.c.bf16 %v3191_v29, %v3184_v46  ;;  %v19723_v12 = vunpack.i.h.bf16 %v16511_v48  ;;  %v12933_v16 = vunpack.i.l.bf16 %v16511_v48  ;;  %v16518_v23 = vpop.permute.xlu0 %12936  ;;  %v14121_v60 = vpop.eup %14120  ;;  %v13030_v34 = vpack.i.bf16 %v16506_v21, %v3191_v29 }
 0x6bd   : > { %v19724_v28 = vunpack.i.h.bf16 %v16518_v23  ;;  %v12938_v11 = vunpack.i.l.bf16 %v16518_v23  ;;  %v3014_v7 = vmul.f32 %v14121_v60, %v16417_v62  ;;  %v2934_v29 = vadd.f32 1.0, %v14119_v35  ;;  %v19926_v60 = vld [vmem:[#allocation10_spill] sm:$0xff] }
 0x6be   : > { %11522 = vmatprep.subr.bf16.mxu1 %v11521_v2  ;;  %13021 = vrot.lane.b32.xlu1 %v13020_v53, %s14460_s19  ;;  %v16529_v46 = vsel %vm19758_vm8, %v12904_v38, %v12933_v16  ;;  %v16534_v19 = vsel %vm19758_vm8, %v12933_v16, %v19723_v12  ;;  %v19923_v2 = vunpack.i.h.bf16 %v16450_v59 }
 0x6bf   : > { %11524 = vmatpush1.bf16.msra.mxu1 %v11523_v49  ;;  %13001 = vrot.lane.b32.xlu0 %v13000_v0, %s14460_s19  ;;  %v16544_v17 = vsel %vm19758_vm8, %v12938_v11, %v19724_v28  ;;  %v16565_v32 = vadd.f32 %v3014_v7, %v19926_v60  ;;  %14124 = vrcp.f32 %v2934_v29 }
 0x6c0   : > { %v16539_v49 = vsel %vm19758_vm8, %v19923_v2, %v12938_v11  ;;  %v16547_v38 = vpop.permute.xlu0 %12941  ;;  %v19924_v11 = vld [vmem:[#allocation15_spill] sm:$0xff] }
 0x6c1   : > { %v19721_v22 = vunpack.i.h.bf16 %v16547_v38  ;;  %v12943_v16 = vunpack.i.l.bf16 %v16547_v38  ;;  %v16558_v2 = vadd.f32 %v3022_v52, %v19924_v11  ;;  %v16560_v62 = vpop.permute.xlu1 %12946  ;;  %19927 = vst [vmem:[#allocation10_spill] sm:$0xff] %v16565_v32  ;;  %v13065_v60 = vpack.i.bf16 %v16544_v17, %v16539_v49 }
 0x6c2   : > { %13026 = vrot.lane.b32.xlu1 %v13010_v43, %s14462_s23  ;;  %v19722_v43 = vunpack.i.h.bf16 %v16560_v62  ;;  %v12948_v35 = vunpack.i.l.bf16 %v16560_v62 }
 0x6c3   : > { %13031 = vrot.lane.b32.xlu0 %v13030_v34, %s14460_s19  ;;  %19925 = vst [vmem:[#allocation15_spill] sm:$0xff] %v16558_v2  ;;  %v16569_v59 = vsel %vm19758_vm8, %v12924_v41, %v12943_v16  ;;  %v16574_v52 = vsel %vm19758_vm8, %v12943_v16, %v19721_v22  ;;  %v19930_v22 = vld [vmem:[#allocation16_spill] sm:$0xff] }
 0x6c4   : > { %v16577_v3 = vsel %vm19758_vm8, %v12929_v1, %v12948_v35  ;;  %v16582_v11 = vsel %vm19758_vm8, %v12948_v35, %v19722_v43  ;;  %v13055_v1 = vpack.i.bf16 %v16534_v19, %v16529_v46  ;;  %v14123_v29 = vpop.eup %14122  ;;  %v13070_v16 = vpack.i.bf16 %v16574_v52, %v16569_v59 }
 0x6c5   : > { %v3038_v35 = vmul.f32 %v14123_v29, %v16448_v50 }
 0x6c6   : > { %13041 = vrot.lane.b32.xlu1 %v13020_v53, %s14462_s23  ;;  %v13050_v53 = vpack.i.bf16 %v16558_v2, %v16565_v32 }
 0x6c7   : > { %13036 = vrot.lane.b32.xlu0 %v13000_v0, %s14462_s23 }
 0x6c9   : > { %v14125_v0 = vpop.eup %14124 }
 0x6ca   : > { %13051 = vrot.lane.b32.xlu1 %v13050_v53, %s14461_s22  ;;  %v19928_v53 = vld [vmem:[#allocation19_spill] sm:$0xff] }
 0x6cb   : > { %13046 = vrot.lane.b32.xlu0 %v13030_v34, %s14462_s23  ;;  %v3030_v34 = vmul.f32 %v14125_v0, %v16463_v63  ;;  %v16606_v7 = vadd.f32 %v3038_v35, %v19928_v53 }
 0x6cd   : > { %19929 = vst [vmem:[#allocation19_spill] sm:$0xff] %v16606_v7  ;;  %v16612_v43 = vadd.f32 %v3030_v34, %v19930_v22 }
 0x6ce   : > { %13056 = vrot.lane.b32.xlu1 %v13055_v1, %s14460_s19 }
 0x6cf   : > { %13061 = vrot.lane.b32.xlu0 %v13055_v1, %s14462_s23  ;;  %v13080_v1 = vpack.i.bf16 %v16582_v11, %v16577_v3  ;;  %19931 = vst [vmem:[#allocation16_spill] sm:$0xff] %v16612_v43  ;;  %v13085_v50 = vpack.i.bf16 %v16606_v7, %v16612_v43 }
 0x6d2   : > { %13071 = vrot.lane.b32.xlu1 %v13070_v16, %s14460_s19 }
 0x6d3   : > { %13066 = vrot.lane.b32.xlu0 %v13065_v60, %s14460_s19 }
 0x6d6   : > { %13076 = vrot.lane.b32.xlu1 %v13065_v60, %s14462_s23 }
 0x6d7   : > { %13081 = vrot.lane.b32.xlu0 %v13080_v1, %s14460_s19 }
 0x6da   : > { %13091 = vrot.lane.b32.xlu1 %v13070_v16, %s14462_s23 }
 0x6db   : > { %13086 = vrot.lane.b32.xlu0 %v13085_v50, %s14461_s22 }
 0x6df   : > { %13096 = vrot.lane.b32.xlu0 %v13080_v1, %s14462_s23 }
 0x714   : > { %v12952_v63 = vpop.permute.xlu1 %12951 }
 0x715   : > { %v12954_v29 = vunpack.i.h.bf16 %v12952_v63  ;;  %v12953_v0 = vunpack.i.l.bf16 %v12952_v63 }
 0x717   : > { %v3320_v41 = vsel %vm19759_vm4, %v12953_v0, %v12954_v29 }
 0x718   : > { %v16620_v35 = vpop.permute.xlu1 %12956 }
 0x719   : > { %v12972_v60 = vpop.permute.xlu0 %12971 }
 0x71a   : > { %v12974_v53 = vunpack.i.h.bf16 %v12972_v60  ;;  %v12973_v22 = vunpack.i.l.bf16 %v12972_v60 }
 0x71c   : > { %v12962_v34 = vpop.permute.xlu1 %12961  ;;  %v3327_v12 = vsel %vm19759_vm4, %v12973_v22, %v12974_v53 }
 0x71d   : > { %v16624_v28 = vpop.permute.xlu0 %12976  ;;  %v11501_v16 = vpack.c.bf16 %v3327_v12, %v3320_v41  ;;  %v12963_v50 = vunpack.i.l.bf16 %v12962_v34  ;;  %v12964_v63 = vunpack.i.h.bf16 %v12962_v34 }
 0x71f   : > { %11502 = vmatprep.subr.bf16.mxu0 %v11501_v16  ;;  %v3319_v60 = vsel %vm19759_vm4, %v12963_v50, %v12953_v0  ;;  %v3321_v44 = vsel %vm19759_vm4, %v12954_v29, %v12964_v63 }
 0x720   : > { %v16626_v4 = vpop.permute.xlu1 %12966 }
 0x721   : > { %v16628_v1 = vpop.permute.xlu0 %12981  ;;  %v12969_v33 = vunpack.i.h.bf16 %v16626_v4 }
 0x722   : > { %v12984_v7 = vunpack.i.h.bf16 %v16628_v1  ;;  %v19738_v43 = vunpack.i.l.bf16 %v16628_v1 }
 0x724   : > { %v3326_v31 = vsel %vm19759_vm4, %v12984_v7, %v12973_v22  ;;  %v16634_v15 = vpop.permute.xlu1 %13006  ;;  %v3322_v34 = vsel %vm19759_vm4, %v12964_v63, %v19738_v43 }
 0x725   : > { %v12987_v13 = vpop.permute.xlu0 %12986  ;;  %v19737_v12 = vunpack.i.h.bf16 %v16634_v15  ;;  %v13008_v41 = vunpack.i.l.bf16 %v16634_v15  ;;  %v11503_v16 = vpack.c.bf16 %v3326_v31, %v3319_v60 }
 0x726   : > { %v12989_v2 = vunpack.i.h.bf16 %v12987_v13  ;;  %v12988_v18 = vunpack.i.l.bf16 %v12987_v13 }
 0x727   : > { %v3328_v0 = vsel %vm19759_vm4, %v12974_v53, %v13008_v41  ;;  %11504 = vmatpush1.bf16.msra.mxu0 %v11503_v16  ;;  %v3329_v7 = vsel %vm19759_vm4, %v13008_v41, %v19737_v12  ;;  %v19744_v16 = vunpack.i.h.bf16 %v16620_v35  ;;  %v12958_v41 = vunpack.i.l.bf16 %v16620_v35 }
 0x728   : > { %v13012_v22 = vpop.permute.xlu1 %13011  ;;  %v11525_v50 = vpack.c.bf16 %v3329_v7, %v3322_v34  ;;  %v11527_v32 = vpack.c.bf16 %v3328_v0, %v3321_v44  ;;  %v3334_v63 = vsel %vm19759_vm4, %v12988_v18, %v12989_v2  ;;  %v12979_v34 = vunpack.i.h.bf16 %v16624_v28 }
 0x729   : > { %v16646_v30 = vpop.permute.xlu0 %12991  ;;  %v13014_v31 = vunpack.i.h.bf16 %v13012_v22  ;;  %v13013_v29 = vunpack.i.l.bf16 %v13012_v22  ;;  %v12978_v44 = vunpack.i.l.bf16 %v16624_v28  ;;  %v12968_v7 = vunpack.i.l.bf16 %v16626_v4 }
 0x72a   : > { %11526 = vmatprep.subr.bf16.mxu1 %v11525_v50  ;;  %v12994_v12 = vunpack.i.h.bf16 %v16646_v30  ;;  %v12993_v37 = vunpack.i.l.bf16 %v16646_v30 }
 0x72b   : > { %11528 = vmatpush1.bf16.msra.mxu1 %v11527_v32  ;;  %v3341_v13 = vsel %vm19759_vm4, %v13013_v29, %v13014_v31  ;;  %v3444_v28 = vsel %vm19757_vm5, %v12968_v7, %v12958_v41 }
 0x72c   : > { %v16650_v60 = vpop.permute.xlu1 %13016  ;;  %v11505_v53 = vpack.c.bf16 %v3341_v13, %v3334_v63  ;;  %v3445_v63 = vsel %vm19757_vm5, %v12958_v41, %v19744_v16  ;;  %v3452_v13 = vsel %vm19757_vm5, %v12978_v44, %v12979_v34  ;;  %v3447_v39 = vsel %vm19757_vm5, %v12969_v33, %v12993_v37 }
 0x72d   : > { %v16656_v0 = vpop.permute.xlu0 %12996  ;;  %v13018_v43 = vunpack.i.l.bf16 %v16650_v60  ;;  %v11509_v56 = vpack.c.bf16 %v3452_v13, %v3445_v63 }
 0x72e   : > { %11506 = vmatprep.subr.bf16.mxu0 %v11505_v53  ;;  %v12998_v14 = vunpack.i.l.bf16 %v16656_v0 }
 0x730   : > { %v16658_v32 = vpop.permute.xlu1 %13021 }
 0x731   : > { %v13002_v22 = vpop.permute.xlu0 %13001  ;;  %v13024_v50 = vunpack.i.h.bf16 %v16658_v32  ;;  %v19754_v51 = vunpack.i.l.bf16 %v16658_v32 }
 0x732   : > { %v13003_v53 = vunpack.i.l.bf16 %v13002_v22  ;;  %v13004_v57 = vunpack.i.h.bf16 %v13002_v22  ;;  %v3451_v22 = vsel %vm19757_vm5, %v12994_v12, %v12978_v44 }
 0x733   : > { %v3340_v24 = vsel %vm19759_vm4, %v13024_v50, %v13013_v29  ;;  %v19932_v50 = vunpack.i.h.bf16 %v16656_v0 }
 0x734   : > { %v3333_v16 = vsel %vm19759_vm4, %v13003_v53, %v12988_v18  ;;  %v13027_v10 = vpop.permute.xlu1 %13026  ;;  %v3335_v18 = vsel %vm19759_vm4, %v12989_v2, %v13004_v57  ;;  %v3336_v2 = vsel %vm19759_vm4, %v13004_v57, %v19754_v51  ;;  %v11511_v53 = vpack.c.bf16 %v3451_v22, %v3444_v28 }
 0x735   : > { %v16676_v42 = vpop.permute.xlu0 %13031  ;;  %v13029_v6 = vunpack.i.h.bf16 %v13027_v10  ;;  %v13028_v8 = vunpack.i.l.bf16 %v13027_v10  ;;  %v11507_v55 = vpack.c.bf16 %v3340_v24, %v3333_v16  ;;  %v3459_v41 = vsel %vm19757_vm5, %v12998_v14, %v19932_v50 }
 0x736   : > { %v13034_v29 = vunpack.i.h.bf16 %v16676_v42  ;;  %v13033_v4 = vunpack.i.l.bf16 %v16676_v42  ;;  %v19933_v10 = vunpack.i.h.bf16 %v16650_v60 }
 0x737   : > { %11508 = vmatpush1.bf16.msra.mxu0 %v11507_v55  ;;  %v3466_v7 = vsel %vm19757_vm5, %v13028_v8, %v13029_v6 }
 0x738   : > { %v3454_v24 = vsel %vm19757_vm5, %v13018_v43, %v19933_v10  ;;  %v3342_v16 = vsel %vm19759_vm4, %v13014_v31, %v13033_v4  ;;  %11510 = vmatprep.subr.bf16.mxu0 %v11509_v56  ;;  %v16691_v12 = vpop.permute.xlu1 %13041  ;;  %v3343_v55 = vsel %vm19759_vm4, %v13033_v4, %v13034_v29  ;;  %v11513_v44 = vpack.c.bf16 %v3466_v7, %v3459_v41 }
 0x739   : > { %v13037_v63 = vpop.permute.xlu0 %13036  ;;  %v13044_v13 = vunpack.i.h.bf16 %v16691_v12  ;;  %v11529_v50 = vpack.c.bf16 %v3343_v55, %v3336_v2  ;;  %v11531_v10 = vpack.c.bf16 %v3342_v16, %v3335_v18  ;;  %v3453_v31 = vsel %vm19757_vm5, %v12979_v34, %v13018_v43 }
 0x73a   : > { %v13038_v56 = vunpack.i.l.bf16 %v13037_v63  ;;  %v13039_v20 = vunpack.i.h.bf16 %v13037_v63  ;;  %v13043_v57 = vunpack.i.l.bf16 %v16691_v12  ;;  %v11533_v4 = vpack.c.bf16 %v3454_v24, %v3447_v39 }
 0x73b   : > { %v3465_v51 = vsel %vm19757_vm5, %v13044_v13, %v13028_v8  ;;  %11512 = vmatpush1.bf16.msra.mxu0 %v11511_v53  ;;  %11530 = vmatprep.subr.bf16.mxu1 %v11529_v50  ;;  %v19934_v43 = vunpack.i.h.bf16 %v16620_v35  ;;  %v19936_v55 = vunpack.i.h.bf16 %v16511_v48  ;;  %v19938_v50 = vunpack.i.h.bf16 %v16656_v0 }
 0x73c   : > { %v3458_v41 = vsel %vm19757_vm5, %v13038_v56, %v12998_v14  ;;  %11514 = vmatprep.subr.bf16.mxu0 %v11513_v44  ;;  %11532 = vmatpush1.bf16.msra.mxu1 %v11531_v10  ;;  %v13052_v28 = vpop.permute.xlu1 %13051  ;;  %v19935_v14 = vunpack.i.h.bf16 %v16518_v23  ;;  %v19937_v23 = vpack.c.bf16 %v16539_v49, %v16529_v46 }
 0x73d   : > { %v3446_v34 = vsel %vm19757_vm5, %v19934_v43, %v12969_v33  ;;  %v16710_v22 = vpop.permute.xlu0 %13046  ;;  %v13054_v18 = vunpack.i.h.bf16 %v13052_v28  ;;  %v13053_v7 = vunpack.i.l.bf16 %v13052_v28  ;;  %11534 = vmatprep.subr.bf16.mxu1 %v11533_v4  ;;  %v11515_v16 = vpack.c.bf16 %v3465_v51, %v3458_v41  ;;  %v16723_v33 = vld [vmem:[%s19649_s3 + $0x40] sm:$0xff] }
 0x73e   : > { %v13049_v8 = vunpack.i.h.bf16 %v16710_v22  ;;  %v13048_v39 = vunpack.i.l.bf16 %v16710_v22  ;;  %v11535_v24 = vpack.c.bf16 %v3453_v31, %v3446_v34  ;;  %v3461_v51 = vsel %vm19757_vm5, %v13039_v20, %v13043_v57  ;;  %v9873_v22 = vld [vmem:[%s19650_s4 + $0x48] sm:$0xff] }
 0x73f   : > { %v3181_v2 = vsel %vm19758_vm8, %v19935_v14, %v13054_v18  ;;  %v3174_v35 = vsel %vm19758_vm8, %v19936_v55, %v13053_v7  ;;  %11516 = vmatpush1.bf16.msra.mxu0 %v11515_v16  ;;  %v3460_v10 = vsel %vm19757_vm5, %v19938_v50, %v13039_v20  ;;  %v19939_v4 = vpack.c.bf16 %v16473_v40, %v16455_v58  ;;  %v16759_v20 = vld [vmem:[%s19649_s3 + $0x48] sm:$0xff] }
 0x740   : > { %v3467_v44 = vsel %vm19757_vm5, %v13029_v6, %v13048_v39  ;;  %11536 = vmatpush1.bf16.msra.mxu1 %v11535_v24  ;;  %11542 = vmatprep.subr.bf16.mxu0 %v19937_v23  ;;  %v16732_v48 = vpop.permute.xlu1 %13056  ;;  %v3468_v63 = vsel %vm19757_vm5, %v13048_v39, %v13049_v8  ;;  %v3233_v13 = vsel %vm3232_vm13, %v3174_v35, 0.0  ;;  %v3234_v53 = vsel %vm3232_vm13, %v3181_v2, 0.0  ;;  %v16790_v24 = vld [vmem:[%s19649_s3 + $0x50] sm:$0xff] }
 0x741   : > { %v16742_v6 = vpop.permute.xlu0 %13061  ;;  %v11537_v31 = vpack.c.bf16 %v3468_v63, %v3461_v51  ;;  %v13100_v56 = vpack.i.bf16 %v3234_v53, %v3233_v13  ;;  %v11539_v46 = vpack.c.bf16 %v3467_v44, %v3460_v10  ;;  %v13058_v49 = vunpack.i.l.bf16 %v16732_v48 }
 0x742   : > { %9884 = vmatmul.mubr.msk.f32.vlgmr.msra.gmra.mrb[46].mxu0 %vm19764_vm10, %v16723_v33  ;;  %v13059_v41 = vunpack.i.h.bf16 %v16732_v48  ;;  %v11565_v58 = vpack.c.bf16 %v3181_v2, %v3174_v35  ;;  %v19942_v40 = vpack.c.bf16 %v16577_v3, %v16569_v59  ;;  %v19943_v7 = vunpack.i.l.bf16 %v16628_v1 }
 0x743   : > { %11538 = vmatprep.subr.bf16.mxu1 %v11537_v31  ;;  %11544 = vmatpush1.bf16.msra.mxu0 %v19939_v4  ;;  %v19944_v39 = vpack.c.bf16 %v16506_v21, %v16500_v54  ;;  %v19945_v1 = vunpack.i.h.bf16 %v16634_v15  ;;  %v19946_v2 = vpack.c.bf16 %v16544_v17, %v16534_v19  ;;  %v9872_v17 = vld [vmem:[%s19650_s4 + $0x40] sm:$0xff]  ;;  %v13064_v23 = vunpack.i.h.bf16 %v16742_v6  ;;  %v16830_v31 = vld [vmem:[%s19649_s3 + $0x58] sm:$0xff] }
 0x744   : > { %13101 = vrot.lane.b32.xlu1 %v13100_v56, %s14460_s19  ;;  %11540 = vmatpush1.bf16.msra.mxu1 %v11539_v46  ;;  %v16763_v28 = vpop.permute.xlu1 %13071  ;;  %v3323_v16 = vsel %vm19759_vm4, %v19943_v7, %v13058_v49  ;;  %v3324_v54 = vsel %vm19759_vm4, %v13058_v49, %v13059_v41  ;;  %v13063_v63 = vunpack.i.l.bf16 %v16742_v6  ;;  %v19947_v50 = vunpack.i.l.bf16 %v16658_v32 }
 0x745   : > { %11546 = vmatprep.subr.bf16.mxu0 %v19942_v40  ;;  %v16768_v43 = vpop.permute.xlu0 %13066  ;;  %3606 = vmatprep.mubr.f32.mxu0 %v19809_v26  ;;  %v13074_v59 = vunpack.i.h.bf16 %v16763_v28  ;;  %v13073_v3 = vunpack.i.l.bf16 %v16763_v28 }
 0x746   : > { %v13069_v34 = vunpack.i.h.bf16 %v16768_v43  ;;  %v13068_v18 = vunpack.i.l.bf16 %v16768_v43  ;;  %11567 = vmatprep.subr.msk.bf16.mxu1 %vm16752_vm6, %v11565_v58  ;;  %9885 = vmatmul.mubr.msk.f32.gmra.mrb[48].mxu0 %vm19764_vm10, %v16759_v20 }
 0x747   : > { %9888 = vmatmul.mubr.msk.f32.vlgmr.msra.gmra.mrb[50].mxu1 %vm19764_vm10, %v16723_v33  ;;  %11548 = vmatpush1.bf16.msra.mxu0 %v19944_v39  ;;  %v3337_v10 = vsel %vm19759_vm4, %v19947_v50, %v13073_v3 }
 0x748   : > { %v3330_v14 = vsel %vm19759_vm4, %v19945_v1, %v13068_v18  ;;  %13111 = vrot.lane.b32.xlu1 %v13100_v56, %s14462_s23  ;;  %11569 = vmatpush1.bf16.msra.mxu1 %v19946_v2  ;;  %v16799_v55 = vpop.permute.xlu1 %13076  ;;  %v3331_v21 = vsel %vm19759_vm4, %v13068_v18, %v13069_v34  ;;  %v3338_v56 = vsel %vm19759_vm4, %v13073_v3, %v13074_v59  ;;  %v19948_v3 = vunpack.i.h.bf16 %v16650_v60 }
 0x749   : > { %v16807_v35 = vpop.permute.xlu0 %13081  ;;  %v13079_v15 = vunpack.i.h.bf16 %v16799_v55  ;;  %v13078_v51 = vunpack.i.l.bf16 %v16799_v55  ;;  %3612 = vmatprep.mubr.f32.mxu0 %v19809_v26  ;;  %3695 = vmatprep.mubr.f32.mxu1 %v19809_v26  ;;  %v11549_v19 = vpack.c.bf16 %v3331_v21, %v3324_v54  ;;  %v11551_v44 = vpack.c.bf16 %v3330_v14, %v3323_v16 }
 0x74a   : > { %v13084_v13 = vunpack.i.h.bf16 %v16807_v35  ;;  %v13083_v53 = vunpack.i.l.bf16 %v16807_v35  ;;  %9886 = vmatmul.mubr.msk.f32.gmra.mrb[50].mxu0 %vm19764_vm10, %v16790_v24  ;;  %v3449_v16 = vsel %vm19757_vm5, %v13063_v63, %v13064_v23  ;;  %v19949_v2 = vunpack.i.h.bf16 %v16560_v62 }
 0x74b   : > { %9889 = vmatmul.mubr.msk.f32.gmra.mrb[52].mxu1 %vm19764_vm10, %v16759_v20  ;;  %11550 = vmatprep.subr.bf16.mxu0 %v11549_v19  ;;  %v3456_v4 = vsel %vm19757_vm5, %v13078_v51, %v13079_v15  ;;  %v3455_v39 = vsel %vm19757_vm5, %v19948_v3, %v13078_v51  ;;  %v19950_v21 = vunpack.i.h.bf16 %v16547_v38  ;;  %v3448_v60 = vsel %vm19757_vm5, %v12993_v37, %v13063_v63 }
 0x74c   : > { %v3344_v46 = vsel %vm19759_vm4, %v13034_v29, %v13083_v53  ;;  %3506 = vperm.xlu1 %12399, %v9872_v17   ;;  %11552 = vmatpush1.bf16.msra.mxu0 %v11551_v44  ;;  %v16838_v32 = vpop.permute.xlu1 %13091  ;;  %v3345_v49 = vsel %vm19759_vm4, %v13083_v53, %v13084_v13  ;;  %v9874_v29 = vld [vmem:[%s19650_s4 + $0x50] sm:$0xff]  ;;  %v11557_v14 = vpack.c.bf16 %v3456_v4, %v3449_v16 }
 0x74d   : > { %v13087_v58 = vpop.permute.xlu0 %13086  ;;  %3618 = vmatprep.mubr.f32.mxu0 %v19809_v26  ;;  %3701 = vmatprep.mubr.f32.mxu1 %v19809_v26  ;;  %v11553_v42 = vpack.c.bf16 %v3345_v49, %v3338_v56  ;;  %v11555_v40 = vpack.c.bf16 %v3344_v46, %v3337_v10  ;;  %v13093_v1 = vunpack.i.l.bf16 %v16838_v32  ;;  %v13094_v17 = vunpack.i.h.bf16 %v16838_v32 }
 0x74e   : > { %v13089_v18 = vunpack.i.h.bf16 %v13087_v58  ;;  %v13088_v7 = vunpack.i.l.bf16 %v13087_v58  ;;  %9887 = vmatmul.mubr.msk.f32.gmra.mrb[52].mxu0 %vm19764_vm10, %v16830_v31  ;;  %v11559_v56 = vpack.c.bf16 %v3455_v39, %v3448_v60 }
 0x74f   : > { %9890 = vmatmul.mubr.msk.f32.gmra.mrb[54].mxu1 %vm19764_vm10, %v16790_v24  ;;  %11554 = vmatprep.subr.bf16.mxu0 %v11553_v42  ;;  %v3462_v37 = vsel %vm19757_vm5, %v13043_v57, %v13093_v1  ;;  %v3463_v63 = vsel %vm19757_vm5, %v13093_v1, %v13094_v17  ;;  %v19951_v57 = vpack.c.bf16 %v16582_v11, %v16574_v52  ;;  %v9875_v52 = vld [vmem:[%s19650_s4 + $0x58] sm:$0xff] }
 0x750   : > { %v3195_v54 = vsel %vm19758_vm8, %v19949_v2, %v13089_v18  ;;  %v3188_v19 = vsel %vm19758_vm8, %v19950_v21, %v13088_v7  ;;  %3516 = vperm.xlu1 %12399, %v9874_v29   ;;  %11556 = vmatpush1.bf16.msra.mxu0 %v11555_v40 }
 0x751   : > { %v16872_v51 = vpop.permute.xlu0 %13096  ;;  %11558 = vmatprep.subr.bf16.mxu0 %v11557_v14  ;;  %3707 = vmatprep.mubr.f32.mxu1 %v19809_v26  ;;  %v11570_v62 = vpack.c.bf16 %v3195_v54, %v3188_v19  ;;  %v3235_v44 = vsel %vm3232_vm13, %v3188_v19, 0.0  ;;  %v3236_v38 = vsel %vm3232_vm13, %v3195_v54, 0.0 }
 0x752   : > { %v13099_v53 = vunpack.i.h.bf16 %v16872_v51  ;;  %v13098_v50 = vunpack.i.l.bf16 %v16872_v51  ;;  %v13105_v10 = vpack.i.bf16 %v3236_v38, %v3235_v44  ;;  %3778 = vmatprep.mubr.f32.mxu0 %v19809_v26 }
 0x753   : > { %9891 = vmatmul.mubr.msk.f32.gmra.mrb[56].mxu1 %vm19764_vm10, %v16830_v31  ;;  %11572 = vmatprep.subr.msk.bf16.mxu1 %vm16752_vm6, %v11570_v62 }
 0x754   : > { %v3469_v30 = vsel %vm19757_vm5, %v13049_v8, %v13098_v50  ;;  %13106 = vrot.lane.b32.xlu0 %v13105_v10, %s14460_s19  ;;  %11560 = vmatpush1.bf16.msra.mxu0 %v11559_v56  ;;  %v3470_v12 = vsel %vm19757_vm5, %v13098_v50, %v13099_v53 }
 0x755   : > { %11574 = vmatpush1.bf16.msra.mxu1 %v19951_v57  ;;  %v11561_v46 = vpack.c.bf16 %v3470_v12, %v3463_v63  ;;  %v11563_v0 = vpack.c.bf16 %v3469_v30, %v3462_v37  ;;  %3867 = vmatprep.mubr.f32.mxu1 %v19809_v26 }
 0x757   : > { %11562 = vmatprep.subr.bf16.mxu0 %v11561_v46 }
 0x758   : > { %13116 = vrot.lane.b32.xlu0 %v13105_v10, %s14462_s23  ;;  %11564 = vmatpush1.bf16.msra.mxu0 %v11563_v0 }
 0x75b   : > { %9892 = vmatmul.mubr.msk.f32.vlgmr.msra.gmra.mrb[54].mxu0 %vm19764_vm10, %v16723_v33 }
 0x75c   : > { %3511 = vperm.xlu0 %12398, %v9873_v22   ;;  %3784 = vmatprep.mubr.f32.mxu0 %v19809_v26 }
 0x75f   : > { %9893 = vmatmul.mubr.msk.f32.gmra.mrb[56].mxu0 %vm19764_vm10, %v16759_v20 }
 0x760   : > { %3521 = vperm.xlu0 %12398, %v9875_v52   ;;  %3790 = vmatprep.mubr.f32.mxu0 %v19809_v26 }
 0x763   : > { %9894 = vmatmul.mubr.msk.f32.gmra.mrb[58].mxu0 %vm19764_vm10, %v16790_v24 }
 0x764   : > { %3796 = vmatprep.mubr.f32.mxu0 %v19809_v26 }
 0x767   : > { %9895 = vmatmul.mubr.msk.f32.gmra.mrb[60].mxu0 %vm19764_vm10, %v16830_v31 }
 0x768   : > { %4672 = vmatprep.mubr.f32.mxu0 %v19809_v26 }
 0x7b6   : > { %v13102_v11 = vpop.permute.xlu1 %13101 }
 0x7b7   : > { %v13104_v8 = vunpack.i.h.bf16 %v13102_v11  ;;  %v13103_v49 = vunpack.i.l.bf16 %v13102_v11 }
 0x7b9   : > { %v3332_v4 = vsel %vm19759_vm4, %v13069_v34, %v13104_v8  ;;  %v3325_v58 = vsel %vm19759_vm4, %v13059_v41, %v13103_v49  ;;  %v11575_v42 = vpack.c.bf16 %v13104_v8, %v13103_v49 }
 0x7ba   : > { %v11577_v29 = vpack.c.bf16 %v3332_v4, %v3325_v58  ;;  %v13112_v40 = vpop.permute.xlu1 %13111 }
 0x7bb   : > { %11576 = vmatprep.subr.bf16.mxu1 %v11575_v42  ;;  %v13114_v18 = vunpack.i.h.bf16 %v13112_v40  ;;  %v13113_v16 = vunpack.i.l.bf16 %v13112_v40 }
 0x7bc   : > { %11578 = vmatpush1.bf16.msra.mxu1 %v11577_v29 }
 0x7bd   : > { %v3457_v41 = vsel %vm19757_vm5, %v13079_v15, %v13114_v18  ;;  %v3450_v2 = vsel %vm19757_vm5, %v13064_v23, %v13113_v16  ;;  %v11583_v28 = vpack.c.bf16 %v13114_v18, %v13113_v16 }
 0x7c6   : > { %v13107_v7 = vpop.permute.xlu0 %13106 }
 0x7c7   : > { %v13109_v3 = vunpack.i.h.bf16 %v13107_v7  ;;  %v13108_v39 = vunpack.i.l.bf16 %v13107_v7 }
 0x7c9   : > { %v3339_v43 = vsel %vm19759_vm4, %v13074_v59, %v13108_v39  ;;  %v3346_v48 = vsel %vm19759_vm4, %v13084_v13, %v13109_v3  ;;  %v11579_v34 = vpack.c.bf16 %v13109_v3, %v13108_v39  ;;  %v11585_v59 = vpack.c.bf16 %v3457_v41, %v3450_v2 }
 0x7ca   : > { %v13117_v1 = vpop.permute.xlu0 %13116  ;;  %v11581_v14 = vpack.c.bf16 %v3346_v48, %v3339_v43 }
 0x7cb   : > { %v13119_v54 = vunpack.i.h.bf16 %v13117_v1  ;;  %v13118_v21 = vunpack.i.l.bf16 %v13117_v1  ;;  %11580 = vmatprep.subr.bf16.mxu1 %v11579_v34  ;;  %v16952_v6 = vpop.permute.xlu1 %3506 }
 0x7cc   : > { %11582 = vmatpush1.bf16.msra.mxu1 %v11581_v14 }
 0x7cd   : > { %11584 = vmatprep.subr.bf16.mxu1 %v11583_v28  ;;  %v3471_v35 = vsel %vm19757_vm5, %v13099_v53, %v13119_v54  ;;  %v3464_v55 = vsel %vm19757_vm5, %v13094_v17, %v13118_v21  ;;  %v11587_v15 = vpack.c.bf16 %v13119_v54, %v13118_v21 }
 0x7ce   : > { %v11589_v13 = vpack.c.bf16 %v3471_v35, %v3464_v55 }
 0x7cf   : > { %v16974_v10 = vpop.permute.xlu1 %3516 }
 0x7d0   : > { %11586 = vmatpush1.bf16.msra.mxu1 %v11585_v59 }
 0x7d1   : > { %11588 = vmatprep.subr.bf16.mxu1 %v11587_v15 }
 0x7d4   : > { %11590 = vmatpush1.bf16.msra.mxu1 %v11589_v13 }
 0x7d7   : > { %9900 = vmatmul.mubr.msk.f32.vlgmr.msra.gmra.mrb[58].mxu1 %vm19764_vm10, %v16723_v33 }
 0x7d8   : > { %3873 = vmatprep.mubr.f32.mxu1 %v19809_v26 }
 0x7db   : > { %9901 = vmatmul.mubr.msk.f32.gmra.mrb[60].mxu1 %vm19764_vm10, %v16759_v20 }
 0x7dc   : > { %3879 = vmatprep.mubr.f32.mxu1 %v19809_v26 }
 0x7df   : > { %9902 = vmatmul.mubr.msk.f32.gmra.mrb[62].mxu1 %vm19764_vm10, %v16790_v24  ;;  %v16961_v24 = vpop.permute.xlu0 %3511 }
 0x7e0   : > { %3885 = vmatprep.mubr.f32.mxu1 %v19809_v26 }
 0x7e3   : > { %9903 = vmatmul.mubr.msk.f32.gmra.mrb[64].mxu1 %vm19764_vm10, %v16830_v31  ;;  %v16988_v11 = vpop.permute.xlu0 %3521 }
 0x7e4   : > { %4761 = vmatprep.mubr.f32.mxu1 %v19809_v26 }
 0x815   : > { %v3602_v33 = vpop.f32.mrb[46].mxu0 }
 0x816   : > { %v16955_v23 = vadd.f32 %v3602_v33, %v16952_v6  ;;  %v3604_v32 = vpop.f32.mrb[47].mxu0 }
 0x817   : > { %v16958_v20 = vadd.f32 %v3604_v32, %v16952_v6 }
 0x818   : > { %v9904_v19 = vmul.f32 -1.442695, %v16955_v23 }
 0x819   : > { %v9905_v17 = vmul.f32 -1.442695, %v16958_v20  ;;  %v3608_v60 = vpop.f32.mrb[48].mxu0 }
 0x81a   : > { %14126 = vpow2.f32 %v9904_v19  ;;  %v16965_v31 = vadd.f32 %v3608_v60, %v16961_v24  ;;  %v3610_v51 = vpop.f32.mrb[49].mxu0  ;;  %v3691_v62 = vpop.f32.mrb[50].mxu1 }
 0x81b   : > { %14128 = vpow2.f32 %v9905_v17  ;;  %v16968_v44 = vadd.f32 %v3610_v51, %v16961_v24  ;;  %v16971_v38 = vadd.f32 %v3691_v62, %v16952_v6  ;;  %v3693_v53 = vpop.f32.mrb[51].mxu1 }
 0x81c   : > { %v9912_v50 = vmul.f32 -1.442695, %v16965_v31  ;;  %v17004_v41 = vadd.f32 %v3693_v53, %v16952_v6 }
 0x81d   : > { %v9913_v56 = vmul.f32 -1.442695, %v16968_v44  ;;  %v9906_v37 = vmul.f32 -1.442695, %v16971_v38  ;;  %v3614_v30 = vpop.f32.mrb[50].mxu0 }
 0x81e   : > { %14130 = vpow2.f32 %v9912_v50  ;;  %v16979_v63 = vadd.f32 %v3614_v30, %v16974_v10  ;;  %v3616_v12 = vpop.f32.mrb[51].mxu0  ;;  %v3697_v57 = vpop.f32.mrb[52].mxu1  ;;  %v9907_v55 = vmul.f32 -1.442695, %v17004_v41 }
 0x81f   : > { %14132 = vpow2.f32 %v9913_v56  ;;  %v16982_v46 = vadd.f32 %v3616_v12, %v16974_v10  ;;  %v16985_v0 = vadd.f32 %v3697_v57, %v16961_v24  ;;  %v3699_v22 = vpop.f32.mrb[53].mxu1 }
 0x820   : > { %14134 = vpow2.f32 %v9906_v37  ;;  %v9920_v52 = vmul.f32 -1.442695, %v16979_v63  ;;  %v17009_v15 = vadd.f32 %v3699_v22, %v16961_v24 }
 0x821   : > { %v9921_v8 = vmul.f32 -1.442695, %v16982_v46  ;;  %v9914_v49 = vmul.f32 -1.442695, %v16985_v0  ;;  %v3620_v4 = vpop.f32.mrb[52].mxu0 }
 0x822   : > { %14136 = vpow2.f32 %v9920_v52  ;;  %v16993_v58 = vadd.f32 %v3620_v4, %v16988_v11  ;;  %v3622_v42 = vpop.f32.mrb[53].mxu0  ;;  %v3703_v29 = vpop.f32.mrb[54].mxu1  ;;  %v9915_v53 = vmul.f32 -1.442695, %v17009_v15 }
 0x823   : > { %14138 = vpow2.f32 %v9921_v8  ;;  %v16996_v40 = vadd.f32 %v3622_v42, %v16988_v11  ;;  %v16999_v18 = vadd.f32 %v3703_v29, %v16974_v10  ;;  %v3705_v7 = vpop.f32.mrb[55].mxu1 }
 0x824   : > { %v14127_v16 = vpop.eup %14126  ;;  %14140 = vpow2.f32 %v9914_v49  ;;  %v9928_v3 = vmul.f32 -1.442695, %v16993_v58  ;;  %v17012_v32 = vadd.f32 %v3705_v7, %v16974_v10 }
 0x825   : > { %v14129_v39 = vpop.eup %14128  ;;  %v3988_v43 = vadd.f32 1.0, %v14127_v16  ;;  %v9929_v48 = vmul.f32 -1.442695, %v16996_v40  ;;  %v9922_v1 = vmul.f32 -1.442695, %v16999_v18 }
 0x826   : > { %v3989_v34 = vadd.f32 1.0, %v14129_v39  ;;  %14142 = vpow2.f32 %v9928_v3  ;;  %v3709_v14 = vpop.f32.mrb[56].mxu1  ;;  %v9923_v12 = vmul.f32 -1.442695, %v17012_v32 }
 0x827   : > { %14144 = vrcp.f32 %v3988_v43  ;;  %v3711_v2 = vpop.f32.mrb[57].mxu1  ;;  %v17015_v60 = vadd.f32 %v3709_v14, %v16988_v11 }
 0x828   : > { %v14131_v54 = vpop.eup %14130  ;;  %14146 = vrcp.f32 %v3989_v34  ;;  %v17022_v57 = vadd.f32 %v3711_v2, %v16988_v11 }
 0x829   : > { %v14133_v21 = vpop.eup %14132  ;;  %v3996_v28 = vadd.f32 1.0, %v14131_v54  ;;  %14148 = vpow2.f32 %v9929_v48  ;;  %v9930_v8 = vmul.f32 -1.442695, %v17015_v60 }
 0x82a   : > { %v14135_v59 = vpop.eup %14134  ;;  %v3997_v35 = vadd.f32 1.0, %v14133_v21  ;;  %14150 = vpow2.f32 %v9922_v1  ;;  %v9931_v34 = vmul.f32 -1.442695, %v17022_v57 }
 0x82b   : > { %14152 = vrcp.f32 %v3996_v28  ;;  %v3990_v13 = vadd.f32 1.0, %v14135_v59 }
 0x82c   : > { %v14137_v33 = vpop.eup %14136  ;;  %14154 = vrcp.f32 %v3997_v35 }
 0x82d   : > { %v14139_v19 = vpop.eup %14138  ;;  %14156 = vrcp.f32 %v3990_v13  ;;  %v4004_v17 = vadd.f32 1.0, %v14137_v33 }
 0x82e   : > { %v14141_v51 = vpop.eup %14140  ;;  %14158 = vpow2.f32 %v9907_v55  ;;  %v4005_v62 = vadd.f32 1.0, %v14139_v19  ;;  %v3780_v50 = vpop.f32.mrb[54].mxu0 }
 0x82f   : > { %14160 = vrcp.f32 %v4004_v17  ;;  %v3998_v56 = vadd.f32 1.0, %v14141_v51  ;;  %v17018_v37 = vpop.f32.mrb[55].mxu0  ;;  %v17026_v49 = vadd.f32 %v3780_v50, %v16952_v6 }
 0x830   : > { %v14143_v30 = vpop.eup %14142  ;;  %14162 = vrcp.f32 %v4005_v62 }
 0x831   : > { %v14145_v22 = vpop.eup %14144  ;;  %14164 = vrcp.f32 %v3998_v56  ;;  %v4012_v52 = vadd.f32 1.0, %v14143_v30  ;;  %v9908_v2 = vmul.f32 -1.442695, %v17026_v49 }
 0x832   : > { %v14147_v4 = vpop.eup %14146  ;;  %v4084_v42 = vmul.f32 %v14145_v22, %v16955_v23  ;;  %14166 = vpow2.f32 %v9915_v53  ;;  %v3786_v29 = vpop.f32.mrb[56].mxu0 }
 0x833   : > { %v14149_v7 = vpop.eup %14148  ;;  %v4085_v16 = vmul.f32 %v14147_v4, %v16958_v20  ;;  %14168 = vrcp.f32 %v4012_v52  ;;  %v17031_v3 = vadd.f32 %v3786_v29, %v16961_v24  ;;  %v17033_v39 = vpop.f32.mrb[57].mxu0 }
 0x834   : > { %v14151_v43 = vpop.eup %14150  ;;  %v4116_v48 = vadd.f32 %v4084_v42, %v16184_v27  ;;  %14170 = vpow2.f32 %v9923_v12  ;;  %v4013_v50 = vadd.f32 1.0, %v14149_v7 }
 0x835   : > { %v14153_v1 = vpop.eup %14152  ;;  %v4117_v23 = vadd.f32 %v4085_v16, %v16188_v9  ;;  %v4006_v14 = vadd.f32 1.0, %v14151_v43  ;;  %14172 = vpow2.f32 %v9930_v8  ;;  %v9916_v35 = vmul.f32 -1.442695, %v17031_v3 }
 0x836   : > { %v14155_v20 = vpop.eup %14154  ;;  %v4092_v54 = vmul.f32 %v14153_v1, %v16965_v31  ;;  %v3792_v21 = vpop.f32.mrb[58].mxu0 }
 0x837   : > { %v14157_v28 = vpop.eup %14156  ;;  %v13120_v59 = vpack.i.bf16 %v4117_v23, %v4116_v48  ;;  %14174 = vrcp.f32 %v4006_v14  ;;  %v17042_v27 = vadd.f32 %v3792_v21, %v16974_v10  ;;  %v17044_v55 = vpop.f32.mrb[59].mxu0  ;;  %v4093_v51 = vmul.f32 %v14155_v20, %v16968_v44  ;;  %v19952_v14 = vld [vmem:[#allocation23_spill] sm:$0xff]  ;;  %v19953_v20 = vld [vmem:[#allocation22_spill] sm:$0xff] }
 0x838   : > { %v14159_v13 = vpop.eup %14158  ;;  %v4124_v9 = vadd.f32 %v4092_v54, %v16261_v5  ;;  %v4086_v33 = vmul.f32 %v14157_v28, %v16971_v38  ;;  %14176 = vpow2.f32 %v9931_v34 }
 0x839   : > { %v14161_v19 = vpop.eup %14160  ;;  %14178 = vpow2.f32 %v9908_v2  ;;  %v9924_v31 = vmul.f32 -1.442695, %v17042_v27  ;;  %13121 = vrot.lane.b32.xlu1 %v13120_v59, %s14454_s15  ;;  %v3991_v4 = vadd.f32 1.0, %v14159_v13  ;;  %v4125_v29 = vadd.f32 %v4093_v51, %v16285_v25 }
 0x83a   : > { %v14163_v17 = vpop.eup %14162  ;;  %v4118_v62 = vadd.f32 %v4086_v33, %v16264_v47  ;;  %v4100_v53 = vmul.f32 %v14161_v19, %v16979_v63  ;;  %v3798_v56 = vpop.f32.mrb[60].mxu0  ;;  %14180 = vpow2.f32 %v9916_v35 }
 0x83b   : > { %v14165_v30 = vpop.eup %14164  ;;  %v4101_v5 = vmul.f32 %v14163_v17, %v16982_v46  ;;  %v17055_v38 = vadd.f32 %v3798_v56, %v16988_v11  ;;  %v17057_v12 = vpop.f32.mrb[61].mxu0  ;;  %14182 = vpow2.f32 %v9924_v31 }
 0x83c   : > { %v14167_v22 = vpop.eup %14166  ;;  %v13125_v52 = vpack.i.bf16 %v4124_v9, %v4118_v62  ;;  %v4132_v8 = vadd.f32 %v4100_v53, %v16216_v36  ;;  %v4094_v44 = vmul.f32 %v14165_v30, %v16985_v0  ;;  %14184 = vrcp.f32 %v4013_v50  ;;  %v19954_v30 = vld [vmem:[#allocation29_spill] sm:$0xff] }
 0x83d   : > { %v14169_v47 = vpop.eup %14168  ;;  %v4133_v63 = vadd.f32 %v4101_v5, %v16222_v45  ;;  %v9932_v42 = vmul.f32 -1.442695, %v17055_v38  ;;  %v3999_v0 = vadd.f32 1.0, %v14167_v22  ;;  %v19955_v22 = vld [vmem:[#allocation7_spill] sm:$0xff] }
 0x83e   : > { %v14171_v46 = vpop.eup %14170  ;;  %v4126_v7 = vadd.f32 %v4094_v44, %v16289_v61  ;;  %v4108_v16 = vmul.f32 %v14169_v47, %v16993_v58  ;;  %13126 = vrot.lane.b32.xlu0 %v13125_v52, %s14454_s15 }
 0x83f   : > { %v14173_v36 = vpop.eup %14172  ;;  %v13130_v43 = vpack.i.bf16 %v4133_v63, %v4132_v8  ;;  %14186 = vpow2.f32 %v9932_v42  ;;  %v4007_v1 = vadd.f32 1.0, %v14171_v46  ;;  %v19956_v42 = vld [vmem:[#allocation20_spill] sm:$0xff] }
 0x840   : > { %v13135_v48 = vpack.i.bf16 %v4126_v7, %v4125_v29  ;;  %v4014_v34 = vadd.f32 1.0, %v14173_v36  ;;  %14188 = vrcp.f32 %v3991_v4  ;;  %v4140_v2 = vadd.f32 %v4108_v16, %v19952_v14  ;;  %v19958_v36 = vld [vmem:[#allocation27_spill] sm:$0xff]  ;;  %v19961_v14 = vld [vmem:[#allocation28_spill] sm:$0xff] }
 0x841   : > { %v14175_v45 = vpop.eup %14174 }
 0x842   : > { %v14177_v23 = vpop.eup %14176  ;;  %v4102_v25 = vmul.f32 %v14175_v45, %v16999_v18  ;;  %14190 = vrcp.f32 %v4014_v34  ;;  %13136 = vrot.lane.b32.xlu1 %v13135_v48, %s14454_s15  ;;  %13131 = vrot.lane.b32.xlu0 %v13130_v43, %s14454_s15  ;;  %v19959_v48 = vld [vmem:[#allocation26_spill] sm:$0xff] }
 0x843   : > { %v14179_v61 = vpop.eup %14178  ;;  %14192 = vrcp.f32 %v3999_v0  ;;  %v4015_v58 = vadd.f32 1.0, %v14177_v23 }
 0x844   : > { %v4134_v54 = vadd.f32 %v4102_v25, %v19953_v20  ;;  %v3992_v21 = vadd.f32 1.0, %v14179_v61  ;;  %v14181_v28 = vpop.eup %14180  ;;  %14194 = vrcp.f32 %v4007_v1  ;;  %v19960_v1 = vld [vmem:[#allocation3_spill] sm:$0xff]  ;;  %v19962_v25 = vld [vmem:[#allocation12_spill] sm:$0xff] }
 0x845   : > { %v4000_v35 = vadd.f32 1.0, %v14181_v28  ;;  %v14183_v13 = vpop.eup %14182 }
 0x846   : > { %v13140_v59 = vpack.i.bf16 %v4140_v2, %v4134_v54  ;;  %14196 = vrcp.f32 %v3992_v21  ;;  %v14185_v9 = vpop.eup %14184  ;;  %v4008_v18 = vadd.f32 1.0, %v14183_v13  ;;  %v17105_v54 = vadd.f32 %v17018_v37, %v16952_v6 }
 0x847   : > { %14198 = vrcp.f32 %v4015_v58  ;;  %v4109_v17 = vmul.f32 %v14185_v9, %v16996_v40  ;;  %v17120_v37 = vadd.f32 %v17057_v12, %v16988_v11 }
 0x848   : > { %14200 = vrcp.f32 %v4000_v35  ;;  %13141 = vrot.lane.b32.xlu1 %v13140_v59, %s14454_s15  ;;  %v9909_v21 = vmul.f32 -1.442695, %v17105_v54  ;;  %v17115_v59 = vadd.f32 %v17044_v55, %v16974_v10 }
 0x849   : > { %v14187_v33 = vpop.eup %14186  ;;  %14202 = vrcp.f32 %v4008_v18  ;;  %v4141_v5 = vadd.f32 %v4109_v17, %v19954_v30  ;;  %v9933_v55 = vmul.f32 -1.442695, %v17120_v37 }
 0x84a   : > { %v4016_v19 = vadd.f32 1.0, %v14187_v33  ;;  %v14189_v31 = vpop.eup %14188  ;;  %v9925_v35 = vmul.f32 -1.442695, %v17115_v59 }
 0x84b   : > { %v4087_v56 = vmul.f32 %v14189_v31, %v17004_v41 }
 0x84c   : > { %v14191_v51 = vpop.eup %14190  ;;  %14204 = vrcp.f32 %v4016_v19 }
 0x84d   : > { %v14193_v62 = vpop.eup %14192  ;;  %v4110_v53 = vmul.f32 %v14191_v51, %v17015_v60  ;;  %v4119_v46 = vadd.f32 %v4087_v56, %v19956_v42  ;;  %v19957_v60 = vld [vmem:[#allocation21_spill] sm:$0xff]  ;;  %14206 = vpow2.f32 %v9909_v21 }
 0x84e   : > { %v14195_v50 = vpop.eup %14194  ;;  %v4095_v44 = vmul.f32 %v14193_v62, %v17009_v15 }
 0x84f   : > { %v4142_v52 = vadd.f32 %v4110_v53, %v19955_v22  ;;  %v4103_v29 = vmul.f32 %v14195_v50, %v17012_v32 }
 0x850   : > { %v14197_v8 = vpop.eup %14196  ;;  %v4127_v43 = vadd.f32 %v4095_v44, %v19958_v36 }
 0x851   : > { %v14199_v47 = vpop.eup %14198  ;;  %v13145_v4 = vpack.i.bf16 %v4142_v52, %v4141_v5  ;;  %v4088_v63 = vmul.f32 %v14197_v8, %v17026_v49  ;;  %v4135_v23 = vadd.f32 %v4103_v29, %v19960_v1 }
 0x852   : > { %v14201_v40 = vpop.eup %14200  ;;  %v4111_v15 = vmul.f32 %v14199_v47, %v17022_v57  ;;  %v19963_v57 = vld [vmem:[#allocation9_spill] sm:$0xff] }
 0x853   : > { %v4120_v7 = vadd.f32 %v4088_v63, %v19957_v60  ;;  %v4096_v41 = vmul.f32 %v14201_v40, %v17031_v3  ;;  %13146 = vrot.lane.b32.xlu0 %v13145_v4, %s14454_s15  ;;  %v14203_v16 = vpop.eup %14202 }
 0x854   : > { %v4104_v49 = vmul.f32 %v14203_v16, %v17042_v27  ;;  %v17094_v61 = vadd.f32 %v4111_v15, %v19962_v25 }
 0x855   : > { %v13150_v0 = vpack.i.bf16 %v4120_v7, %v4119_v46  ;;  %v4128_v34 = vadd.f32 %v4096_v41, %v19959_v48 }
 0x856   : > { %v14205_v45 = vpop.eup %14204  ;;  %v4136_v2 = vadd.f32 %v4104_v49, %v19961_v14 }
 0x857   : > { %v13155_v32 = vpack.i.bf16 %v4128_v34, %v4127_v43  ;;  %v4112_v3 = vmul.f32 %v14205_v45, %v17055_v38  ;;  %13151 = vrot.lane.b32.xlu0 %v13150_v0, %s14454_s15  ;;  %v17109_v38 = vadd.f32 %v17033_v39, %v16961_v24  ;;  %v14207_v39 = vpop.eup %14206 }
 0x858   : > { %v13160_v58 = vpack.i.bf16 %v4136_v2, %v4135_v23  ;;  %v3993_v51 = vadd.f32 1.0, %v14207_v39 }
 0x859   : > { %v17097_v20 = vadd.f32 %v4112_v3, %v19963_v57  ;;  %13156 = vrot.lane.b32.xlu1 %v13155_v32, %s14454_s15  ;;  %v9917_v28 = vmul.f32 -1.442695, %v17109_v38 }
 0x85b   : > { %v13200_v27 = vpack.i.bf16 %v17097_v20, %v17094_v61  ;;  %14208 = vpow2.f32 %v9917_v28 }
 0x85c   : > { %14210 = vpow2.f32 %v9925_v35 }
 0x85d   : > { %13161 = vrot.lane.b32.xlu1 %v13160_v58, %s14454_s15 }
 0x865   : > { %v14209_v17 = vpop.eup %14208 }
 0x866   : > { %v4001_v5 = vadd.f32 1.0, %v14209_v17  ;;  %v14211_v8 = vpop.eup %14210 }
 0x867   : > { %v4009_v41 = vadd.f32 1.0, %v14211_v8 }
 0x8aa   : > { %v3869_v13 = vpop.f32.mrb[58].mxu1 }
 0x8ab   : > { %v17123_v9 = vadd.f32 %v3869_v13, %v16952_v6  ;;  %v3871_v18 = vpop.f32.mrb[59].mxu1  ;;  %v13122_v33 = vpop.permute.xlu1 %13121 }
 0x8ac   : > { %v17126_v19 = vadd.f32 %v3871_v18, %v16952_v6  ;;  %v17131_v53 = vunpack.i.l.bf16 %v13122_v33  ;;  %v13124_v44 = vunpack.i.h.bf16 %v13122_v33 }
 0x8ad   : > { %v9910_v31 = vmul.f32 -1.442695, %v17123_v9 }
 0x8ae   : > { %v9911_v62 = vmul.f32 -1.442695, %v17126_v19  ;;  %v3875_v12 = vpop.f32.mrb[60].mxu1  ;;  %v4244_v34 = vsel %vm19763_vm0, %v17131_v53, %v13124_v44 }
 0x8af   : > { %14212 = vpow2.f32 %v9910_v31  ;;  %v17134_v50 = vadd.f32 %v3875_v12, %v16961_v24  ;;  %v3877_v56 = vpop.f32.mrb[61].mxu1 }
 0x8b0   : > { %14214 = vpow2.f32 %v9911_v62  ;;  %v17137_v6 = vadd.f32 %v3877_v56, %v16961_v24  ;;  %v17139_v30 = vpop.permute.xlu0 %13126  ;;  %v4304_v24 = vsel %vm19763_vm0, 0.0, %v17131_v53 }
 0x8b1   : > { %14216 = vpow2.f32 %v9933_v55  ;;  %v9918_v22 = vmul.f32 -1.442695, %v17134_v50  ;;  %v13129_v52 = vunpack.i.h.bf16 %v17139_v30  ;;  %v13128_v4 = vunpack.i.l.bf16 %v17139_v30  ;;  %v10549_v55 = vld [vmem:[%s19652_s6 + $0x28] sm:$0xff] }
 0x8b2   : > { %14218 = vrcp.f32 %v3993_v51  ;;  %v9919_v47 = vmul.f32 -1.442695, %v17137_v6  ;;  %v3881_v63 = vpop.f32.mrb[62].mxu1 }
 0x8b3   : > { %14220 = vpow2.f32 %v9918_v22  ;;  %v4305_v40 = vsel %vm19763_vm0, 0.0, %v13129_v52  ;;  %v3883_v42 = vpop.f32.mrb[63].mxu1  ;;  %v17149_v46 = vadd.f32 %v3881_v63, %v16974_v10  ;;  %v17163_v43 = vsel %vm19763_vm0, %v13124_v44, %v13128_v4 }
 0x8b4   : > { %14222 = vpow2.f32 %v9919_v47  ;;  %v17152_v29 = vadd.f32 %v3883_v42, %v16974_v10  ;;  %v17154_v60 = vpop.permute.xlu1 %13136  ;;  %v17156_v7 = vpack.i.bf16 %v4305_v40, %v4304_v24  ;;  %v17167_v0 = vpop.permute.xlu0 %13131  ;;  %v11593_v49 = vpack.c.bf16 %v13129_v52, %v17131_v53 }
 0x8b5   : > { %14224 = vrcp.f32 %v4001_v5  ;;  %v13139_v16 = vunpack.i.h.bf16 %v17154_v60  ;;  %v13138_v36 = vunpack.i.l.bf16 %v17154_v60  ;;  %v9926_v15 = vmul.f32 -1.442695, %v17149_v46 }
 0x8b6   : > { %v9927_v10 = vmul.f32 -1.442695, %v17152_v29  ;;  %13166 = vrot.lane.b32.xlu1 %v17156_v7, %s14455_s16  ;;  %v3887_v48 = vpop.f32.mrb[64].mxu1  ;;  %v17188_v58 = vunpack.i.l.bf16 %v17167_v0  ;;  %v13170_v21 = vpack.i.bf16 %v17163_v43, %v4244_v34  ;;  %v13134_v44 = vunpack.i.h.bf16 %v17167_v0 }
 0x8b7   : > { %v4251_v45 = vsel %vm19763_vm0, %v13129_v52, %v13138_v36  ;;  %v17178_v1 = vsel %vm19763_vm0, %v13138_v36, %v13139_v16  ;;  %v17181_v23 = vadd.f32 %v3887_v48, %v16988_v11  ;;  %v3889_v32 = vpop.f32.mrb[65].mxu1  ;;  %14226 = vpow2.f32 %v9926_v15 }
 0x8b8   : > { %v17184_v14 = vadd.f32 %v3889_v32, %v16988_v11  ;;  %v13180_v2 = vpack.i.bf16 %v17178_v1, %v4251_v45  ;;  %v11591_v3 = vpack.c.bf16 %v4251_v45, %v4244_v34  ;;  %14228 = vpow2.f32 %v9927_v10 }
 0x8b9   : > { %v14213_v25 = vpop.eup %14212  ;;  %v9934_v57 = vmul.f32 -1.442695, %v17181_v23  ;;  %14230 = vrcp.f32 %v4009_v41  ;;  %v4306_v51 = vsel %vm19763_vm0, 0.0, %v17188_v58  ;;  %v11619_v30 = vpack.c.bf16 %v17178_v1, %v17163_v43  ;;  %v19973_v1 = vld [vmem:[#allocation11_spill] sm:$0xff] }
 0x8ba   : > { %v14215_v28 = vpop.eup %14214  ;;  %v3994_v35 = vadd.f32 1.0, %v14213_v25  ;;  %v9935_v13 = vmul.f32 -1.442695, %v17184_v14  ;;  %v17193_v39 = vpop.permute.xlu1 %13141  ;;  %13181 = vrot.lane.b32.xlu0 %v13180_v2, %s14455_s16  ;;  %11592 = vmatprep.subr.bf16.mxu0 %v11591_v3  ;;  %v19965_v25 = vld [vmem:[#allocation4_spill] sm:$0xff] }
 0x8bb   : > { %v14217_v11 = vpop.eup %14216  ;;  %v3995_v18 = vadd.f32 1.0, %v14215_v28  ;;  %14232 = vpow2.f32 %v9934_v57  ;;  %v17197_v33 = vunpack.i.h.bf16 %v17193_v39  ;;  %13171 = vrot.lane.b32.xlu1 %v13170_v21, %s14455_s16  ;;  %11595 = vmatpush1.bf16.msk.msra.mxu0 %vm14884_vm9, %v11593_v49  ;;  %v13143_v52 = vunpack.i.l.bf16 %v17193_v39 }
 0x8bc   : > { %v14219_v31 = vpop.eup %14218  ;;  %14234 = vrcp.f32 %v3994_v35  ;;  %v4017_v8 = vadd.f32 1.0, %v14217_v11 }
 0x8bd   : > { %v14221_v17 = vpop.eup %14220  ;;  %14236 = vrcp.f32 %v3995_v18  ;;  %v4307_v62 = vsel %vm19763_vm0, 0.0, %v17197_v33  ;;  %v4089_v24 = vmul.f32 %v14219_v31, %v17105_v54  ;;  %v17217_v42 = vsel %vm19763_vm0, %v13134_v44, %v13143_v52 }
 0x8be   : > { %v14223_v12 = vpop.eup %14222  ;;  %v4002_v53 = vadd.f32 1.0, %v14221_v17  ;;  %14238 = vpow2.f32 %v9935_v13  ;;  %v17206_v56 = vpack.i.bf16 %v4307_v62, %v4306_v51  ;;  %v4258_v54 = vsel %vm19763_vm0, %v17188_v58, %v13134_v44  ;;  %v19966_v13 = vld [vmem:[#allocation6_spill] sm:$0xff]  ;;  %v19967_v51 = vld [vmem:[#allocation5_spill] sm:$0xff] }
 0x8bf   : > { %v14225_v5 = vpop.eup %14224  ;;  %v4003_v22 = vadd.f32 1.0, %v14223_v12  ;;  %13176 = vrot.lane.b32.xlu1 %v13170_v21, %s14457_s17  ;;  %v13195_v32 = vpack.i.bf16 %v17217_v42, %v4258_v54 }
 0x8c0   : > { %14240 = vrcp.f32 %v4002_v53  ;;  %13186 = vrot.lane.b32.xlu0 %v17206_v56, %s14455_s16  ;;  %v4097_v10 = vmul.f32 %v14225_v5, %v17109_v38  ;;  %v11598_v53 = vpack.c.bf16 %v17197_v33, %v17188_v58 }
 0x8c1   : > { %14242 = vrcp.f32 %v4003_v22  ;;  %v14227_v47 = vpop.eup %14226 }
 0x8c2   : > { %v14229_v63 = vpop.eup %14228  ;;  %v4010_v40 = vadd.f32 1.0, %v14227_v47  ;;  %14244 = vrcp.f32 %v4017_v8  ;;  %v4129_v62 = vadd.f32 %v4097_v10, %v19967_v51 }
 0x8c3   : > { %v14231_v41 = vpop.eup %14230  ;;  %v4011_v36 = vadd.f32 1.0, %v14229_v63 }
 0x8c4   : > { %13191 = vrot.lane.b32.xlu0 %v13180_v2, %s14457_s17  ;;  %14246 = vrcp.f32 %v4010_v40  ;;  %v17229_v2 = vadd.f32 %v4089_v24, %v19965_v25  ;;  %v4105_v12 = vmul.f32 %v14231_v41, %v17115_v59  ;;  %v19968_v24 = vld [vmem:[#allocation10_spill] sm:$0xff]  ;;  %v19969_v41 = vld [vmem:[#allocation13_spill] sm:$0xff] }
 0x8c5   : > { %v14233_v15 = vpop.eup %14232  ;;  %v17221_v0 = vpop.permute.xlu0 %13146  ;;  %14248 = vrcp.f32 %v4011_v36 }
 0x8c6   : > { %v14235_v48 = vpop.eup %14234  ;;  %v4018_v34 = vadd.f32 1.0, %v14233_v15  ;;  %v13149_v49 = vunpack.i.h.bf16 %v17221_v0  ;;  %v13148_v45 = vunpack.i.l.bf16 %v17221_v0 }
 0x8c7   : > { %v14237_v3 = vpop.eup %14236  ;;  %v4090_v38 = vmul.f32 %v14235_v48, %v17123_v9 }
 0x8c8   : > { %v14239_v57 = vpop.eup %14238  ;;  %v4091_v21 = vmul.f32 %v14237_v3, %v17126_v19  ;;  %14250 = vrcp.f32 %v4018_v34  ;;  %v17236_v28 = vsel %vm19763_vm0, %v13148_v45, %v13149_v49  ;;  %v4265_v35 = vsel %vm19763_vm0, %v17197_v33, %v13148_v45  ;;  %13196 = vrot.lane.b32.xlu0 %v13195_v32, %s14455_s16 }
 0x8c9   : > { %v4122_v11 = vadd.f32 %v4090_v38, %v19966_v13  ;;  %v4019_v18 = vadd.f32 1.0, %v14239_v57  ;;  %v11596_v31 = vpack.c.bf16 %v4265_v35, %v4258_v54  ;;  %v13205_v9 = vpack.i.bf16 %v17236_v28, %v4265_v35  ;;  %v17243_v17 = vpop.permute.xlu0 %13151  ;;  %v19972_v38 = vld [vmem:[#allocation14_spill] sm:$0xff]  ;;  %v19974_v13 = vld [vmem:[#allocation17_spill] sm:$0xff] }
 0x8ca   : > { %v14241_v19 = vpop.eup %14240  ;;  %v13153_v5 = vunpack.i.l.bf16 %v17243_v17  ;;  %v11623_v63 = vpack.c.bf16 %v17236_v28, %v17217_v42  ;;  %v13154_v58 = vunpack.i.h.bf16 %v17243_v17  ;;  %v4123_v40 = vadd.f32 %v4091_v21, %v19968_v24 }
 0x8cb   : > { %v14243_v22 = vpop.eup %14242  ;;  %v13230_v8 = vpack.i.bf16 %v4122_v11, %v17229_v2  ;;  %v4098_v44 = vmul.f32 %v14241_v19, %v17134_v50  ;;  %14252 = vrcp.f32 %v4019_v18  ;;  %11597 = vmatprep.subr.bf16.mxu0 %v11596_v31  ;;  %13206 = vrot.lane.b32.xlu1 %v13205_v9, %s14455_s16  ;;  %v17253_v47 = vpop.permute.xlu1 %13156  ;;  %v19971_v2 = vld [vmem:[#allocation8_spill] sm:$0xff] }
 0x8cc   : > { %v4099_v59 = vmul.f32 %v14243_v22, %v17137_v6  ;;  %11600 = vmatpush1.bf16.msk.msra.mxu0 %vm14884_vm9, %v11598_v53  ;;  %v13159_v33 = vunpack.i.h.bf16 %v17253_v47  ;;  %v13158_v50 = vunpack.i.l.bf16 %v17253_v47  ;;  %13201 = vrot.lane.b32.xlu0 %v13200_v27, %s14454_s15  ;;  %v14245_v15 = vpop.eup %14244  ;;  %v19970_v6 = vld [vmem:[#allocation15_spill] sm:$0xff]  ;;  %v4246_v48 = vsel %vm19763_vm0, %v13128_v4, %v13153_v5 }
 0x8cd   : > { %v4130_v36 = vadd.f32 %v4098_v44, %v19969_v41  ;;  %v17287_v25 = vsel %vm19763_vm0, %v13153_v5, %v13154_v58  ;;  %v4113_v60 = vmul.f32 %v14245_v15, %v17120_v37 }
 0x8ce   : > { %v4131_v10 = vadd.f32 %v4099_v59, %v19970_v6  ;;  %v17273_v54 = vsel %vm19763_vm0, %v13158_v50, %v13159_v33  ;;  %v4253_v61 = vsel %vm19763_vm0, %v13139_v16, %v13158_v50  ;;  %v14247_v20 = vpop.eup %14246  ;;  %v13240_v51 = vpack.i.bf16 %v17287_v25, %v4246_v48 }
 0x8cf   : > { %v13235_v27 = vpack.i.bf16 %v4130_v36, %v4129_v62  ;;  %13211 = vrot.lane.b32.xlu1 %v17156_v7, %s14457_s17  ;;  %v11617_v34 = vpack.c.bf16 %v4253_v61, %v4246_v48  ;;  %v4106_v3 = vmul.f32 %v14247_v20, %v17149_v46  ;;  %v14249_v4 = vpop.eup %14248  ;;  %v11643_v7 = vpack.c.bf16 %v17273_v54, %v17287_v25  ;;  %v17311_v31 = vpop.permute.xlu1 %13161 }
 0x8d0   : > { %v13290_v45 = vpack.i.bf16 %v4131_v10, %v4123_v40  ;;  %13216 = vrot.lane.b32.xlu0 %v13195_v32, %s14457_s17  ;;  %v4137_v46 = vadd.f32 %v4105_v12, %v19971_v2  ;;  %v4107_v43 = vmul.f32 %v14249_v4, %v17152_v29  ;;  %v17303_v35 = vadd.f32 %v4113_v60, %v19973_v1  ;;  %v19975_v29 = vld [vmem:[#allocation16_spill] sm:$0xff] }
 0x8d1   : > { %11618 = vmatprep.subr.bf16.mxu1 %v11617_v34  ;;  %v4138_v57 = vadd.f32 %v4106_v3, %v19972_v38  ;;  %v13164_v62 = vunpack.i.h.bf16 %v17311_v31  ;;  %v13163_v12 = vunpack.i.l.bf16 %v17311_v31  ;;  %v13250_v53 = vpack.i.bf16 %v17273_v54, %v4253_v61  ;;  %v17518_v54 = vld [vmem:[%s19651_s5 + $0x10] sm:$0xff] }
 0x8d2   : > { %v14251_v16 = vpop.eup %14250  ;;  %11620 = vmatpush1.bf16.msra.mxu1 %v11619_v30 }
 0x8d3   : > { %v4114_v21 = vmul.f32 %v14251_v16, %v17181_v23  ;;  %13221 = vrot.lane.b32.xlu1 %v13205_v9, %s14457_s17  ;;  %v13265_v32 = vpack.i.bf16 %v4138_v57, %v4137_v46  ;;  %v17315_v9 = vadd.f32 %v4107_v43, %v19975_v29  ;;  %v17332_v5 = vsel %vm19763_vm0, %v13143_v52, %v13163_v12 }
 0x8d4   : > { %13226 = vrot.lane.b32.xlu0 %v17206_v56, %s14457_s17  ;;  %v19976_v56 = vld [vmem:[#allocation19_spill] sm:$0xff]  ;;  %v17337_v22 = vsel %vm19763_vm0, %v13163_v12, %v13164_v62 }
 0x8d5   : > { %v14253_v37 = vpop.eup %14252  ;;  %v17306_v11 = vadd.f32 %v4114_v21, %v19974_v13 }
 0x8d6   : > { %v4115_v18 = vmul.f32 %v14253_v37, %v17184_v14 }
 0x8d7   : > { %v13275_v23 = vpack.i.bf16 %v17306_v11, %v17303_v35  ;;  %13231 = vrot.lane.b32.xlu1 %v13230_v8, %s14454_s15  ;;  %v13260_v8 = vpack.i.bf16 %v17337_v22, %v17332_v5 }
 0x8d8   : > { %v17318_v19 = vadd.f32 %v4115_v18, %v19976_v56  ;;  %13236 = vrot.lane.b32.xlu0 %v13235_v27, %s14454_s15 }
 0x8da   : > { %v13295_v14 = vpack.i.bf16 %v17318_v19, %v17315_v9 }
 0x8db   : > { %13241 = vrot.lane.b32.xlu1 %v13240_v51, %s14455_s16 }
 0x8dc   : > { %13251 = vrot.lane.b32.xlu0 %v13250_v53, %s14455_s16 }
 0x8df   : > { %13246 = vrot.lane.b32.xlu1 %v13240_v51, %s14457_s17 }
 0x8e0   : > { %13256 = vrot.lane.b32.xlu0 %v13250_v53, %s14457_s17 }
 0x8e3   : > { %13261 = vrot.lane.b32.xlu1 %v13260_v8, %s14455_s16 }
 0x8e7   : > { %13266 = vrot.lane.b32.xlu1 %v13265_v32, %s14454_s15 }
 0x8eb   : > { %13281 = vrot.lane.b32.xlu1 %v13260_v8, %s14457_s17 }
 0x8ef   : > { %13291 = vrot.lane.b32.xlu1 %v13290_v45, %s14454_s15 }
 0x928   : > { %v13167_v39 = vpop.permute.xlu1 %13166 }
 0x929   : > { %v13169_v44 = vunpack.i.h.bf16 %v13167_v39  ;;  %v13168_v40 = vunpack.i.l.bf16 %v13167_v39 }
 0x92c   : > { %v17347_v52 = vpop.permute.xlu0 %13181 }
 0x92d   : > { %v13184_v59 = vunpack.i.h.bf16 %v17347_v52  ;;  %v13183_v50 = vunpack.i.l.bf16 %v17347_v52  ;;  %v17351_v24 = vpop.permute.xlu1 %13171 }
 0x92e   : > { %v13174_v41 = vunpack.i.h.bf16 %v17351_v24  ;;  %v13173_v36 = vunpack.i.l.bf16 %v17351_v24 }
 0x92f   : > { %v4399_v15 = vsel %vm19762_vm2, %v13169_v44, %v13183_v50  ;;  %v4400_v6 = vsel %vm19762_vm2, %v13183_v50, %v13184_v59 }
 0x930   : > { %v4392_v10 = vsel %vm19762_vm2, %v13168_v40, %v13173_v36  ;;  %v4393_v48 = vsel %vm19762_vm2, %v13173_v36, %v13174_v41 }
 0x931   : > { %v11601_v61 = vpack.c.bf16 %v4400_v6, %v4393_v48  ;;  %v11603_v20 = vpack.c.bf16 %v4399_v15, %v4392_v10  ;;  %v17365_v45 = vpop.permute.xlu1 %13176 }
 0x932   : > { %v13187_v27 = vpop.permute.xlu0 %13186  ;;  %v13179_v30 = vunpack.i.h.bf16 %v17365_v45  ;;  %v13178_v2 = vunpack.i.l.bf16 %v17365_v45  ;;  %v17543_v45 = vld [vmem:[%s19651_s5 + $0x18] sm:$0xff] }
 0x933   : > { %11602 = vmatprep.subr.bf16.mxu0 %v11601_v61  ;;  %v13188_v16 = vunpack.i.l.bf16 %v13187_v27  ;;  %v13189_v57 = vunpack.i.h.bf16 %v13187_v27 }
 0x934   : > { %11604 = vmatpush1.bf16.msra.mxu0 %v11603_v20  ;;  %v4517_v12 = vsel %vm19761_vm3, %v13178_v2, %v13179_v30 }
 0x936   : > { %v17363_v34 = vpop.permute.xlu0 %13191 }
 0x937   : > { %v13194_v46 = vunpack.i.h.bf16 %v17363_v34  ;;  %v13193_v38 = vunpack.i.l.bf16 %v17363_v34 }
 0x939   : > { %v4524_v53 = vsel %vm19761_vm3, %v13193_v38, %v13194_v46 }
 0x93a   : > { %v17367_v3 = vpop.permute.xlu0 %13196  ;;  %v11609_v61 = vpack.c.bf16 %v4524_v53, %v4517_v12 }
 0x93b   : > { %v13199_v4 = vunpack.i.h.bf16 %v17367_v3  ;;  %v13198_v60 = vunpack.i.l.bf16 %v17367_v3 }
 0x93d   : > { %v17375_v21 = vpop.permute.xlu1 %13206  ;;  %v4406_v37 = vsel %vm19762_vm2, %v13188_v16, %v13198_v60  ;;  %v4407_v13 = vsel %vm19762_vm2, %v13198_v60, %v13199_v4 }
 0x93e   : > { %v13209_v32 = vunpack.i.h.bf16 %v17375_v21  ;;  %v13208_v43 = vunpack.i.l.bf16 %v17375_v21  ;;  %v17380_v1 = vpop.permute.xlu0 %13201 }
 0x93f   : > { %v13204_v18 = vunpack.i.h.bf16 %v17380_v1  ;;  %v13203_v29 = vunpack.i.l.bf16 %v17380_v1 }
 0x940   : > { %v4413_v56 = vsel %vm19762_vm2, %v13189_v57, %v13208_v43  ;;  %v4414_v51 = vsel %vm19762_vm2, %v13208_v43, %v13209_v32 }
 0x941   : > { %v13212_v8 = vpop.permute.xlu1 %13211  ;;  %v4267_v39 = vsel %vm19763_vm0, %v13149_v49, %v13203_v29  ;;  %v17403_v44 = vsel %vm19763_vm0, %v13203_v29, %v13204_v18  ;;  %v11605_v50 = vpack.c.bf16 %v4414_v51, %v4407_v13  ;;  %v11607_v40 = vpack.c.bf16 %v4413_v56, %v4406_v37 }
 0x942   : > { %v13214_v36 = vunpack.i.h.bf16 %v13212_v8  ;;  %v13213_v15 = vunpack.i.l.bf16 %v13212_v8  ;;  %v17405_v6 = vpop.permute.xlu0 %13216  ;;  %v13270_v10 = vpack.i.bf16 %v17403_v44, %v4267_v39  ;;  %v11621_v48 = vpack.c.bf16 %v4267_v39, %v17332_v5  ;;  %v17453_v39 = vld [vmem:[%s19651_s5] sm:$0xff] }
 0x943   : > { %11606 = vmatprep.subr.bf16.mxu0 %v11605_v50  ;;  %v13219_v0 = vunpack.i.h.bf16 %v17405_v6  ;;  %v13218_v49 = vunpack.i.l.bf16 %v17405_v6 }
 0x944   : > { %v4523_v20 = vsel %vm19761_vm3, %v13214_v36, %v13193_v38  ;;  %v4516_v27 = vsel %vm19761_vm3, %v13213_v15, %v13178_v2  ;;  %11608 = vmatpush1.bf16.msra.mxu0 %v11607_v40  ;;  %13271 = vrot.lane.b32.xlu0 %v13270_v10, %s14455_s16 }
 0x945   : > { %v17414_v60 = vpop.permute.xlu1 %13221  ;;  %11610 = vmatprep.subr.bf16.mxu0 %v11609_v61  ;;  %11622 = vmatprep.subr.bf16.mxu1 %v11621_v48  ;;  %v11611_v57 = vpack.c.bf16 %v4523_v20, %v4516_v27  ;;  %v4531_v2 = vsel %vm19761_vm3, %v13218_v49, %v13219_v0  ;;  %v17490_v27 = vld [vmem:[%s19651_s5 + $0x8] sm:$0xff] }
 0x946   : > { %v13224_v16 = vunpack.i.h.bf16 %v17414_v60  ;;  %v13223_v5 = vunpack.i.l.bf16 %v17414_v60  ;;  %11624 = vmatpush1.bf16.msra.mxu1 %v11623_v63  ;;  %v13227_v43 = vpop.permute.xlu0 %13226 }
 0x947   : > { %v13229_v38 = vunpack.i.h.bf16 %v13227_v43  ;;  %v13228_v37 = vunpack.i.l.bf16 %v13227_v43 }
 0x948   : > { %11612 = vmatpush1.bf16.msra.mxu0 %v11611_v57  ;;  %13276 = vrot.lane.b32.xlu0 %v13275_v23, %s14454_s15  ;;  %v4538_v13 = vsel %vm19761_vm3, %v13223_v5, %v13224_v16 }
 0x949   : > { %v17431_v29 = vpop.permute.xlu1 %13231  ;;  %v4530_v42 = vsel %vm19761_vm3, %v13228_v37, %v13218_v49  ;;  %v4537_v28 = vsel %vm19761_vm3, %v13229_v38, %v13223_v5  ;;  %v11613_v63 = vpack.c.bf16 %v4538_v13, %v4531_v2 }
 0x94a   : > { %v13234_v56 = vunpack.i.h.bf16 %v17431_v29  ;;  %v13233_v51 = vunpack.i.l.bf16 %v17431_v29  ;;  %v17437_v12 = vpop.permute.xlu0 %13236  ;;  %v11615_v53 = vpack.c.bf16 %v4537_v28, %v4530_v42  ;;  %v4316_v29 = vld [vmem:[%s19652_s6] sm:$0xff] }
 0x94b   : > { %11614 = vmatprep.subr.bf16.mxu0 %v11613_v63  ;;  %v13239_v35 = vunpack.i.h.bf16 %v17437_v12  ;;  %v13238_v11 = vunpack.i.l.bf16 %v17437_v12 }
 0x94c   : > { %v4248_v23 = vsel %vm19763_vm0, %v13154_v58, %v13233_v51  ;;  %v17447_v8 = vsel %vm19763_vm0, %v13233_v51, %v13234_v56  ;;  %13286 = vrot.lane.b32.xlu0 %v13270_v10, %s14457_s17  ;;  %11616 = vmatpush1.bf16.msra.mxu0 %v11615_v53 }
 0x94d   : > { %v17455_v50 = vpop.permute.xlu1 %13241  ;;  %v13300_v40 = vpack.i.bf16 %v17447_v8, %v4248_v23  ;;  %v17461_v17 = vsel %vm19763_vm0, %v13238_v11, %v13239_v35  ;;  %v4255_v58 = vsel %vm19763_vm0, %v13159_v33, %v13238_v11 }
 0x94e   : > { %v13244_v36 = vunpack.i.h.bf16 %v17455_v50  ;;  %v13243_v15 = vunpack.i.l.bf16 %v17455_v50  ;;  %v17468_v10 = vpop.permute.xlu0 %13251  ;;  %v11641_v48 = vpack.c.bf16 %v4255_v58, %v4248_v23  ;;  %v17476_v47 = vpack.i.bf16 %v17461_v17, %v4255_v58 }
 0x94f   : > { %13301 = vrot.lane.b32.xlu1 %v13300_v40, %s14455_s16  ;;  %v13254_v49 = vunpack.i.h.bf16 %v17468_v10  ;;  %v13253_v61 = vunpack.i.l.bf16 %v17468_v10  ;;  %9944 = vmatmul.mubr.msk.f32.vlgmr.msra.gmra.mrb[62].mxu0 %vm19764_vm10, %v17453_v39  ;;  %v11668_v33 = vpack.c.bf16 %v17461_v17, %v17447_v8  ;;  %v4317_v17 = vld [vmem:[%s19652_s6 + $0x8] sm:$0xff] }
 0x950   : > { %v4394_v20 = vsel %vm19762_vm2, %v13174_v41, %v13243_v15  ;;  %13296 = vrot.lane.b32.xlu0 %v13295_v14, %s14454_s15  ;;  %11642 = vmatprep.subr.bf16.mxu0 %v11641_v48  ;;  %v4395_v9 = vsel %vm19762_vm2, %v13243_v15, %v13244_v36 }
 0x951   : > { %v17492_v5 = vpop.permute.xlu1 %13246  ;;  %v4401_v57 = vsel %vm19762_vm2, %v13184_v59, %v13253_v61  ;;  %11644 = vmatpush1.bf16.msra.mxu0 %v11643_v7  ;;  %4678 = vmatprep.mubr.f32.mxu0 %v19809_v26  ;;  %v4402_v19 = vsel %vm19762_vm2, %v13253_v61, %v13254_v49 }
 0x952   : > { %v13248_v14 = vunpack.i.l.bf16 %v17492_v5  ;;  %v17508_v24 = vpop.permute.xlu0 %13256  ;;  %v11625_v52 = vpack.c.bf16 %v4402_v19, %v4395_v9  ;;  %v11627_v59 = vpack.c.bf16 %v4401_v57, %v4394_v20  ;;  %v13249_v48 = vunpack.i.h.bf16 %v17492_v5 }
 0x953   : > { %v13258_v41 = vunpack.i.l.bf16 %v17508_v24  ;;  %9945 = vmatmul.mubr.msk.f32.gmra.mrb[64].mxu0 %vm19764_vm10, %v17490_v27 }
 0x954   : > { %13306 = vrot.lane.b32.xlu0 %v17476_v47, %s14455_s16  ;;  %11626 = vmatprep.subr.bf16.mxu1 %v11625_v52  ;;  %v17525_v25 = vsel %vm19761_vm3, %v13179_v30, %v13248_v14  ;;  %v4519_v3 = vsel %vm19761_vm3, %v13248_v14, %v13249_v48 }
 0x955   : > { %v17527_v7 = vpop.permute.xlu1 %13261  ;;  %v17532_v43 = vsel %vm19761_vm3, %v13194_v46, %v13258_v41  ;;  %11628 = vmatpush1.bf16.msra.mxu1 %v11627_v59  ;;  %4684 = vmatprep.mubr.f32.mxu0 %v19809_v26 }
 0x956   : > { %v11635_v2 = vpack.c.bf16 %v17532_v43, %v17525_v25  ;;  %v13263_v58 = vunpack.i.l.bf16 %v17527_v7 }
 0x957   : > { %9946 = vmatmul.mubr.msk.f32.gmra.mrb[66].mxu0 %vm19764_vm10, %v17518_v54 }
 0x958   : > { %4690 = vmatprep.mubr.f32.mxu0 %v19809_v26  ;;  %v4408_v9 = vsel %vm19762_vm2, %v13199_v4, %v13263_v58 }
 0x959   : > { %v17545_v34 = vpop.permute.xlu1 %13266 }
 0x95a   : > { %v13269_v30 = vunpack.i.h.bf16 %v17545_v34  ;;  %v13268_v46 = vunpack.i.l.bf16 %v17545_v34 }
 0x95b   : > { %9947 = vmatmul.mubr.msk.f32.gmra.mrb[68].mxu0 %vm19764_vm10, %v17543_v45 }
 0x95c   : > { %v4262_v38 = vsel %vm19763_vm0, %v13164_v62, %v13268_v46  ;;  %v17557_v37 = vsel %vm19763_vm0, %v13268_v46, %v13269_v30  ;;  %4850 = vmatprep.mubr.f32.mxu0 %v19809_v26 }
 0x95d   : > { %v17560_v13 = vpop.permute.xlu1 %13281  ;;  %v13310_v42 = vpack.i.bf16 %v17557_v37, %v4262_v38 }
 0x95e   : > { %v13283_v4 = vunpack.i.l.bf16 %v17560_v13 }
 0x95f   : > { %13311 = vrot.lane.b32.xlu1 %v13310_v42, %s14455_s16 }
 0x960   : > { %v4532_v1 = vsel %vm19761_vm3, %v13219_v0, %v13283_v4 }
 0x961   : > { %v13292_v28 = vpop.permute.xlu1 %13291 }
 0x962   : > { %v13294_v63 = vunpack.i.h.bf16 %v13292_v28  ;;  %v13293_v51 = vunpack.i.l.bf16 %v13292_v28 }
 0x963   : > { %13316 = vrot.lane.b32.xlu1 %v13300_v40, %s14457_s17  ;;  %v13264_v40 = vunpack.i.h.bf16 %v17527_v7 }
 0x964   : > { %v17568_v31 = vsel %vm19763_vm0, %v13239_v35, %v13294_v63  ;;  %v17573_v62 = vsel %vm19763_vm0, %v13234_v56, %v13293_v51  ;;  %v4318_v56 = vld [vmem:[%s19652_s6 + $0x10] sm:$0xff]  ;;  %v13259_v35 = vunpack.i.h.bf16 %v17508_v24 }
 0x965   : > { %v11665_v53 = vpack.c.bf16 %v17568_v31, %v17573_v62  ;;  %v4308_v11 = vsel %vm397_vm1, %v17573_v62, 0.0  ;;  %v4309_v23 = vsel %vm397_vm1, %v17568_v31, 0.0  ;;  %v4409_v52 = vsel %vm19762_vm2, %v13263_v58, %v13264_v40 }
 0x966   : > { %v13340_v12 = vpack.i.bf16 %v4309_v23, %v4308_v11  ;;  %v4526_v57 = vsel %vm19761_vm3, %v13258_v41, %v13259_v35  ;;  %v11647_v58 = vpack.c.bf16 %v17403_v44, %v17337_v22 }
 0x967   : > { %13331 = vrot.lane.b32.xlu1 %v13310_v42, %s14457_s17  ;;  %v11633_v21 = vpack.c.bf16 %v4526_v57, %v4519_v3 }
 0x96b   : > { %13341 = vrot.lane.b32.xlu1 %v13340_v12, %s14455_s16 }
 0x96f   : > { %13351 = vrot.lane.b32.xlu1 %v13340_v12, %s14457_s17 }
 0x973   : > { %4578 = vperm.xlu1 %12399, %v4316_v29  }
 0x977   : > { %4588 = vperm.xlu1 %12399, %v4318_v56  }
 0x9b6   : > { %v17593_v15 = vpop.permute.xlu0 %13271 }
 0x9b7   : > { %v13274_v61 = vunpack.i.h.bf16 %v17593_v15  ;;  %v13273_v20 = vunpack.i.l.bf16 %v17593_v15 }
 0x9b9   : > { %v4415_v19 = vsel %vm19762_vm2, %v13209_v32, %v13273_v20  ;;  %v4416_v59 = vsel %vm19762_vm2, %v13273_v20, %v13274_v61  ;;  %v13284_v32 = vunpack.i.h.bf16 %v17560_v13 }
 0x9ba   : > { %v13277_v46 = vpop.permute.xlu0 %13276  ;;  %v11629_v42 = vpack.c.bf16 %v4416_v59, %v4409_v52  ;;  %v11631_v28 = vpack.c.bf16 %v4415_v19, %v4408_v9 }
 0x9bb   : > { %v13279_v41 = vunpack.i.h.bf16 %v13277_v46  ;;  %v13278_v63 = vunpack.i.l.bf16 %v13277_v46  ;;  %v4533_v22 = vsel %vm19761_vm3, %v13283_v4, %v13284_v32 }
 0x9bc   : > { %11630 = vmatprep.subr.bf16.mxu1 %v11629_v42 }
 0x9bd   : > { %v4269_v51 = vsel %vm19763_vm0, %v13204_v18, %v13278_v63  ;;  %v4270_v11 = vsel %vm19763_vm0, %v13278_v63, %v13279_v41  ;;  %11632 = vmatpush1.bf16.msra.mxu1 %v11631_v28 }
 0x9be   : > { %v17624_v23 = vpop.permute.xlu0 %13286  ;;  %11634 = vmatprep.subr.bf16.mxu1 %v11633_v21  ;;  %v13320_v12 = vpack.i.bf16 %v4270_v11, %v4269_v51  ;;  %v11645_v29 = vpack.c.bf16 %v4269_v51, %v4262_v38  ;;  %v11673_v10 = vpack.c.bf16 %v4270_v11, %v17557_v37 }
 0x9bf   : > { %v13289_v14 = vunpack.i.h.bf16 %v17624_v23  ;;  %v13288_v56 = vunpack.i.l.bf16 %v17624_v23 }
 0x9c0   : > { %13321 = vrot.lane.b32.xlu0 %v13320_v12, %s14455_s16  ;;  %11646 = vmatprep.subr.bf16.mxu0 %v11645_v29 }
 0x9c1   : > { %v13302_v18 = vpop.permute.xlu1 %13301  ;;  %v4539_v20 = vsel %vm19761_vm3, %v13224_v16, %v13288_v56  ;;  %11636 = vmatpush1.bf16.msra.mxu1 %v11635_v2  ;;  %11648 = vmatpush1.bf16.msra.mxu0 %v11647_v58  ;;  %v4540_v44 = vsel %vm19761_vm3, %v13288_v56, %v13289_v14 }
 0x9c2   : > { %v13297_v6 = vpop.permute.xlu0 %13296  ;;  %v11637_v0 = vpack.c.bf16 %v4540_v44, %v4533_v22  ;;  %v11639_v38 = vpack.c.bf16 %v4539_v20, %v4532_v1  ;;  %v13303_v9 = vunpack.i.l.bf16 %v13302_v18  ;;  %v13304_v16 = vunpack.i.h.bf16 %v13302_v18 }
 0x9c3   : > { %v13299_v57 = vunpack.i.h.bf16 %v13297_v6  ;;  %v13298_v60 = vunpack.i.l.bf16 %v13297_v6  ;;  %v19978_v22 = vlaneseq }
 0x9c4   : > { %13326 = vrot.lane.b32.xlu0 %v17476_v47, %s14457_s17  ;;  %11638 = vmatprep.subr.bf16.mxu1 %v11637_v0  ;;  %v4396_v34 = vsel %vm19762_vm2, %v13244_v36, %v13303_v9  ;;  %v4397_v50 = vsel %vm19762_vm2, %v13303_v9, %v13304_v16 }
 0x9c5   : > { %v4264_v25 = vsel %vm19763_vm0, %v13269_v30, %v13298_v60  ;;  %v4271_v43 = vsel %vm19763_vm0, %v13279_v41, %v13299_v57  ;;  %11640 = vmatpush1.bf16.msra.mxu1 %v11639_v38  ;;  %v17719_v44 = vand.u32 127, %v19978_v22 }
 0x9c6   : > { %v13307_v2 = vpop.permute.xlu0 %13306  ;;  %11667 = vmatprep.subr.msk.bf16.mxu1 %vm15169_vm11, %v11665_v53  ;;  %v4310_v47 = vsel %vm397_vm1, %v4264_v25, 0.0  ;;  %v4311_v46 = vsel %vm397_vm1, %v4271_v43, 0.0  ;;  %v11670_v30 = vpack.c.bf16 %v4271_v43, %v4264_v25 }
 0x9c7   : > { %v13309_v52 = vunpack.i.h.bf16 %v13307_v2  ;;  %v13308_v59 = vunpack.i.l.bf16 %v13307_v2  ;;  %v13345_v62 = vpack.i.bf16 %v4311_v46, %v4310_v47  ;;  %v5087_v25 = vadd.s32 128, %v17719_v44 }
 0x9c8   : > { %13336 = vrot.lane.b32.xlu0 %v13320_v12, %s14457_s17  ;;  %9948 = vmatmul.mubr.msk.f32.vlgmr.msra.gmra.mrb[66].mxu1 %vm19764_vm10, %v17453_v39 }
 0x9c9   : > { %v4403_v31 = vsel %vm19762_vm2, %v13254_v49, %v13308_v59  ;;  %11669 = vmatpush1.bf16.msra.mxu1 %v11668_v33  ;;  %4767 = vmatprep.mubr.f32.mxu1 %v19809_v26  ;;  %v4404_v36 = vsel %vm19762_vm2, %v13308_v59, %v13309_v52  ;;  %v4319_v33 = vld [vmem:[%s19652_s6 + $0x18] sm:$0xff] }
 0x9ca   : > { %11672 = vmatprep.subr.msk.bf16.mxu1 %vm15169_vm11, %v11670_v30  ;;  %v11649_v53 = vpack.c.bf16 %v4404_v36, %v4397_v50  ;;  %v11651_v42 = vpack.c.bf16 %v4403_v31, %v4396_v34 }
 0x9cc   : > { %13346 = vrot.lane.b32.xlu0 %v13345_v62, %s14455_s16  ;;  %9949 = vmatmul.mubr.msk.f32.gmra.mrb[68].mxu1 %vm19764_vm10, %v17490_v27 }
 0x9cd   : > { %11650 = vmatprep.subr.bf16.mxu0 %v11649_v53  ;;  %11674 = vmatpush1.bf16.msra.mxu1 %v11673_v10  ;;  %v17754_v10 = vmul.u32 4, %v17719_v44 }
 0x9ce   : > { %11652 = vmatpush1.bf16.msra.mxu0 %v11651_v42  ;;  %4773 = vmatprep.mubr.f32.mxu1 %v19809_v26 }
 0x9d0   : > { %13356 = vrot.lane.b32.xlu0 %v13345_v62, %s14457_s17  ;;  %9950 = vmatmul.mubr.msk.f32.gmra.mrb[70].mxu1 %vm19764_vm10, %v17518_v54 }
 0x9d1   : > { %v17684_v8 = vpop.permute.xlu1 %13311  ;;  %4779 = vmatprep.mubr.f32.mxu1 %v19809_v26 }
 0x9d2   : > { %v13314_v6 = vunpack.i.h.bf16 %v17684_v8  ;;  %v13313_v0 = vunpack.i.l.bf16 %v17684_v8 }
 0x9d4   : > { %4583 = vperm.xlu0 %12398, %v4317_v17   ;;  %9951 = vmatmul.mubr.msk.f32.gmra.mrb[72].mxu1 %vm19764_vm10, %v17543_v45  ;;  %v4410_v43 = vsel %vm19762_vm2, %v13264_v40, %v13313_v0  ;;  %v4411_v19 = vsel %vm19762_vm2, %v13313_v0, %v13314_v6  ;;  %v19979_v40 = vld [vmem:[#allocation2_spill] sm:$0xff] }
 0x9d5   : > { %v17692_v49 = vpop.permute.xlu1 %13316  ;;  %4939 = vmatprep.mubr.f32.mxu1 %v19809_v26  ;;  %v17741_v15 = vadd.s32 8, %v19979_v40  ;;  %v17763_v24 = vadd.s32 16, %v19979_v40  ;;  %vm5090_vm11 = vcmp.eq.s32.totalorder %v19979_v40, %v17754_v10  ;;  %v17793_v22 = vadd.s32 32, %v19979_v40 }
 0x9d6   : > { %v13319_v9 = vunpack.i.h.bf16 %v17692_v49  ;;  %v17796_v0 = vadd.s32 40, %v19979_v40 }
 0x9d7   : > { %vm5092_vm13 = vcmp.eq.s32.totalorder %v17741_v15, %v17754_v10 }
 0x9d8   : > { %4593 = vperm.xlu0 %12398, %v4319_v33  }
 0x9d9   : > { %v17698_v37 = vpop.permute.xlu1 %13331 }
 0x9da   : > { %v13334_v50 = vunpack.i.h.bf16 %v17698_v37  ;;  %v13333_v36 = vunpack.i.l.bf16 %v17698_v37  ;;  %v17866_v37 = vadd.s32 64, %v19979_v40 }
 0x9dd   : > { %v13342_v28 = vpop.permute.xlu1 %13341 }
 0x9de   : > { %v13344_v41 = vunpack.i.h.bf16 %v13342_v28  ;;  %v13343_v63 = vunpack.i.l.bf16 %v13342_v28  ;;  %v4534_v28 = vsel %vm19761_vm3, %v13284_v32, %v13333_v36 }
 0x9e0   : > { %v4405_v3 = vsel %vm19762_vm2, %v13309_v52, %v13344_v41  ;;  %v4398_v4 = vsel %vm19762_vm2, %v13304_v16, %v13343_v63  ;;  %v11675_v21 = vpack.c.bf16 %v13344_v41, %v13343_v63  ;;  %v13318_v16 = vunpack.i.l.bf16 %v17692_v49 }
 0x9e1   : > { %v11677_v51 = vpack.c.bf16 %v4405_v3, %v4398_v4  ;;  %v13352_v33 = vpop.permute.xlu1 %13351  ;;  %v4535_v63 = vsel %vm19761_vm3, %v13333_v36, %v13334_v50  ;;  %v17888_v36 = vadd.s32 80, %v19979_v40 }
 0x9e2   : > { %11676 = vmatprep.subr.bf16.mxu1 %v11675_v21  ;;  %v4520_v31 = vsel %vm19761_vm3, %v13249_v48, %v13318_v16  ;;  %v4521_v7 = vsel %vm19761_vm3, %v13318_v16, %v13319_v9  ;;  %v13354_v13 = vunpack.i.h.bf16 %v13352_v33  ;;  %v13353_v32 = vunpack.i.l.bf16 %v13352_v33 }
 0x9e3   : > { %11678 = vmatpush1.bf16.msra.mxu1 %v11677_v51  ;;  %v17990_v33 = vadd.s32 168, %v19979_v40 }
 0xa22   : > { %v17702_v11 = vpop.f32.mrb[62].mxu0 }
 0xa23   : > { %v17704_v12 = vpop.f32.mrb[63].mxu0 }
 0xa26   : > { %v17706_v29 = vpop.f32.mrb[64].mxu0 }
 0xa27   : > { %v17708_v56 = vpop.f32.mrb[65].mxu0 }
 0xa2a   : > { %v17710_v58 = vpop.f32.mrb[66].mxu0 }
 0xa2b   : > { %v17712_v1 = vpop.f32.mrb[67].mxu0 }
 0xa2e   : > { %v17714_v18 = vpop.f32.mrb[68].mxu0 }
 0xa2f   : > { %v17716_v20 = vpop.f32.mrb[69].mxu0 }
 0xa32   : > { %v13322_v38 = vpop.permute.xlu0 %13321 }
 0xa33   : > { %v13324_v57 = vunpack.i.h.bf16 %v13322_v38  ;;  %v13323_v60 = vunpack.i.l.bf16 %v13322_v38 }
 0xa35   : > { %v4417_v2 = vsel %vm19762_vm2, %v13274_v61, %v13323_v60  ;;  %v4418_v52 = vsel %vm19762_vm2, %v13323_v60, %v13324_v57  ;;  %v17743_v61 = vmul.u32 4, %v5087_v25 }
 0xa36   : > { %v13327_v59 = vpop.permute.xlu0 %13326  ;;  %v11653_v47 = vpack.c.bf16 %v4418_v52, %v4411_v19  ;;  %v11655_v46 = vpack.c.bf16 %v4417_v2, %v4410_v43  ;;  %v19768_v2 = vmov 1.0|1.0   ;;  %v5002_v19 = vadd.s32 296, %v19979_v40 }
 0xa37   : > { %v13329_v34 = vunpack.i.h.bf16 %v13327_v59  ;;  %v13328_v30 = vunpack.i.l.bf16 %v13327_v59  ;;  %vm5091_vm1 = vcmp.eq.s32.totalorder %v19979_v40, %v17743_v61  ;;  %vm5093_vm6 = vcmp.eq.s32.totalorder %v17741_v15, %v17743_v61 }
 0xa38   : > { %11654 = vmatprep.subr.bf16.mxu0 %v11653_v47  ;;  %vm11691_vm7 = vmpackc.low %vm5093_vm6, %vm5091_vm1  ;;  %vm5095_vm5 = vcmp.eq.s32.totalorder %v17763_v24, %v17743_v61  ;;  %vm5094_vm6 = vcmp.eq.s32.totalorder %v17763_v24, %v17754_v10  ;;  %v11683_v59 = vpack.c.bf16 %v13354_v13, %v13353_v32  ;;  %v17829_v47 = vadd.s32 48, %v19979_v40 }
 0xa39   : > { %v4527_v5 = vsel %vm19761_vm3, %v13259_v35, %v13328_v30  ;;  %11656 = vmatpush1.bf16.msra.mxu0 %v11655_v46  ;;  %v4528_v48 = vsel %vm19761_vm3, %v13328_v30, %v13329_v34  ;;  %v17766_v35 = vadd.s32 24, %v19979_v40  ;;  %vm17807_vm1 = vmpackc.low %vm5092_vm13, %vm5090_vm11  ;;  %vm5099_vm11 = vcmp.eq.s32.totalorder %v17793_v22, %v17743_v61 }
 0xa3a   : > { %v17751_v62 = vpop.permute.xlu0 %13336  ;;  %v11657_v53 = vpack.c.bf16 %v4528_v48, %v4521_v7  ;;  %v11659_v42 = vpack.c.bf16 %v4527_v5, %v4520_v31  ;;  %vm5101_vm13 = vcmp.eq.s32.totalorder %v17796_v0, %v17743_v61  ;;  %v17832_v46 = vadd.s32 56, %v19979_v40  ;;  %v17895_v48 = vpop.permute.xlu1 %4578 }
 0xa3b   : > { %v13339_v8 = vunpack.i.h.bf16 %v17751_v62  ;;  %v13338_v17 = vunpack.i.l.bf16 %v17751_v62  ;;  %vm5097_vm8 = vcmp.eq.s32.totalorder %v17766_v35, %v17743_v61  ;;  %vm5096_vm4 = vcmp.eq.s32.totalorder %v17766_v35, %v17754_v10 }
 0xa3c   : > { %11658 = vmatprep.subr.bf16.mxu0 %v11657_v53  ;;  %v17869_v7 = vadd.s32 72, %v19979_v40  ;;  %vm5102_vm12 = vcmp.eq.s32.totalorder %v17829_v47, %v17754_v10  ;;  %v17891_v5 = vadd.s32 88, %v19979_v40  ;;  %v4677_v62 = vadd.f32 %v17704_v12, %v17895_v48 }
 0xa3d   : > { %v4541_v41 = vsel %vm19761_vm3, %v13289_v14, %v13338_v17  ;;  %11660 = vmatpush1.bf16.msra.mxu0 %v11659_v42  ;;  %v4542_v3 = vsel %vm19761_vm3, %v13338_v17, %v13339_v8  ;;  %v17917_v12 = vadd.s32 104, %v19979_v40  ;;  %v17933_v53 = vadd.s32 112, %v19979_v40 }
 0xa3e   : > { %v13347_v4 = vpop.permute.xlu0 %13346  ;;  %v11661_v21 = vpack.c.bf16 %v4542_v3, %v4535_v63  ;;  %v11663_v51 = vpack.c.bf16 %v4541_v41, %v4534_v28  ;;  %v17952_v42 = vadd.s32 128, %v19979_v40  ;;  %v17973_v17 = vadd.s32 152, %v19979_v40 }
 0xa3f   : > { %v13349_v23 = vunpack.i.h.bf16 %v13347_v4  ;;  %v13348_v14 = vunpack.i.l.bf16 %v13347_v4  ;;  %v18003_v28 = vadd.s32 176, %v19979_v40  ;;  %v18006_v41 = vadd.s32 184, %v19979_v40 }
 0xa40   : > { %11662 = vmatprep.subr.bf16.mxu0 %v11661_v21  ;;  %v18019_v63 = vadd.s32 192, %v19979_v40  ;;  %v18022_v3 = vadd.s32 200, %v19979_v40  ;;  %v18035_v4 = vadd.s32 208, %v19979_v40  ;;  %v18038_v21 = vadd.s32 216, %v19979_v40 }
 0xa41   : > { %v4419_v38 = vsel %vm19762_vm2, %v13324_v57, %v13349_v23  ;;  %v4412_v60 = vsel %vm19762_vm2, %v13314_v6, %v13348_v14  ;;  %11664 = vmatpush1.bf16.msra.mxu0 %v11663_v51  ;;  %v11679_v16 = vpack.c.bf16 %v13349_v23, %v13348_v14  ;;  %v4529_v6 = vsel %vm19761_vm3, %v13329_v34, %v13354_v13 }
 0xa42   : > { %v13357_v25 = vpop.permute.xlu0 %13356  ;;  %v11681_v43 = vpack.c.bf16 %v4419_v38, %v4412_v60  ;;  %11692 = vmatprep.subr.msk.bf16.mxu0 %vm11691_vm7, %v19768_v2  ;;  %vm11695_vm7 = vmpackc.low %vm5097_vm8, %vm5095_vm5  ;;  %v4522_v34 = vsel %vm19761_vm3, %v13319_v9, %v13353_v32  ;;  %vm5098_vm5 = vcmp.eq.s32.totalorder %v17793_v22, %v17754_v10  ;;  %19982 = vst [vmem:[#allocation23_spill] sm:$0xff] %v18038_v21  ;;  %v18051_v51 = vadd.s32 224, %v19979_v40 }
 0xa43   : > { %v13359_v57 = vunpack.i.h.bf16 %v13357_v25  ;;  %v13358_v52 = vunpack.i.l.bf16 %v13357_v25  ;;  %11680 = vmatprep.subr.bf16.mxu1 %v11679_v16  ;;  %v11685_v30 = vpack.c.bf16 %v4529_v6, %v4522_v34  ;;  %vm11697_vm8 = vmpackc.low %vm5096_vm4, %vm5094_vm6  ;;  %vm5103_vm4 = vcmp.eq.s32.totalorder %v17829_v47, %v17743_v61 }
 0xa44   : > { %9952 = vmatmul.mubr.msk.f32.vlgmr.msra.gmra.mrb[70].mxu0 %vm19764_vm10, %v17453_v39  ;;  %11682 = vmatpush1.bf16.msra.mxu1 %v11681_v43  ;;  %vm5105_vm6 = vcmp.eq.s32.totalorder %v17832_v46, %v17743_v61  ;;  %19983 = vst [vmem:[#allocation22_spill] sm:$0xff] %v18051_v51  ;;  %v18054_v13 = vadd.s32 232, %v19979_v40  ;;  %v4995_v32 = vadd.s32 240, %v19979_v40  ;;  %v4996_v23 = vadd.s32 248, %v19979_v40 }
 0xa45   : > { %11684 = vmatprep.subr.bf16.mxu1 %v11683_v59  ;;  %11694 = vmatpush1.bf16.msk.msra.mxu0 %vm17807_vm1, %v19768_v2  ;;  %v4543_v49 = vsel %vm19761_vm3, %v13339_v8, %v13359_v57  ;;  %v4536_v9 = vsel %vm19761_vm3, %v13334_v50, %v13358_v52  ;;  %v11687_v31 = vpack.c.bf16 %v13359_v57, %v13358_v52  ;;  %vm11699_vm1 = vmpackc.low %vm5101_vm13, %vm5099_vm11  ;;  %v17970_v8 = vadd.s32 144, %v19979_v40  ;;  %v18109_v59 = vpop.permute.xlu1 %4588 }
 0xa46   : > { %4856 = vmatprep.mubr.f32.mxu0 %v19809_v26  ;;  %11696 = vmatprep.subr.msk.bf16.mxu0 %vm11695_vm7, %v19768_v2  ;;  %vm5100_vm7 = vcmp.eq.s32.totalorder %v17796_v0, %v17754_v10  ;;  %v11689_v50 = vpack.c.bf16 %v4543_v49, %v4536_v9  ;;  %vm11703_vm13 = vmpackc.low %vm5105_vm6, %vm5103_vm4  ;;  %vm5104_vm3 = vcmp.eq.s32.totalorder %v17832_v46, %v17754_v10  ;;  %v4997_v14 = vadd.s32 256, %v19979_v40 }
 0xa47   : > { %vm11701_vm11 = vmpackc.low %vm5100_vm7, %vm5098_vm5  ;;  %vm5106_vm4 = vcmp.eq.s32.totalorder %v17866_v37, %v17754_v10  ;;  %vm5108_vm6 = vcmp.eq.s32.totalorder %v17869_v7, %v17754_v10  ;;  %19984 = vst [vmem:[#allocation29_spill] sm:$0xff] %v18054_v13  ;;  %v4998_v38 = vadd.s32 264, %v19979_v40  ;;  %v4999_v60 = vadd.s32 272, %v19979_v40 }
 0xa48   : > { %9953 = vmatmul.mubr.msk.f32.gmra.mrb[72].mxu0 %vm19764_vm10, %v17490_v27  ;;  %11686 = vmatpush1.bf16.msra.mxu1 %v11685_v30  ;;  %vm11705_vm5 = vmpackc.low %vm5104_vm3, %vm5102_vm12  ;;  %vm5111_vm3 = vcmp.eq.s32.totalorder %v17888_v36, %v17743_v61  ;;  %vm5113_vm12 = vcmp.eq.s32.totalorder %v17891_v5, %v17743_v61  ;;  %v5000_v16 = vadd.s32 280, %v19979_v40  ;;  %v5001_v43 = vadd.s32 288, %v19979_v40 }
 0xa49   : > { %11688 = vmatprep.subr.bf16.mxu1 %v11687_v31  ;;  %11698 = vmatpush1.bf16.msk.msra.mxu0 %vm11697_vm8, %v19768_v2  ;;  %vm5107_vm8 = vcmp.eq.s32.totalorder %v17866_v37, %v17743_v61  ;;  %v4675_v6 = vadd.f32 %v17702_v11, %v17895_v48  ;;  %v5003_v52 = vadd.s32 304, %v19979_v40  ;;  %v5004_v11 = vadd.s32 312, %v19979_v40 }
 0xa4a   : > { %4862 = vmatprep.mubr.f32.mxu0 %v19809_v26  ;;  %11700 = vmatprep.subr.msk.bf16.mxu0 %vm11699_vm1, %v19768_v2  ;;  %vm5109_vm1 = vcmp.eq.s32.totalorder %v17869_v7, %v17743_v61  ;;  %v4689_v34 = vadd.f32 %v17712_v1, %v18109_v59  ;;  %v5006_v49 = vadd.s32 328, %v19979_v40  ;;  %v4687_v1 = vadd.f32 %v17710_v58, %v18109_v59 }
 0xa4b   : > { %vm11707_vm7 = vmpackc.low %vm5109_vm1, %vm5107_vm8  ;;  %vm5110_vm8 = vcmp.eq.s32.totalorder %v17888_v36, %v17754_v10  ;;  %vm5112_vm1 = vcmp.eq.s32.totalorder %v17891_v5, %v17754_v10  ;;  %v5007_v31 = vadd.s32 336, %v19979_v40  ;;  %v5008_v58 = vadd.s32 344, %v19979_v40 }
 0xa4c   : > { %9954 = vmatmul.mubr.msk.f32.gmra.mrb[74].mxu0 %vm19764_vm10, %v17518_v54  ;;  %11690 = vmatpush1.bf16.msra.mxu1 %v11689_v50  ;;  %v5009_v50 = vadd.s32 352, %v19979_v40 }
 0xa4d   : > { %11702 = vmatpush1.bf16.msk.msra.mxu0 %vm11701_vm11, %v19768_v2  ;;  %4868 = vmatprep.mubr.f32.mxu0 %v19809_v26  ;;  %vm11709_vm11 = vmpackc.low %vm5108_vm6, %vm5106_vm4 }
 0xa4e   : > { %11704 = vmatprep.subr.msk.bf16.mxu0 %vm11703_vm13, %v19768_v2  ;;  %vm11711_vm13 = vmpackc.low %vm5113_vm12, %vm5111_vm3  ;;  %vm5116_vm3 = vcmp.eq.s32.totalorder %v17917_v12, %v17754_v10  ;;  %vm5119_vm12 = vcmp.eq.s32.totalorder %v17933_v53, %v17743_v61 }
 0xa4f   : > { %9960 = vmatmul.mubr.msk.f32.vlgmr.msra.gmra.mrb[74].mxu1 %vm19764_vm10, %v17453_v39  ;;  %v17914_v39 = vadd.s32 96, %v19979_v40 }
 0xa50   : > { %9955 = vmatmul.mubr.msk.f32.gmra.mrb[76].mxu0 %vm19764_vm10, %v17543_v45  ;;  %4945 = vmatprep.mubr.f32.mxu1 %v19809_v26 }
 0xa51   : > { %11706 = vmatpush1.bf16.msk.msra.mxu0 %vm11705_vm5, %v19768_v2  ;;  %5887 = vmatprep.mubr.f32.mxu0 %v4677_v62  ;;  %vm5115_vm2 = vcmp.eq.s32.totalorder %v17914_v39, %v17743_v61  ;;  %vm5117_vm5 = vcmp.eq.s32.totalorder %v17917_v12, %v17743_v61  ;;  %vm5114_vm6 = vcmp.eq.s32.totalorder %v17914_v39, %v17754_v10  ;;  %v5010_v62 = vadd.s32 360, %v19979_v40 }
 0xa52   : > { %11708 = vmatprep.subr.msk.bf16.mxu0 %vm11707_vm7, %v19768_v2  ;;  %vm11713_vm7 = vmpackc.low %vm5112_vm1, %vm5110_vm8  ;;  %vm5118_vm8 = vcmp.eq.s32.totalorder %v17933_v53, %v17754_v10 }
 0xa53   : > { %9961 = vmatmul.mubr.msk.f32.gmra.mrb[76].mxu1 %vm19764_vm10, %v17490_v27  ;;  %v17936_v27 = vadd.s32 120, %v19979_v40  ;;  %vm11715_vm4 = vmpackc.low %vm5117_vm5, %vm5115_vm2  ;;  %vm5123_vm5 = vcmp.eq.s32.totalorder %v17952_v42, %v17743_v61  ;;  %v18090_v25 = vpop.permute.xlu0 %4583 }
 0xa54   : > { %4951 = vmatprep.mubr.f32.mxu1 %v19809_v26  ;;  %vm11717_vm2 = vmpackc.low %vm5116_vm3, %vm5114_vm6  ;;  %vm5122_vm6 = vcmp.eq.s32.totalorder %v17952_v42, %v17754_v10  ;;  %v4683_v57 = vadd.f32 %v17708_v56, %v18090_v25  ;;  %v4681_v56 = vadd.f32 %v17706_v29, %v18090_v25  ;;  %v5005_v29 = vadd.s32 320, %v19979_v40 }
 0xa55   : > { %11710 = vmatpush1.bf16.msk.msra.mxu0 %vm11709_vm11, %v19768_v2  ;;  %vm5121_vm11 = vcmp.eq.s32.totalorder %v17936_v27, %v17743_v61  ;;  %vm5120_vm1 = vcmp.eq.s32.totalorder %v17936_v27, %v17754_v10 }
 0xa56   : > { %11712 = vmatprep.subr.msk.bf16.mxu0 %vm11711_vm13, %v19768_v2  ;;  %vm11719_vm13 = vmpackc.low %vm5121_vm11, %vm5119_vm12  ;;  %vm5127_vm12 = vcmp.eq.s32.totalorder %v17970_v8, %v17743_v61  ;;  %vm5129_vm11 = vcmp.eq.s32.totalorder %v17973_v17, %v17743_v61 }
 0xa57   : > { %9962 = vmatmul.mubr.msk.f32.gmra.mrb[78].mxu1 %vm19764_vm10, %v17518_v54  ;;  %v17955_v54 = vadd.s32 136, %v19979_v40  ;;  %v18118_v30 = vpop.permute.xlu0 %4593 }
 0xa58   : > { %4957 = vmatprep.mubr.f32.mxu1 %v19809_v26  ;;  %v4695_v9 = vadd.f32 %v17716_v20, %v18118_v30  ;;  %v4693_v20 = vadd.f32 %v17714_v18, %v18118_v30  ;;  %v5011_v18 = vadd.s32 368, %v19979_v40 }
 0xa59   : > { %11714 = vmatpush1.bf16.msk.msra.mxu0 %vm11713_vm7, %v19768_v2  ;;  %vm5125_vm0 = vcmp.eq.s32.totalorder %v17955_v54, %v17743_v61  ;;  %vm11721_vm7 = vmpackc.low %vm5120_vm1, %vm5118_vm8  ;;  %vm5124_vm3 = vcmp.eq.s32.totalorder %v17955_v54, %v17754_v10  ;;  %vm5128_vm8 = vcmp.eq.s32.totalorder %v17973_v17, %v17754_v10 }
 0xa5a   : > { %11716 = vmatprep.subr.msk.bf16.mxu0 %vm11715_vm4, %v19768_v2  ;;  %vm11723_vm4 = vmpackc.low %vm5125_vm0, %vm5123_vm5  ;;  %vm5133_vm5 = vcmp.eq.s32.totalorder %v17990_v33, %v17743_v61 }
 0xa5b   : > { %9963 = vmatmul.mubr.msk.f32.gmra.mrb[80].mxu1 %vm19764_vm10, %v17543_v45  ;;  %v17987_v45 = vadd.s32 160, %v19979_v40  ;;  %vm11725_vm0 = vmpackc.low %vm5124_vm3, %vm5122_vm6  ;;  %vm5132_vm3 = vcmp.eq.s32.totalorder %v17990_v33, %v17754_v10 }
 0xa5c   : > { %6394 = vmatprep.mubr.f32.mxu1 %v19809_v26 }
 0xa5d   : > { %11718 = vmatpush1.bf16.msk.msra.mxu0 %vm11717_vm2, %v19768_v2  ;;  %vm11727_vm2 = vmpackc.low %vm5129_vm11, %vm5127_vm12  ;;  %vm5131_vm1 = vcmp.eq.s32.totalorder %v17987_v45, %v17743_v61  ;;  %vm5130_vm6 = vcmp.eq.s32.totalorder %v17987_v45, %v17754_v10  ;;  %vm5135_vm12 = vcmp.eq.s32.totalorder %v18003_v28, %v17743_v61  ;;  %vm5137_vm11 = vcmp.eq.s32.totalorder %v18006_v41, %v17743_v61 }
 0xa5e   : > { %11720 = vmatprep.subr.msk.bf16.mxu0 %vm11719_vm13, %v19768_v2  ;;  %vm5126_vm13 = vcmp.eq.s32.totalorder %v17970_v8, %v17754_v10 }
 0xa61   : > { %11722 = vmatpush1.bf16.msk.msra.mxu0 %vm11721_vm7, %v19768_v2  ;;  %vm11729_vm7 = vmpackc.low %vm5128_vm8, %vm5126_vm13  ;;  %vm5134_vm13 = vcmp.eq.s32.totalorder %v18003_v28, %v17754_v10  ;;  %vm5136_vm8 = vcmp.eq.s32.totalorder %v18006_v41, %v17754_v10 }
 0xa62   : > { %11724 = vmatprep.subr.msk.bf16.mxu0 %vm11723_vm4, %v19768_v2  ;;  %vm11731_vm4 = vmpackc.low %vm5133_vm5, %vm5131_vm1  ;;  %vm5139_vm1 = vcmp.eq.s32.totalorder %v18019_v63, %v17743_v61  ;;  %vm5141_vm5 = vcmp.eq.s32.totalorder %v18022_v3, %v17743_v61 }
 0xa65   : > { %11726 = vmatpush1.bf16.msk.msra.mxu0 %vm11725_vm0, %v19768_v2  ;;  %vm11733_vm0 = vmpackc.low %vm5132_vm3, %vm5130_vm6  ;;  %vm5138_vm6 = vcmp.eq.s32.totalorder %v18019_v63, %v17754_v10  ;;  %vm5140_vm3 = vcmp.eq.s32.totalorder %v18022_v3, %v17754_v10 }
 0xa66   : > { %11728 = vmatprep.subr.msk.bf16.mxu0 %vm11727_vm2, %v19768_v2  ;;  %vm11735_vm2 = vmpackc.low %vm5137_vm11, %vm5135_vm12  ;;  %vm5143_vm12 = vcmp.eq.s32.totalorder %v18035_v4, %v17743_v61  ;;  %vm5145_vm11 = vcmp.eq.s32.totalorder %v18038_v21, %v17743_v61 }
 0xa69   : > { %11730 = vmatpush1.bf16.msk.msra.mxu0 %vm11729_vm7, %v19768_v2  ;;  %vm11737_vm7 = vmpackc.low %vm5136_vm8, %vm5134_vm13  ;;  %vm5142_vm13 = vcmp.eq.s32.totalorder %v18035_v4, %v17754_v10  ;;  %vm5144_vm8 = vcmp.eq.s32.totalorder %v18038_v21, %v17754_v10 }
 0xa6a   : > { %11732 = vmatprep.subr.msk.bf16.mxu0 %vm11731_vm4, %v19768_v2  ;;  %vm11739_vm4 = vmpackc.low %vm5141_vm5, %vm5139_vm1  ;;  %vm5147_vm1 = vcmp.eq.s32.totalorder %v18051_v51, %v17743_v61  ;;  %vm5149_vm5 = vcmp.eq.s32.totalorder %v18054_v13, %v17743_v61 }
 0xa6d   : > { %11734 = vmatpush1.bf16.msk.msra.mxu0 %vm11733_vm0, %v19768_v2  ;;  %vm11741_vm0 = vmpackc.low %vm5140_vm3, %vm5138_vm6  ;;  %vm5146_vm6 = vcmp.eq.s32.totalorder %v18051_v51, %v17754_v10  ;;  %vm5148_vm3 = vcmp.eq.s32.totalorder %v18054_v13, %v17754_v10 }
 0xa6e   : > { %11736 = vmatprep.subr.msk.bf16.mxu0 %vm11735_vm2, %v19768_v2  ;;  %vm11743_vm2 = vmpackc.low %vm5145_vm11, %vm5143_vm12  ;;  %vm5151_vm12 = vcmp.eq.s32.totalorder %v4995_v32, %v17743_v61  ;;  %vm5153_vm11 = vcmp.eq.s32.totalorder %v4996_v23, %v17743_v61 }
 0xa71   : > { %11738 = vmatpush1.bf16.msk.msra.mxu0 %vm11737_vm7, %v19768_v2  ;;  %vm11745_vm7 = vmpackc.low %vm5144_vm8, %vm5142_vm13  ;;  %vm5150_vm13 = vcmp.eq.s32.totalorder %v4995_v32, %v17754_v10  ;;  %vm5152_vm8 = vcmp.eq.s32.totalorder %v4996_v23, %v17754_v10  ;;  %v5012_v32 = vadd.s32 376, %v19979_v40  ;;  %v5013_v23 = vadd.s32 384, %v19979_v40 }
 0xa72   : > { %11740 = vmatprep.subr.msk.bf16.mxu0 %vm11739_vm4, %v19768_v2  ;;  %vm11747_vm4 = vmpackc.low %vm5149_vm5, %vm5147_vm1  ;;  %vm5155_vm1 = vcmp.eq.s32.totalorder %v4997_v14, %v17743_v61  ;;  %vm5157_vm5 = vcmp.eq.s32.totalorder %v4998_v38, %v17743_v61 }
 0xa75   : > { %11742 = vmatpush1.bf16.msk.msra.mxu0 %vm11741_vm0, %v19768_v2  ;;  %vm11749_vm0 = vmpackc.low %vm5148_vm3, %vm5146_vm6  ;;  %vm5154_vm6 = vcmp.eq.s32.totalorder %v4997_v14, %v17754_v10  ;;  %vm5156_vm3 = vcmp.eq.s32.totalorder %v4998_v38, %v17754_v10  ;;  %v5014_v14 = vadd.s32 392, %v19979_v40 }
 0xa76   : > { %11744 = vmatprep.subr.msk.bf16.mxu0 %vm11743_vm2, %v19768_v2  ;;  %vm11751_vm2 = vmpackc.low %vm5153_vm11, %vm5151_vm12  ;;  %vm5159_vm12 = vcmp.eq.s32.totalorder %v4999_v60, %v17743_v61  ;;  %vm5161_vm11 = vcmp.eq.s32.totalorder %v5000_v16, %v17743_v61 }
 0xa79   : > { %11746 = vmatpush1.bf16.msk.msra.mxu0 %vm11745_vm7, %v19768_v2  ;;  %vm11753_vm7 = vmpackc.low %vm5152_vm8, %vm5150_vm13  ;;  %vm5158_vm13 = vcmp.eq.s32.totalorder %v4999_v60, %v17754_v10  ;;  %vm5160_vm8 = vcmp.eq.s32.totalorder %v5000_v16, %v17754_v10  ;;  %v5015_v16 = vadd.s32 400, %v19979_v40 }
 0xa7a   : > { %11748 = vmatprep.subr.msk.bf16.mxu0 %vm11747_vm4, %v19768_v2  ;;  %vm11755_vm4 = vmpackc.low %vm5157_vm5, %vm5155_vm1  ;;  %vm5163_vm1 = vcmp.eq.s32.totalorder %v5001_v43, %v17743_v61  ;;  %vm5165_vm5 = vcmp.eq.s32.totalorder %v5002_v19, %v17743_v61 }
 0xa7d   : > { %11750 = vmatpush1.bf16.msk.msra.mxu0 %vm11749_vm0, %v19768_v2  ;;  %vm11757_vm0 = vmpackc.low %vm5156_vm3, %vm5154_vm6  ;;  %vm5162_vm6 = vcmp.eq.s32.totalorder %v5001_v43, %v17754_v10  ;;  %vm5164_vm3 = vcmp.eq.s32.totalorder %v5002_v19, %v17754_v10  ;;  %v5016_v43 = vadd.s32 408, %v19979_v40 }
 0xa7e   : > { %11752 = vmatprep.subr.msk.bf16.mxu0 %vm11751_vm2, %v19768_v2  ;;  %vm11759_vm2 = vmpackc.low %vm5161_vm11, %vm5159_vm12  ;;  %vm5167_vm12 = vcmp.eq.s32.totalorder %v5003_v52, %v17743_v61  ;;  %vm5169_vm11 = vcmp.eq.s32.totalorder %v5004_v11, %v17743_v61 }
 0xa81   : > { %11754 = vmatpush1.bf16.msk.msra.mxu0 %vm11753_vm7, %v19768_v2  ;;  %vm11761_vm7 = vmpackc.low %vm5160_vm8, %vm5158_vm13  ;;  %vm5166_vm13 = vcmp.eq.s32.totalorder %v5003_v52, %v17754_v10  ;;  %vm5168_vm8 = vcmp.eq.s32.totalorder %v5004_v11, %v17754_v10  ;;  %v5017_v52 = vadd.s32 416, %v19979_v40  ;;  %v5018_v11 = vadd.s32 424, %v19979_v40 }
 0xa82   : > { %11756 = vmatprep.subr.msk.bf16.mxu0 %vm11755_vm4, %v19768_v2  ;;  %vm11763_vm4 = vmpackc.low %vm5165_vm5, %vm5163_vm1  ;;  %vm5171_vm1 = vcmp.eq.s32.totalorder %v5005_v29, %v17743_v61  ;;  %vm5173_vm5 = vcmp.eq.s32.totalorder %v5006_v49, %v17743_v61 }
 0xa84   : > { %5888 = vmatmul.mubr.f32.vlgmr.msra.gmra.mrb[78].mxu0 %v4675_v6 }
 0xa85   : > { %5893 = vmatprep.mubr.f32.mxu0 %v4683_v57  ;;  %11758 = vmatpush1.bf16.msk.msra.mxu0 %vm11757_vm0, %v19768_v2  ;;  %vm11765_vm0 = vmpackc.low %vm5164_vm3, %vm5162_vm6  ;;  %vm5170_vm6 = vcmp.eq.s32.totalorder %v5005_v29, %v17754_v10  ;;  %vm5172_vm3 = vcmp.eq.s32.totalorder %v5006_v49, %v17754_v10  ;;  %v5019_v29 = vadd.s32 432, %v19979_v40  ;;  %v5020_v49 = vadd.s32 440, %v19979_v40 }
 0xa86   : > { %11760 = vmatprep.subr.msk.bf16.mxu0 %vm11759_vm2, %v19768_v2  ;;  %vm11767_vm2 = vmpackc.low %vm5169_vm11, %vm5167_vm12  ;;  %vm5175_vm12 = vcmp.eq.s32.totalorder %v5007_v31, %v17743_v61  ;;  %vm5177_vm11 = vcmp.eq.s32.totalorder %v5008_v58, %v17743_v61 }
 0xa88   : > { %5894 = vmatmul.mubr.f32.gmra.mrb[80].mxu0 %v4681_v56 }
 0xa89   : > { %5899 = vmatprep.mubr.f32.mxu0 %v4689_v34  ;;  %11762 = vmatpush1.bf16.msk.msra.mxu0 %vm11761_vm7, %v19768_v2  ;;  %vm11769_vm7 = vmpackc.low %vm5168_vm8, %vm5166_vm13  ;;  %vm5174_vm13 = vcmp.eq.s32.totalorder %v5007_v31, %v17754_v10  ;;  %vm5176_vm8 = vcmp.eq.s32.totalorder %v5008_v58, %v17754_v10  ;;  %v5021_v31 = vadd.s32 448, %v19979_v40  ;;  %v5022_v58 = vadd.s32 456, %v19979_v40 }
 0xa8a   : > { %11764 = vmatprep.subr.msk.bf16.mxu0 %vm11763_vm4, %v19768_v2  ;;  %vm11771_vm4 = vmpackc.low %vm5173_vm5, %vm5171_vm1  ;;  %vm5179_vm1 = vcmp.eq.s32.totalorder %v5009_v50, %v17743_v61  ;;  %vm5181_vm5 = vcmp.eq.s32.totalorder %v5010_v62, %v17743_v61 }
 0xa8c   : > { %5900 = vmatmul.mubr.f32.gmra.mrb[82].mxu0 %v4687_v1 }
 0xa8d   : > { %5905 = vmatprep.mubr.f32.mxu0 %v4695_v9  ;;  %11766 = vmatpush1.bf16.msk.msra.mxu0 %vm11765_vm0, %v19768_v2  ;;  %vm11773_vm0 = vmpackc.low %vm5172_vm3, %vm5170_vm6  ;;  %vm5178_vm6 = vcmp.eq.s32.totalorder %v5009_v50, %v17754_v10  ;;  %vm5180_vm3 = vcmp.eq.s32.totalorder %v5010_v62, %v17754_v10  ;;  %v5024_v50 = vadd.s32 472, %v19979_v40  ;;  %v5025_v62 = vadd.s32 480, %v19979_v40 }
 0xa8e   : > { %11768 = vmatprep.subr.msk.bf16.mxu0 %vm11767_vm2, %v19768_v2  ;;  %vm11775_vm2 = vmpackc.low %vm5177_vm11, %vm5175_vm12  ;;  %vm5183_vm12 = vcmp.eq.s32.totalorder %v5011_v18, %v17743_v61  ;;  %vm5185_vm11 = vcmp.eq.s32.totalorder %v5012_v32, %v17743_v61 }
 0xa90   : > { %5906 = vmatmul.mubr.f32.gmra.mrb[84].mxu0 %v4693_v20  ;;  %v5023_v20 = vadd.s32 464, %v19979_v40 }
 0xa91   : > { %11770 = vmatpush1.bf16.msk.msra.mxu0 %vm11769_vm7, %v19768_v2  ;;  %vm11777_vm7 = vmpackc.low %vm5176_vm8, %vm5174_vm13  ;;  %vm5182_vm13 = vcmp.eq.s32.totalorder %v5011_v18, %v17754_v10  ;;  %vm5184_vm8 = vcmp.eq.s32.totalorder %v5012_v32, %v17754_v10  ;;  %v5026_v18 = vadd.s32 488, %v19979_v40  ;;  %v5027_v32 = vadd.s32 496, %v19979_v40 }
 0xa92   : > { %11772 = vmatprep.subr.msk.bf16.mxu0 %vm11771_vm4, %v19768_v2  ;;  %vm11779_vm4 = vmpackc.low %vm5181_vm5, %vm5179_vm1  ;;  %vm5187_vm1 = vcmp.eq.s32.totalorder %v5013_v23, %v17743_v61  ;;  %vm5189_vm5 = vcmp.eq.s32.totalorder %v5014_v14, %v17743_v61 }
 0xa95   : > { %11774 = vmatpush1.bf16.msk.msra.mxu0 %vm11773_vm0, %v19768_v2  ;;  %vm11781_vm0 = vmpackc.low %vm5180_vm3, %vm5178_vm6  ;;  %vm5186_vm6 = vcmp.eq.s32.totalorder %v5013_v23, %v17754_v10  ;;  %vm5188_vm3 = vcmp.eq.s32.totalorder %v5014_v14, %v17754_v10  ;;  %v5028_v23 = vadd.s32 504, %v19979_v40  ;;  %v5029_v14 = vadd.s32 512, %v19979_v40 }
 0xa96   : > { %11776 = vmatprep.subr.msk.bf16.mxu0 %vm11775_vm2, %v19768_v2  ;;  %vm11783_vm2 = vmpackc.low %vm5185_vm11, %vm5183_vm12  ;;  %vm5191_vm12 = vcmp.eq.s32.totalorder %v5015_v16, %v17743_v61  ;;  %vm5193_vm11 = vcmp.eq.s32.totalorder %v5016_v43, %v17743_v61 }
 0xa99   : > { %11778 = vmatpush1.bf16.msk.msra.mxu0 %vm11777_vm7, %v19768_v2  ;;  %vm11785_vm7 = vmpackc.low %vm5184_vm8, %vm5182_vm13  ;;  %vm5190_vm13 = vcmp.eq.s32.totalorder %v5015_v16, %v17754_v10  ;;  %vm5192_vm8 = vcmp.eq.s32.totalorder %v5016_v43, %v17754_v10  ;;  %v5031_v16 = vadd.s32 528, %v19979_v40  ;;  %v5032_v43 = vadd.s32 536, %v19979_v40 }
 0xa9a   : > { %11780 = vmatprep.subr.msk.bf16.mxu0 %vm11779_vm4, %v19768_v2  ;;  %vm11787_vm4 = vmpackc.low %vm5189_vm5, %vm5187_vm1  ;;  %vm5195_vm1 = vcmp.eq.s32.totalorder %v5017_v52, %v17743_v61  ;;  %vm5197_vm5 = vcmp.eq.s32.totalorder %v5018_v11, %v17743_v61 }
 0xa9b   : > { %v18164_v38 = vpop.f32.mrb[66].mxu1 }
 0xa9c   : > { %v4765_v60 = vpop.f32.mrb[67].mxu1 }
 0xa9d   : > { %v4766_v19 = vadd.f32 %v4765_v60, %v17895_v48  ;;  %11782 = vmatpush1.bf16.msk.msra.mxu0 %vm11781_vm0, %v19768_v2  ;;  %vm11789_vm0 = vmpackc.low %vm5188_vm3, %vm5186_vm6  ;;  %vm5194_vm6 = vcmp.eq.s32.totalorder %v5017_v52, %v17754_v10  ;;  %vm5196_vm3 = vcmp.eq.s32.totalorder %v5018_v11, %v17754_v10  ;;  %v5030_v60 = vadd.s32 520, %v19979_v40 }
 0xa9e   : > { %11784 = vmatprep.subr.msk.bf16.mxu0 %vm11783_vm2, %v19768_v2  ;;  %vm11791_vm2 = vmpackc.low %vm5193_vm11, %vm5191_vm12  ;;  %vm5199_vm12 = vcmp.eq.s32.totalorder %v5019_v29, %v17743_v61  ;;  %vm5201_vm11 = vcmp.eq.s32.totalorder %v5020_v49, %v17743_v61  ;;  %v5034_v52 = vadd.s32 552, %v19979_v40  ;;  %v4764_v11 = vadd.f32 %v18164_v38, %v17895_v48 }
 0xa9f   : > { %v18175_v6 = vpop.f32.mrb[68].mxu1  ;;  %5976 = vmatprep.mubr.f32.mxu0 %v4766_v19  ;;  %v5033_v19 = vadd.s32 544, %v19979_v40  ;;  %v5036_v38 = vadd.s32 568, %v19979_v40 }
 0xaa0   : > { %v18179_v57 = vpop.f32.mrb[69].mxu1 }
 0xaa1   : > { %11786 = vmatpush1.bf16.msk.msra.mxu0 %vm11785_vm7, %v19768_v2  ;;  %vm11793_vm7 = vmpackc.low %vm5192_vm8, %vm5190_vm13  ;;  %vm5198_vm13 = vcmp.eq.s32.totalorder %v5019_v29, %v17754_v10  ;;  %vm5200_vm8 = vcmp.eq.s32.totalorder %v5020_v49, %v17754_v10  ;;  %v4772_v29 = vadd.f32 %v18179_v57, %v18090_v25  ;;  %v5035_v49 = vadd.s32 560, %v19979_v40 }
 0xaa2   : > { %11788 = vmatprep.subr.msk.bf16.mxu0 %vm11787_vm4, %v19768_v2  ;;  %vm11795_vm4 = vmpackc.low %vm5197_vm5, %vm5195_vm1  ;;  %vm5203_vm1 = vcmp.eq.s32.totalorder %v5021_v31, %v17743_v61  ;;  %vm5205_vm5 = vcmp.eq.s32.totalorder %v5022_v58, %v17743_v61  ;;  %v4770_v57 = vadd.f32 %v18175_v6, %v18090_v25  ;;  %v5038_v6 = vadd.s32 584, %v19979_v40 }
 0xaa3   : > { %v18187_v56 = vpop.f32.mrb[70].mxu1 }
 0xaa4   : > { %v18191_v34 = vpop.f32.mrb[71].mxu1 }
 0xaa5   : > { %11790 = vmatpush1.bf16.msk.msra.mxu0 %vm11789_vm0, %v19768_v2  ;;  %vm11797_vm0 = vmpackc.low %vm5196_vm3, %vm5194_vm6  ;;  %vm5202_vm6 = vcmp.eq.s32.totalorder %v5021_v31, %v17754_v10  ;;  %vm5204_vm3 = vcmp.eq.s32.totalorder %v5022_v58, %v17754_v10  ;;  %v4778_v31 = vadd.f32 %v18191_v34, %v18109_v59  ;;  %v5037_v58 = vadd.s32 576, %v19979_v40 }
 0xaa6   : > { %11792 = vmatprep.subr.msk.bf16.mxu0 %vm11791_vm2, %v19768_v2  ;;  %vm11799_vm2 = vmpackc.low %vm5201_vm11, %vm5199_vm12  ;;  %vm5207_vm12 = vcmp.eq.s32.totalorder %v5023_v20, %v17743_v61  ;;  %vm5209_vm11 = vcmp.eq.s32.totalorder %v5024_v50, %v17743_v61  ;;  %v4776_v34 = vadd.f32 %v18187_v56, %v18109_v59  ;;  %v5040_v56 = vadd.s32 600, %v19979_v40 }
 0xaa7   : > { %v18199_v1 = vpop.f32.mrb[72].mxu1 }
 0xaa8   : > { %v18203_v9 = vpop.f32.mrb[73].mxu1 }
 0xaa9   : > { %11794 = vmatpush1.bf16.msk.msra.mxu0 %vm11793_vm7, %v19768_v2  ;;  %vm11801_vm7 = vmpackc.low %vm5200_vm8, %vm5198_vm13  ;;  %vm5206_vm13 = vcmp.eq.s32.totalorder %v5023_v20, %v17754_v10  ;;  %vm5208_vm8 = vcmp.eq.s32.totalorder %v5024_v50, %v17754_v10  ;;  %v4784_v20 = vadd.f32 %v18203_v9, %v18118_v30  ;;  %v5039_v50 = vadd.s32 592, %v19979_v40 }
 0xaaa   : > { %11796 = vmatprep.subr.msk.bf16.mxu0 %vm11795_vm4, %v19768_v2  ;;  %vm11803_vm4 = vmpackc.low %vm5205_vm5, %vm5203_vm1  ;;  %vm5211_vm1 = vcmp.eq.s32.totalorder %v5025_v62, %v17743_v61  ;;  %vm5213_vm5 = vcmp.eq.s32.totalorder %v5026_v18, %v17743_v61  ;;  %v4782_v9 = vadd.f32 %v18199_v1, %v18118_v30  ;;  %v5043_v1 = vadd.s32 624, %v19979_v40 }
 0xaad   : > { %11798 = vmatpush1.bf16.msk.msra.mxu0 %vm11797_vm0, %v19768_v2  ;;  %vm11805_vm0 = vmpackc.low %vm5204_vm3, %vm5202_vm6  ;;  %vm5210_vm6 = vcmp.eq.s32.totalorder %v5025_v62, %v17754_v10  ;;  %vm5212_vm3 = vcmp.eq.s32.totalorder %v5026_v18, %v17754_v10  ;;  %v5041_v62 = vadd.s32 608, %v19979_v40  ;;  %v5042_v18 = vadd.s32 616, %v19979_v40 }
 0xaae   : > { %11800 = vmatprep.subr.msk.bf16.mxu0 %vm11799_vm2, %v19768_v2  ;;  %vm11807_vm2 = vmpackc.low %vm5209_vm11, %vm5207_vm12  ;;  %vm5215_vm12 = vcmp.eq.s32.totalorder %v5027_v32, %v17743_v61  ;;  %vm5217_vm11 = vcmp.eq.s32.totalorder %v5028_v23, %v17743_v61 }
 0xab1   : > { %11802 = vmatpush1.bf16.msk.msra.mxu0 %vm11801_vm7, %v19768_v2  ;;  %vm11809_vm7 = vmpackc.low %vm5208_vm8, %vm5206_vm13  ;;  %vm5214_vm13 = vcmp.eq.s32.totalorder %v5027_v32, %v17754_v10  ;;  %vm5216_vm8 = vcmp.eq.s32.totalorder %v5028_v23, %v17754_v10  ;;  %v5044_v32 = vadd.s32 632, %v19979_v40  ;;  %v5045_v23 = vadd.s32 640, %v19979_v40 }
 0xab2   : > { %11804 = vmatprep.subr.msk.bf16.mxu0 %vm11803_vm4, %v19768_v2  ;;  %vm11811_vm4 = vmpackc.low %vm5213_vm5, %vm5211_vm1  ;;  %vm5219_vm1 = vcmp.eq.s32.totalorder %v5029_v14, %v17743_v61  ;;  %vm5221_vm5 = vcmp.eq.s32.totalorder %v5030_v60, %v17743_v61 }
 0xab5   : > { %11806 = vmatpush1.bf16.msk.msra.mxu0 %vm11805_vm0, %v19768_v2  ;;  %vm11813_vm0 = vmpackc.low %vm5212_vm3, %vm5210_vm6  ;;  %vm5218_vm6 = vcmp.eq.s32.totalorder %v5029_v14, %v17754_v10  ;;  %vm5220_vm3 = vcmp.eq.s32.totalorder %v5030_v60, %v17754_v10  ;;  %v5046_v14 = vadd.s32 648, %v19979_v40  ;;  %v5047_v60 = vadd.s32 656, %v19979_v40 }
 0xab6   : > { %11808 = vmatprep.subr.msk.bf16.mxu0 %vm11807_vm2, %v19768_v2  ;;  %vm11815_vm2 = vmpackc.low %vm5217_vm11, %vm5215_vm12  ;;  %vm5223_vm12 = vcmp.eq.s32.totalorder %v5031_v16, %v17743_v61  ;;  %vm5225_vm11 = vcmp.eq.s32.totalorder %v5032_v43, %v17743_v61 }
 0xab9   : > { %11810 = vmatpush1.bf16.msk.msra.mxu0 %vm11809_vm7, %v19768_v2  ;;  %vm11817_vm7 = vmpackc.low %vm5216_vm8, %vm5214_vm13  ;;  %vm5222_vm13 = vcmp.eq.s32.totalorder %v5031_v16, %v17754_v10  ;;  %vm5224_vm8 = vcmp.eq.s32.totalorder %v5032_v43, %v17754_v10  ;;  %v5048_v16 = vadd.s32 664, %v19979_v40  ;;  %v5049_v43 = vadd.s32 672, %v19979_v40 }
 0xaba   : > { %11812 = vmatprep.subr.msk.bf16.mxu0 %vm11811_vm4, %v19768_v2  ;;  %vm11819_vm4 = vmpackc.low %vm5221_vm5, %vm5219_vm1  ;;  %vm5227_vm1 = vcmp.eq.s32.totalorder %v5033_v19, %v17743_v61  ;;  %vm5229_vm5 = vcmp.eq.s32.totalorder %v5034_v52, %v17743_v61 }
 0xabd   : > { %11814 = vmatpush1.bf16.msk.msra.mxu0 %vm11813_vm0, %v19768_v2  ;;  %vm11821_vm0 = vmpackc.low %vm5220_vm3, %vm5218_vm6  ;;  %vm5226_vm6 = vcmp.eq.s32.totalorder %v5033_v19, %v17754_v10  ;;  %vm5228_vm3 = vcmp.eq.s32.totalorder %v5034_v52, %v17754_v10  ;;  %v5050_v19 = vadd.s32 680, %v19979_v40  ;;  %v5051_v52 = vadd.s32 688, %v19979_v40 }
 0xabe   : > { %11816 = vmatprep.subr.msk.bf16.mxu0 %vm11815_vm2, %v19768_v2  ;;  %vm11823_vm2 = vmpackc.low %vm5225_vm11, %vm5223_vm12  ;;  %vm5231_vm12 = vcmp.eq.s32.totalorder %v5035_v49, %v17743_v61  ;;  %vm5233_vm11 = vcmp.eq.s32.totalorder %v5036_v38, %v17743_v61 }
 0xac1   : > { %11818 = vmatpush1.bf16.msk.msra.mxu0 %vm11817_vm7, %v19768_v2  ;;  %vm11825_vm7 = vmpackc.low %vm5224_vm8, %vm5222_vm13  ;;  %vm5230_vm13 = vcmp.eq.s32.totalorder %v5035_v49, %v17754_v10  ;;  %vm5232_vm8 = vcmp.eq.s32.totalorder %v5036_v38, %v17754_v10  ;;  %v5054_v49 = vadd.s32 712, %v19979_v40  ;;  %v5055_v38 = vadd.s32 720, %v19979_v40 }
 0xac2   : > { %11820 = vmatprep.subr.msk.bf16.mxu0 %vm11819_vm4, %v19768_v2  ;;  %vm11827_vm4 = vmpackc.low %vm5229_vm5, %vm5227_vm1  ;;  %vm5235_vm1 = vcmp.eq.s32.totalorder %v5037_v58, %v17743_v61  ;;  %vm5237_vm5 = vcmp.eq.s32.totalorder %v5038_v6, %v17743_v61 }
 0xac4   : > { %5977 = vmatmul.mubr.f32.vlgmr.msra.gmra.mrb[78].mxu0 %v4764_v11  ;;  %v5052_v11 = vadd.s32 696, %v19979_v40 }
 0xac5   : > { %5982 = vmatprep.mubr.f32.mxu0 %v4772_v29  ;;  %11822 = vmatpush1.bf16.msk.msra.mxu0 %vm11821_vm0, %v19768_v2  ;;  %vm11829_vm0 = vmpackc.low %vm5228_vm3, %vm5226_vm6  ;;  %vm5234_vm6 = vcmp.eq.s32.totalorder %v5037_v58, %v17754_v10  ;;  %vm5236_vm3 = vcmp.eq.s32.totalorder %v5038_v6, %v17754_v10  ;;  %v5053_v29 = vadd.s32 704, %v19979_v40  ;;  %v5058_v58 = vadd.s32 744, %v19979_v40 }
 0xac6   : > { %11824 = vmatprep.subr.msk.bf16.mxu0 %vm11823_vm2, %v19768_v2  ;;  %vm11831_vm2 = vmpackc.low %vm5233_vm11, %vm5231_vm12  ;;  %vm5239_vm12 = vcmp.eq.s32.totalorder %v5039_v50, %v17743_v61  ;;  %vm5241_vm11 = vcmp.eq.s32.totalorder %v5040_v56, %v17743_v61  ;;  %v5059_v6 = vadd.s32 752, %v19979_v40 }
 0xac8   : > { %5983 = vmatmul.mubr.f32.gmra.mrb[80].mxu0 %v4770_v57  ;;  %v5056_v57 = vadd.s32 728, %v19979_v40 }
 0xac9   : > { %5988 = vmatprep.mubr.f32.mxu0 %v4778_v31  ;;  %11826 = vmatpush1.bf16.msk.msra.mxu0 %vm11825_vm7, %v19768_v2  ;;  %vm11833_vm7 = vmpackc.low %vm5232_vm8, %vm5230_vm13  ;;  %vm5238_vm13 = vcmp.eq.s32.totalorder %v5039_v50, %v17754_v10  ;;  %vm5240_vm8 = vcmp.eq.s32.totalorder %v5040_v56, %v17754_v10  ;;  %v5057_v31 = vadd.s32 736, %v19979_v40  ;;  %v5062_v50 = vadd.s32 776, %v19979_v40 }
 0xaca   : > { %11828 = vmatprep.subr.msk.bf16.mxu0 %vm11827_vm4, %v19768_v2  ;;  %vm11835_vm4 = vmpackc.low %vm5237_vm5, %vm5235_vm1  ;;  %vm5243_vm1 = vcmp.eq.s32.totalorder %v5041_v62, %v17743_v61  ;;  %vm5245_vm5 = vcmp.eq.s32.totalorder %v5042_v18, %v17743_v61  ;;  %v5063_v56 = vadd.s32 784, %v19979_v40 }
 0xacc   : > { %5989 = vmatmul.mubr.f32.gmra.mrb[82].mxu0 %v4776_v34  ;;  %v5060_v34 = vadd.s32 760, %v19979_v40 }
 0xacd   : > { %5994 = vmatprep.mubr.f32.mxu0 %v4784_v20  ;;  %11830 = vmatpush1.bf16.msk.msra.mxu0 %vm11829_vm0, %v19768_v2  ;;  %vm11837_vm0 = vmpackc.low %vm5236_vm3, %vm5234_vm6  ;;  %vm5242_vm6 = vcmp.eq.s32.totalorder %v5041_v62, %v17754_v10  ;;  %vm5244_vm3 = vcmp.eq.s32.totalorder %v5042_v18, %v17754_v10  ;;  %v5061_v20 = vadd.s32 768, %v19979_v40 }
 0xace   : > { %11832 = vmatprep.subr.msk.bf16.mxu0 %vm11831_vm2, %v19768_v2  ;;  %vm11839_vm2 = vmpackc.low %vm5241_vm11, %vm5239_vm12  ;;  %vm5247_vm12 = vcmp.eq.s32.totalorder %v5043_v1, %v17743_v61  ;;  %vm5249_vm11 = vcmp.eq.s32.totalorder %v5044_v32, %v17743_v61 }
 0xad0   : > { %5995 = vmatmul.mubr.f32.gmra.mrb[84].mxu0 %v4782_v9  ;;  %v5064_v9 = vadd.s32 792, %v19979_v40 }
 0xad1   : > { %11834 = vmatpush1.bf16.msk.msra.mxu0 %vm11833_vm7, %v19768_v2  ;;  %vm11841_vm7 = vmpackc.low %vm5240_vm8, %vm5238_vm13  ;;  %vm5246_vm13 = vcmp.eq.s32.totalorder %v5043_v1, %v17754_v10  ;;  %vm5248_vm8 = vcmp.eq.s32.totalorder %v5044_v32, %v17754_v10  ;;  %v5065_v1 = vadd.s32 800, %v19979_v40  ;;  %v5066_v32 = vadd.s32 808, %v19979_v40 }
 0xad2   : > { %11836 = vmatprep.subr.msk.bf16.mxu0 %vm11835_vm4, %v19768_v2  ;;  %vm11843_vm4 = vmpackc.low %vm5245_vm5, %vm5243_vm1  ;;  %vm5251_vm1 = vcmp.eq.s32.totalorder %v5045_v23, %v17743_v61  ;;  %vm5253_vm5 = vcmp.eq.s32.totalorder %v5046_v14, %v17743_v61 }
 0xad5   : > { %11838 = vmatpush1.bf16.msk.msra.mxu0 %vm11837_vm0, %v19768_v2  ;;  %vm11845_vm0 = vmpackc.low %vm5244_vm3, %vm5242_vm6  ;;  %vm5250_vm6 = vcmp.eq.s32.totalorder %v5045_v23, %v17754_v10  ;;  %vm5252_vm3 = vcmp.eq.s32.totalorder %v5046_v14, %v17754_v10 }
 0xad6   : > { %11840 = vmatprep.subr.msk.bf16.mxu0 %vm11839_vm2, %v19768_v2  ;;  %vm11847_vm2 = vmpackc.low %vm5249_vm11, %vm5247_vm12  ;;  %vm5255_vm12 = vcmp.eq.s32.totalorder %v5047_v60, %v17743_v61  ;;  %vm5257_vm11 = vcmp.eq.s32.totalorder %v5048_v16, %v17743_v61 }
 0xad9   : > { %11842 = vmatpush1.bf16.msk.msra.mxu0 %vm11841_vm7, %v19768_v2  ;;  %vm11849_vm7 = vmpackc.low %vm5248_vm8, %vm5246_vm13  ;;  %vm5254_vm13 = vcmp.eq.s32.totalorder %v5047_v60, %v17754_v10  ;;  %vm5256_vm8 = vcmp.eq.s32.totalorder %v5048_v16, %v17754_v10 }
 0xada   : > { %11844 = vmatprep.subr.msk.bf16.mxu0 %vm11843_vm4, %v19768_v2  ;;  %vm11851_vm4 = vmpackc.low %vm5253_vm5, %vm5251_vm1  ;;  %vm5259_vm1 = vcmp.eq.s32.totalorder %v5049_v43, %v17743_v61  ;;  %vm5261_vm5 = vcmp.eq.s32.totalorder %v5050_v19, %v17743_v61 }
 0xadd   : > { %11846 = vmatpush1.bf16.msk.msra.mxu0 %vm11845_vm0, %v19768_v2  ;;  %vm11853_vm0 = vmpackc.low %vm5252_vm3, %vm5250_vm6  ;;  %vm5258_vm6 = vcmp.eq.s32.totalorder %v5049_v43, %v17754_v10  ;;  %vm5260_vm3 = vcmp.eq.s32.totalorder %v5050_v19, %v17754_v10  ;;  %v5067_v43 = vadd.s32 816, %v19979_v40  ;;  %v5068_v19 = vadd.s32 824, %v19979_v40 }
 0xade   : > { %11848 = vmatprep.subr.msk.bf16.mxu0 %vm11847_vm2, %v19768_v2  ;;  %vm11855_vm2 = vmpackc.low %vm5257_vm11, %vm5255_vm12  ;;  %vm5263_vm12 = vcmp.eq.s32.totalorder %v5051_v52, %v17743_v61  ;;  %vm5265_vm11 = vcmp.eq.s32.totalorder %v5052_v11, %v17743_v61 }
 0xae1   : > { %11850 = vmatpush1.bf16.msk.msra.mxu0 %vm11849_vm7, %v19768_v2  ;;  %vm11857_vm7 = vmpackc.low %vm5256_vm8, %vm5254_vm13  ;;  %vm5262_vm13 = vcmp.eq.s32.totalorder %v5051_v52, %v17754_v10  ;;  %vm5264_vm8 = vcmp.eq.s32.totalorder %v5052_v11, %v17754_v10 }
 0xae2   : > { %11852 = vmatprep.subr.msk.bf16.mxu0 %vm11851_vm4, %v19768_v2  ;;  %vm11859_vm4 = vmpackc.low %vm5261_vm5, %vm5259_vm1  ;;  %vm5267_vm1 = vcmp.eq.s32.totalorder %v5053_v29, %v17743_v61  ;;  %vm5269_vm5 = vcmp.eq.s32.totalorder %v5054_v49, %v17743_v61 }
 0xae5   : > { %11854 = vmatpush1.bf16.msk.msra.mxu0 %vm11853_vm0, %v19768_v2  ;;  %vm11861_vm0 = vmpackc.low %vm5260_vm3, %vm5258_vm6  ;;  %vm5266_vm6 = vcmp.eq.s32.totalorder %v5053_v29, %v17754_v10  ;;  %vm5268_vm3 = vcmp.eq.s32.totalorder %v5054_v49, %v17754_v10 }
 0xae6   : > { %11856 = vmatprep.subr.msk.bf16.mxu0 %vm11855_vm2, %v19768_v2  ;;  %vm11863_vm2 = vmpackc.low %vm5265_vm11, %vm5263_vm12  ;;  %vm5271_vm12 = vcmp.eq.s32.totalorder %v5055_v38, %v17743_v61  ;;  %vm5273_vm11 = vcmp.eq.s32.totalorder %v5056_v57, %v17743_v61 }
 0xae9   : > { %11858 = vmatpush1.bf16.msk.msra.mxu0 %vm11857_vm7, %v19768_v2  ;;  %vm11865_vm7 = vmpackc.low %vm5264_vm8, %vm5262_vm13  ;;  %vm5270_vm13 = vcmp.eq.s32.totalorder %v5055_v38, %v17754_v10  ;;  %vm5272_vm8 = vcmp.eq.s32.totalorder %v5056_v57, %v17754_v10  ;;  %v5069_v38 = vadd.s32 832, %v19979_v40  ;;  %v5070_v57 = vadd.s32 840, %v19979_v40 }
 0xaea   : > { %11860 = vmatprep.subr.msk.bf16.mxu0 %vm11859_vm4, %v19768_v2  ;;  %vm11867_vm4 = vmpackc.low %vm5269_vm5, %vm5267_vm1  ;;  %vm5275_vm1 = vcmp.eq.s32.totalorder %v5057_v31, %v17743_v61  ;;  %vm5277_vm5 = vcmp.eq.s32.totalorder %v5058_v58, %v17743_v61 }
 0xaed   : > { %11862 = vmatpush1.bf16.msk.msra.mxu0 %vm11861_vm0, %v19768_v2  ;;  %vm11869_vm0 = vmpackc.low %vm5268_vm3, %vm5266_vm6  ;;  %vm5274_vm6 = vcmp.eq.s32.totalorder %v5057_v31, %v17754_v10  ;;  %vm5276_vm3 = vcmp.eq.s32.totalorder %v5058_v58, %v17754_v10 }
 0xaee   : > { %11864 = vmatprep.subr.msk.bf16.mxu0 %vm11863_vm2, %v19768_v2  ;;  %vm11871_vm2 = vmpackc.low %vm5273_vm11, %vm5271_vm12  ;;  %vm5279_vm12 = vcmp.eq.s32.totalorder %v5059_v6, %v17743_v61  ;;  %vm5281_vm11 = vcmp.eq.s32.totalorder %v5060_v34, %v17743_v61 }
 0xaf1   : > { %11866 = vmatpush1.bf16.msk.msra.mxu0 %vm11865_vm7, %v19768_v2  ;;  %vm11873_vm7 = vmpackc.low %vm5272_vm8, %vm5270_vm13  ;;  %vm5278_vm13 = vcmp.eq.s32.totalorder %v5059_v6, %v17754_v10  ;;  %vm5280_vm8 = vcmp.eq.s32.totalorder %v5060_v34, %v17754_v10 }
 0xaf2   : > { %11868 = vmatprep.subr.msk.bf16.mxu0 %vm11867_vm4, %v19768_v2  ;;  %vm11875_vm4 = vmpackc.low %vm5277_vm5, %vm5275_vm1  ;;  %vm5283_vm1 = vcmp.eq.s32.totalorder %v5061_v20, %v17743_v61  ;;  %vm5285_vm5 = vcmp.eq.s32.totalorder %v5062_v50, %v17743_v61 }
 0xaf3   : > { %vm11881_vm10 = vmpackc.low %vm5280_vm8, %vm5278_vm13 }
 0xaf4   : > { %vm11883_vm15 = vmpackc.low %vm5285_vm5, %vm5283_vm1  ;;  %vm5290_vm1 = vcmp.eq.s32.totalorder %v5065_v1, %v17754_v10  ;;  %vm5292_vm5 = vcmp.eq.s32.totalorder %v5066_v32, %v17754_v10 }
 0xaf5   : > { %11870 = vmatpush1.bf16.msk.msra.mxu0 %vm11869_vm0, %v19768_v2  ;;  %vm11877_vm0 = vmpackc.low %vm5276_vm3, %vm5274_vm6  ;;  %vm5287_vm6 = vcmp.eq.s32.totalorder %v5063_v56, %v17743_v61  ;;  %vm5289_vm3 = vcmp.eq.s32.totalorder %v5064_v9, %v17743_v61 }
 0xaf6   : > { %11872 = vmatprep.subr.msk.bf16.mxu0 %vm11871_vm2, %v19768_v2  ;;  %vm11879_vm2 = vmpackc.low %vm5281_vm11, %vm5279_vm12  ;;  %vm5286_vm12 = vcmp.eq.s32.totalorder %v5063_v56, %v17754_v10  ;;  %vm5288_vm11 = vcmp.eq.s32.totalorder %v5064_v9, %v17754_v10  ;;  %v5071_v56 = vadd.s32 848, %v19979_v40  ;;  %v5072_v9 = vadd.s32 856, %v19979_v40 }
 0xaf7   : > { %vm11889_vm13 = vmpackc.low %vm5288_vm11, %vm5286_vm12  ;;  %vm5299_vm12 = vcmp.eq.s32.totalorder %v5069_v38, %v17743_v61  ;;  %vm5301_vm11 = vcmp.eq.s32.totalorder %v5070_v57, %v17743_v61 }
 0xaf9   : > { %11874 = vmatpush1.bf16.msk.msra.mxu0 %vm11873_vm7, %v19768_v2  ;;  %vm5282_vm7 = vcmp.eq.s32.totalorder %v5061_v20, %v17754_v10 }
 0xafa   : > { %11876 = vmatprep.subr.msk.bf16.mxu0 %vm11875_vm4, %v19768_v2  ;;  %vm5284_vm4 = vcmp.eq.s32.totalorder %v5062_v50, %v17754_v10 }
 0xafd   : > { %11878 = vmatpush1.bf16.msk.msra.mxu0 %vm11877_vm0, %v19768_v2  ;;  %vm5291_vm0 = vcmp.eq.s32.totalorder %v5065_v1, %v17743_v61 }
 0xafe   : > { %11880 = vmatprep.subr.msk.bf16.mxu0 %vm11879_vm2, %v19768_v2  ;;  %vm5293_vm2 = vcmp.eq.s32.totalorder %v5066_v32, %v17743_v61 }
 0xaff   : > { %vm11891_vm8 = vmpackc.low %vm5293_vm2, %vm5291_vm0  ;;  %vm19767_vm2 = vcmask 523264  }
 0xb01   : > { %11882 = vmatpush1.bf16.msk.msra.mxu0 %vm11881_vm10, %v19768_v2  ;;  %vm11885_vm10 = vmpackc.low %vm5284_vm4, %vm5282_vm7  ;;  %vm5295_vm7 = vcmp.eq.s32.totalorder %v5067_v43, %v17743_v61  ;;  %vm5297_vm4 = vcmp.eq.s32.totalorder %v5068_v19, %v17743_v61 }
 0xb02   : > { %11884 = vmatprep.subr.msk.bf16.mxu0 %vm11883_vm15, %v19768_v2  ;;  %vm11887_vm15 = vmpackc.low %vm5289_vm3, %vm5287_vm6 }
 0xb03   : > { %vm11893_vm6 = vmpackc.low %vm5292_vm5, %vm5290_vm1  ;;  %vm5300_vm1 = vcmp.eq.s32.totalorder %v5070_v57, %v17754_v10  ;;  %vm5303_vm5 = vcmp.eq.s32.totalorder %v5071_v56, %v17743_v61  ;;  %v5079_v57 = vadd.s32 912, %v19979_v40 }
 0xb04   : > { %vm11895_vm3 = vmpackc.low %vm5297_vm4, %vm5295_vm7  ;;  %vm5305_vm7 = vcmp.eq.s32.totalorder %v5072_v9, %v17743_v61 }
 0xb17   : > { %v4852_v62 = vpop.f32.mrb[70].mxu0 }
 0xb18   : > { %v4854_v18 = vpop.f32.mrb[71].mxu0  ;;  %v4853_v14 = vadd.f32 %v4852_v62, %v17895_v48 }
 0xb19   : > { %v4855_v23 = vadd.f32 %v4854_v18, %v17895_v48 }
 0xb1b   : > { %v4858_v60 = vpop.f32.mrb[72].mxu0  ;;  %6065 = vmatprep.mubr.f32.mxu0 %v4855_v23 }
 0xb1c   : > { %v4860_v16 = vpop.f32.mrb[73].mxu0  ;;  %6066 = vmatmul.mubr.f32.vlgmr.msra.gmra.mrb[78].mxu0 %v4853_v14  ;;  %v4859_v11 = vadd.f32 %v4858_v60, %v18090_v25  ;;  %v5073_v14 = vadd.s32 864, %v19979_v40  ;;  %v5074_v60 = vadd.s32 872, %v19979_v40 }
 0xb1d   : > { %v4861_v52 = vadd.f32 %v4860_v16, %v18090_v25  ;;  %11886 = vmatpush1.bf16.msk.msra.mxu0 %vm11885_vm10, %v19768_v2  ;;  %vm5294_vm10 = vcmp.eq.s32.totalorder %v5067_v43, %v17754_v10 }
 0xb1e   : > { %11888 = vmatprep.subr.msk.bf16.mxu0 %vm11887_vm15, %v19768_v2  ;;  %vm5296_vm15 = vcmp.eq.s32.totalorder %v5068_v19, %v17754_v10  ;;  %v5075_v19 = vadd.s32 880, %v19979_v40 }
 0xb1f   : > { %v4864_v29 = vpop.f32.mrb[74].mxu0  ;;  %6071 = vmatprep.mubr.f32.mxu0 %v4861_v52  ;;  %vm11897_vm0 = vmpackc.low %vm5296_vm15, %vm5294_vm10  ;;  %vm5304_vm10 = vcmp.eq.s32.totalorder %v5072_v9, %v17754_v10  ;;  %vm5307_vm15 = vcmp.eq.s32.totalorder %v5073_v14, %v17743_v61  ;;  %v5076_v52 = vadd.s32 888, %v19979_v40 }
 0xb20   : > { %v4866_v49 = vpop.f32.mrb[75].mxu0  ;;  %6072 = vmatmul.mubr.f32.gmra.mrb[80].mxu0 %v4859_v11  ;;  %v4865_v58 = vadd.f32 %v4864_v29, %v18109_v59 }
 0xb21   : > { %v4867_v31 = vadd.f32 %v4866_v49, %v18109_v59  ;;  %11890 = vmatpush1.bf16.msk.msra.mxu0 %vm11889_vm13, %v19768_v2  ;;  %vm11899_vm13 = vmpackc.low %vm5301_vm11, %vm5299_vm12  ;;  %vm5309_vm12 = vcmp.eq.s32.totalorder %v5074_v60, %v17743_v61  ;;  %v5077_v49 = vadd.s32 896, %v19979_v40 }
 0xb22   : > { %v18422_v6 = vpop.f32.mrb[74].mxu1  ;;  %11892 = vmatprep.subr.msk.bf16.mxu0 %vm11891_vm8, %v19768_v2  ;;  %vm5298_vm8 = vcmp.eq.s32.totalorder %v5069_v38, %v17754_v10  ;;  %v5078_v38 = vadd.s32 904, %v19979_v40 }
 0xb23   : > { %v4870_v34 = vpop.f32.mrb[76].mxu0  ;;  %v4943_v20 = vpop.f32.mrb[75].mxu1  ;;  %6077 = vmatprep.mubr.f32.mxu0 %v4867_v31  ;;  %vm11901_vm4 = vmpackc.low %vm5300_vm1, %vm5298_vm8  ;;  %vm5308_vm8 = vcmp.eq.s32.totalorder %v5074_v60, %v17754_v10  ;;  %vm5311_vm1 = vcmp.eq.s32.totalorder %v5075_v19, %v17743_v61  ;;  %v5080_v31 = vadd.s32 920, %v19979_v40 }
 0xb24   : > { %v4872_v50 = vpop.f32.mrb[77].mxu0  ;;  %6078 = vmatmul.mubr.f32.gmra.mrb[82].mxu0 %v4865_v58  ;;  %v4871_v18 = vadd.f32 %v4870_v34, %v18118_v30  ;;  %v4944_v32 = vadd.f32 %v4943_v20, %v17895_v48  ;;  %v5081_v58 = vadd.s32 928, %v19979_v40  ;;  %v5082_v34 = vadd.s32 936, %v19979_v40 }
 0xb25   : > { %v4873_v62 = vadd.f32 %v4872_v50, %v18118_v30  ;;  %11894 = vmatpush1.bf16.msk.msra.mxu0 %vm11893_vm6, %v19768_v2  ;;  %vm11903_vm6 = vmpackc.low %vm5305_vm7, %vm5303_vm5  ;;  %vm5313_vm5 = vcmp.eq.s32.totalorder %v5076_v52, %v17743_v61  ;;  %v5083_v20 = vadd.s32 944, %v19979_v40  ;;  %v5084_v50 = vadd.s32 952, %v19979_v40 }
 0xb26   : > { %v18434_v1 = vpop.f32.mrb[76].mxu1  ;;  %11896 = vmatprep.subr.msk.bf16.mxu0 %vm11895_vm3, %v19768_v2  ;;  %vm5302_vm3 = vcmp.eq.s32.totalorder %v5071_v56, %v17754_v10 }
 0xb27   : > { %v18438_v23 = vpop.f32.mrb[77].mxu1  ;;  %6083 = vmatprep.mubr.f32.mxu0 %v4873_v62  ;;  %vm11905_vm11 = vmpackc.low %vm5304_vm10, %vm5302_vm3  ;;  %vm5312_vm3 = vcmp.eq.s32.totalorder %v5076_v52, %v17754_v10  ;;  %vm5315_vm10 = vcmp.eq.s32.totalorder %v5077_v49, %v17743_v61  ;;  %v4948_v9 = vadd.f32 %v18434_v1, %v18090_v25 }
 0xb28   : > { %6084 = vmatmul.mubr.f32.gmra.mrb[84].mxu0 %v4871_v18  ;;  %v4950_v56 = vadd.f32 %v18438_v23, %v18090_v25 }
 0xb29   : > { %11898 = vmatpush1.bf16.msk.msra.mxu0 %vm11897_vm0, %v19768_v2  ;;  %10444 = vmatprep.mubr.msk.f32.mxu0 %vm19767_vm2, %v4944_v32  ;;  %vm11907_vm0 = vmpackc.low %vm5309_vm12, %vm5307_vm15  ;;  %vm5317_vm15 = vcmp.eq.s32.totalorder %v5078_v38, %v17743_v61 }
 0xb2a   : > { %v18448_v16 = vpop.f32.mrb[78].mxu1  ;;  %11900 = vmatprep.subr.msk.bf16.mxu0 %vm11899_vm13, %v19768_v2  ;;  %vm5306_vm13 = vcmp.eq.s32.totalorder %v5073_v14, %v17754_v10 }
 0xb2b   : > { %v18451_v43 = vpop.f32.mrb[79].mxu1  ;;  %vm11909_vm7 = vmpackc.low %vm5308_vm8, %vm5306_vm13  ;;  %vm5316_vm13 = vcmp.eq.s32.totalorder %v5078_v38, %v17754_v10  ;;  %vm5319_vm8 = vcmp.eq.s32.totalorder %v5079_v57, %v17743_v61  ;;  %v4954_v62 = vadd.f32 %v18448_v16, %v18109_v59 }
 0xb2d   : > { %11902 = vmatpush1.bf16.msk.msra.mxu0 %vm11901_vm4, %v19768_v2  ;;  %vm11911_vm4 = vmpackc.low %vm5313_vm5, %vm5311_vm1  ;;  %vm5321_vm1 = vcmp.eq.s32.totalorder %v5080_v31, %v17743_v61 }
 0xb2e   : > { %v18460_v11 = vpop.f32.mrb[80].mxu1  ;;  %11904 = vmatprep.subr.msk.bf16.mxu0 %vm11903_vm6, %v19768_v2  ;;  %vm5310_vm6 = vcmp.eq.s32.totalorder %v5075_v19, %v17754_v10 }
 0xb2f   : > { %v18463_v29 = vpop.f32.mrb[81].mxu1  ;;  %vm11913_vm12 = vmpackc.low %vm5312_vm3, %vm5310_vm6  ;;  %vm5320_vm6 = vcmp.eq.s32.totalorder %v5080_v31, %v17754_v10  ;;  %vm5323_vm3 = vcmp.eq.s32.totalorder %v5081_v58, %v17743_v61 }
 0xb31   : > { %11906 = vmatpush1.bf16.msk.msra.mxu0 %vm11905_vm11, %v19768_v2  ;;  %vm11915_vm11 = vmpackc.low %vm5317_vm15, %vm5315_vm10  ;;  %vm5325_vm10 = vcmp.eq.s32.totalorder %v5082_v34, %v17743_v61 }
 0xb32   : > { %11908 = vmatprep.subr.msk.bf16.mxu0 %vm11907_vm0, %v19768_v2  ;;  %vm5314_vm0 = vcmp.eq.s32.totalorder %v5077_v49, %v17754_v10 }
 0xb33   : > { %vm11917_vm5 = vmpackc.low %vm5316_vm13, %vm5314_vm0  ;;  %vm5324_vm0 = vcmp.eq.s32.totalorder %v5082_v34, %v17754_v10  ;;  %vm5327_vm13 = vcmp.eq.s32.totalorder %v5083_v20, %v17743_v61 }
 0xb35   : > { %11910 = vmatpush1.bf16.msk.msra.mxu0 %vm11909_vm7, %v19768_v2  ;;  %vm11919_vm7 = vmpackc.low %vm5321_vm1, %vm5319_vm8  ;;  %vm5329_vm8 = vcmp.eq.s32.totalorder %v5084_v50, %v17743_v61  ;;  %v4942_v61 = vadd.f32 %v18422_v6, %v17895_v48  ;;  %v4962_v48 = vadd.f32 %v18463_v29, %v18118_v30  ;;  %v4960_v6 = vadd.f32 %v18460_v11, %v18118_v30 }
 0xb36   : > { %11912 = vmatprep.subr.msk.bf16.mxu0 %vm11911_vm4, %v19768_v2  ;;  %vm5318_vm4 = vcmp.eq.s32.totalorder %v5079_v57, %v17754_v10  ;;  %vm11927_vm2 = vmpackc.low %vm5329_vm8, %vm5327_vm13 }
 0xb37   : > { %vm11921_vm15 = vmpackc.low %vm5320_vm6, %vm5318_vm4  ;;  %vm19985_vm6 = vcmask 523264  }
 0xb39   : > { %11914 = vmatpush1.bf16.msk.msra.mxu0 %vm11913_vm12, %v19768_v2  ;;  %vm11923_vm12 = vmpackc.low %vm5325_vm10, %vm5323_vm3  ;;  %vm6219_vm10 = vcmask 924672  }
 0xb3a   : > { %11916 = vmatprep.subr.msk.bf16.mxu0 %vm11915_vm11, %v19768_v2  ;;  %vm5322_vm11 = vcmp.eq.s32.totalorder %v5081_v58, %v17754_v10  ;;  %vm18561_vm13 = vmpackc.low %vm6219_vm10, %vm6219_vm10 }
 0xb3b   : > { %vm11925_vm1 = vmpackc.low %vm5324_vm0, %vm5322_vm11 }
 0xb3d   : > { %11918 = vmatpush1.bf16.msk.msra.mxu0 %vm11917_vm5, %v19768_v2  ;;  %vm5326_vm5 = vcmp.eq.s32.totalorder %v5083_v20, %v17754_v10 }
 0xb3e   : > { %11920 = vmatprep.subr.msk.bf16.mxu0 %vm11919_vm7, %v19768_v2  ;;  %vm5328_vm7 = vcmp.eq.s32.totalorder %v5084_v50, %v17754_v10  ;;  %v4956_v10 = vadd.f32 %v18451_v43, %v18109_v59 }
 0xb3f   : > { %vm11929_vm4 = vmpackc.low %vm5328_vm7, %vm5326_vm5 }
 0xb41   : > { %11922 = vmatpush1.bf16.msk.msra.mxu0 %vm11921_vm15, %v19768_v2  ;;  %vm19988_vm15 = vcmask 7168  }
 0xb42   : > { %11924 = vmatprep.subr.msk.bf16.mxu0 %vm11923_vm12, %v19768_v2  ;;  %vm19989_vm12 = vmmov %vm19988_vm15 }
 0xb43   : > { %vm19990_vm11 = vmmov %vm19989_vm12 }
 0xb44   : > { %vm19991_vm0 = vmmov %vm19990_vm11 }
 0xb45   : > { %11926 = vmatpush1.bf16.msk.msra.mxu0 %vm11925_vm1, %v19768_v2  ;;  %vm19994_vm8 = vmmov %vm19991_vm0 }
 0xb46   : > { %11928 = vmatprep.subr.msk.bf16.mxu0 %vm11927_vm2, %v19768_v2  ;;  %vm19986_vm2 = vmmov %vm19985_vm6 }
 0xb47   : > { %vm19987_vm3 = vmmov %vm19986_vm2 }
 0xb48   : > { %vm19995_vm1 = vmmov %vm19991_vm0 }
 0xb49   : > { %11930 = vmatpush1.bf16.msk.msra.mxu0 %vm11929_vm4, %v19768_v2  ;;  %vm19996_vm5 = vmmov %vm19991_vm0  ;;  %vm19998_vm4 = vcmask 1039360  }
 0xb4a   : > { %vm19997_vm7 = vmmov %vm19991_vm0 }
 0xb4c   : > { %6155 = vmatmul.mubr.f32.vlgmr.msra.gmra.mrb[78].mxu0 %v4942_v61 }
 0xb4d   : > { %10445 = vmatprep.mubr.msk.f32.mxu0 %vm19985_vm6, %v4950_v56  ;;  %vm19999_vm6 = vmmov %vm19998_vm4  ;;  %v10551_v56 = vld [vmem:[%s19652_s6 + $0x38] sm:$0xff] }
 0xb50   : > { %6161 = vmatmul.mubr.f32.gmra.mrb[80].mxu0 %v4948_v9 }
 0xb51   : > { %10446 = vmatprep.mubr.msk.f32.mxu0 %vm19986_vm2, %v4956_v10  ;;  %vm20000_vm2 = vmmov %vm19998_vm4 }
 0xb54   : > { %6167 = vmatmul.mubr.f32.gmra.mrb[82].mxu0 %v4954_v62 }
 0xb55   : > { %10447 = vmatprep.mubr.msk.f32.mxu0 %vm19987_vm3, %v4962_v48  ;;  %vm20001_vm3 = vmmov %vm20000_vm2 }
 0xb58   : > { %6173 = vmatmul.mubr.f32.gmra.mrb[84].mxu0 %v4960_v6 }
 0xc1f   : > { %v18525_v25 = vpop.f32.mrb[78].mxu0 }
 0xc20   : > { %v18527_v18 = vpop.f32.mrb[79].mxu0 }
 0xc21   : > { %v13360_v1 = vpack.i.bf16 %v18527_v18, %v18525_v25 }
 0xc23   : > { %13361 = vrot.lane.b32.xlu1 %v13360_v1, %s14454_s15  ;;  %v18532_v59 = vpop.f32.mrb[80].mxu0 }
 0xc24   : > { %v18534_v32 = vpop.f32.mrb[81].mxu0 }
 0xc25   : > { %v13365_v23 = vpack.i.bf16 %v18534_v32, %v18532_v59 }
 0xc27   : > { %13366 = vrot.lane.b32.xlu0 %v13365_v23, %s14454_s15  ;;  %v18539_v30 = vpop.f32.mrb[82].mxu0 }
 0xc28   : > { %v18541_v14 = vpop.f32.mrb[83].mxu0 }
 0xc29   : > { %v13370_v60 = vpack.i.bf16 %v18541_v14, %v18539_v30 }
 0xc2b   : > { %13371 = vrot.lane.b32.xlu1 %v13370_v60, %s14454_s15  ;;  %v18546_v16 = vpop.f32.mrb[84].mxu0 }
 0xc2c   : > { %v18548_v43 = vpop.f32.mrb[85].mxu0 }
 0xc2d   : > { %v13375_v19 = vpack.i.bf16 %v18548_v43, %v18546_v16 }
 0xc2f   : > { %13376 = vrot.lane.b32.xlu0 %v13375_v19, %s14454_s15 }
 0xc95   : > { %v13362_v52 = vpop.permute.xlu1 %13361 }
 0xc96   : > { %v13364_v11 = vunpack.i.h.bf16 %v13362_v52  ;;  %v13363_v29 = vunpack.i.l.bf16 %v13362_v52 }
 0xc98   : > { %v6203_v49 = vsel %vm19988_vm15, %v13363_v29, %v13364_v11  ;;  %v6215_v38 = vsel %vm19989_vm12, 0.0, %v13363_v29  ;;  %vm20002_vm15 = vcmask 1031168  }
 0xc99   : > { %v13367_v57 = vpop.permute.xlu0 %13366  ;;  %v6220_v31 = vsel %vm6219_vm10, %v6203_v49, 0.0  ;;  %vm20003_vm12 = vmmov %vm20002_vm15 }
 0xc9a   : > { %v13369_v58 = vunpack.i.h.bf16 %v13367_v57  ;;  %v13368_v34 = vunpack.i.l.bf16 %v13367_v57  ;;  %v13380_v20 = vpack.i.bf16 %v6220_v31, %v6215_v38 }
 0xc9c   : > { %v6204_v50 = vsel %vm19990_vm11, %v13368_v34, %v13369_v58  ;;  %v6216_v61 = vsel %vm19991_vm0, 0.0, %v13368_v34  ;;  %13381 = vrot.lane.b32.xlu1 %v13380_v20, %s14455_s16  ;;  %v11934_v48 = vpack.c.bf16 %v13368_v34, %v13363_v29  ;;  %vm20004_vm11 = vmmov %vm20003_vm12 }
 0xc9d   : > { %v13372_v9 = vpop.permute.xlu1 %13371  ;;  %v11931_v10 = vpack.c.bf16 %v6204_v50, %v6203_v49  ;;  %v6221_v62 = vsel %vm6219_vm10, %v6204_v50, 0.0  ;;  %vm20005_vm0 = vmmov %vm20004_vm11 }
 0xc9e   : > { %v13374_v6 = vunpack.i.h.bf16 %v13372_v9  ;;  %v13373_v1 = vunpack.i.l.bf16 %v13372_v9  ;;  %v13385_v23 = vpack.i.bf16 %v6221_v62, %v6216_v61  ;;  %v10452_v9 = vld [vmem:[%s19650_s4 + $0x60] sm:$0xff]  ;;  %v10455_v62 = vld [vmem:[%s19650_s4 + $0x78] sm:$0xff] }
 0xc9f   : > { %11933 = vmatprep.subr.msk.bf16.mxu1 %vm18561_vm13, %v11931_v10  ;;  %v10453_v10 = vld [vmem:[%s19650_s4 + $0x68] sm:$0xff] }
 0xca0   : > { %v6205_v60 = vsel %vm19994_vm8, %v13373_v1, %v13374_v6  ;;  %v6217_v19 = vsel %vm19995_vm1, 0.0, %v13373_v1  ;;  %11936 = vmatpush1.bf16.msk.msra.mxu1 %vm14884_vm9, %v11934_v48  ;;  %13386 = vrot.lane.b32.xlu0 %v13385_v23, %s14455_s16  ;;  %vm20006_vm8 = vcmask 785408  }
 0xca1   : > { %v13377_v52 = vpop.permute.xlu0 %13376  ;;  %v6222_v11 = vsel %vm6219_vm10, %v6205_v60, 0.0  ;;  %vm20007_vm1 = vmmov %vm20006_vm8 }
 0xca2   : > { %v13379_v49 = vunpack.i.h.bf16 %v13377_v52  ;;  %v13378_v29 = vunpack.i.l.bf16 %v13377_v52  ;;  %v13390_v38 = vpack.i.bf16 %v6222_v11, %v6217_v19 }
 0xca4   : > { %v6206_v57 = vsel %vm19996_vm5, %v13378_v29, %v13379_v49  ;;  %v6218_v31 = vsel %vm19997_vm7, 0.0, %v13378_v29  ;;  %13391 = vrot.lane.b32.xlu1 %v13390_v38, %s14455_s16  ;;  %v11940_v50 = vpack.c.bf16 %v13378_v29, %v13373_v1  ;;  %vm20008_vm5 = vmmov %vm20007_vm1 }
 0xca5   : > { %v11937_v58 = vpack.c.bf16 %v6206_v57, %v6205_v60  ;;  %v6223_v34 = vsel %vm6219_vm10, %v6206_v57, 0.0  ;;  %vm20009_vm7 = vmmov %vm20007_vm1 }
 0xca6   : > { %v13400_v61 = vpack.i.bf16 %v6223_v34, %v6218_v31 }
 0xca7   : > { %11939 = vmatprep.subr.msk.bf16.mxu1 %vm18561_vm13, %v11937_v58 }
 0xca8   : > { %13396 = vrot.lane.b32.xlu1 %v13380_v20, %s14457_s17  ;;  %11942 = vmatpush1.bf16.msk.msra.mxu1 %vm14884_vm9, %v11940_v50  ;;  %v10454_v20 = vld [vmem:[%s19650_s4 + $0x70] sm:$0xff] }
 0xca9   : > { %13401 = vrot.lane.b32.xlu0 %v13400_v61, %s14455_s16 }
 0xcac   : > { %13411 = vrot.lane.b32.xlu1 %v13390_v38, %s14457_s17 }
 0xcad   : > { %13406 = vrot.lane.b32.xlu0 %v13385_v23, %s14457_s17 }
 0xcb0   : > { %6300 = vperm.xlu1 %12399, %v10452_v9  }
 0xcb1   : > { %13416 = vrot.lane.b32.xlu0 %v13400_v61, %s14457_s17 }
 0xcb4   : > { %6310 = vperm.xlu1 %12399, %v10454_v20  }
 0xcb5   : > { %6305 = vperm.xlu0 %12398, %v10453_v10  }
 0xcb9   : > { %6315 = vperm.xlu0 %12398, %v10455_v62  }
 0xd0e   : > { %v13382_v48 = vpop.permute.xlu1 %13381 }
 0xd0f   : > { %v13384_v6 = vunpack.i.h.bf16 %v13382_v48  ;;  %v13383_v1 = vunpack.i.l.bf16 %v13382_v48 }
 0xd11   : > { %v6258_v52 = vsel %vm19998_vm4, %v13383_v1, %v13384_v6  ;;  %vm6523_vm4 = vcmask 932864  }
 0xd12   : > { %v13387_v23 = vpop.permute.xlu0 %13386 }
 0xd13   : > { %v13389_v60 = vunpack.i.h.bf16 %v13387_v23  ;;  %v13388_v19 = vunpack.i.l.bf16 %v13387_v23 }
 0xd15   : > { %v6259_v11 = vsel %vm19999_vm6, %v13388_v19, %v13389_v60  ;;  %v11943_v49 = vpack.c.bf16 %v13389_v60, %v13384_v6  ;;  %vm20010_vm6 = vcmask 15360  }
 0xd16   : > { %v13392_v29 = vpop.permute.xlu1 %13391  ;;  %v11945_v38 = vpack.c.bf16 %v6259_v11, %v6258_v52 }
 0xd17   : > { %11944 = vmatprep.subr.bf16.mxu1 %v11943_v49  ;;  %v13394_v57 = vunpack.i.h.bf16 %v13392_v29  ;;  %v13393_v31 = vunpack.i.l.bf16 %v13392_v29 }
 0xd18   : > { %11946 = vmatpush1.bf16.msra.mxu1 %v11945_v38 }
 0xd19   : > { %v6260_v10 = vsel %vm20000_vm2, %v13393_v31, %v13394_v57  ;;  %vm20011_vm2 = vmmov %vm20010_vm6 }
 0xd1a   : > { %v13397_v58 = vpop.permute.xlu1 %13396 }
 0xd1b   : > { %v13402_v34 = vpop.permute.xlu0 %13401  ;;  %v13399_v9 = vunpack.i.h.bf16 %v13397_v58  ;;  %v13398_v20 = vunpack.i.l.bf16 %v13397_v58 }
 0xd1c   : > { %v13404_v50 = vunpack.i.h.bf16 %v13402_v34  ;;  %v13403_v61 = vunpack.i.l.bf16 %v13402_v34 }
 0xd1d   : > { %v6286_v52 = vsel %vm20002_vm15, %v13398_v20, %v13399_v9  ;;  %v10448_v20 = vld [vmem:[%s19649_s3 + $0x60] sm:$0xff]  ;;  %vm20013_vm15 = vmmov %vm20011_vm2 }
 0xd1e   : > { %v6261_v62 = vsel %vm20001_vm3, %v13403_v61, %v13404_v50  ;;  %v11947_v48 = vpack.c.bf16 %v13404_v50, %v13394_v57  ;;  %v13412_v1 = vpop.permute.xlu1 %13411  ;;  %vm20012_vm3 = vmmov %vm20011_vm2 }
 0xd1f   : > { %v13407_v23 = vpop.permute.xlu0 %13406  ;;  %v11949_v6 = vpack.c.bf16 %v6261_v62, %v6260_v10  ;;  %v13414_v11 = vunpack.i.h.bf16 %v13412_v1  ;;  %v13413_v49 = vunpack.i.l.bf16 %v13412_v1  ;;  %v10451_v62 = vld [vmem:[%s19649_s3 + $0x78] sm:$0xff] }
 0xd20   : > { %v13409_v60 = vunpack.i.h.bf16 %v13407_v23  ;;  %v13408_v19 = vunpack.i.l.bf16 %v13407_v23  ;;  %11948 = vmatprep.subr.bf16.mxu1 %v11947_v48 }
 0xd21   : > { %11950 = vmatpush1.bf16.msra.mxu1 %v11949_v6  ;;  %v6288_v57 = vsel %vm20004_vm11, %v13413_v49, %v13414_v11  ;;  %vm20016_vm11 = vmmov %vm20011_vm2 }
 0xd22   : > { %v6287_v29 = vsel %vm20003_vm12, %v13408_v19, %v13409_v60  ;;  %v11951_v38 = vpack.c.bf16 %v13409_v60, %v13399_v9  ;;  %v10449_v9 = vld [vmem:[%s19649_s3 + $0x68] sm:$0xff]  ;;  %vm18671_vm12 = vmpackc.low %vm6523_vm4, %vm6523_vm4 }
 0xd23   : > { %v13417_v58 = vpop.permute.xlu0 %13416  ;;  %v11953_v34 = vpack.c.bf16 %v6287_v29, %v6286_v52 }
 0xd24   : > { %v13419_v31 = vunpack.i.h.bf16 %v13417_v58  ;;  %v13418_v2 = vunpack.i.l.bf16 %v13417_v58  ;;  %11952 = vmatprep.subr.bf16.mxu1 %v11951_v38 }
 0xd25   : > { %11954 = vmatpush1.bf16.msra.mxu1 %v11953_v34 }
 0xd26   : > { %v6289_v50 = vsel %vm20005_vm0, %v13418_v2, %v13419_v31  ;;  %v11955_v61 = vpack.c.bf16 %v13419_v31, %v13414_v11  ;;  %v10450_v2 = vld [vmem:[%s19649_s3 + $0x70] sm:$0xff]  ;;  %vm20017_vm0 = vmmov %vm20011_vm2 }
 0xd27   : > { %v11957_v10 = vpack.c.bf16 %v6289_v50, %v6288_v57 }
 0xd28   : > { %11956 = vmatprep.subr.bf16.mxu1 %v11955_v61 }
 0xd29   : > { %11958 = vmatpush1.bf16.msra.mxu1 %v11957_v10 }
 0xd2c   : > { %10468 = vmatmul.mubr.msk.f32.vlgmr.msra.gmra.mrb[82].mxu1 %vm20006_vm8, %v10448_v20  ;;  %vm20019_vm8 = vmmov %vm20017_vm0 }
 0xd2d   : > { %6400 = vmatprep.mubr.f32.mxu1 %v19809_v26 }
 0xd2f   : > { %v6301_v48 = vpop.permute.xlu1 %6300 }
 0xd30   : > { %10469 = vmatmul.mubr.msk.f32.gmra.mrb[84].mxu1 %vm20007_vm1, %v10449_v9  ;;  %vm20020_vm1 = vmmov %vm20017_vm0 }
 0xd31   : > { %6406 = vmatprep.mubr.f32.mxu1 %v19809_v26 }
 0xd33   : > { %v6311_v31 = vpop.permute.xlu1 %6310 }
 0xd34   : > { %10470 = vmatmul.mubr.msk.f32.gmra.mrb[86].mxu1 %vm20008_vm5, %v10450_v2  ;;  %v6306_v52 = vpop.permute.xlu0 %6305 }
 0xd35   : > { %6412 = vmatprep.mubr.f32.mxu1 %v19809_v26 }
 0xd38   : > { %10471 = vmatmul.mubr.msk.f32.gmra.mrb[88].mxu1 %vm20009_vm7, %v10451_v62  ;;  %v6316_v2 = vpop.permute.xlu0 %6315 }
 0xd39   : > { %6698 = vmatprep.mubr.f32.mxu1 %v19809_v26 }
 0xdff   : > { %v6396_v1 = vpop.f32.mrb[82].mxu1 }
 0xe00   : > { %v6397_v23 = vadd.f32 %v6396_v1, %v6301_v48  ;;  %v6398_v6 = vpop.f32.mrb[83].mxu1 }
 0xe01   : > { %v6399_v60 = vadd.f32 %v6398_v6, %v6301_v48 }
 0xe02   : > { %v10472_v19 = vmul.f32 -1.442695, %v6397_v23 }
 0xe03   : > { %v10473_v11 = vmul.f32 -1.442695, %v6399_v60  ;;  %v6402_v49 = vpop.f32.mrb[84].mxu1 }
 0xe04   : > { %14254 = vpow2.f32 %v10472_v19  ;;  %v6403_v29 = vadd.f32 %v6402_v49, %v6306_v52  ;;  %v6404_v38 = vpop.f32.mrb[85].mxu1 }
 0xe05   : > { %14256 = vpow2.f32 %v10473_v11  ;;  %v6405_v58 = vadd.f32 %v6404_v38, %v6306_v52 }
 0xe06   : > { %v10474_v34 = vmul.f32 -1.442695, %v6403_v29 }
 0xe07   : > { %v10475_v57 = vmul.f32 -1.442695, %v6405_v58  ;;  %v6408_v50 = vpop.f32.mrb[86].mxu1 }
 0xe08   : > { %14258 = vpow2.f32 %v10474_v34  ;;  %v6409_v61 = vadd.f32 %v6408_v50, %v6311_v31  ;;  %v6410_v10 = vpop.f32.mrb[87].mxu1 }
 0xe09   : > { %14260 = vpow2.f32 %v10475_v57  ;;  %v6411_v20 = vadd.f32 %v6410_v10, %v6311_v31 }
 0xe0a   : > { %v10476_v9 = vmul.f32 -1.442695, %v6409_v61 }
 0xe0b   : > { %v10477_v62 = vmul.f32 -1.442695, %v6411_v20  ;;  %v6414_v48 = vpop.f32.mrb[88].mxu1 }
 0xe0c   : > { %14262 = vpow2.f32 %v10476_v9  ;;  %v6415_v1 = vadd.f32 %v6414_v48, %v6316_v2  ;;  %v6416_v6 = vpop.f32.mrb[89].mxu1 }
 0xe0d   : > { %14264 = vpow2.f32 %v10477_v62  ;;  %v6417_v19 = vadd.f32 %v6416_v6, %v6316_v2 }
 0xe0e   : > { %v14255_v11 = vpop.eup %14254  ;;  %v10478_v52 = vmul.f32 -1.442695, %v6415_v1 }
 0xe0f   : > { %v14257_v49 = vpop.eup %14256  ;;  %v6443_v38 = vadd.f32 1.0, %v14255_v11  ;;  %v10479_v13 = vmul.f32 -1.442695, %v6417_v19 }
 0xe10   : > { %v6444_v51 = vadd.f32 1.0, %v14257_v49  ;;  %14266 = vpow2.f32 %v10478_v52 }
 0xe11   : > { %14268 = vrcp.f32 %v6443_v38 }
 0xe12   : > { %v14259_v34 = vpop.eup %14258  ;;  %14270 = vrcp.f32 %v6444_v51 }
 0xe13   : > { %v14261_v31 = vpop.eup %14260  ;;  %v6445_v57 = vadd.f32 1.0, %v14259_v34  ;;  %14272 = vpow2.f32 %v10479_v13 }
 0xe14   : > { %v6446_v50 = vadd.f32 1.0, %v14261_v31 }
 0xe15   : > { %14274 = vrcp.f32 %v6445_v57 }
 0xe16   : > { %v14263_v10 = vpop.eup %14262  ;;  %14276 = vrcp.f32 %v6446_v50 }
 0xe17   : > { %v14265_v9 = vpop.eup %14264  ;;  %v6447_v62 = vadd.f32 1.0, %v14263_v10 }
 0xe18   : > { %v6448_v2 = vadd.f32 1.0, %v14265_v9 }
 0xe19   : > { %14278 = vrcp.f32 %v6447_v62 }
 0xe1a   : > { %v14267_v48 = vpop.eup %14266  ;;  %14280 = vrcp.f32 %v6448_v2 }
 0xe1b   : > { %v14269_v6 = vpop.eup %14268  ;;  %v6449_v11 = vadd.f32 1.0, %v14267_v48 }
 0xe1c   : > { %v14271_v49 = vpop.eup %14270  ;;  %v6467_v52 = vmul.f32 %v14269_v6, %v6397_v23 }
 0xe1d   : > { %v14273_v38 = vpop.eup %14272  ;;  %v6468_v21 = vmul.f32 %v14271_v49, %v6399_v60  ;;  %14282 = vrcp.f32 %v6449_v11 }
 0xe1e   : > { %v18628_v51 = vadd.f32 %v6467_v52, %v18525_v25  ;;  %v6450_v13 = vadd.f32 1.0, %v14273_v38 }
 0xe1f   : > { %v14275_v34 = vpop.eup %14274  ;;  %v18631_v31 = vadd.f32 %v6468_v21, %v18527_v18 }
 0xe20   : > { %v14277_v57 = vpop.eup %14276  ;;  %v6469_v50 = vmul.f32 %v14275_v34, %v6403_v29  ;;  %14284 = vrcp.f32 %v6450_v13 }
 0xe21   : > { %v13420_v10 = vpack.i.bf16 %v18631_v31, %v18628_v51  ;;  %v6470_v9 = vmul.f32 %v14277_v57, %v6405_v58 }
 0xe22   : > { %v18636_v23 = vadd.f32 %v6469_v50, %v18532_v59 }
 0xe23   : > { %v14279_v60 = vpop.eup %14278  ;;  %v18639_v62 = vadd.f32 %v6470_v9, %v18534_v32  ;;  %13421 = vrot.lane.b32.xlu1 %v13420_v10, %s14459_s18  ;;  %v10487_v10 = vld [vmem:[%s19650_s4 + $0x98] sm:$0xff] }
 0xe24   : > { %v14281_v25 = vpop.eup %14280  ;;  %v6471_v2 = vmul.f32 %v14279_v60, %v6409_v61 }
 0xe25   : > { %v13425_v21 = vpack.i.bf16 %v18639_v62, %v18636_v23  ;;  %v6472_v18 = vmul.f32 %v14281_v25, %v6411_v20 }
 0xe26   : > { %v18645_v29 = vadd.f32 %v6471_v2, %v18539_v30 }
 0xe27   : > { %v14283_v48 = vpop.eup %14282  ;;  %v18648_v58 = vadd.f32 %v6472_v18, %v18541_v14  ;;  %13426 = vrot.lane.b32.xlu0 %v13425_v21, %s14459_s18 }
 0xe28   : > { %v6473_v59 = vmul.f32 %v14283_v48, %v6415_v1 }
 0xe29   : > { %v13430_v32 = vpack.i.bf16 %v18648_v58, %v18645_v29 }
 0xe2a   : > { %v14285_v6 = vpop.eup %14284  ;;  %v18654_v61 = vadd.f32 %v6473_v59, %v18546_v16 }
 0xe2b   : > { %v6474_v11 = vmul.f32 %v14285_v6, %v6417_v19  ;;  %13431 = vrot.lane.b32.xlu1 %v13430_v32, %s14459_s18 }
 0xe2d   : > { %v18658_v30 = vadd.f32 %v6474_v11, %v18548_v43 }
 0xe2f   : > { %v13435_v14 = vpack.i.bf16 %v18658_v30, %v18654_v61 }
 0xe31   : > { %13436 = vrot.lane.b32.xlu0 %v13435_v14, %s14459_s18 }
 0xe95   : > { %v13422_v20 = vpop.permute.xlu1 %13421 }
 0xe96   : > { %v13424_v1 = vunpack.i.h.bf16 %v13422_v20  ;;  %v13423_v49 = vunpack.i.l.bf16 %v13422_v20 }
 0xe98   : > { %v6507_v52 = vsel %vm20010_vm6, %v13423_v49, %v13424_v1  ;;  %v6519_v16 = vsel %vm20011_vm2, 0.0, %v13423_v49  ;;  %vm20025_vm6 = vcmask 1014784  }
 0xe99   : > { %v13427_v38 = vpop.permute.xlu0 %13426  ;;  %v6524_v19 = vsel %vm6523_vm4, %v6507_v52, 0.0  ;;  %vm20026_vm2 = vmmov %vm20025_vm6 }
 0xe9a   : > { %v13429_v13 = vunpack.i.h.bf16 %v13427_v38  ;;  %v13428_v34 = vunpack.i.l.bf16 %v13427_v38  ;;  %v13440_v43 = vpack.i.bf16 %v6524_v19, %v6519_v16 }
 0xe9c   : > { %v6508_v57 = vsel %vm20012_vm3, %v13428_v34, %v13429_v13  ;;  %v6520_v50 = vsel %vm20013_vm15, 0.0, %v13428_v34  ;;  %13441 = vrot.lane.b32.xlu1 %v13440_v43, %s14457_s17  ;;  %v11962_v2 = vpack.c.bf16 %v13428_v34, %v13423_v49  ;;  %vm20027_vm3 = vmmov %vm20026_vm2 }
 0xe9d   : > { %v13432_v9 = vpop.permute.xlu1 %13431  ;;  %v11959_v60 = vpack.c.bf16 %v6508_v57, %v6507_v52  ;;  %v6525_v25 = vsel %vm6523_vm4, %v6508_v57, 0.0  ;;  %v10484_v57 = vld [vmem:[%s19650_s4 + $0x80] sm:$0xff]  ;;  %vm20028_vm15 = vmmov %vm20026_vm2 }
 0xe9e   : > { %v13434_v21 = vunpack.i.h.bf16 %v13432_v9  ;;  %v13433_v18 = vunpack.i.l.bf16 %v13432_v9  ;;  %v13445_v48 = vpack.i.bf16 %v6525_v25, %v6520_v50  ;;  %v10485_v50 = vld [vmem:[%s19650_s4 + $0x88] sm:$0xff] }
 0xe9f   : > { %11961 = vmatprep.subr.msk.bf16.mxu1 %vm18671_vm12, %v11959_v60 }
 0xea0   : > { %v6509_v59 = vsel %vm20016_vm11, %v13433_v18, %v13434_v21  ;;  %v6521_v32 = vsel %vm20017_vm0, 0.0, %v13433_v18  ;;  %13446 = vrot.lane.b32.xlu0 %v13445_v48, %s14457_s17  ;;  %11964 = vmatpush1.bf16.msk.msra.mxu1 %vm15659_vm14, %v11962_v2 }
 0xea1   : > { %v6526_v11 = vsel %vm6523_vm4, %v6509_v59, 0.0 }
 0xea2   : > { %v13450_v14 = vpack.i.bf16 %v6526_v11, %v6521_v32 }
 0xea3   : > { %v13437_v20 = vpop.permute.xlu0 %13436 }
 0xea4   : > { %v13439_v1 = vunpack.i.h.bf16 %v13437_v20  ;;  %v13438_v49 = vunpack.i.l.bf16 %v13437_v20  ;;  %13451 = vrot.lane.b32.xlu1 %v13450_v14, %s14457_s17 }
 0xea6   : > { %v6510_v52 = vsel %vm20019_vm8, %v13438_v49, %v13439_v1  ;;  %v6522_v16 = vsel %vm20020_vm1, 0.0, %v13438_v49  ;;  %v11968_v13 = vpack.c.bf16 %v13438_v49, %v13433_v18  ;;  %vm6827_vm1 = vcmask 949248  }
 0xea7   : > { %v11965_v38 = vpack.c.bf16 %v6510_v52, %v6509_v59  ;;  %v6527_v19 = vsel %vm6523_vm4, %v6510_v52, 0.0 }
 0xea8   : > { %v13460_v34 = vpack.i.bf16 %v6527_v19, %v6522_v16  ;;  %13456 = vrot.lane.b32.xlu1 %v13440_v43, %s14460_s19  ;;  %v10486_v43 = vld [vmem:[%s19650_s4 + $0x90] sm:$0xff] }
 0xea9   : > { %11967 = vmatprep.subr.msk.bf16.mxu1 %vm18671_vm12, %v11965_v38  ;;  %vm20029_vm12 = vcmask 785408  }
 0xeaa   : > { %13461 = vrot.lane.b32.xlu0 %v13460_v34, %s14457_s17  ;;  %11970 = vmatpush1.bf16.msk.msra.mxu1 %vm15659_vm14, %v11968_v13  ;;  %vm20021_vm14 = vcmask 1031168   ;;  %vm20030_vm11 = vmmov %vm20029_vm12 }
 0xeab   : > { %vm20022_vm5 = vmmov %vm20021_vm14 }
 0xeac   : > { %13471 = vrot.lane.b32.xlu1 %v13450_v14, %s14460_s19  ;;  %vm20023_vm7 = vmmov %vm20022_vm5 }
 0xead   : > { %vm20024_vm4 = vmmov %vm20022_vm5 }
 0xeae   : > { %13466 = vrot.lane.b32.xlu0 %v13445_v48, %s14460_s19  ;;  %vm20031_vm0 = vmmov %vm20030_vm11 }
 0xeaf   : > { %vm20032_vm8 = vmmov %vm20031_vm0 }
 0xeb0   : > { %6604 = vperm.xlu1 %12399, %v10484_v57  }
 0xeb2   : > { %13476 = vrot.lane.b32.xlu0 %v13460_v34, %s14460_s19 }
 0xeb4   : > { %6614 = vperm.xlu1 %12399, %v10486_v43  }
 0xeb6   : > { %6609 = vperm.xlu0 %12398, %v10485_v50  }
 0xeba   : > { %6619 = vperm.xlu0 %12398, %v10487_v10  }
 0xf0e   : > { %v13442_v9 = vpop.permute.xlu1 %13441 }
 0xf0f   : > { %v13444_v60 = vunpack.i.h.bf16 %v13442_v9  ;;  %v13443_v25 = vunpack.i.l.bf16 %v13442_v9 }
 0xf11   : > { %v6562_v48 = vsel %vm20021_vm14, %v13443_v25, %v13444_v60  ;;  %vm20033_vm14 = vcmask 31744  }
 0xf12   : > { %v13447_v2 = vpop.permute.xlu0 %13446 }
 0xf13   : > { %v13449_v21 = vunpack.i.h.bf16 %v13447_v2  ;;  %v13448_v18 = vunpack.i.l.bf16 %v13447_v2 }
 0xf15   : > { %v6563_v59 = vsel %vm20022_vm5, %v13448_v18, %v13449_v21  ;;  %v11971_v32 = vpack.c.bf16 %v13449_v21, %v13444_v60  ;;  %vm20034_vm5 = vmmov %vm20033_vm14 }
 0xf16   : > { %v13452_v6 = vpop.permute.xlu1 %13451  ;;  %v11973_v11 = vpack.c.bf16 %v6563_v59, %v6562_v48 }
 0xf17   : > { %11972 = vmatprep.subr.bf16.mxu1 %v11971_v32  ;;  %v13454_v20 = vunpack.i.h.bf16 %v13452_v6  ;;  %v13453_v1 = vunpack.i.l.bf16 %v13452_v6 }
 0xf18   : > { %11974 = vmatpush1.bf16.msra.mxu1 %v11973_v11 }
 0xf19   : > { %v6564_v13 = vsel %vm20023_vm7, %v13453_v1, %v13454_v20  ;;  %vm20035_vm7 = vmmov %vm20034_vm5 }
 0xf1a   : > { %v13457_v14 = vpop.permute.xlu1 %13456 }
 0xf1b   : > { %v13459_v38 = vunpack.i.h.bf16 %v13457_v14  ;;  %v13458_v19 = vunpack.i.l.bf16 %v13457_v14 }
 0xf1c   : > { %v13462_v49 = vpop.permute.xlu0 %13461 }
 0xf1d   : > { %v13464_v52 = vunpack.i.h.bf16 %v13462_v49  ;;  %v13463_v16 = vunpack.i.l.bf16 %v13462_v49  ;;  %v6590_v25 = vsel %vm20025_vm6, %v13458_v19, %v13459_v38  ;;  %v10483_v19 = vld [vmem:[%s19649_s3 + $0x98] sm:$0xff]  ;;  %vm18781_vm6 = vmpackc.low %vm6827_vm1, %vm6827_vm1 }
 0xf1e   : > { %v13472_v50 = vpop.permute.xlu1 %13471 }
 0xf1f   : > { %v6565_v34 = vsel %vm20024_vm4, %v13463_v16, %v13464_v52  ;;  %v11975_v57 = vpack.c.bf16 %v13464_v52, %v13454_v20  ;;  %v13474_v21 = vunpack.i.h.bf16 %v13472_v50  ;;  %v13473_v18 = vunpack.i.l.bf16 %v13472_v50  ;;  %v10480_v52 = vld [vmem:[%s19649_s3 + $0x80] sm:$0xff]  ;;  %v10481_v16 = vld [vmem:[%s19649_s3 + $0x88] sm:$0xff]  ;;  %vm20036_vm4 = vmmov %vm20034_vm5 }
 0xf20   : > { %v13467_v43 = vpop.permute.xlu0 %13466  ;;  %v11977_v10 = vpack.c.bf16 %v6565_v34, %v6564_v13 }
 0xf21   : > { %v13469_v9 = vunpack.i.h.bf16 %v13467_v43  ;;  %v13468_v60 = vunpack.i.l.bf16 %v13467_v43  ;;  %11976 = vmatprep.subr.bf16.mxu1 %v11975_v57  ;;  %v6592_v14 = vsel %vm20027_vm3, %v13473_v18, %v13474_v21 }
 0xf22   : > { %11978 = vmatpush1.bf16.msra.mxu1 %v11977_v10 }
 0xf23   : > { %v6591_v2 = vsel %vm20026_vm2, %v13468_v60, %v13469_v9  ;;  %v11979_v48 = vpack.c.bf16 %v13469_v9, %v13459_v38  ;;  %v10482_v38 = vld [vmem:[%s19649_s3 + $0x90] sm:$0xff]  ;;  %vm20039_vm2 = vmmov %vm20036_vm4 }
 0xf24   : > { %v13477_v59 = vpop.permute.xlu0 %13476  ;;  %v11981_v32 = vpack.c.bf16 %v6591_v2, %v6590_v25  ;;  %vm20040_vm3 = vmmov %vm20039_vm2 }
 0xf25   : > { %v13479_v6 = vunpack.i.h.bf16 %v13477_v59  ;;  %v13478_v11 = vunpack.i.l.bf16 %v13477_v59  ;;  %11980 = vmatprep.subr.bf16.mxu1 %v11979_v48 }
 0xf26   : > { %11982 = vmatpush1.bf16.msra.mxu1 %v11981_v32 }
 0xf27   : > { %v6593_v20 = vsel %vm20028_vm15, %v13478_v11, %v13479_v6  ;;  %v11983_v1 = vpack.c.bf16 %v13479_v6, %v13474_v21 }
 0xf28   : > { %v11985_v49 = vpack.c.bf16 %v6593_v20, %v6592_v14 }
 0xf29   : > { %11984 = vmatprep.subr.bf16.mxu1 %v11983_v1 }
 0xf2a   : > { %11986 = vmatpush1.bf16.msra.mxu1 %v11985_v49 }
 0xf2d   : > { %10500 = vmatmul.mubr.msk.f32.vlgmr.msra.gmra.mrb[90].mxu1 %vm20029_vm12, %v10480_v52  ;;  %vm20043_vm12 = vmmov %vm20039_vm2 }
 0xf2e   : > { %6704 = vmatprep.mubr.f32.mxu1 %v19809_v26 }
 0xf2f   : > { %v6605_v13 = vpop.permute.xlu1 %6604 }
 0xf31   : > { %10501 = vmatmul.mubr.msk.f32.gmra.mrb[92].mxu1 %vm20030_vm11, %v10481_v16  ;;  %vm20044_vm11 = vmmov %vm20039_vm2 }
 0xf32   : > { %6710 = vmatprep.mubr.f32.mxu1 %v19809_v26 }
 0xf33   : > { %v6615_v59 = vpop.permute.xlu1 %6614 }
 0xf35   : > { %10502 = vmatmul.mubr.msk.f32.gmra.mrb[94].mxu1 %vm20031_vm0, %v10482_v38  ;;  %v6610_v9 = vpop.permute.xlu0 %6609  ;;  %vm20045_vm0 = vcmask 1014784  }
 0xf36   : > { %6716 = vmatprep.mubr.f32.mxu1 %v19809_v26 }
 0xf39   : > { %10503 = vmatmul.mubr.msk.f32.gmra.mrb[96].mxu1 %vm20032_vm8, %v10483_v19  ;;  %v6620_v49 = vpop.permute.xlu0 %6619  ;;  %vm20046_vm8 = vmmov %vm20045_vm0 }
 0xf3a   : > { %7002 = vmatprep.mubr.f32.mxu1 %v19809_v26 }
0x1000   : > { %v6700_v34 = vpop.f32.mrb[90].mxu1 }
0x1001   : > { %v6701_v57 = vadd.f32 %v6700_v34, %v6605_v13  ;;  %v6702_v43 = vpop.f32.mrb[91].mxu1 }
0x1002   : > { %v6703_v50 = vadd.f32 %v6702_v43, %v6605_v13 }
0x1003   : > { %v10504_v10 = vmul.f32 -1.442695, %v6701_v57 }
0x1004   : > { %v10505_v60 = vmul.f32 -1.442695, %v6703_v50  ;;  %v6706_v25 = vpop.f32.mrb[92].mxu1 }
0x1005   : > { %14286 = vpow2.f32 %v10504_v10  ;;  %v6707_v2 = vadd.f32 %v6706_v25, %v6610_v9  ;;  %v6708_v21 = vpop.f32.mrb[93].mxu1 }
0x1006   : > { %14288 = vpow2.f32 %v10505_v60  ;;  %v6709_v18 = vadd.f32 %v6708_v21, %v6610_v9 }
0x1007   : > { %v10506_v48 = vmul.f32 -1.442695, %v6707_v2 }
0x1008   : > { %v10507_v32 = vmul.f32 -1.442695, %v6709_v18  ;;  %v6712_v6 = vpop.f32.mrb[94].mxu1 }
0x1009   : > { %14290 = vpow2.f32 %v10506_v48  ;;  %v6713_v11 = vadd.f32 %v6712_v6, %v6615_v59  ;;  %v6714_v14 = vpop.f32.mrb[95].mxu1 }
0x100a   : > { %14292 = vpow2.f32 %v10507_v32  ;;  %v6715_v20 = vadd.f32 %v6714_v14, %v6615_v59 }
0x100b   : > { %v10508_v1 = vmul.f32 -1.442695, %v6713_v11 }
0x100c   : > { %v10509_v52 = vmul.f32 -1.442695, %v6715_v20  ;;  %v6718_v16 = vpop.f32.mrb[96].mxu1 }
0x100d   : > { %14294 = vpow2.f32 %v10508_v1  ;;  %v6719_v38 = vadd.f32 %v6718_v16, %v6620_v49  ;;  %v6720_v19 = vpop.f32.mrb[97].mxu1 }
0x100e   : > { %14296 = vpow2.f32 %v10509_v52  ;;  %v6721_v13 = vadd.f32 %v6720_v19, %v6620_v49 }
0x100f   : > { %v14287_v34 = vpop.eup %14286  ;;  %v10510_v43 = vmul.f32 -1.442695, %v6719_v38 }
0x1010   : > { %v14289_v10 = vpop.eup %14288  ;;  %v6747_v9 = vadd.f32 1.0, %v14287_v34  ;;  %v10511_v60 = vmul.f32 -1.442695, %v6721_v13 }
0x1011   : > { %v6748_v25 = vadd.f32 1.0, %v14289_v10  ;;  %14298 = vpow2.f32 %v10510_v43 }
0x1012   : > { %14300 = vrcp.f32 %v6747_v9 }
0x1013   : > { %v14291_v21 = vpop.eup %14290  ;;  %14302 = vrcp.f32 %v6748_v25 }
0x1014   : > { %v14293_v48 = vpop.eup %14292  ;;  %v6749_v59 = vadd.f32 1.0, %v14291_v21  ;;  %14304 = vpow2.f32 %v10511_v60 }
0x1015   : > { %v6750_v32 = vadd.f32 1.0, %v14293_v48 }
0x1016   : > { %14306 = vrcp.f32 %v6749_v59 }
0x1017   : > { %v14295_v6 = vpop.eup %14294  ;;  %14308 = vrcp.f32 %v6750_v32 }
0x1018   : > { %v14297_v14 = vpop.eup %14296  ;;  %v6751_v1 = vadd.f32 1.0, %v14295_v6 }
0x1019   : > { %v6752_v49 = vadd.f32 1.0, %v14297_v14 }
0x101a   : > { %14310 = vrcp.f32 %v6751_v1 }
0x101b   : > { %v14299_v52 = vpop.eup %14298  ;;  %14312 = vrcp.f32 %v6752_v49 }
0x101c   : > { %v14301_v16 = vpop.eup %14300  ;;  %v6753_v19 = vadd.f32 1.0, %v14299_v52 }
0x101d   : > { %v14303_v34 = vpop.eup %14302  ;;  %v6771_v43 = vmul.f32 %v14301_v16, %v6701_v57 }
0x101e   : > { %v14305_v10 = vpop.eup %14304  ;;  %v6772_v9 = vmul.f32 %v14303_v34, %v6703_v50  ;;  %14314 = vrcp.f32 %v6753_v19 }
0x101f   : > { %v18738_v25 = vadd.f32 %v6771_v43, %v18628_v51  ;;  %v6754_v60 = vadd.f32 1.0, %v14305_v10 }
0x1020   : > { %v14307_v21 = vpop.eup %14306  ;;  %v18741_v48 = vadd.f32 %v6772_v9, %v18631_v31 }
0x1021   : > { %v14309_v59 = vpop.eup %14308  ;;  %v6773_v32 = vmul.f32 %v14307_v21, %v6707_v2  ;;  %14316 = vrcp.f32 %v6754_v60 }
0x1022   : > { %v13480_v6 = vpack.i.bf16 %v18741_v48, %v18738_v25  ;;  %v6774_v14 = vmul.f32 %v14309_v59, %v6709_v18 }
0x1023   : > { %v18746_v57 = vadd.f32 %v6773_v32, %v18636_v23 }
0x1024   : > { %v14311_v50 = vpop.eup %14310  ;;  %v18749_v1 = vadd.f32 %v6774_v14, %v18639_v62  ;;  %13481 = vrot.lane.b32.xlu1 %v13480_v6, %s14461_s22  ;;  %v10519_v6 = vld [vmem:[%s19650_s4 + $0xb8] sm:$0xff] }
0x1025   : > { %v14313_v51 = vpop.eup %14312  ;;  %v6775_v49 = vmul.f32 %v14311_v50, %v6713_v11 }
0x1026   : > { %v13485_v31 = vpack.i.bf16 %v18749_v1, %v18746_v57  ;;  %v6776_v2 = vmul.f32 %v14313_v51, %v6715_v20 }
0x1027   : > { %v18755_v52 = vadd.f32 %v6775_v49, %v18645_v29 }
0x1028   : > { %v14315_v16 = vpop.eup %14314  ;;  %v18758_v18 = vadd.f32 %v6776_v2, %v18648_v58  ;;  %13486 = vrot.lane.b32.xlu0 %v13485_v31, %s14461_s22 }
0x1029   : > { %v6777_v23 = vmul.f32 %v14315_v16, %v6719_v38 }
0x102a   : > { %v13490_v62 = vpack.i.bf16 %v18758_v18, %v18755_v52 }
0x102b   : > { %v14317_v19 = vpop.eup %14316  ;;  %v18764_v11 = vadd.f32 %v6777_v23, %v18654_v61 }
0x102c   : > { %v6778_v34 = vmul.f32 %v14317_v19, %v6721_v13  ;;  %13491 = vrot.lane.b32.xlu1 %v13490_v62, %s14461_s22  ;;  %v20041_v19 = vld [vmem:[#allocation30_spill] sm:$0xff] }
0x102d   : > { %vm20042_vm15 = vnez %v20041_v19 }
0x102e   : > { %v18768_v29 = vadd.f32 %v6778_v34, %v18658_v30 }
0x1030   : > { %v13495_v58 = vpack.i.bf16 %v18768_v29, %v18764_v11 }
0x1032   : > { %13496 = vrot.lane.b32.xlu0 %v13495_v58, %s14461_s22 }
0x1096   : > { %v13482_v20 = vpop.permute.xlu1 %13481 }
0x1097   : > { %v13484_v38 = vunpack.i.h.bf16 %v13482_v20  ;;  %v13483_v43 = vunpack.i.l.bf16 %v13482_v20 }
0x1099   : > { %v6811_v10 = vsel %vm20033_vm14, %v13483_v43, %v13484_v38  ;;  %v6823_v61 = vsel %vm20034_vm5, 0.0, %v13483_v43  ;;  %vm20048_vm14 = vmmov %vm20045_vm0  ;;  %vm20049_vm5 = vcmask 982016  }
0x109a   : > { %v13487_v9 = vpop.permute.xlu0 %13486  ;;  %v6828_v13 = vsel %vm6827_vm1, %v6811_v10, 0.0 }
0x109b   : > { %v13489_v60 = vunpack.i.h.bf16 %v13487_v9  ;;  %v13488_v21 = vunpack.i.l.bf16 %v13487_v9  ;;  %v13500_v30 = vpack.i.bf16 %v6828_v13, %v6823_v61 }
0x109d   : > { %v6812_v59 = vsel %vm20035_vm7, %v13488_v21, %v13489_v60  ;;  %v6824_v32 = vsel %vm20036_vm4, 0.0, %v13488_v21  ;;  %13501 = vrot.lane.b32.xlu1 %v13500_v30, %s14460_s19  ;;  %v11990_v49 = vpack.c.bf16 %v13488_v21, %v13483_v43  ;;  %vm20050_vm7 = vmmov %vm20049_vm5 }
0x109e   : > { %v13492_v14 = vpop.permute.xlu1 %13491  ;;  %v11987_v50 = vpack.c.bf16 %v6812_v59, %v6811_v10  ;;  %v6829_v51 = vsel %vm6827_vm1, %v6812_v59, 0.0  ;;  %v10516_v59 = vld [vmem:[%s19650_s4 + $0xa0] sm:$0xff]  ;;  %vm20051_vm4 = vmmov %vm20049_vm5 }
0x109f   : > { %v13494_v31 = vunpack.i.h.bf16 %v13492_v14  ;;  %v13493_v2 = vunpack.i.l.bf16 %v13492_v14  ;;  %v13505_v16 = vpack.i.bf16 %v6829_v51, %v6824_v32  ;;  %v10517_v32 = vld [vmem:[%s19650_s4 + $0xa8] sm:$0xff] }
0x10a0   : > { %11989 = vmatprep.subr.msk.bf16.mxu1 %vm18781_vm6, %v11987_v50 }
0x10a1   : > { %v6813_v23 = vsel %vm20039_vm2, %v13493_v2, %v13494_v31  ;;  %v6825_v62 = vsel %vm20040_vm3, 0.0, %v13493_v2  ;;  %13506 = vrot.lane.b32.xlu0 %v13505_v16, %s14460_s19  ;;  %11992 = vmatpush1.bf16.msk.msra.mxu1 %vm20042_vm15, %v11990_v49  ;;  %vm20053_vm2 = vcmask 785408  }
0x10a2   : > { %v6830_v34 = vsel %vm6827_vm1, %v6813_v23, 0.0  ;;  %vm20054_vm3 = vmmov %vm20053_vm2 }
0x10a3   : > { %v13510_v58 = vpack.i.bf16 %v6830_v34, %v6825_v62 }
0x10a4   : > { %v13497_v20 = vpop.permute.xlu0 %13496 }
0x10a5   : > { %v13499_v38 = vunpack.i.h.bf16 %v13497_v20  ;;  %v13498_v43 = vunpack.i.l.bf16 %v13497_v20  ;;  %13511 = vrot.lane.b32.xlu1 %v13510_v58, %s14460_s19 }
0x10a7   : > { %v6814_v10 = vsel %vm20043_vm12, %v13498_v43, %v13499_v38  ;;  %v6826_v61 = vsel %vm20044_vm11, 0.0, %v13498_v43  ;;  %v11996_v60 = vpack.c.bf16 %v13498_v43, %v13493_v2  ;;  %vm20056_vm12 = vmmov %vm20053_vm2  ;;  %vm20057_vm11 = vcmask 7168  }
0x10a8   : > { %v11993_v9 = vpack.c.bf16 %v6814_v10, %v6813_v23  ;;  %v6831_v13 = vsel %vm6827_vm1, %v6814_v10, 0.0  ;;  %vm20047_vm1 = vmmov %vm20045_vm0 }
0x10a9   : > { %v13520_v21 = vpack.i.bf16 %v6831_v13, %v6826_v61  ;;  %13516 = vrot.lane.b32.xlu1 %v13500_v30, %s14462_s23  ;;  %v10518_v30 = vld [vmem:[%s19650_s4 + $0xb0] sm:$0xff] }
0x10aa   : > { %11995 = vmatprep.subr.msk.bf16.mxu1 %vm18781_vm6, %v11993_v9  ;;  %vm20052_vm6 = vmmov %vm20051_vm4 }
0x10ab   : > { %13521 = vrot.lane.b32.xlu0 %v13520_v21, %s14460_s19  ;;  %11998 = vmatpush1.bf16.msk.msra.mxu1 %vm20042_vm15, %v11996_v60  ;;  %vm20055_vm15 = vmmov %vm20053_vm2 }
0x10ad   : > { %13531 = vrot.lane.b32.xlu1 %v13510_v58, %s14462_s23 }
0x10af   : > { %13526 = vrot.lane.b32.xlu0 %v13505_v16, %s14462_s23 }
0x10b1   : > { %6908 = vperm.xlu1 %12399, %v10516_v59  }
0x10b3   : > { %13536 = vrot.lane.b32.xlu0 %v13520_v21, %s14462_s23 }
0x10b5   : > { %6918 = vperm.xlu1 %12399, %v10518_v30  }
0x10b7   : > { %6913 = vperm.xlu0 %12398, %v10517_v32  }
0x10bb   : > { %6923 = vperm.xlu0 %12398, %v10519_v6  }
0x110f   : > { %v13502_v14 = vpop.permute.xlu1 %13501 }
0x1110   : > { %v13504_v50 = vunpack.i.h.bf16 %v13502_v14  ;;  %v13503_v51 = vunpack.i.l.bf16 %v13502_v14 }
0x1112   : > { %v6866_v16 = vsel %vm20045_vm0, %v13503_v51, %v13504_v50  ;;  %vm20058_vm0 = vmmov %vm20057_vm11 }
0x1113   : > { %v13507_v49 = vpop.permute.xlu0 %13506 }
0x1114   : > { %v13509_v31 = vunpack.i.h.bf16 %v13507_v49  ;;  %v13508_v2 = vunpack.i.l.bf16 %v13507_v49 }
0x1116   : > { %v6867_v23 = vsel %vm20046_vm8, %v13508_v2, %v13509_v31  ;;  %v11999_v62 = vpack.c.bf16 %v13509_v31, %v13504_v50  ;;  %vm20059_vm8 = vmmov %vm20058_vm0 }
0x1117   : > { %v13512_v19 = vpop.permute.xlu1 %13511  ;;  %v12001_v34 = vpack.c.bf16 %v6867_v23, %v6866_v16 }
0x1118   : > { %12000 = vmatprep.subr.bf16.mxu1 %v11999_v62  ;;  %v13514_v20 = vunpack.i.h.bf16 %v13512_v19  ;;  %v13513_v38 = vunpack.i.l.bf16 %v13512_v19 }
0x1119   : > { %12002 = vmatpush1.bf16.msra.mxu1 %v12001_v34 }
0x111a   : > { %v6868_v60 = vsel %vm20047_vm1, %v13513_v38, %v13514_v20  ;;  %vm20060_vm1 = vmmov %vm20058_vm0 }
0x111b   : > { %v13517_v58 = vpop.permute.xlu1 %13516 }
0x111c   : > { %v13519_v9 = vunpack.i.h.bf16 %v13517_v58  ;;  %v13518_v13 = vunpack.i.l.bf16 %v13517_v58 }
0x111d   : > { %v13522_v43 = vpop.permute.xlu0 %13521 }
0x111e   : > { %v13524_v10 = vunpack.i.h.bf16 %v13522_v43  ;;  %v13523_v61 = vunpack.i.l.bf16 %v13522_v43  ;;  %v6894_v51 = vsel %vm20049_vm5, %v13518_v13, %v13519_v9  ;;  %v10515_v13 = vld [vmem:[%s19649_s3 + $0xb8] sm:$0xff]  ;;  %vm20062_vm5 = vmmov %vm20058_vm0 }
0x111f   : > { %v13532_v32 = vpop.permute.xlu1 %13531 }
0x1120   : > { %v6869_v21 = vsel %vm20048_vm14, %v13523_v61, %v13524_v10  ;;  %v12003_v59 = vpack.c.bf16 %v13524_v10, %v13514_v20  ;;  %v13534_v31 = vunpack.i.h.bf16 %v13532_v32  ;;  %v13533_v2 = vunpack.i.l.bf16 %v13532_v32  ;;  %v10512_v10 = vld [vmem:[%s19649_s3 + $0xa0] sm:$0xff]  ;;  %v10513_v61 = vld [vmem:[%s19649_s3 + $0xa8] sm:$0xff]  ;;  %vm20061_vm14 = vmmov %vm20058_vm0 }
0x1121   : > { %v13527_v30 = vpop.permute.xlu0 %13526  ;;  %v12005_v6 = vpack.c.bf16 %v6869_v21, %v6868_v60 }
0x1122   : > { %v13529_v14 = vunpack.i.h.bf16 %v13527_v30  ;;  %v13528_v50 = vunpack.i.l.bf16 %v13527_v30  ;;  %12004 = vmatprep.subr.bf16.mxu1 %v12003_v59  ;;  %v6896_v58 = vsel %vm20051_vm4, %v13533_v2, %v13534_v31  ;;  %vm20064_vm4 = vmmov %vm20058_vm0 }
0x1123   : > { %12006 = vmatpush1.bf16.msra.mxu1 %v12005_v6 }
0x1124   : > { %v6895_v49 = vsel %vm20050_vm7, %v13528_v50, %v13529_v14  ;;  %v12007_v16 = vpack.c.bf16 %v13529_v14, %v13519_v9  ;;  %v10514_v9 = vld [vmem:[%s19649_s3 + $0xb0] sm:$0xff]  ;;  %vm20063_vm7 = vmmov %vm20058_vm0 }
0x1125   : > { %v13537_v23 = vpop.permute.xlu0 %13536  ;;  %v12009_v62 = vpack.c.bf16 %v6895_v49, %v6894_v51 }
0x1126   : > { %v13539_v19 = vunpack.i.h.bf16 %v13537_v23  ;;  %v13538_v34 = vunpack.i.l.bf16 %v13537_v23  ;;  %12008 = vmatprep.subr.bf16.mxu1 %v12007_v16 }
0x1127   : > { %12010 = vmatpush1.bf16.msra.mxu1 %v12009_v62 }
0x1128   : > { %v6897_v20 = vsel %vm20052_vm6, %v13538_v34, %v13539_v19  ;;  %v12011_v38 = vpack.c.bf16 %v13539_v19, %v13534_v31 }
0x1129   : > { %v12013_v43 = vpack.c.bf16 %v6897_v20, %v6896_v58 }
0x112a   : > { %12012 = vmatprep.subr.bf16.mxu1 %v12011_v38 }
0x112b   : > { %12014 = vmatpush1.bf16.msra.mxu1 %v12013_v43 }
0x112e   : > { %10532 = vmatmul.mubr.msk.f32.vlgmr.msra.gmra.mrb[98].mxu1 %vm20053_vm2, %v10512_v10  ;;  %vm20069_vm2 = vcmask 1031168  }
0x112f   : > { %7008 = vmatprep.mubr.f32.mxu1 %v19809_v26 }
0x1130   : > { %v6909_v60 = vpop.permute.xlu1 %6908 }
0x1132   : > { %10533 = vmatmul.mubr.msk.f32.gmra.mrb[100].mxu1 %vm20054_vm3, %v10513_v61  ;;  %vm20070_vm3 = vmmov %vm20069_vm2 }
0x1133   : > { %7014 = vmatprep.mubr.f32.mxu1 %v19809_v26 }
0x1134   : > { %v6919_v23 = vpop.permute.xlu1 %6918 }
0x1136   : > { %10534 = vmatmul.mubr.msk.f32.gmra.mrb[102].mxu1 %vm20055_vm15, %v10514_v9  ;;  %v6914_v14 = vpop.permute.xlu0 %6913  ;;  %vm20071_vm15 = vmmov %vm20069_vm2 }
0x1137   : > { %7020 = vmatprep.mubr.f32.mxu1 %v19809_v26 }
0x113a   : > { %10535 = vmatmul.mubr.msk.f32.gmra.mrb[104].mxu1 %vm20056_vm12, %v10515_v13  ;;  %v6924_v43 = vpop.permute.xlu0 %6923  ;;  %vm20072_vm12 = vmmov %vm20069_vm2 }
0x113b   : > { %7305 = vmatprep.mubr.f32.mxu1 %v19809_v26 }
0x1201   : > { %v7004_v21 = vpop.f32.mrb[98].mxu1 }
0x1202   : > { %v7005_v59 = vadd.f32 %v7004_v21, %v6909_v60  ;;  %v7006_v30 = vpop.f32.mrb[99].mxu1 }
0x1203   : > { %v7007_v32 = vadd.f32 %v7006_v30, %v6909_v60 }
0x1204   : > { %v10536_v6 = vmul.f32 -1.442695, %v7005_v59 }
0x1205   : > { %v10537_v50 = vmul.f32 -1.442695, %v7007_v32  ;;  %v7010_v51 = vpop.f32.mrb[100].mxu1 }
0x1206   : > { %14318 = vpow2.f32 %v10536_v6  ;;  %v7011_v49 = vadd.f32 %v7010_v51, %v6914_v14  ;;  %v7012_v31 = vpop.f32.mrb[101].mxu1 }
0x1207   : > { %14320 = vpow2.f32 %v10537_v50  ;;  %v7013_v2 = vadd.f32 %v7012_v31, %v6914_v14 }
0x1208   : > { %v10538_v16 = vmul.f32 -1.442695, %v7011_v49 }
0x1209   : > { %v10539_v62 = vmul.f32 -1.442695, %v7013_v2  ;;  %v7016_v19 = vpop.f32.mrb[102].mxu1 }
0x120a   : > { %14322 = vpow2.f32 %v10538_v16  ;;  %v7017_v34 = vadd.f32 %v7016_v19, %v6919_v23  ;;  %v7018_v58 = vpop.f32.mrb[103].mxu1 }
0x120b   : > { %14324 = vpow2.f32 %v10539_v62  ;;  %v7019_v20 = vadd.f32 %v7018_v58, %v6919_v23 }
0x120c   : > { %v10540_v38 = vmul.f32 -1.442695, %v7017_v34 }
0x120d   : > { %v10541_v10 = vmul.f32 -1.442695, %v7019_v20  ;;  %v7022_v61 = vpop.f32.mrb[104].mxu1 }
0x120e   : > { %14326 = vpow2.f32 %v10540_v38  ;;  %v7023_v9 = vadd.f32 %v7022_v61, %v6924_v43  ;;  %v7024_v13 = vpop.f32.mrb[105].mxu1 }
0x120f   : > { %14328 = vpow2.f32 %v10541_v10  ;;  %v7025_v60 = vadd.f32 %v7024_v13, %v6924_v43 }
0x1210   : > { %v14319_v21 = vpop.eup %14318  ;;  %v10542_v30 = vmul.f32 -1.442695, %v7023_v9 }
0x1211   : > { %v14321_v6 = vpop.eup %14320  ;;  %v7051_v14 = vadd.f32 1.0, %v14319_v21  ;;  %v10543_v50 = vmul.f32 -1.442695, %v7025_v60 }
0x1212   : > { %v7052_v51 = vadd.f32 1.0, %v14321_v6  ;;  %14330 = vpow2.f32 %v10542_v30 }
0x1213   : > { %14332 = vrcp.f32 %v7051_v14 }
0x1214   : > { %v14323_v31 = vpop.eup %14322  ;;  %14334 = vrcp.f32 %v7052_v51 }
0x1215   : > { %v14325_v16 = vpop.eup %14324  ;;  %v7053_v23 = vadd.f32 1.0, %v14323_v31  ;;  %14336 = vpow2.f32 %v10543_v50 }
0x1216   : > { %v7054_v62 = vadd.f32 1.0, %v14325_v16 }
0x1217   : > { %14338 = vrcp.f32 %v7053_v23 }
0x1218   : > { %v14327_v19 = vpop.eup %14326  ;;  %14340 = vrcp.f32 %v7054_v62 }
0x1219   : > { %v14329_v58 = vpop.eup %14328  ;;  %v7055_v38 = vadd.f32 1.0, %v14327_v19 }
0x121a   : > { %v7056_v43 = vadd.f32 1.0, %v14329_v58 }
0x121b   : > { %14342 = vrcp.f32 %v7055_v38 }
0x121c   : > { %v14331_v10 = vpop.eup %14330  ;;  %14344 = vrcp.f32 %v7056_v43 }
0x121d   : > { %v14333_v61 = vpop.eup %14332  ;;  %v7057_v13 = vadd.f32 1.0, %v14331_v10 }
0x121e   : > { %v14335_v21 = vpop.eup %14334  ;;  %v7075_v30 = vmul.f32 %v14333_v61, %v7005_v59 }
0x121f   : > { %v14337_v6 = vpop.eup %14336  ;;  %v7076_v14 = vmul.f32 %v14335_v21, %v7007_v32  ;;  %14346 = vrcp.f32 %v7057_v13 }
0x1220   : > { %v7083_v51 = vadd.f32 %v7075_v30, %v18738_v25  ;;  %v7058_v50 = vadd.f32 1.0, %v14337_v6 }
0x1221   : > { %v14339_v31 = vpop.eup %14338  ;;  %v7084_v16 = vadd.f32 %v7076_v14, %v18741_v48 }
0x1222   : > { %v14341_v23 = vpop.eup %14340  ;;  %v7077_v62 = vmul.f32 %v14339_v31, %v7011_v49  ;;  %14348 = vrcp.f32 %v7058_v50 }
0x1223   : > { %v13540_v19 = vpack.i.bf16 %v7084_v16, %v7083_v51  ;;  %v7078_v58 = vmul.f32 %v14341_v23, %v7013_v2 }
0x1224   : > { %v7085_v38 = vadd.f32 %v7077_v62, %v18746_v57 }
0x1225   : > { %v14343_v43 = vpop.eup %14342  ;;  %v7086_v10 = vadd.f32 %v7078_v58, %v18749_v1  ;;  %13541 = vrot.lane.b32.xlu1 %v13540_v19, %s14454_s15 }
0x1226   : > { %v14345_v59 = vpop.eup %14344  ;;  %v7079_v32 = vmul.f32 %v14343_v43, %v7017_v34 }
0x1227   : > { %v13545_v61 = vpack.i.bf16 %v7086_v10, %v7085_v38  ;;  %v7080_v25 = vmul.f32 %v14345_v59, %v7019_v20 }
0x1228   : > { %v7087_v13 = vadd.f32 %v7079_v32, %v18755_v52 }
0x1229   : > { %v14347_v21 = vpop.eup %14346  ;;  %v7088_v48 = vadd.f32 %v7080_v25, %v18758_v18  ;;  %13546 = vrot.lane.b32.xlu0 %v13545_v61, %s14454_s15 }
0x122a   : > { %v7081_v49 = vmul.f32 %v14347_v21, %v7023_v9 }
0x122b   : > { %v13550_v2 = vpack.i.bf16 %v7088_v48, %v7087_v13 }
0x122c   : > { %v14349_v30 = vpop.eup %14348  ;;  %v7089_v57 = vadd.f32 %v7081_v49, %v18764_v11 }
0x122d   : > { %v7082_v6 = vmul.f32 %v14349_v30, %v7025_v60  ;;  %13551 = vrot.lane.b32.xlu1 %v13550_v2, %s14454_s15 }
0x122f   : > { %v7090_v1 = vadd.f32 %v7082_v6, %v18768_v29 }
0x1231   : > { %v13555_v34 = vpack.i.bf16 %v7090_v1, %v7089_v57 }
0x1233   : > { %13556 = vrot.lane.b32.xlu0 %v13555_v34, %s14454_s15  ;;  %v10548_v34 = vld [vmem:[%s19652_s6 + $0x20] sm:$0xff] }
0x1297   : > { %v13542_v20 = vpop.permute.xlu1 %13541 }
0x1298   : > { %v13544_v52 = vunpack.i.h.bf16 %v13542_v20  ;;  %v13543_v14 = vunpack.i.l.bf16 %v13542_v20  ;;  %v10550_v20 = vld [vmem:[%s19652_s6 + $0x30] sm:$0xff] }
0x129a   : > { %v7115_v18 = vsel %vm20057_vm11, %v13543_v14, %v13544_v52  ;;  %v7127_v51 = vsel %vm20058_vm0, 0.0, %v13543_v14 }
0x129b   : > { %v13547_v9 = vpop.permute.xlu0 %13546  ;;  %v7131_v50 = vsel %vm6219_vm10, %v7115_v18, 0.0 }
0x129c   : > { %v13549_v31 = vunpack.i.h.bf16 %v13547_v9  ;;  %v13548_v11 = vunpack.i.l.bf16 %v13547_v9  ;;  %v13560_v60 = vpack.i.bf16 %v7131_v50, %v7127_v51 }
0x129e   : > { %v7116_v16 = vsel %vm20059_vm8, %v13548_v11, %v13549_v31  ;;  %v7128_v29 = vsel %vm20060_vm1, 0.0, %v13548_v11  ;;  %13561 = vrot.lane.b32.xlu1 %v13560_v60, %s14455_s16  ;;  %v12018_v58 = vpack.c.bf16 %v13548_v11, %v13543_v14 }
0x129f   : > { %v13552_v23 = vpop.permute.xlu1 %13551  ;;  %v12015_v62 = vpack.c.bf16 %v7116_v16, %v7115_v18  ;;  %v7132_v19 = vsel %vm6219_vm10, %v7116_v16, 0.0 }
0x12a0   : > { %v13554_v38 = vunpack.i.h.bf16 %v13552_v23  ;;  %v13553_v43 = vunpack.i.l.bf16 %v13552_v23  ;;  %v13565_v10 = vpack.i.bf16 %v7132_v19, %v7128_v29 }
0x12a1   : > { %12017 = vmatprep.subr.msk.bf16.mxu1 %vm18561_vm13, %v12015_v62 }
0x12a2   : > { %v7117_v59 = vsel %vm20061_vm14, %v13553_v43, %v13554_v38  ;;  %v7129_v32 = vsel %vm20062_vm5, 0.0, %v13553_v43  ;;  %13566 = vrot.lane.b32.xlu0 %v13565_v10, %s14455_s16  ;;  %12020 = vmatpush1.bf16.msk.msra.mxu1 %vm14884_vm9, %v12018_v58  ;;  %vm20073_vm5 = vcmask 785408  }
0x12a3   : > { %v7133_v61 = vsel %vm6219_vm10, %v7117_v59, 0.0 }
0x12a4   : > { %v13570_v25 = vpack.i.bf16 %v7133_v61, %v7129_v32 }
0x12a5   : > { %v13557_v13 = vpop.permute.xlu0 %13556 }
0x12a6   : > { %v13559_v21 = vunpack.i.h.bf16 %v13557_v13  ;;  %v13558_v48 = vunpack.i.l.bf16 %v13557_v13  ;;  %13571 = vrot.lane.b32.xlu1 %v13570_v25, %s14455_s16 }
0x12a8   : > { %v7118_v49 = vsel %vm20063_vm7, %v13558_v48, %v13559_v21  ;;  %v7130_v2 = vsel %vm20064_vm4, 0.0, %v13558_v48  ;;  %v12024_v6 = vpack.c.bf16 %v13558_v48, %v13553_v43 }
0x12a9   : > { %v12021_v30 = vpack.c.bf16 %v7118_v49, %v7117_v59  ;;  %v7134_v57 = vsel %vm6219_vm10, %v7118_v49, 0.0 }
0x12aa   : > { %v13580_v1 = vpack.i.bf16 %v7134_v57, %v7130_v2  ;;  %13576 = vrot.lane.b32.xlu1 %v13560_v60, %s14457_s17 }
0x12ab   : > { %12023 = vmatprep.subr.msk.bf16.mxu1 %vm18561_vm13, %v12021_v30 }
0x12ac   : > { %13581 = vrot.lane.b32.xlu0 %v13580_v1, %s14455_s16  ;;  %12026 = vmatpush1.bf16.msk.msra.mxu1 %vm14884_vm9, %v12024_v6  ;;  %vm20065_vm9 = vcmask 1039360  }
0x12ad   : > { %vm20066_vm10 = vmmov %vm20065_vm9 }
0x12ae   : > { %13591 = vrot.lane.b32.xlu1 %v13570_v25, %s14457_s17  ;;  %vm20067_vm13 = vmmov %vm20065_vm9 }
0x12af   : > { %vm20068_vm6 = vmmov %vm20065_vm9 }
0x12b0   : > { %13586 = vrot.lane.b32.xlu0 %v13565_v10, %s14457_s17 }
0x12b2   : > { %7211 = vperm.xlu1 %12399, %v10548_v34  }
0x12b4   : > { %13596 = vrot.lane.b32.xlu0 %v13580_v1, %s14457_s17 }
0x12b6   : > { %7221 = vperm.xlu1 %12399, %v10550_v20  }
0x12b8   : > { %7216 = vperm.xlu0 %12398, %v10549_v55  }
0x12bc   : > { %7226 = vperm.xlu0 %12398, %v10551_v56   ;;  %v18906_v56 = vmul.u32 5, %v17719_v44 }
0x12be   : > { %vm7331_vm11 = vcmp.eq.s32.totalorder %v19979_v40, %v18906_v56  ;;  %vm7332_vm0 = vcmp.eq.s32.totalorder %v17741_v15, %v18906_v56  ;;  %vm7333_vm1 = vcmp.eq.s32.totalorder %v17763_v24, %v18906_v56  ;;  %vm7334_vm14 = vcmp.eq.s32.totalorder %v17766_v35, %v18906_v56 }
0x12bf   : > { %vm12044_vm8 = vmpackc.low %vm7332_vm0, %vm7331_vm11  ;;  %vm7335_vm4 = vcmp.eq.s32.totalorder %v17793_v22, %v18906_v56  ;;  %vm7340_vm11 = vcmp.eq.s32.totalorder %v17869_v7, %v18906_v56 }
0x12c0   : > { %vm12047_vm7 = vmpackc.low %vm7334_vm14, %vm7333_vm1  ;;  %vm7341_vm1 = vcmp.eq.s32.totalorder %v17888_v36, %v18906_v56  ;;  %vm7342_vm14 = vcmp.eq.s32.totalorder %v17891_v5, %v18906_v56 }
0x1310   : > { %v13562_v52 = vpop.permute.xlu1 %13561 }
0x1311   : > { %v13564_v14 = vunpack.i.h.bf16 %v13562_v52  ;;  %v13563_v18 = vunpack.i.l.bf16 %v13562_v52 }
0x1313   : > { %v7169_v31 = vsel %vm20065_vm9, %v13563_v18, %v13564_v14  ;;  %vm7336_vm9 = vcmp.eq.s32.totalorder %v17796_v0, %v18906_v56 }
0x1314   : > { %v13567_v51 = vpop.permute.xlu0 %13566 }
0x1315   : > { %v13569_v9 = vunpack.i.h.bf16 %v13567_v51  ;;  %v13568_v50 = vunpack.i.l.bf16 %v13567_v51 }
0x1317   : > { %v7170_v11 = vsel %vm20066_vm10, %v13568_v50, %v13569_v9  ;;  %v12027_v60 = vpack.c.bf16 %v13569_v9, %v13564_v14  ;;  %vm20075_vm10 = vmmov %vm20073_vm5 }
0x1318   : > { %v13572_v16 = vpop.permute.xlu1 %13571  ;;  %v12029_v29 = vpack.c.bf16 %v7170_v11, %v7169_v31  ;;  %v10544_v31 = vld [vmem:[%s19651_s5 + $0x20] sm:$0xff]  ;;  %v14464_v11 = vmov 0.0|0.0  }
0x1319   : > { %12028 = vmatprep.subr.bf16.mxu1 %v12027_v60  ;;  %v13574_v62 = vunpack.i.h.bf16 %v13572_v16  ;;  %v13573_v19 = vunpack.i.l.bf16 %v13572_v16  ;;  %v10545_v60 = vld [vmem:[%s19651_s5 + $0x28] sm:$0xff]  ;;  %v20074_v16 = vmov 1.0|1.0  }
0x131a   : > { %12030 = vmatpush1.bf16.msra.mxu1 %v12029_v29  ;;  %v10546_v29 = vld [vmem:[%s19651_s5 + $0x30] sm:$0xff] }
0x131b   : > { %v7171_v32 = vsel %vm20067_vm13, %v13573_v19, %v13574_v62  ;;  %vm12050_vm13 = vmpackc.low %vm7336_vm9, %vm7335_vm4  ;;  %vm7344_vm4 = vcmp.eq.s32.totalorder %v17917_v12, %v18906_v56 }
0x131c   : > { %v13577_v23 = vpop.permute.xlu1 %13576 }
0x131d   : > { %v13579_v10 = vunpack.i.h.bf16 %v13577_v23  ;;  %v13578_v59 = vunpack.i.l.bf16 %v13577_v23  ;;  %v10547_v23 = vld [vmem:[%s19651_s5 + $0x38] sm:$0xff] }
0x131e   : > { %v13582_v58 = vpop.permute.xlu0 %13581 }
0x131f   : > { %v13584_v38 = vunpack.i.h.bf16 %v13582_v58  ;;  %v13583_v43 = vunpack.i.l.bf16 %v13582_v58  ;;  %v7197_v30 = vsel %vm20069_vm2, %v13578_v59, %v13579_v10  ;;  %vm7338_vm2 = vcmp.eq.s32.totalorder %v17832_v46, %v18906_v56  ;;  %v20079_v46 = vld [vmem:[#allocation22_spill] sm:$0xff] }
0x1320   : > { %v13592_v21 = vpop.permute.xlu1 %13591 }
0x1321   : > { %v7172_v61 = vsel %vm20068_vm6, %v13583_v43, %v13584_v38  ;;  %v12031_v25 = vpack.c.bf16 %v13584_v38, %v13574_v62  ;;  %v13594_v1 = vunpack.i.h.bf16 %v13592_v21  ;;  %v13593_v34 = vunpack.i.l.bf16 %v13592_v21 }
0x1322   : > { %v13587_v13 = vpop.permute.xlu0 %13586  ;;  %v12033_v48 = vpack.c.bf16 %v7172_v61, %v7171_v32  ;;  %vm7337_vm6 = vcmp.eq.s32.totalorder %v17829_v47, %v18906_v56  ;;  %v20078_v47 = vld [vmem:[#allocation23_spill] sm:$0xff] }
0x1323   : > { %v13589_v49 = vunpack.i.h.bf16 %v13587_v13  ;;  %v13588_v2 = vunpack.i.l.bf16 %v13587_v13  ;;  %12032 = vmatprep.subr.bf16.mxu1 %v12031_v25  ;;  %v7199_v18 = vsel %vm20071_vm15, %v13593_v34, %v13594_v1  ;;  %vm12053_vm15 = vmpackc.low %vm7338_vm2, %vm7337_vm6  ;;  %vm7347_vm2 = vcmp.eq.s32.totalorder %v17952_v42, %v18906_v56 }
0x1324   : > { %12034 = vmatpush1.bf16.msra.mxu1 %v12033_v48 }
0x1325   : > { %v7198_v57 = vsel %vm20070_vm3, %v13588_v2, %v13589_v49  ;;  %v12035_v6 = vpack.c.bf16 %v13589_v49, %v13579_v10  ;;  %vm20076_vm3 = vmmov %vm20073_vm5 }
0x1326   : > { %v12037_v20 = vpack.c.bf16 %v7198_v57, %v7197_v30  ;;  %v13597_v55 = vpop.permute.xlu0 %13596  ;;  %vm20077_vm0 = vmmov %vm20076_vm3 }
0x1327   : > { %v13599_v52 = vunpack.i.h.bf16 %v13597_v55  ;;  %v13598_v14 = vunpack.i.l.bf16 %v13597_v55  ;;  %12036 = vmatprep.subr.bf16.mxu1 %v12035_v6  ;;  %v10697_v6 = vld [vmem:[%s19652_s6 + $0x48] sm:$0xff] }
0x1328   : > { %12038 = vmatpush1.bf16.msra.mxu1 %v12037_v20 }
0x1329   : > { %v7200_v51 = vsel %vm20072_vm12, %v13598_v14, %v13599_v52  ;;  %v12039_v9 = vpack.c.bf16 %v13599_v52, %v13594_v1  ;;  %vm7339_vm12 = vcmp.eq.s32.totalorder %v17866_v37, %v18906_v56  ;;  %v20080_v37 = vld [vmem:[#allocation29_spill] sm:$0xff] }
0x132a   : > { %v12041_v50 = vpack.c.bf16 %v7200_v51, %v7199_v18 }
0x132b   : > { %12040 = vmatprep.subr.bf16.mxu1 %v12039_v9 }
0x132c   : > { %12042 = vmatpush1.bf16.msra.mxu1 %v12041_v50 }
0x132d   : > { %12043 = vmatprep.subr.bf16.mxu1 %v14464_v11 }
0x132f   : > { %10564 = vmatmul.mubr.msk.f32.vlgmr.msra.gmra.mrb[106].mxu1 %vm20073_vm5, %v10544_v31  ;;  %vm12059_vm5 = vmpackc.low %vm7342_vm14, %vm7341_vm1  ;;  %vm7352_vm1 = vcmp.eq.s32.totalorder %v17990_v33, %v18906_v56 }
0x1330   : > { %7311 = vmatprep.mubr.f32.mxu1 %v19809_v26  ;;  %12045 = vmatpush1.bf16.msk.msra.mxu1 %vm12044_vm8, %v20074_v16  ;;  %vm12056_vm8 = vmpackc.low %vm7340_vm11, %vm7339_vm12  ;;  %vm7349_vm12 = vcmp.eq.s32.totalorder %v17970_v8, %v18906_v56  ;;  %vm7350_vm11 = vcmp.eq.s32.totalorder %v17973_v17, %v18906_v56 }
0x1331   : > { %12046 = vmatprep.subr.bf16.mxu1 %v14464_v11  ;;  %v7212_v36 = vpop.permute.xlu1 %7211 }
0x1333   : > { %10565 = vmatmul.mubr.msk.f32.gmra.mrb[108].mxu1 %vm20075_vm10, %v10545_v60  ;;  %vm7345_vm10 = vcmp.eq.s32.totalorder %v17933_v53, %v18906_v56 }
0x1334   : > { %7317 = vmatprep.mubr.f32.mxu1 %v19809_v26  ;;  %12048 = vmatpush1.bf16.msk.msra.mxu1 %vm12047_vm7, %v20074_v16  ;;  %vm7343_vm7 = vcmp.eq.s32.totalorder %v17914_v39, %v18906_v56 }
0x1335   : > { %12049 = vmatprep.subr.bf16.mxu1 %v14464_v11  ;;  %vm12062_vm9 = vmpackc.low %vm7344_vm4, %vm7343_vm7  ;;  %vm7354_vm7 = vcmp.eq.s32.totalorder %v18006_v41, %v18906_v56 }
0x1337   : > { %10566 = vmatmul.mubr.msk.f32.gmra.mrb[110].mxu1 %vm20076_vm3, %v10546_v29  ;;  %vm7348_vm3 = vcmp.eq.s32.totalorder %v17955_v54, %v18906_v56  ;;  %v10638_v29 = vld [vmem:[%s19650_s4 + $0xd0] sm:$0xff] }
0x1338   : > { %7323 = vmatprep.mubr.f32.mxu1 %v19809_v26  ;;  %12051 = vmatpush1.bf16.msk.msra.mxu1 %vm12050_vm13, %v20074_v16  ;;  %vm7346_vm13 = vcmp.eq.s32.totalorder %v17936_v27, %v18906_v56  ;;  %v7217_v27 = vpop.permute.xlu0 %7216 }
0x1339   : > { %12052 = vmatprep.subr.bf16.mxu1 %v14464_v11  ;;  %vm12065_vm6 = vmpackc.low %vm7346_vm13, %vm7345_vm10  ;;  %vm7356_vm10 = vcmp.eq.s32.totalorder %v18022_v3, %v18906_v56 }
0x133b   : > { %10567 = vmatmul.mubr.msk.f32.gmra.mrb[112].mxu1 %vm20077_vm0, %v10547_v23  ;;  %vm12071_vm0 = vmpackc.low %vm7350_vm11, %vm7349_vm12  ;;  %vm7360_vm12 = vcmp.eq.s32.totalorder %v20080_v37, %v18906_v56  ;;  %v10632_v23 = vld [vmem:[%s19649_s3 + $0xc0] sm:$0xff] }
0x133c   : > { %12054 = vmatpush1.bf16.msk.msra.mxu1 %vm12053_vm15, %v20074_v16  ;;  %vm12068_vm15 = vmpackc.low %vm7348_vm3, %vm7347_vm2  ;;  %vm7358_vm2 = vcmp.eq.s32.totalorder %v20078_v47, %v18906_v56  ;;  %v7227_v3 = vpop.permute.xlu0 %7226  ;;  %v10637_v47 = vld [vmem:[%s19650_s4 + $0xc8] sm:$0xff] }
0x133d   : > { %12055 = vmatprep.subr.bf16.mxu1 %v14464_v11 }
0x1340   : > { %12057 = vmatpush1.bf16.msk.msra.mxu1 %vm12056_vm8, %v20074_v16  ;;  %vm7351_vm8 = vcmp.eq.s32.totalorder %v17987_v45, %v18906_v56  ;;  %v7222_v45 = vpop.permute.xlu1 %7221 }
0x1341   : > { %12058 = vmatprep.subr.bf16.mxu1 %v14464_v11  ;;  %vm12074_vm14 = vmpackc.low %vm7352_vm1, %vm7351_vm8  ;;  %vm7539_vm8 = vcmask 400384   ;;  %vm20081_vm1 = vcmask 7168  }
0x1344   : > { %12060 = vmatpush1.bf16.msk.msra.mxu1 %vm12059_vm5, %v20074_v16  ;;  %vm7353_vm5 = vcmp.eq.s32.totalorder %v18003_v28, %v18906_v56 }
0x1345   : > { %12061 = vmatprep.subr.bf16.mxu1 %v14464_v11  ;;  %vm12077_vm4 = vmpackc.low %vm7354_vm7, %vm7353_vm5 }
0x1346   : > { %vm19041_vm5 = vmpackc.low %vm7539_vm8, %vm7539_vm8 }
0x1347   : > { %vm20085_vm7 = vmmov %vm20081_vm1 }
0x1348   : > { %12063 = vmatpush1.bf16.msk.msra.mxu1 %vm12062_vm9, %v20074_v16  ;;  %vm7355_vm9 = vcmp.eq.s32.totalorder %v18019_v63, %v18906_v56 }
0x1349   : > { %12064 = vmatprep.subr.bf16.mxu1 %v14464_v11  ;;  %vm12080_vm13 = vmpackc.low %vm7356_vm10, %vm7355_vm9  ;;  %vm20087_vm9 = vcmask 785408  }
0x134a   : > { %vm20088_vm10 = vmmov %vm20087_vm9 }
0x134c   : > { %12066 = vmatpush1.bf16.msk.msra.mxu1 %vm12065_vm6, %v20074_v16  ;;  %vm7357_vm6 = vcmp.eq.s32.totalorder %v18035_v4, %v18906_v56 }
0x134d   : > { %12067 = vmatprep.subr.bf16.mxu1 %v14464_v11  ;;  %vm12083_vm3 = vmpackc.low %vm7358_vm2, %vm7357_vm6  ;;  %vm7751_vm2 = vcmask 408576  }
0x134e   : > { %vm20090_vm6 = vmmov %vm20087_vm9 }
0x1350   : > { %12069 = vmatpush1.bf16.msk.msra.mxu1 %vm12068_vm15, %v20074_v16  ;;  %vm7359_vm15 = vcmp.eq.s32.totalorder %v20079_v46, %v18906_v56  ;;  %v10639_v46 = vld [vmem:[%s19650_s4 + $0xd8] sm:$0xff] }
0x1351   : > { %12070 = vmatprep.subr.bf16.mxu1 %v14464_v11  ;;  %vm12086_vm11 = vmpackc.low %vm7360_vm12, %vm7359_vm15 }
0x1352   : > { %vm19113_vm12 = vmpackc.low %vm7751_vm2, %vm7751_vm2 }
0x1354   : > { %12072 = vmatpush1.bf16.msk.msra.mxu1 %vm12071_vm0, %v20074_v16  ;;  %vm7421_vm0 = vcmask 916480  }
0x1355   : > { %12073 = vmatprep.subr.bf16.mxu1 %v14464_v11 }
0x1358   : > { %12075 = vmatpush1.bf16.msk.msra.mxu1 %vm12074_vm14, %v20074_v16  ;;  %vm20082_vm14 = vmmov %vm20081_vm1 }
0x1359   : > { %12076 = vmatprep.subr.bf16.mxu1 %v14464_v11 }
0x135c   : > { %12078 = vmatpush1.bf16.msk.msra.mxu1 %vm12077_vm4, %v20074_v16  ;;  %vm20086_vm4 = vmmov %vm20081_vm1 }
0x135d   : > { %12079 = vmatprep.subr.bf16.mxu1 %v14464_v11 }
0x1360   : > { %12081 = vmatpush1.bf16.msk.msra.mxu1 %vm12080_vm13, %v20074_v16  ;;  %vm20089_vm13 = vmmov %vm20087_vm9 }
0x1361   : > { %12082 = vmatprep.subr.bf16.mxu1 %v14464_v11 }
0x1364   : > { %12084 = vmatpush1.bf16.msk.msra.mxu1 %vm12083_vm3, %v20074_v16  ;;  %vm20091_vm3 = vcmask 15360  }
0x1365   : > { %12085 = vmatprep.subr.bf16.mxu1 %v14464_v11  ;;  %v10636_v11 = vld [vmem:[%s19650_s4 + $0xc0] sm:$0xff]  ;;  %vm20092_vm15 = vmmov %vm20091_vm3 }
0x1368   : > { %12087 = vmatpush1.bf16.msk.msra.mxu1 %vm12086_vm11, %v20074_v16  ;;  %vm20095_vm11 = vmmov %vm20091_vm3 }
0x1402   : > { %v7307_v7 = vpop.f32.mrb[106].mxu1 }
0x1403   : > { %v7309_v5 = vpop.f32.mrb[107].mxu1  ;;  %v7308_v12 = vadd.f32 %v7307_v7, %v7212_v36 }
0x1404   : > { %v7310_v39 = vadd.f32 %v7309_v5, %v7212_v36 }
0x1406   : > { %v7313_v53 = vpop.f32.mrb[108].mxu1  ;;  %10628 = vmatprep.mubr.msk.f32.mxu1 %vm7421_vm0, %v7310_v39 }
0x1407   : > { %v7315_v42 = vpop.f32.mrb[109].mxu1  ;;  %7499 = vmatmul.mubr.f32.vlgmr.msra.gmra.mrb[114].mxu1 %v7308_v12  ;;  %v7314_v8 = vadd.f32 %v7313_v53, %v7217_v27 }
0x1408   : > { %v7316_v54 = vadd.f32 %v7315_v42, %v7217_v27 }
0x140a   : > { %v7319_v17 = vpop.f32.mrb[110].mxu1  ;;  %10629 = vmatprep.mubr.msk.f32.mxu1 %vm7421_vm0, %v7316_v54 }
0x140b   : > { %v7321_v33 = vpop.f32.mrb[111].mxu1  ;;  %7504 = vmatmul.mubr.f32.gmra.mrb[116].mxu1 %v7314_v8  ;;  %v7320_v41 = vadd.f32 %v7319_v17, %v7222_v45 }
0x140c   : > { %v7322_v28 = vadd.f32 %v7321_v33, %v7222_v45 }
0x140e   : > { %v7325_v63 = vpop.f32.mrb[112].mxu1  ;;  %10630 = vmatprep.mubr.msk.f32.mxu1 %vm7421_vm0, %v7322_v28 }
0x140f   : > { %v7327_v4 = vpop.f32.mrb[113].mxu1  ;;  %7509 = vmatmul.mubr.f32.gmra.mrb[118].mxu1 %v7320_v41  ;;  %v7326_v19 = vadd.f32 %v7325_v63, %v7227_v3  ;;  %v10633_v63 = vld [vmem:[%s19649_s3 + $0xc8] sm:$0xff] }
0x1410   : > { %v7328_v62 = vadd.f32 %v7327_v4, %v7227_v3  ;;  %v10634_v3 = vld [vmem:[%s19649_s3 + $0xd0] sm:$0xff]  ;;  %v10635_v4 = vld [vmem:[%s19649_s3 + $0xd8] sm:$0xff] }
0x1412   : > { %10631 = vmatprep.mubr.msk.f32.mxu1 %vm7421_vm0, %v7328_v62  ;;  %vm20096_vm0 = vmmov %vm20091_vm3 }
0x1413   : > { %7514 = vmatmul.mubr.f32.gmra.mrb[120].mxu1 %v7326_v19 }
0x1414   : > { %11011 = vmatprep.mubr.msk.f32.mxu1 %vm20087_vm9, %v10632_v23  ;;  %vm7963_vm9 = vcmask 424960  }
0x14da   : > { %v19023_v58 = vpop.f32.mrb[114].mxu1 }
0x14db   : > { %v7502_v38 = vpop.f32.mrb[115].mxu1 }
0x14de   : > { %v19025_v43 = vpop.f32.mrb[116].mxu1 }
0x14df   : > { %v13600_v10 = vpack.i.bf16 %v19025_v43, %v19023_v58  ;;  %v7507_v59 = vpop.f32.mrb[117].mxu1 }
0x14e1   : > { %13601 = vrot.lane.b32.xlu1 %v13600_v10, %s14454_s15 }
0x14e2   : > { %v19030_v32 = vpop.f32.mrb[118].mxu1 }
0x14e3   : > { %v7512_v61 = vpop.f32.mrb[119].mxu1 }
0x14e6   : > { %v19032_v25 = vpop.f32.mrb[120].mxu1 }
0x14e7   : > { %v13605_v13 = vpack.i.bf16 %v19032_v25, %v19030_v32  ;;  %v7517_v21 = vpop.f32.mrb[121].mxu1 }
0x14e9   : > { %13606 = vrot.lane.b32.xlu0 %v13605_v13, %s14454_s15 }
0x1553   : > { %v13602_v48 = vpop.permute.xlu1 %13601 }
0x1554   : > { %v13604_v49 = vunpack.i.h.bf16 %v13602_v48  ;;  %v13603_v2 = vunpack.i.l.bf16 %v13602_v48 }
0x1556   : > { %v7536_v30 = vsel %vm20081_vm1, 0.0, %v13604_v49  ;;  %v7535_v57 = vsel %vm20082_vm14, 0.0, %v13603_v2  ;;  %vm20097_vm1 = vmmov %vm20090_vm6 }
0x1557   : > { %v7541_v1 = vsel %vm7539_vm8, %v7536_v30, 0.0  ;;  %v7540_v34 = vsel %vm7539_vm8, %v7535_v57, 0.0  ;;  %v12088_v20 = vpack.c.bf16 %v7536_v30, %v7535_v57  ;;  %vm20098_vm14 = vmmov %vm20097_vm1 }
0x1558   : > { %v13610_v55 = vpack.i.bf16 %v7541_v1, %v7540_v34 }
0x1559   : > { %12090 = vmatprep.subr.msk.bf16.mxu1 %vm19041_vm5, %v12088_v20 }
0x155a   : > { %12093 = vmatpush3.bf16.msk.msra.mxu1 %vm19041_vm5, %v12088_v20  ;;  %13611 = vrot.lane.b32.xlu1 %v13610_v55, %s14455_s16 }
0x155b   : > { %v13607_v56 = vpop.permute.xlu0 %13606 }
0x155c   : > { %v13609_v52 = vunpack.i.h.bf16 %v13607_v56  ;;  %v13608_v14 = vunpack.i.l.bf16 %v13607_v56 }
0x155e   : > { %v7538_v18 = vsel %vm20085_vm7, 0.0, %v13609_v52  ;;  %v7537_v51 = vsel %vm20086_vm4, 0.0, %v13608_v14  ;;  %13621 = vrot.lane.b32.xlu1 %v13610_v55, %s14457_s17  ;;  %vm20099_vm7 = vmmov %vm20097_vm1 }
0x155f   : > { %v7543_v9 = vsel %vm7539_vm8, %v7538_v18, 0.0  ;;  %v7542_v50 = vsel %vm7539_vm8, %v7537_v51, 0.0  ;;  %v12094_v31 = vpack.c.bf16 %v7538_v18, %v7537_v51  ;;  %vm20100_vm4 = vmmov %vm20097_vm1 }
0x1560   : > { %v13615_v60 = vpack.i.bf16 %v7543_v9, %v7542_v50 }
0x1561   : > { %12096 = vmatprep.subr.msk.bf16.mxu1 %vm19041_vm5, %v12094_v31 }
0x1562   : > { %7584 = vperm.xlu1 %12399, %v10636_v11   ;;  %12099 = vmatpush3.bf16.msk.msra.mxu1 %vm19041_vm5, %v12094_v31 }
0x1563   : > { %13616 = vrot.lane.b32.xlu0 %v13615_v60, %s14455_s16 }
0x1566   : > { %7594 = vperm.xlu1 %12399, %v10638_v29  }
0x1567   : > { %13626 = vrot.lane.b32.xlu0 %v13615_v60, %s14457_s17 }
0x156b   : > { %7589 = vperm.xlu0 %12398, %v10637_v47  }
0x156f   : > { %7599 = vperm.xlu0 %12398, %v10639_v46  }
0x15cc   : > { %v13612_v37 = vpop.permute.xlu1 %13611 }
0x15cd   : > { %v13614_v7 = vunpack.i.h.bf16 %v13612_v37  ;;  %v13613_v36 = vunpack.i.l.bf16 %v13612_v37 }
0x15cf   : > { %v12100_v5 = vpack.c.bf16 %v13614_v7, %v13613_v36 }
0x15d0   : > { %v13622_v39 = vpop.permute.xlu1 %13621 }
0x15d1   : > { %12101 = vmatprep.subr.bf16.mxu1 %v12100_v5  ;;  %v13624_v53 = vunpack.i.h.bf16 %v13622_v39  ;;  %v13623_v27 = vunpack.i.l.bf16 %v13622_v39 }
0x15d2   : > { %12103 = vmatpush3.bf16.msra.mxu1 %v12100_v5 }
0x15d3   : > { %v12108_v45 = vpack.c.bf16 %v13624_v53, %v13623_v27 }
0x15d5   : > { %v13617_v12 = vpop.permute.xlu0 %13616 }
0x15d6   : > { %v13619_v42 = vunpack.i.h.bf16 %v13617_v12  ;;  %v13618_v54 = vunpack.i.l.bf16 %v13617_v12 }
0x15d8   : > { %v12104_v8 = vpack.c.bf16 %v13619_v42, %v13618_v54 }
0x15d9   : > { %v13627_v17 = vpop.permute.xlu0 %13626 }
0x15da   : > { %v13629_v33 = vunpack.i.h.bf16 %v13627_v17  ;;  %v13628_v28 = vunpack.i.l.bf16 %v13627_v17  ;;  %12105 = vmatprep.subr.bf16.mxu1 %v12104_v8 }
0x15db   : > { %12107 = vmatpush3.bf16.msra.mxu1 %v12104_v8 }
0x15dc   : > { %12109 = vmatprep.subr.bf16.mxu1 %v12108_v45  ;;  %v12112_v41 = vpack.c.bf16 %v13629_v33, %v13628_v28 }
0x15df   : > { %12111 = vmatpush3.bf16.msra.mxu1 %v12108_v45 }
0x15e0   : > { %12113 = vmatprep.subr.bf16.mxu1 %v12112_v41 }
0x15e1   : > { %v7585_v19 = vpop.permute.xlu1 %7584 }
0x15e3   : > { %12115 = vmatpush3.bf16.msra.mxu1 %v12112_v41 }
0x15e5   : > { %v7595_v2 = vpop.permute.xlu1 %7594 }
0x15e6   : > { %11012 = vmatmul.mubr.msk.f32.vlgmr.msra.gmra.mrb[122].mxu1 %vm20088_vm10, %v10633_v63  ;;  %vm20101_vm10 = vcmask 31744  }
0x15e7   : > { %11014 = vmatprep.mubr.msk.f32.mxu1 %vm20089_vm13, %v10634_v3  ;;  %vm20102_vm13 = vmmov %vm20101_vm10 }
0x15ea   : > { %11015 = vmatmul.mubr.msk.f32.gmra.mrb[124].mxu1 %vm20090_vm6, %v10635_v4  ;;  %v7590_v62 = vpop.permute.xlu0 %7589  ;;  %vm19185_vm6 = vmpackc.low %vm7963_vm9, %vm7963_vm9 }
0x15ee   : > { %v7600_v21 = vpop.permute.xlu0 %7599 }
0x16b9   : > { %v11013_v38 = vpop.f32.mrb[122].mxu1 }
0x16ba   : > { %v7686_v10 = vadd.f32 %v11013_v38, %v7590_v62  ;;  %v7680_v59 = vpop.f32.mrb[123].mxu1 }
0x16bb   : > { %v7681_v61 = vadd.f32 %v7680_v59, %v7585_v19  ;;  %v10656_v59 = vld [vmem:[%s19650_s4 + $0xe0] sm:$0xff] }
0x16bc   : > { %v10649_v13 = vmul.f32 -1.442695, %v7686_v10 }
0x16bd   : > { %v10648_v48 = vmul.f32 -1.442695, %v7681_v61  ;;  %v11016_v49 = vpop.f32.mrb[124].mxu1 }
0x16be   : > { %14350 = vpow2.f32 %v10649_v13  ;;  %v7696_v30 = vadd.f32 %v11016_v49, %v7600_v21  ;;  %v7690_v57 = vpop.f32.mrb[125].mxu1  ;;  %v10658_v13 = vld [vmem:[%s19650_s4 + $0xf0] sm:$0xff]  ;;  %v10659_v21 = vld [vmem:[%s19650_s4 + $0xf8] sm:$0xff] }
0x16bf   : > { %14352 = vpow2.f32 %v10648_v48  ;;  %v7691_v1 = vadd.f32 %v7690_v57, %v7595_v2 }
0x16c0   : > { %v10651_v34 = vmul.f32 -1.442695, %v7696_v30 }
0x16c1   : > { %v10650_v20 = vmul.f32 -1.442695, %v7691_v1 }
0x16c2   : > { %14354 = vpow2.f32 %v10651_v34 }
0x16c3   : > { %14356 = vpow2.f32 %v10650_v20 }
0x16c8   : > { %v14351_v55 = vpop.eup %14350 }
0x16c9   : > { %v14353_v56 = vpop.eup %14352  ;;  %v7712_v52 = vadd.f32 1.0, %v14351_v55 }
0x16ca   : > { %v7711_v14 = vadd.f32 1.0, %v14353_v56 }
0x16cb   : > { %14358 = vrcp.f32 %v7712_v52 }
0x16cc   : > { %v14355_v18 = vpop.eup %14354  ;;  %14360 = vrcp.f32 %v7711_v14 }
0x16cd   : > { %v14357_v51 = vpop.eup %14356  ;;  %v7714_v9 = vadd.f32 1.0, %v14355_v18 }
0x16ce   : > { %v7713_v50 = vadd.f32 1.0, %v14357_v51 }
0x16cf   : > { %14362 = vrcp.f32 %v7714_v9 }
0x16d0   : > { %14364 = vrcp.f32 %v7713_v50 }
0x16d5   : > { %v14359_v31 = vpop.eup %14358 }
0x16d6   : > { %v14361_v11 = vpop.eup %14360  ;;  %v7724_v60 = vmul.f32 %v14359_v31, %v7686_v10  ;;  %v10652_v10 = vld [vmem:[%s19649_s3 + $0xe0] sm:$0xff]  ;;  %v10653_v31 = vld [vmem:[%s19649_s3 + $0xe8] sm:$0xff] }
0x16d7   : > { %v7723_v29 = vmul.f32 %v14361_v11, %v7681_v61  ;;  %11041 = vmatprep.mubr.msk.f32.mxu1 %vm20097_vm1, %v10652_v10  ;;  %v10657_v61 = vld [vmem:[%s19650_s4 + $0xe8] sm:$0xff]  ;;  %v10654_v11 = vld [vmem:[%s19649_s3 + $0xf0] sm:$0xff] }
0x16d8   : > { %v19092_v23 = vadd.f32 %v7724_v60, %v19025_v43  ;;  %v10655_v60 = vld [vmem:[%s19649_s3 + $0xf8] sm:$0xff] }
0x16d9   : > { %v14363_v47 = vpop.eup %14362  ;;  %v19095_v46 = vadd.f32 %v7723_v29, %v19023_v58 }
0x16da   : > { %v14365_v37 = vpop.eup %14364  ;;  %v7726_v7 = vmul.f32 %v14363_v47, %v7696_v30 }
0x16db   : > { %v13630_v36 = vpack.i.bf16 %v19092_v23, %v19095_v46  ;;  %v7725_v5 = vmul.f32 %v14365_v37, %v7691_v1 }
0x16dc   : > { %v19100_v39 = vadd.f32 %v7726_v7, %v19032_v25 }
0x16dd   : > { %v19103_v12 = vadd.f32 %v7725_v5, %v19030_v32  ;;  %13631 = vrot.lane.b32.xlu1 %v13630_v36, %s14459_s18 }
0x16df   : > { %v13635_v43 = vpack.i.bf16 %v19100_v39, %v19103_v12 }
0x16e1   : > { %13636 = vrot.lane.b32.xlu0 %v13635_v43, %s14459_s18 }
0x174f   : > { %v13632_v58 = vpop.permute.xlu1 %13631 }
0x1750   : > { %v13634_v53 = vunpack.i.h.bf16 %v13632_v58  ;;  %v13633_v27 = vunpack.i.l.bf16 %v13632_v58 }
0x1752   : > { %v7748_v42 = vsel %vm20091_vm3, 0.0, %v13634_v53  ;;  %v7747_v54 = vsel %vm20092_vm15, 0.0, %v13633_v27  ;;  %vm20107_vm15 = vmmov %vm20097_vm1 }
0x1753   : > { %v7753_v25 = vsel %vm7751_vm2, %v7748_v42, 0.0  ;;  %v7752_v8 = vsel %vm7751_vm2, %v7747_v54, 0.0  ;;  %v12116_v17 = vpack.c.bf16 %v7748_v42, %v7747_v54  ;;  %v13637_v45 = vpop.permute.xlu0 %13636 }
0x1754   : > { %v13640_v33 = vpack.i.bf16 %v7753_v25, %v7752_v8  ;;  %v13639_v28 = vunpack.i.h.bf16 %v13637_v45  ;;  %v13638_v41 = vunpack.i.l.bf16 %v13637_v45 }
0x1755   : > { %12118 = vmatprep.subr.msk.bf16.mxu1 %vm19113_vm12, %v12116_v17 }
0x1756   : > { %v7750_v63 = vsel %vm20095_vm11, 0.0, %v13639_v28  ;;  %v7749_v3 = vsel %vm20096_vm0, 0.0, %v13638_v41  ;;  %12121 = vmatpush3.bf16.msk.msra.mxu1 %vm19113_vm12, %v12116_v17  ;;  %13641 = vrot.lane.b32.xlu1 %v13640_v33, %s14457_s17  ;;  %vm20109_vm11 = vmmov %vm20097_vm1 }
0x1757   : > { %v7755_v4 = vsel %vm7751_vm2, %v7750_v63, 0.0  ;;  %v7754_v62 = vsel %vm7751_vm2, %v7749_v3, 0.0  ;;  %v12122_v19 = vpack.c.bf16 %v7750_v63, %v7749_v3  ;;  %vm20105_vm2 = vmmov %vm20101_vm10 }
0x1758   : > { %v13645_v38 = vpack.i.bf16 %v7755_v4, %v7754_v62  ;;  %vm20106_vm3 = vmmov %vm20105_vm2 }
0x1759   : > { %12124 = vmatprep.subr.msk.bf16.mxu1 %vm19113_vm12, %v12122_v19  ;;  %vm20110_vm0 = vmmov %vm20097_vm1 }
0x175a   : > { %13646 = vrot.lane.b32.xlu0 %v13645_v38, %s14457_s17  ;;  %12127 = vmatpush3.bf16.msk.msra.mxu1 %vm19113_vm12, %v12122_v19  ;;  %vm20108_vm12 = vmmov %vm20097_vm1  ;;  %vm20111_vm1 = vcmask 7168  }
0x175b   : > { %13651 = vrot.lane.b32.xlu1 %v13640_v33, %s14460_s19 }
0x175e   : > { %13656 = vrot.lane.b32.xlu0 %v13645_v38, %s14460_s19 }
0x175f   : > { %7796 = vperm.xlu1 %12399, %v10656_v59  }
0x1762   : > { %7801 = vperm.xlu0 %12398, %v10657_v61  }
0x1763   : > { %7806 = vperm.xlu1 %12399, %v10658_v13  }
0x1766   : > { %7811 = vperm.xlu0 %12398, %v10659_v21  }
0x17c8   : > { %v13642_v48 = vpop.permute.xlu1 %13641 }
0x17c9   : > { %v13644_v49 = vunpack.i.h.bf16 %v13642_v48  ;;  %v13643_v2 = vunpack.i.l.bf16 %v13642_v48 }
0x17cb   : > { %v12128_v30 = vpack.c.bf16 %v13644_v49, %v13643_v2 }
0x17cc   : > { %v13647_v57 = vpop.permute.xlu0 %13646 }
0x17cd   : > { %v13649_v1 = vunpack.i.h.bf16 %v13647_v57  ;;  %v13648_v34 = vunpack.i.l.bf16 %v13647_v57  ;;  %v13652_v20 = vpop.permute.xlu1 %13651  ;;  %12129 = vmatprep.subr.bf16.mxu1 %v12128_v30 }
0x17ce   : > { %v13654_v55 = vunpack.i.h.bf16 %v13652_v20  ;;  %v13653_v56 = vunpack.i.l.bf16 %v13652_v20  ;;  %12131 = vmatpush3.bf16.msra.mxu1 %v12128_v30 }
0x17cf   : > { %v12132_v52 = vpack.c.bf16 %v13649_v1, %v13648_v34 }
0x17d0   : > { %v13657_v14 = vpop.permute.xlu0 %13656  ;;  %v12136_v18 = vpack.c.bf16 %v13654_v55, %v13653_v56 }
0x17d1   : > { %v13659_v51 = vunpack.i.h.bf16 %v13657_v14  ;;  %v13658_v9 = vunpack.i.l.bf16 %v13657_v14  ;;  %12133 = vmatprep.subr.bf16.mxu1 %v12132_v52 }
0x17d2   : > { %12135 = vmatpush3.bf16.msra.mxu1 %v12132_v52 }
0x17d3   : > { %12137 = vmatprep.subr.bf16.mxu1 %v12136_v18  ;;  %v12140_v50 = vpack.c.bf16 %v13659_v51, %v13658_v9 }
0x17d6   : > { %12139 = vmatpush3.bf16.msra.mxu1 %v12136_v18 }
0x17d7   : > { %12141 = vmatprep.subr.bf16.mxu1 %v12140_v50 }
0x17da   : > { %12143 = vmatpush3.bf16.msra.mxu1 %v12140_v50 }
0x17dd   : > { %11042 = vmatmul.mubr.msk.f32.vlgmr.msra.gmra.mrb[126].mxu1 %vm20098_vm14, %v10653_v31  ;;  %vm20112_vm14 = vmmov %vm20111_vm1 }
0x17de   : > { %11044 = vmatprep.mubr.msk.f32.mxu1 %vm20099_vm7, %v10654_v11  ;;  %v7797_v47 = vpop.permute.xlu1 %7796  ;;  %vm20113_vm7 = vmmov %vm20111_vm1 }
0x17e1   : > { %11045 = vmatmul.mubr.msk.f32.gmra.mrb[128].mxu1 %vm20100_vm4, %v10655_v60  ;;  %v7802_v29 = vpop.permute.xlu0 %7801  ;;  %vm20114_vm4 = vmmov %vm20111_vm1 }
0x17e2   : > { %v7807_v42 = vpop.permute.xlu1 %7806 }
0x17e5   : > { %v7812_v58 = vpop.permute.xlu0 %7811 }
0x18b0   : > { %v11043_v37 = vpop.f32.mrb[126].mxu1 }
0x18b1   : > { %v7898_v7 = vadd.f32 %v11043_v37, %v7802_v29  ;;  %v7892_v36 = vpop.f32.mrb[127].mxu1 }
0x18b2   : > { %v7893_v5 = vadd.f32 %v7892_v36, %v7797_v47  ;;  %v10676_v36 = vld [vmem:[%s19650_s4 + $0x100] sm:$0xff] }
0x18b3   : > { %v10669_v43 = vmul.f32 -1.442695, %v7898_v7 }
0x18b4   : > { %v10668_v53 = vmul.f32 -1.442695, %v7893_v5  ;;  %v11046_v27 = vpop.f32.mrb[128].mxu1 }
0x18b5   : > { %14366 = vpow2.f32 %v10669_v43  ;;  %v7908_v54 = vadd.f32 %v11046_v27, %v7812_v58  ;;  %v7902_v32 = vpop.f32.mrb[129].mxu1  ;;  %v10678_v43 = vld [vmem:[%s19650_s4 + $0x110] sm:$0xff]  ;;  %v10679_v58 = vld [vmem:[%s19650_s4 + $0x118] sm:$0xff] }
0x18b6   : > { %14368 = vpow2.f32 %v10668_v53  ;;  %v7903_v25 = vadd.f32 %v7902_v32, %v7807_v42 }
0x18b7   : > { %v10671_v8 = vmul.f32 -1.442695, %v7908_v54 }
0x18b8   : > { %v10670_v17 = vmul.f32 -1.442695, %v7903_v25 }
0x18b9   : > { %14370 = vpow2.f32 %v10671_v8 }
0x18ba   : > { %14372 = vpow2.f32 %v10670_v17 }
0x18bf   : > { %v14367_v45 = vpop.eup %14366 }
0x18c0   : > { %v14369_v33 = vpop.eup %14368  ;;  %v7924_v28 = vadd.f32 1.0, %v14367_v45 }
0x18c1   : > { %v7923_v41 = vadd.f32 1.0, %v14369_v33 }
0x18c2   : > { %14374 = vrcp.f32 %v7924_v28 }
0x18c3   : > { %v14371_v63 = vpop.eup %14370  ;;  %14376 = vrcp.f32 %v7923_v41 }
0x18c4   : > { %v14373_v3 = vpop.eup %14372  ;;  %v7926_v4 = vadd.f32 1.0, %v14371_v63 }
0x18c5   : > { %v7925_v62 = vadd.f32 1.0, %v14373_v3 }
0x18c6   : > { %14378 = vrcp.f32 %v7926_v4 }
0x18c7   : > { %14380 = vrcp.f32 %v7925_v62 }
0x18cc   : > { %v14375_v19 = vpop.eup %14374 }
0x18cd   : > { %v14377_v38 = vpop.eup %14376  ;;  %v7936_v10 = vmul.f32 %v14375_v19, %v7898_v7  ;;  %v10672_v7 = vld [vmem:[%s19649_s3 + $0x100] sm:$0xff]  ;;  %v10673_v19 = vld [vmem:[%s19649_s3 + $0x108] sm:$0xff] }
0x18ce   : > { %v7935_v59 = vmul.f32 %v14377_v38, %v7893_v5  ;;  %11071 = vmatprep.mubr.msk.f32.mxu1 %vm20107_vm15, %v10672_v7  ;;  %v10677_v5 = vld [vmem:[%s19650_s4 + $0x108] sm:$0xff]  ;;  %v10674_v38 = vld [vmem:[%s19649_s3 + $0x110] sm:$0xff]  ;;  %vm20117_vm15 = vmmov %vm20110_vm0 }
0x18cf   : > { %v19164_v61 = vadd.f32 %v7936_v10, %v19092_v23  ;;  %v10675_v10 = vld [vmem:[%s19649_s3 + $0x118] sm:$0xff] }
0x18d0   : > { %v14379_v13 = vpop.eup %14378  ;;  %v19167_v21 = vadd.f32 %v7935_v59, %v19095_v46 }
0x18d1   : > { %v14381_v48 = vpop.eup %14380  ;;  %v7938_v49 = vmul.f32 %v14379_v13, %v7908_v54 }
0x18d2   : > { %v13660_v2 = vpack.i.bf16 %v19164_v61, %v19167_v21  ;;  %v7937_v30 = vmul.f32 %v14381_v48, %v7903_v25 }
0x18d3   : > { %v19172_v57 = vadd.f32 %v7938_v49, %v19100_v39 }
0x18d4   : > { %v19175_v1 = vadd.f32 %v7937_v30, %v19103_v12  ;;  %13661 = vrot.lane.b32.xlu1 %v13660_v2, %s14461_s22 }
0x18d6   : > { %v13665_v23 = vpack.i.bf16 %v19172_v57, %v19175_v1 }
0x18d8   : > { %13666 = vrot.lane.b32.xlu0 %v13665_v23, %s14461_s22 }
0x1946   : > { %v13662_v46 = vpop.permute.xlu1 %13661 }
0x1947   : > { %v13664_v34 = vunpack.i.h.bf16 %v13662_v46  ;;  %v13663_v20 = vunpack.i.l.bf16 %v13662_v46 }
0x1949   : > { %v7960_v55 = vsel %vm20101_vm10, 0.0, %v13664_v34  ;;  %v7959_v56 = vsel %vm20102_vm13, 0.0, %v13663_v20 }
0x194a   : > { %v7965_v12 = vsel %vm7963_vm9, %v7960_v55, 0.0  ;;  %v7964_v52 = vsel %vm7963_vm9, %v7959_v56, 0.0  ;;  %v12144_v14 = vpack.c.bf16 %v7960_v55, %v7959_v56  ;;  %v13667_v18 = vpop.permute.xlu0 %13666 }
0x194b   : > { %v13670_v51 = vpack.i.bf16 %v7965_v12, %v7964_v52  ;;  %v13669_v9 = vunpack.i.h.bf16 %v13667_v18  ;;  %v13668_v50 = vunpack.i.l.bf16 %v13667_v18 }
0x194c   : > { %12146 = vmatprep.subr.msk.bf16.mxu1 %vm19185_vm6, %v12144_v14 }
0x194d   : > { %v7962_v31 = vsel %vm20105_vm2, 0.0, %v13669_v9  ;;  %v7961_v11 = vsel %vm20106_vm3, 0.0, %v13668_v50  ;;  %12149 = vmatpush3.bf16.msk.msra.mxu1 %vm19185_vm6, %v12144_v14  ;;  %13671 = vrot.lane.b32.xlu1 %v13670_v51, %s14460_s19  ;;  %vm20116_vm3 = vmmov %vm20110_vm0 }
0x194e   : > { %v7967_v60 = vsel %vm7963_vm9, %v7962_v31, 0.0  ;;  %v7966_v29 = vsel %vm7963_vm9, %v7961_v11, 0.0  ;;  %v12150_v47 = vpack.c.bf16 %v7962_v31, %v7961_v11  ;;  %vm20115_vm9 = vmmov %vm20110_vm0 }
0x194f   : > { %v13675_v37 = vpack.i.bf16 %v7967_v60, %v7966_v29 }
0x1950   : > { %12152 = vmatprep.subr.msk.bf16.mxu1 %vm19185_vm6, %v12150_v47 }
0x1951   : > { %13676 = vrot.lane.b32.xlu0 %v13675_v37, %s14460_s19  ;;  %12155 = vmatpush3.bf16.msk.msra.mxu1 %vm19185_vm6, %v12150_v47 }
0x1952   : > { %13681 = vrot.lane.b32.xlu1 %v13670_v51, %s14462_s23 }
0x1955   : > { %13686 = vrot.lane.b32.xlu0 %v13675_v37, %s14462_s23 }
0x1956   : > { %8008 = vperm.xlu1 %12399, %v10676_v36  }
0x1959   : > { %8013 = vperm.xlu0 %12398, %v10677_v5  }
0x195a   : > { %8018 = vperm.xlu1 %12399, %v10678_v43  }
0x195d   : > { %8023 = vperm.xlu0 %12398, %v10679_v58  }
0x19bf   : > { %v13672_v53 = vpop.permute.xlu1 %13671 }
0x19c0   : > { %v13674_v27 = vunpack.i.h.bf16 %v13672_v53  ;;  %v13673_v42 = vunpack.i.l.bf16 %v13672_v53 }
0x19c2   : > { %v12156_v54 = vpack.c.bf16 %v13674_v27, %v13673_v42 }
0x19c3   : > { %v13677_v32 = vpop.permute.xlu0 %13676 }
0x19c4   : > { %v13679_v25 = vunpack.i.h.bf16 %v13677_v32  ;;  %v13678_v8 = vunpack.i.l.bf16 %v13677_v32  ;;  %v13682_v17 = vpop.permute.xlu1 %13681  ;;  %12157 = vmatprep.subr.bf16.mxu1 %v12156_v54 }
0x19c5   : > { %v13684_v45 = vunpack.i.h.bf16 %v13682_v17  ;;  %v13683_v33 = vunpack.i.l.bf16 %v13682_v17  ;;  %12159 = vmatpush3.bf16.msra.mxu1 %v12156_v54 }
0x19c6   : > { %v12160_v28 = vpack.c.bf16 %v13679_v25, %v13678_v8 }
0x19c7   : > { %v13687_v41 = vpop.permute.xlu0 %13686  ;;  %v12164_v63 = vpack.c.bf16 %v13684_v45, %v13683_v33 }
0x19c8   : > { %v13689_v3 = vunpack.i.h.bf16 %v13687_v41  ;;  %v13688_v4 = vunpack.i.l.bf16 %v13687_v41  ;;  %12161 = vmatprep.subr.bf16.mxu1 %v12160_v28 }
0x19c9   : > { %12163 = vmatpush3.bf16.msra.mxu1 %v12160_v28 }
0x19ca   : > { %12165 = vmatprep.subr.bf16.mxu1 %v12164_v63  ;;  %v12168_v62 = vpack.c.bf16 %v13689_v3, %v13688_v4 }
0x19cd   : > { %12167 = vmatpush3.bf16.msra.mxu1 %v12164_v63 }
0x19ce   : > { %12169 = vmatprep.subr.bf16.mxu1 %v12168_v62 }
0x19d1   : > { %12171 = vmatpush3.bf16.msra.mxu1 %v12168_v62 }
0x19d4   : > { %11072 = vmatmul.mubr.msk.f32.vlgmr.msra.gmra.mrb[130].mxu1 %vm20108_vm12, %v10673_v19  ;;  %vm20118_vm12 = vmmov %vm20110_vm0 }
0x19d5   : > { %11074 = vmatprep.mubr.msk.f32.mxu1 %vm20109_vm11, %v10674_v38  ;;  %v8009_v13 = vpop.permute.xlu1 %8008 }
0x19d8   : > { %11075 = vmatmul.mubr.msk.f32.gmra.mrb[132].mxu1 %vm20110_vm0, %v10675_v10  ;;  %v8014_v59 = vpop.permute.xlu0 %8013 }
0x19d9   : > { %v8019_v55 = vpop.permute.xlu1 %8018 }
0x19dc   : > { %v8024_v46 = vpop.permute.xlu0 %8023 }
0x1aa7   : > { %v11073_v48 = vpop.f32.mrb[130].mxu1 }
0x1aa8   : > { %v8110_v49 = vadd.f32 %v11073_v48, %v8014_v59  ;;  %v8104_v2 = vpop.f32.mrb[131].mxu1  ;;  %v10692_v48 = vld [vmem:[%s19651_s5 + $0x40] sm:$0xff] }
0x1aa9   : > { %v8105_v30 = vadd.f32 %v8104_v2, %v8009_v13  ;;  %11101 = vmatprep.mubr.msk.f32.mxu1 %vm20115_vm9, %v10692_v48  ;;  %v10698_v2 = vld [vmem:[%s19652_s6 + $0x50] sm:$0xff]  ;;  %vm20119_vm9 = vmmov %vm20114_vm4 }
0x1aaa   : > { %v10689_v23 = vmul.f32 -1.442695, %v8110_v49 }
0x1aab   : > { %v10688_v34 = vmul.f32 -1.442695, %v8105_v30  ;;  %v11076_v20 = vpop.f32.mrb[132].mxu1 }
0x1aac   : > { %14382 = vpow2.f32 %v10689_v23  ;;  %v8120_v56 = vadd.f32 %v11076_v20, %v8024_v46  ;;  %v8114_v39 = vpop.f32.mrb[133].mxu1  ;;  %v8334_v23 = vmul.u32 6, %v17719_v44 }
0x1aad   : > { %14384 = vpow2.f32 %v10688_v34  ;;  %v8115_v12 = vadd.f32 %v8114_v39, %v8019_v55 }
0x1aae   : > { %v10691_v52 = vmul.f32 -1.442695, %v8120_v56  ;;  %vm8337_vm10 = vcmp.eq.s32.totalorder %v17763_v24, %v8334_v23  ;;  %vm8338_vm13 = vcmp.eq.s32.totalorder %v17766_v35, %v8334_v23  ;;  %vm8339_vm11 = vcmp.eq.s32.totalorder %v17793_v22, %v8334_v23 }
0x1aaf   : > { %v10690_v14 = vmul.f32 -1.442695, %v8115_v12  ;;  %vm12204_vm2 = vmpackc.low %vm8338_vm13, %vm8337_vm10  ;;  %vm8340_vm0 = vcmp.eq.s32.totalorder %v17796_v0, %v8334_v23 }
0x1ab0   : > { %14386 = vpow2.f32 %v10691_v52  ;;  %vm20123_vm10 = vmmov %vm20114_vm4 }
0x1ab1   : > { %14388 = vpow2.f32 %v10690_v14  ;;  %vm20124_vm13 = vmmov %vm20116_vm3 }
0x1ab6   : > { %v14383_v18 = vpop.eup %14382 }
0x1ab7   : > { %v14385_v51 = vpop.eup %14384  ;;  %v8136_v9 = vadd.f32 1.0, %v14383_v18 }
0x1ab8   : > { %v8135_v50 = vadd.f32 1.0, %v14385_v51 }
0x1ab9   : > { %14390 = vrcp.f32 %v8136_v9 }
0x1aba   : > { %v14387_v31 = vpop.eup %14386  ;;  %14392 = vrcp.f32 %v8135_v50 }
0x1abb   : > { %v14389_v11 = vpop.eup %14388  ;;  %v8138_v60 = vadd.f32 1.0, %v14387_v31  ;;  %v10693_v31 = vld [vmem:[%s19651_s5 + $0x48] sm:$0xff] }
0x1abc   : > { %v8137_v29 = vadd.f32 1.0, %v14389_v11  ;;  %v10694_v11 = vld [vmem:[%s19651_s5 + $0x50] sm:$0xff] }
0x1abd   : > { %14394 = vrcp.f32 %v8138_v60  ;;  %v10695_v60 = vld [vmem:[%s19651_s5 + $0x58] sm:$0xff] }
0x1abe   : > { %14396 = vrcp.f32 %v8137_v29 }
0x1ac3   : > { %v14391_v47 = vpop.eup %14390 }
0x1ac4   : > { %v14393_v37 = vpop.eup %14392  ;;  %v8148_v7 = vmul.f32 %v14391_v47, %v8110_v49  ;;  %v10696_v49 = vld [vmem:[%s19652_s6 + $0x40] sm:$0xff] }
0x1ac5   : > { %v8147_v36 = vmul.f32 %v14393_v37, %v8105_v30  ;;  %v10699_v30 = vld [vmem:[%s19652_s6 + $0x58] sm:$0xff] }
0x1ac6   : > { %v8152_v5 = vadd.f32 %v8148_v7, %v19164_v61 }
0x1ac7   : > { %v14395_v43 = vpop.eup %14394  ;;  %v8151_v58 = vadd.f32 %v8147_v36, %v19167_v21 }
0x1ac8   : > { %v14397_v53 = vpop.eup %14396  ;;  %v8150_v27 = vmul.f32 %v14395_v43, %v8120_v56 }
0x1ac9   : > { %v13690_v42 = vpack.i.bf16 %v8152_v5, %v8151_v58  ;;  %v8149_v54 = vmul.f32 %v14397_v53, %v8115_v12 }
0x1aca   : > { %v8154_v32 = vadd.f32 %v8150_v27, %v19172_v57 }
0x1acb   : > { %v8153_v25 = vadd.f32 %v8149_v54, %v19175_v1  ;;  %13691 = vrot.lane.b32.xlu1 %v13690_v42, %s14454_s15 }
0x1acd   : > { %v13695_v8 = vpack.i.bf16 %v8154_v32, %v8153_v25 }
0x1acf   : > { %13696 = vrot.lane.b32.xlu0 %v13695_v8, %s14454_s15 }
0x1b3d   : > { %v13692_v17 = vpop.permute.xlu1 %13691 }
0x1b3e   : > { %v13694_v45 = vunpack.i.h.bf16 %v13692_v17  ;;  %v13693_v33 = vunpack.i.l.bf16 %v13692_v17 }
0x1b40   : > { %v8172_v61 = vsel %vm20111_vm1, 0.0, %v13694_v45  ;;  %v8171_v21 = vsel %vm20112_vm14, 0.0, %v13693_v33  ;;  %vm12208_vm1 = vmpackc.low %vm8340_vm0, %vm8339_vm11  ;;  %vm8353_vm14 = vcmask 392192  }
0x1b41   : > { %v8176_v28 = vsel %vm7539_vm8, %v8172_v61, 0.0  ;;  %v8175_v41 = vsel %vm7539_vm8, %v8171_v21, 0.0  ;;  %v12172_v63 = vpack.c.bf16 %v8172_v61, %v8171_v21  ;;  %v13697_v57 = vpop.permute.xlu0 %13696 }
0x1b42   : > { %v13700_v3 = vpack.i.bf16 %v8176_v28, %v8175_v41  ;;  %v13699_v1 = vunpack.i.h.bf16 %v13697_v57  ;;  %v13698_v4 = vunpack.i.l.bf16 %v13697_v57  ;;  %v10789_v28 = vld [vmem:[%s19652_s6 + $0x68] sm:$0xff] }
0x1b43   : > { %12174 = vmatprep.subr.msk.bf16.mxu1 %vm19041_vm5, %v12172_v63 }
0x1b44   : > { %v8174_v62 = vsel %vm20113_vm7, 0.0, %v13699_v1  ;;  %v8173_v19 = vsel %vm20114_vm4, 0.0, %v13698_v4  ;;  %12177 = vmatpush3.bf16.msk.msra.mxu1 %vm19041_vm5, %v12172_v63  ;;  %13701 = vrot.lane.b32.xlu1 %v13700_v3, %s14455_s16  ;;  %vm8471_vm7 = vcmask 72704  }
0x1b45   : > { %v8178_v38 = vsel %vm7539_vm8, %v8174_v62, 0.0  ;;  %v8177_v10 = vsel %vm7539_vm8, %v8173_v19, 0.0  ;;  %v12178_v59 = vpack.c.bf16 %v8174_v62, %v8173_v19  ;;  %vm8335_vm8 = vcmp.eq.s32.totalorder %v19979_v40, %v8334_v23 }
0x1b46   : > { %v13705_v13 = vpack.i.bf16 %v8178_v38, %v8177_v10 }
0x1b47   : > { %12180 = vmatprep.subr.msk.bf16.mxu1 %vm19041_vm5, %v12178_v59 }
0x1b48   : > { %13706 = vrot.lane.b32.xlu0 %v13705_v13, %s14455_s16  ;;  %12183 = vmatpush3.bf16.msk.msra.mxu1 %vm19041_vm5, %v12178_v59  ;;  %vm8336_vm5 = vcmp.eq.s32.totalorder %v17741_v15, %v8334_v23  ;;  %v10731_v23 = vld [vmem:[%s19650_s4 + $0x138] sm:$0xff] }
0x1b49   : > { %13711 = vrot.lane.b32.xlu1 %v13700_v3, %s14457_s17  ;;  %vm12200_vm6 = vmpackc.low %vm8336_vm5, %vm8335_vm8 }
0x1b4a   : > { %12201 = vmatprep.subr.msk.bf16.mxu0 %vm12200_vm6, %v20074_v16  ;;  %vm19320_vm8 = vmpackc.low %vm8471_vm7, %vm8471_vm7 }
0x1b4b   : > { %12203 = vmatpush3.bf16.msk.msra.mxu0 %vm12200_vm6, %v20074_v16  ;;  %vm20122_vm5 = vmmov %vm20114_vm4 }
0x1b4c   : > { %13716 = vrot.lane.b32.xlu0 %v13705_v13, %s14457_s17  ;;  %12205 = vmatprep.subr.msk.bf16.mxu0 %vm12204_vm2, %v20074_v16  ;;  %vm20125_vm6 = vmmov %vm20116_vm3 }
0x1b4d   : > { %8219 = vperm.xlu1 %12399, %v10696_v49   ;;  %v10728_v49 = vld [vmem:[%s19650_s4 + $0x120] sm:$0xff] }
0x1b4f   : > { %12207 = vmatpush3.bf16.msk.msra.mxu0 %vm12204_vm2, %v20074_v16  ;;  %vm20126_vm2 = vmmov %vm20116_vm3 }
0x1b50   : > { %8224 = vperm.xlu0 %12398, %v10697_v6   ;;  %12209 = vmatprep.subr.msk.bf16.mxu0 %vm12208_vm1, %v20074_v16  ;;  %v10724_v6 = vld [vmem:[%s19649_s3 + $0x120] sm:$0xff] }
0x1b51   : > { %8229 = vperm.xlu1 %12399, %v10698_v2   ;;  %v10730_v2 = vld [vmem:[%s19650_s4 + $0x130] sm:$0xff] }
0x1b53   : > { %12211 = vmatpush3.bf16.msk.msra.mxu0 %vm12208_vm1, %v20074_v16 }
0x1b54   : > { %8234 = vperm.xlu0 %12398, %v10699_v30   ;;  %v10729_v30 = vld [vmem:[%s19650_s4 + $0x128] sm:$0xff] }
0x1bb6   : > { %v13702_v46 = vpop.permute.xlu1 %13701 }
0x1bb7   : > { %v13704_v34 = vunpack.i.h.bf16 %v13702_v46  ;;  %v13703_v20 = vunpack.i.l.bf16 %v13702_v46 }
0x1bb9   : > { %v12184_v55 = vpack.c.bf16 %v13704_v34, %v13703_v20 }
0x1bba   : > { %v13707_v56 = vpop.permute.xlu0 %13706 }
0x1bbb   : > { %v13709_v15 = vunpack.i.h.bf16 %v13707_v56  ;;  %v13708_v39 = vunpack.i.l.bf16 %v13707_v56  ;;  %v13712_v24 = vpop.permute.xlu1 %13711  ;;  %12185 = vmatprep.subr.bf16.mxu1 %v12184_v55 }
0x1bbc   : > { %v13714_v35 = vunpack.i.h.bf16 %v13712_v24  ;;  %v13713_v12 = vunpack.i.l.bf16 %v13712_v24  ;;  %12187 = vmatpush3.bf16.msra.mxu1 %v12184_v55 }
0x1bbd   : > { %v12188_v52 = vpack.c.bf16 %v13709_v15, %v13708_v39 }
0x1bbe   : > { %v13717_v14 = vpop.permute.xlu0 %13716  ;;  %v12192_v18 = vpack.c.bf16 %v13714_v35, %v13713_v12 }
0x1bbf   : > { %v13719_v51 = vunpack.i.h.bf16 %v13717_v14  ;;  %v13718_v9 = vunpack.i.l.bf16 %v13717_v14  ;;  %12189 = vmatprep.subr.bf16.mxu1 %v12188_v52 }
0x1bc0   : > { %12191 = vmatpush3.bf16.msra.mxu1 %v12188_v52 }
0x1bc1   : > { %12193 = vmatprep.subr.bf16.mxu1 %v12192_v18  ;;  %v12196_v50 = vpack.c.bf16 %v13719_v51, %v13718_v9 }
0x1bc4   : > { %12195 = vmatpush3.bf16.msra.mxu1 %v12192_v18 }
0x1bc5   : > { %12197 = vmatprep.subr.bf16.mxu1 %v12196_v50 }
0x1bc8   : > { %12199 = vmatpush3.bf16.msra.mxu1 %v12196_v50 }
0x1bcb   : > { %11102 = vmatmul.mubr.msk.f32.vlgmr.msra.gmra.mrb[134].mxu1 %vm20116_vm3, %v10693_v31  ;;  %v10725_v31 = vld [vmem:[%s19649_s3 + $0x128] sm:$0xff]  ;;  %vm20127_vm3 = vmmov %vm20126_vm2 }
0x1bcc   : > { %11104 = vmatprep.mubr.msk.f32.mxu1 %vm20117_vm15, %v10694_v11  ;;  %v8220_v29 = vpop.permute.xlu1 %8219  ;;  %v10726_v11 = vld [vmem:[%s19649_s3 + $0x130] sm:$0xff]  ;;  %vm8683_vm15 = vcmask 80896  }
0x1bcd   : > { %vm19392_vm0 = vmpackc.low %vm8683_vm15, %vm8683_vm15 }
0x1bcf   : > { %11105 = vmatmul.mubr.msk.f32.gmra.mrb[136].mxu1 %vm20118_vm12, %v10695_v60  ;;  %v8225_v47 = vpop.permute.xlu0 %8224  ;;  %v10727_v60 = vld [vmem:[%s19649_s3 + $0x138] sm:$0xff]  ;;  %vm20128_vm12 = vcmask 15360  }
0x1bd0   : > { %v8230_v58 = vpop.permute.xlu1 %8229  ;;  %11149 = vmatprep.mubr.msk.f32.mxu1 %vm20124_vm13, %v10724_v6  ;;  %vm20129_vm11 = vmmov %vm20128_vm12  ;;  %vm8895_vm13 = vcmask 97280  }
0x1bd1   : > { %vm20132_vm1 = vmmov %vm20129_vm11 }
0x1bd3   : > { %v8235_v22 = vpop.permute.xlu0 %8234 }
0x1c9e   : > { %v11103_v37 = vpop.f32.mrb[134].mxu1 }
0x1c9f   : > { %v8315_v7 = vpop.f32.mrb[135].mxu1  ;;  %v8321_v5 = vadd.f32 %v11103_v37, %v8225_v47 }
0x1ca0   : > { %v8316_v36 = vadd.f32 %v8315_v7, %v8220_v29 }
0x1ca2   : > { %v11106_v43 = vpop.f32.mrb[136].mxu1  ;;  %11119 = vmatprep.mubr.msk.f32.mxu0 %vm8353_vm14, %v8316_v36 }
0x1ca3   : > { %v8325_v53 = vpop.f32.mrb[137].mxu1  ;;  %11120 = vmatmul.mubr.msk.f32.vlgmr.msra.gmra.mrb[86].mxu0 %vm8353_vm14, %v8321_v5  ;;  %v8331_v0 = vadd.f32 %v11106_v43, %v8235_v22 }
0x1ca4   : > { %v8326_v27 = vadd.f32 %v8325_v53, %v8230_v58 }
0x1ca6   : > { %11122 = vmatprep.mubr.msk.f32.mxu0 %vm8353_vm14, %v8326_v27 }
0x1ca7   : > { %11123 = vmatmul.mubr.msk.f32.gmra.mrb[88].mxu0 %vm8353_vm14, %v8331_v0  ;;  %vm20133_vm14 = vmmov %vm20132_vm1 }
0x1d76   : > { %v19302_v42 = vpop.f32.mrb[86].mxu0 }
0x1d77   : > { %v19304_v16 = vpop.f32.mrb[87].mxu0 }
0x1d78   : > { %v13720_v54 = vpack.i.bf16 %v19302_v42, %v19304_v16 }
0x1d7a   : > { %13721 = vrot.lane.b32.xlu1 %v13720_v54, %s14454_s15  ;;  %v19309_v32 = vpop.f32.mrb[88].mxu0 }
0x1d7b   : > { %v19311_v25 = vpop.f32.mrb[89].mxu0 }
0x1d7c   : > { %v13725_v8 = vpack.i.bf16 %v19309_v32, %v19311_v25 }
0x1d7e   : > { %13726 = vrot.lane.b32.xlu0 %v13725_v8, %s14454_s15 }
0x1dec   : > { %v13722_v17 = vpop.permute.xlu1 %13721 }
0x1ded   : > { %v13724_v45 = vunpack.i.h.bf16 %v13722_v17  ;;  %v13723_v33 = vunpack.i.l.bf16 %v13722_v17 }
0x1def   : > { %v8468_v61 = vsel %vm20114_vm4, 0.0, %v13724_v45  ;;  %v8467_v21 = vsel %vm20119_vm9, 0.0, %v13723_v33  ;;  %vm20134_vm4 = vmmov %vm20126_vm2 }
0x1df0   : > { %v8473_v41 = vsel %vm8471_vm7, %v8468_v61, 0.0  ;;  %v8472_v63 = vsel %vm8471_vm7, %v8467_v21, 0.0  ;;  %v12212_v57 = vpack.c.bf16 %v8468_v61, %v8467_v21  ;;  %v13727_v3 = vpop.permute.xlu0 %13726  ;;  %vm20135_vm9 = vmmov %vm20126_vm2 }
0x1df1   : > { %v13730_v1 = vpack.i.bf16 %v8473_v41, %v8472_v63  ;;  %v13729_v4 = vunpack.i.h.bf16 %v13727_v3  ;;  %v13728_v62 = vunpack.i.l.bf16 %v13727_v3 }
0x1df2   : > { %12214 = vmatprep.subr.msk.bf16.mxu1 %vm19320_vm8, %v12212_v57 }
0x1df3   : > { %v8470_v19 = vsel %vm20122_vm5, 0.0, %v13729_v4  ;;  %v8469_v38 = vsel %vm20123_vm10, 0.0, %v13728_v62  ;;  %12217 = vmatpush3.bf16.msk.msra.mxu1 %vm19320_vm8, %v12212_v57  ;;  %13731 = vrot.lane.b32.xlu1 %v13730_v1, %s14455_s16  ;;  %vm20136_vm5 = vmmov %vm20126_vm2 }
0x1df4   : > { %v8475_v10 = vsel %vm8471_vm7, %v8470_v19, 0.0  ;;  %v8474_v59 = vsel %vm8471_vm7, %v8469_v38, 0.0  ;;  %v12218_v13 = vpack.c.bf16 %v8470_v19, %v8469_v38  ;;  %vm20137_vm10 = vmmov %vm20126_vm2 }
0x1df5   : > { %v13735_v48 = vpack.i.bf16 %v8475_v10, %v8474_v59 }
0x1df6   : > { %12220 = vmatprep.subr.msk.bf16.mxu1 %vm19320_vm8, %v12218_v13 }
0x1df7   : > { %13741 = vrot.lane.b32.xlu1 %v13730_v1, %s14457_s17  ;;  %12223 = vmatpush3.bf16.msk.msra.mxu1 %vm19320_vm8, %v12218_v13 }
0x1df8   : > { %13736 = vrot.lane.b32.xlu0 %v13735_v48, %s14455_s16 }
0x1dfb   : > { %8516 = vperm.xlu1 %12399, %v10728_v49  }
0x1dfc   : > { %13746 = vrot.lane.b32.xlu0 %v13735_v48, %s14457_s17 }
0x1dff   : > { %8526 = vperm.xlu1 %12399, %v10730_v2  }
0x1e00   : > { %8521 = vperm.xlu0 %12398, %v10729_v30  }
0x1e04   : > { %8531 = vperm.xlu0 %12398, %v10731_v23  }
0x1e65   : > { %v13732_v46 = vpop.permute.xlu1 %13731 }
0x1e66   : > { %v13734_v34 = vunpack.i.h.bf16 %v13732_v46  ;;  %v13733_v20 = vunpack.i.l.bf16 %v13732_v46 }
0x1e68   : > { %v12224_v55 = vpack.c.bf16 %v13734_v34, %v13733_v20 }
0x1e69   : > { %v13742_v56 = vpop.permute.xlu1 %13741 }
0x1e6a   : > { %v13737_v15 = vpop.permute.xlu0 %13736  ;;  %12225 = vmatprep.subr.bf16.mxu1 %v12224_v55  ;;  %v13744_v39 = vunpack.i.h.bf16 %v13742_v56  ;;  %v13743_v24 = vunpack.i.l.bf16 %v13742_v56 }
0x1e6b   : > { %v13739_v35 = vunpack.i.h.bf16 %v13737_v15  ;;  %v13738_v12 = vunpack.i.l.bf16 %v13737_v15  ;;  %12227 = vmatpush3.bf16.msra.mxu1 %v12224_v55 }
0x1e6c   : > { %v12232_v18 = vpack.c.bf16 %v13744_v39, %v13743_v24 }
0x1e6d   : > { %v12228_v52 = vpack.c.bf16 %v13739_v35, %v13738_v12 }
0x1e6e   : > { %v13747_v14 = vpop.permute.xlu0 %13746 }
0x1e6f   : > { %v13749_v51 = vunpack.i.h.bf16 %v13747_v14  ;;  %v13748_v9 = vunpack.i.l.bf16 %v13747_v14  ;;  %12229 = vmatprep.subr.bf16.mxu1 %v12228_v52 }
0x1e70   : > { %12231 = vmatpush3.bf16.msra.mxu1 %v12228_v52 }
0x1e71   : > { %12233 = vmatprep.subr.bf16.mxu1 %v12232_v18  ;;  %v12236_v50 = vpack.c.bf16 %v13749_v51, %v13748_v9 }
0x1e74   : > { %12235 = vmatpush3.bf16.msra.mxu1 %v12232_v18 }
0x1e75   : > { %12237 = vmatprep.subr.bf16.mxu1 %v12236_v50 }
0x1e78   : > { %12239 = vmatpush3.bf16.msra.mxu1 %v12236_v50 }
0x1e7a   : > { %v8517_v47 = vpop.permute.xlu1 %8516 }
0x1e7b   : > { %11150 = vmatmul.mubr.msk.f32.vlgmr.msra.gmra.mrb[138].mxu1 %vm20125_vm6, %v10725_v31  ;;  %v10744_v31 = vld [vmem:[%s19649_s3 + $0x140] sm:$0xff]  ;;  %vm20138_vm6 = vcmask 31744  }
0x1e7c   : > { %11152 = vmatprep.mubr.msk.f32.mxu1 %vm20126_vm2, %v10726_v11  ;;  %11179 = vmatprep.mubr.msk.f32.mxu0 %vm20134_vm4, %v10744_v31  ;;  %v10748_v11 = vld [vmem:[%s19650_s4 + $0x140] sm:$0xff]  ;;  %vm20139_vm2 = vmmov %vm20138_vm6 }
0x1e7e   : > { %v8527_v27 = vpop.permute.xlu1 %8526 }
0x1e7f   : > { %11153 = vmatmul.mubr.msk.f32.gmra.mrb[140].mxu1 %vm20127_vm3, %v10727_v60  ;;  %v8522_v29 = vpop.permute.xlu0 %8521  ;;  %v10749_v60 = vld [vmem:[%s19650_s4 + $0x148] sm:$0xff]  ;;  %vm19464_vm3 = vmpackc.low %vm8895_vm13, %vm8895_vm13 }
0x1e83   : > { %v8532_v58 = vpop.permute.xlu0 %8531 }
0x1f4e   : > { %v11151_v37 = vpop.f32.mrb[138].mxu1 }
0x1f4f   : > { %v8618_v7 = vadd.f32 %v11151_v37, %v8522_v29  ;;  %v8612_v36 = vpop.f32.mrb[139].mxu1  ;;  %v10750_v29 = vld [vmem:[%s19650_s4 + $0x150] sm:$0xff] }
0x1f50   : > { %v8613_v5 = vadd.f32 %v8612_v36, %v8517_v47  ;;  %v10751_v47 = vld [vmem:[%s19650_s4 + $0x158] sm:$0xff] }
0x1f51   : > { %v10741_v43 = vmul.f32 -1.442695, %v8618_v7 }
0x1f52   : > { %v10740_v53 = vmul.f32 -1.442695, %v8613_v5  ;;  %v11154_v22 = vpop.f32.mrb[140].mxu1 }
0x1f53   : > { %14398 = vpow2.f32 %v10741_v43  ;;  %v8628_v0 = vadd.f32 %v11154_v22, %v8532_v58  ;;  %v8622_v54 = vpop.f32.mrb[141].mxu1 }
0x1f54   : > { %14400 = vpow2.f32 %v10740_v53  ;;  %v8623_v8 = vadd.f32 %v8622_v54, %v8527_v27 }
0x1f55   : > { %v10743_v17 = vmul.f32 -1.442695, %v8628_v0 }
0x1f56   : > { %v10742_v45 = vmul.f32 -1.442695, %v8623_v8 }
0x1f57   : > { %14402 = vpow2.f32 %v10743_v17 }
0x1f58   : > { %14404 = vpow2.f32 %v10742_v45 }
0x1f5d   : > { %v14399_v33 = vpop.eup %14398 }
0x1f5e   : > { %v14401_v61 = vpop.eup %14400  ;;  %v8644_v21 = vadd.f32 1.0, %v14399_v33 }
0x1f5f   : > { %v8643_v41 = vadd.f32 1.0, %v14401_v61 }
0x1f60   : > { %14406 = vrcp.f32 %v8644_v21  ;;  %v10745_v21 = vld [vmem:[%s19649_s3 + $0x148] sm:$0xff] }
0x1f61   : > { %v14403_v63 = vpop.eup %14402  ;;  %14408 = vrcp.f32 %v8643_v41  ;;  %v10746_v41 = vld [vmem:[%s19649_s3 + $0x150] sm:$0xff] }
0x1f62   : > { %v14405_v57 = vpop.eup %14404  ;;  %v8646_v3 = vadd.f32 1.0, %v14403_v63  ;;  %v10747_v63 = vld [vmem:[%s19649_s3 + $0x158] sm:$0xff] }
0x1f63   : > { %v8645_v1 = vadd.f32 1.0, %v14405_v57 }
0x1f64   : > { %14410 = vrcp.f32 %v8646_v3 }
0x1f65   : > { %14412 = vrcp.f32 %v8645_v1 }
0x1f6a   : > { %v14407_v4 = vpop.eup %14406 }
0x1f6b   : > { %v14409_v62 = vpop.eup %14408  ;;  %v8656_v19 = vmul.f32 %v14407_v4, %v8618_v7 }
0x1f6c   : > { %v8655_v38 = vmul.f32 %v14409_v62, %v8613_v5 }
0x1f6d   : > { %v19371_v10 = vadd.f32 %v19302_v42, %v8656_v19 }
0x1f6e   : > { %v14411_v59 = vpop.eup %14410  ;;  %v19374_v13 = vadd.f32 %v8655_v38, %v19304_v16 }
0x1f6f   : > { %v14413_v48 = vpop.eup %14412  ;;  %v8658_v49 = vmul.f32 %v14411_v59, %v8628_v0 }
0x1f70   : > { %v13750_v6 = vpack.i.bf16 %v19371_v10, %v19374_v13  ;;  %v8657_v2 = vmul.f32 %v14413_v48, %v8623_v8 }
0x1f71   : > { %v19379_v30 = vadd.f32 %v19309_v32, %v8658_v49 }
0x1f72   : > { %v19382_v23 = vadd.f32 %v8657_v2, %v19311_v25  ;;  %13751 = vrot.lane.b32.xlu1 %v13750_v6, %s14459_s18 }
0x1f74   : > { %v13755_v42 = vpack.i.bf16 %v19379_v30, %v19382_v23 }
0x1f76   : > { %13756 = vrot.lane.b32.xlu0 %v13755_v42, %s14459_s18 }
0x1fe4   : > { %v13752_v16 = vpop.permute.xlu1 %13751 }
0x1fe5   : > { %v13754_v46 = vunpack.i.h.bf16 %v13752_v16  ;;  %v13753_v34 = vunpack.i.l.bf16 %v13752_v16 }
0x1fe7   : > { %v8680_v20 = vsel %vm20128_vm12, 0.0, %v13754_v46  ;;  %v8679_v55 = vsel %vm20129_vm11, 0.0, %v13753_v34  ;;  %vm20143_vm12 = vmmov %vm20139_vm2 }
0x1fe8   : > { %v8685_v25 = vsel %vm8683_vm15, %v8680_v20, 0.0  ;;  %v8684_v56 = vsel %vm8683_vm15, %v8679_v55, 0.0  ;;  %v12240_v15 = vpack.c.bf16 %v8680_v20, %v8679_v55  ;;  %v13757_v39 = vpop.permute.xlu0 %13756  ;;  %vm20144_vm11 = vmmov %vm20134_vm4 }
0x1fe9   : > { %v13760_v24 = vpack.i.bf16 %v8685_v25, %v8684_v56  ;;  %v13759_v35 = vunpack.i.h.bf16 %v13757_v39  ;;  %v13758_v12 = vunpack.i.l.bf16 %v13757_v39 }
0x1fea   : > { %12242 = vmatprep.subr.msk.bf16.mxu0 %vm19392_vm0, %v12240_v15 }
0x1feb   : > { %v8682_v52 = vsel %vm20132_vm1, 0.0, %v13759_v35  ;;  %v8681_v14 = vsel %vm20133_vm14, 0.0, %v13758_v12  ;;  %12245 = vmatpush3.bf16.msk.msra.mxu0 %vm19392_vm0, %v12240_v15  ;;  %13761 = vrot.lane.b32.xlu1 %v13760_v24, %s14457_s17 }
0x1fec   : > { %v8687_v18 = vsel %vm8683_vm15, %v8682_v52, 0.0  ;;  %v8686_v51 = vsel %vm8683_vm15, %v8681_v14, 0.0  ;;  %v12246_v9 = vpack.c.bf16 %v8682_v52, %v8681_v14  ;;  %vm20142_vm15 = vmmov %vm20139_vm2 }
0x1fed   : > { %v13765_v50 = vpack.i.bf16 %v8687_v18, %v8686_v51 }
0x1fee   : > { %12248 = vmatprep.subr.msk.bf16.mxu0 %vm19392_vm0, %v12246_v9 }
0x1fef   : > { %13766 = vrot.lane.b32.xlu0 %v13765_v50, %s14457_s17  ;;  %12251 = vmatpush3.bf16.msk.msra.mxu0 %vm19392_vm0, %v12246_v9  ;;  %vm20145_vm0 = vmmov %vm20134_vm4  ;;  %vm20148_vm4 = vcmask 7168  }
0x1ff0   : > { %13771 = vrot.lane.b32.xlu1 %v13760_v24, %s14460_s19  ;;  %vm20146_vm1 = vmmov %vm20145_vm0 }
0x1ff1   : > { %vm20147_vm14 = vmmov %vm20145_vm0 }
0x1ff3   : > { %13776 = vrot.lane.b32.xlu0 %v13765_v50, %s14460_s19 }
0x1ff4   : > { %8728 = vperm.xlu1 %12399, %v10748_v11  }
0x1ff7   : > { %8733 = vperm.xlu0 %12398, %v10749_v60  }
0x1ff8   : > { %8738 = vperm.xlu1 %12399, %v10750_v29  }
0x1ffb   : > { %8743 = vperm.xlu0 %12398, %v10751_v47  }
0x205d   : > { %v13762_v37 = vpop.permute.xlu1 %13761 }
0x205e   : > { %v13764_v7 = vunpack.i.h.bf16 %v13762_v37  ;;  %v13763_v36 = vunpack.i.l.bf16 %v13762_v37 }
0x2060   : > { %v12252_v5 = vpack.c.bf16 %v13764_v7, %v13763_v36 }
0x2061   : > { %v13767_v43 = vpop.permute.xlu0 %13766 }
0x2062   : > { %v13769_v58 = vunpack.i.h.bf16 %v13767_v43  ;;  %v13768_v53 = vunpack.i.l.bf16 %v13767_v43  ;;  %v13772_v22 = vpop.permute.xlu1 %13771  ;;  %12253 = vmatprep.subr.bf16.mxu0 %v12252_v5 }
0x2063   : > { %v13774_v27 = vunpack.i.h.bf16 %v13772_v22  ;;  %v13773_v0 = vunpack.i.l.bf16 %v13772_v22  ;;  %12255 = vmatpush3.bf16.msra.mxu0 %v12252_v5 }
0x2064   : > { %v12256_v54 = vpack.c.bf16 %v13769_v58, %v13768_v53 }
0x2065   : > { %v13777_v8 = vpop.permute.xlu0 %13776  ;;  %v12260_v17 = vpack.c.bf16 %v13774_v27, %v13773_v0 }
0x2066   : > { %v13779_v45 = vunpack.i.h.bf16 %v13777_v8  ;;  %v13778_v33 = vunpack.i.l.bf16 %v13777_v8  ;;  %12257 = vmatprep.subr.bf16.mxu0 %v12256_v54 }
0x2067   : > { %12259 = vmatpush3.bf16.msra.mxu0 %v12256_v54 }
0x2068   : > { %12261 = vmatprep.subr.bf16.mxu0 %v12260_v17  ;;  %v12264_v61 = vpack.c.bf16 %v13779_v45, %v13778_v33 }
0x206b   : > { %12263 = vmatpush3.bf16.msra.mxu0 %v12260_v17 }
0x206c   : > { %12265 = vmatprep.subr.bf16.mxu0 %v12264_v61 }
0x206f   : > { %12267 = vmatpush3.bf16.msra.mxu0 %v12264_v61 }
0x2072   : > { %11180 = vmatmul.mubr.msk.f32.vlgmr.msra.gmra.mrb[90].mxu0 %vm20135_vm9, %v10745_v21  ;;  %v10764_v21 = vld [vmem:[%s19649_s3 + $0x160] sm:$0xff]  ;;  %vm20149_vm9 = vmmov %vm20148_vm4 }
0x2073   : > { %11182 = vmatprep.mubr.msk.f32.mxu0 %vm20136_vm5, %v10746_v41  ;;  %v8729_v3 = vpop.permute.xlu1 %8728  ;;  %11209 = vmatprep.mubr.msk.f32.mxu1 %vm20144_vm11, %v10764_v21  ;;  %v10768_v41 = vld [vmem:[%s19650_s4 + $0x160] sm:$0xff]  ;;  %vm20150_vm5 = vmmov %vm20148_vm4  ;;  %vm20158_vm11 = vcmask 23552  }
0x2076   : > { %11183 = vmatmul.mubr.msk.f32.gmra.mrb[92].mxu0 %vm20137_vm10, %v10747_v63  ;;  %v8734_v57 = vpop.permute.xlu0 %8733  ;;  %v10769_v63 = vld [vmem:[%s19650_s4 + $0x168] sm:$0xff]  ;;  %vm20151_vm10 = vmmov %vm20148_vm4 }
0x2077   : > { %v8739_v6 = vpop.permute.xlu1 %8738 }
0x207a   : > { %v8744_v59 = vpop.permute.xlu0 %8743 }
0x2145   : > { %v11181_v1 = vpop.f32.mrb[90].mxu0 }
0x2146   : > { %v8830_v4 = vadd.f32 %v11181_v1, %v8734_v57  ;;  %v8824_v62 = vpop.f32.mrb[91].mxu0  ;;  %v10770_v57 = vld [vmem:[%s19650_s4 + $0x170] sm:$0xff] }
0x2147   : > { %v8825_v19 = vadd.f32 %v8824_v62, %v8729_v3  ;;  %v10771_v3 = vld [vmem:[%s19650_s4 + $0x178] sm:$0xff] }
0x2148   : > { %v10761_v38 = vmul.f32 -1.442695, %v8830_v4 }
0x2149   : > { %v10760_v48 = vmul.f32 -1.442695, %v8825_v19  ;;  %v11184_v49 = vpop.f32.mrb[92].mxu0 }
0x214a   : > { %14414 = vpow2.f32 %v10761_v38  ;;  %v8840_v2 = vadd.f32 %v11184_v49, %v8744_v59  ;;  %v8834_v42 = vpop.f32.mrb[93].mxu0 }
0x214b   : > { %14416 = vpow2.f32 %v10760_v48  ;;  %v8835_v16 = vadd.f32 %v8834_v42, %v8739_v6 }
0x214c   : > { %v10763_v46 = vmul.f32 -1.442695, %v8840_v2 }
0x214d   : > { %v10762_v34 = vmul.f32 -1.442695, %v8835_v16 }
0x214e   : > { %14418 = vpow2.f32 %v10763_v46 }
0x214f   : > { %14420 = vpow2.f32 %v10762_v34 }
0x2154   : > { %v14415_v20 = vpop.eup %14414 }
0x2155   : > { %v14417_v55 = vpop.eup %14416  ;;  %v8856_v32 = vadd.f32 1.0, %v14415_v20 }
0x2156   : > { %v8855_v25 = vadd.f32 1.0, %v14417_v55 }
0x2157   : > { %14422 = vrcp.f32 %v8856_v32  ;;  %v10765_v32 = vld [vmem:[%s19649_s3 + $0x168] sm:$0xff] }
0x2158   : > { %v14419_v56 = vpop.eup %14418  ;;  %14424 = vrcp.f32 %v8855_v25  ;;  %v10766_v25 = vld [vmem:[%s19649_s3 + $0x170] sm:$0xff] }
0x2159   : > { %v14421_v15 = vpop.eup %14420  ;;  %v8858_v39 = vadd.f32 1.0, %v14419_v56  ;;  %v10767_v56 = vld [vmem:[%s19649_s3 + $0x178] sm:$0xff] }
0x215a   : > { %v8857_v24 = vadd.f32 1.0, %v14421_v15 }
0x215b   : > { %14426 = vrcp.f32 %v8858_v39 }
0x215c   : > { %14428 = vrcp.f32 %v8857_v24 }
0x2161   : > { %v14423_v35 = vpop.eup %14422 }
0x2162   : > { %v14425_v12 = vpop.eup %14424  ;;  %v8868_v52 = vmul.f32 %v14423_v35, %v8830_v4 }
0x2163   : > { %v8867_v14 = vmul.f32 %v14425_v12, %v8825_v19 }
0x2164   : > { %v19443_v18 = vadd.f32 %v8868_v52, %v19371_v10 }
0x2165   : > { %v14427_v51 = vpop.eup %14426  ;;  %v19446_v9 = vadd.f32 %v8867_v14, %v19374_v13 }
0x2166   : > { %v14429_v50 = vpop.eup %14428  ;;  %v8870_v31 = vmul.f32 %v14427_v51, %v8840_v2 }
0x2167   : > { %v13780_v11 = vpack.i.bf16 %v19443_v18, %v19446_v9  ;;  %v8869_v60 = vmul.f32 %v14429_v50, %v8835_v16 }
0x2168   : > { %v19451_v29 = vadd.f32 %v8870_v31, %v19379_v30 }
0x2169   : > { %v19454_v47 = vadd.f32 %v8869_v60, %v19382_v23  ;;  %13781 = vrot.lane.b32.xlu1 %v13780_v11, %s14461_s22 }
0x216b   : > { %v13785_v10 = vpack.i.bf16 %v19451_v29, %v19454_v47 }
0x216d   : > { %13786 = vrot.lane.b32.xlu0 %v13785_v10, %s14461_s22 }
0x21db   : > { %v13782_v13 = vpop.permute.xlu1 %13781 }
0x21dc   : > { %v13784_v37 = vunpack.i.h.bf16 %v13782_v13  ;;  %v13783_v7 = vunpack.i.l.bf16 %v13782_v13 }
0x21de   : > { %v8892_v36 = vsel %vm20138_vm6, 0.0, %v13784_v37  ;;  %v8891_v5 = vsel %vm20139_vm2, 0.0, %v13783_v7  ;;  %vm20155_vm6 = vmmov %vm20145_vm0 }
0x21df   : > { %v8897_v23 = vsel %vm8895_vm13, %v8892_v36, 0.0  ;;  %v8896_v43 = vsel %vm8895_vm13, %v8891_v5, 0.0  ;;  %v12268_v58 = vpack.c.bf16 %v8892_v36, %v8891_v5  ;;  %v13787_v53 = vpop.permute.xlu0 %13786 }
0x21e0   : > { %v13790_v22 = vpack.i.bf16 %v8897_v23, %v8896_v43  ;;  %v13789_v27 = vunpack.i.h.bf16 %v13787_v53  ;;  %v13788_v0 = vunpack.i.l.bf16 %v13787_v53 }
0x21e1   : > { %12270 = vmatprep.subr.msk.bf16.mxu1 %vm19464_vm3, %v12268_v58 }
0x21e2   : > { %v8894_v54 = vsel %vm20142_vm15, 0.0, %v13789_v27  ;;  %v8893_v8 = vsel %vm20143_vm12, 0.0, %v13788_v0  ;;  %12273 = vmatpush3.bf16.msk.msra.mxu1 %vm19464_vm3, %v12268_v58  ;;  %13791 = vrot.lane.b32.xlu1 %v13790_v22, %s14460_s19  ;;  %vm20156_vm15 = vcmask 15360  }
0x21e3   : > { %v8899_v17 = vsel %vm8895_vm13, %v8894_v54, 0.0  ;;  %v8898_v45 = vsel %vm8895_vm13, %v8893_v8, 0.0  ;;  %v12274_v33 = vpack.c.bf16 %v8894_v54, %v8893_v8  ;;  %vm20152_vm13 = vmmov %vm20145_vm0 }
0x21e4   : > { %v13795_v61 = vpack.i.bf16 %v8899_v17, %v8898_v45  ;;  %vm20157_vm12 = vmmov %vm20156_vm15 }
0x21e5   : > { %12276 = vmatprep.subr.msk.bf16.mxu1 %vm19464_vm3, %v12274_v33 }
0x21e6   : > { %13796 = vrot.lane.b32.xlu0 %v13795_v61, %s14460_s19  ;;  %12279 = vmatpush3.bf16.msk.msra.mxu1 %vm19464_vm3, %v12274_v33  ;;  %vm9270_vm3 = vcmask 64512  }
0x21e7   : > { %13801 = vrot.lane.b32.xlu1 %v13790_v22, %s14462_s23 }
0x21ea   : > { %13806 = vrot.lane.b32.xlu0 %v13795_v61, %s14462_s23 }
0x21eb   : > { %8940 = vperm.xlu1 %12399, %v10768_v41  }
0x21ee   : > { %8945 = vperm.xlu0 %12398, %v10769_v63  }
0x21ef   : > { %8950 = vperm.xlu1 %12399, %v10770_v57  }
0x21f2   : > { %8955 = vperm.xlu0 %12398, %v10771_v3  }
0x2254   : > { %v13792_v1 = vpop.permute.xlu1 %13791 }
0x2255   : > { %v13794_v4 = vunpack.i.h.bf16 %v13792_v1  ;;  %v13793_v62 = vunpack.i.l.bf16 %v13792_v1 }
0x2257   : > { %v12280_v19 = vpack.c.bf16 %v13794_v4, %v13793_v62 }
0x2258   : > { %v13797_v38 = vpop.permute.xlu0 %13796 }
0x2259   : > { %v13799_v59 = vunpack.i.h.bf16 %v13797_v38  ;;  %v13798_v48 = vunpack.i.l.bf16 %v13797_v38  ;;  %v13802_v49 = vpop.permute.xlu1 %13801  ;;  %12281 = vmatprep.subr.bf16.mxu1 %v12280_v19 }
0x225a   : > { %v13804_v6 = vunpack.i.h.bf16 %v13802_v49  ;;  %v13803_v2 = vunpack.i.l.bf16 %v13802_v49  ;;  %12283 = vmatpush3.bf16.msra.mxu1 %v12280_v19 }
0x225b   : > { %v12284_v42 = vpack.c.bf16 %v13799_v59, %v13798_v48 }
0x225c   : > { %v13807_v16 = vpop.permute.xlu0 %13806  ;;  %v12288_v46 = vpack.c.bf16 %v13804_v6, %v13803_v2 }
0x225d   : > { %v13809_v34 = vunpack.i.h.bf16 %v13807_v16  ;;  %v13808_v20 = vunpack.i.l.bf16 %v13807_v16  ;;  %12285 = vmatprep.subr.bf16.mxu1 %v12284_v42 }
0x225e   : > { %12287 = vmatpush3.bf16.msra.mxu1 %v12284_v42 }
0x225f   : > { %12289 = vmatprep.subr.bf16.mxu1 %v12288_v46  ;;  %v12292_v55 = vpack.c.bf16 %v13809_v34, %v13808_v20 }
0x2262   : > { %12291 = vmatpush3.bf16.msra.mxu1 %v12288_v46 }
0x2263   : > { %12293 = vmatprep.subr.bf16.mxu1 %v12292_v55 }
0x2266   : > { %12295 = vmatpush3.bf16.msra.mxu1 %v12292_v55  ;;  %v10784_v55 = vld [vmem:[%s19651_s5 + $0x60] sm:$0xff] }
0x2267   : > { %11239 = vmatprep.mubr.msk.f32.mxu0 %vm20152_vm13, %v10784_v55  ;;  %vm20167_vm13 = vmmov %vm20155_vm6 }
0x2269   : > { %11210 = vmatmul.mubr.msk.f32.vlgmr.msra.gmra.mrb[142].mxu1 %vm20145_vm0, %v10765_v32  ;;  %v10788_v32 = vld [vmem:[%s19652_s6 + $0x60] sm:$0xff] }
0x226a   : > { %11212 = vmatprep.mubr.msk.f32.mxu1 %vm20146_vm1, %v10766_v25  ;;  %v8941_v39 = vpop.permute.xlu1 %8940  ;;  %v10790_v25 = vld [vmem:[%s19652_s6 + $0x70] sm:$0xff]  ;;  %vm20161_vm1 = vmmov %vm20158_vm11 }
0x226d   : > { %11213 = vmatmul.mubr.msk.f32.gmra.mrb[144].mxu1 %vm20147_vm14, %v10767_v56  ;;  %v8946_v15 = vpop.permute.xlu0 %8945  ;;  %v10791_v56 = vld [vmem:[%s19652_s6 + $0x78] sm:$0xff]  ;;  %vm20162_vm14 = vmmov %vm20161_vm1 }
0x226e   : > { %v8951_v11 = vpop.permute.xlu1 %8950 }
0x2271   : > { %v8956_v51 = vpop.permute.xlu0 %8955 }
0x233c   : > { %v11211_v24 = vpop.f32.mrb[142].mxu1 }
0x233d   : > { %v9042_v35 = vadd.f32 %v11211_v24, %v8946_v15  ;;  %v9036_v12 = vpop.f32.mrb[143].mxu1 }
0x233e   : > { %v9037_v52 = vadd.f32 %v9036_v12, %v8941_v39 }
0x233f   : > { %v10781_v14 = vmul.f32 -1.442695, %v9042_v35 }
0x2340   : > { %v10780_v50 = vmul.f32 -1.442695, %v9037_v52  ;;  %v11214_v31 = vpop.f32.mrb[144].mxu1 }
0x2341   : > { %14430 = vpow2.f32 %v10781_v14  ;;  %v9052_v60 = vadd.f32 %v11214_v31, %v8956_v51  ;;  %v9046_v10 = vpop.f32.mrb[145].mxu1 }
0x2342   : > { %14432 = vpow2.f32 %v10780_v50  ;;  %v9047_v13 = vadd.f32 %v9046_v10, %v8951_v11 }
0x2343   : > { %v10783_v37 = vmul.f32 -1.442695, %v9052_v60 }
0x2344   : > { %v10782_v7 = vmul.f32 -1.442695, %v9047_v13 }
0x2345   : > { %14434 = vpow2.f32 %v10783_v37 }
0x2346   : > { %14436 = vpow2.f32 %v10782_v7 }
0x234b   : > { %v14431_v36 = vpop.eup %14430 }
0x234c   : > { %v14433_v5 = vpop.eup %14432  ;;  %v9068_v30 = vadd.f32 1.0, %v14431_v36  ;;  %v10785_v36 = vld [vmem:[%s19651_s5 + $0x68] sm:$0xff] }
0x234d   : > { %v9067_v23 = vadd.f32 1.0, %v14433_v5  ;;  %v10786_v5 = vld [vmem:[%s19651_s5 + $0x70] sm:$0xff] }
0x234e   : > { %14438 = vrcp.f32 %v9068_v30  ;;  %v10787_v30 = vld [vmem:[%s19651_s5 + $0x78] sm:$0xff] }
0x234f   : > { %v14435_v43 = vpop.eup %14434  ;;  %14440 = vrcp.f32 %v9067_v23  ;;  %v9266_v23 = vmul.u32 8, %v17719_v44 }
0x2350   : > { %v14437_v58 = vpop.eup %14436  ;;  %v9070_v53 = vadd.f32 1.0, %v14435_v43  ;;  %v14465_v43 = vmov 1.0  }
0x2351   : > { %v9069_v22 = vadd.f32 1.0, %v14437_v58  ;;  %vm9267_vm2 = vcmp.eq.s32.totalorder %v19979_v40, %v9266_v23  ;;  %v9394_v23 = vld [vmem:[%s19653_s7 + $0x10] sm:$0xff] }
0x2352   : > { %14442 = vrcp.f32 %v9070_v53  ;;  %11245 = vmatprep.subr.msk.mxu1 %vm9267_vm2, %v14465_v43 }
0x2353   : > { %14444 = vrcp.f32 %v9069_v22  ;;  %11246 = vmatpush3.msk.msra.mxu1 %vm9267_vm2, %v14465_v43  ;;  %v9395_v43 = vld [vmem:[%s19653_s7 + $0x18] sm:$0xff] }
0x2358   : > { %v14439_v27 = vpop.eup %14438 }
0x2359   : > { %v14441_v0 = vpop.eup %14440  ;;  %v9080_v54 = vmul.f32 %v14439_v27, %v9042_v35 }
0x235a   : > { %v9079_v8 = vmul.f32 %v14441_v0, %v9037_v52 }
0x235b   : > { %v9084_v17 = vadd.f32 %v9080_v54, %v19443_v18 }
0x235c   : > { %v14443_v45 = vpop.eup %14442  ;;  %v9083_v33 = vadd.f32 %v9079_v8, %v19446_v9 }
0x235d   : > { %v14445_v61 = vpop.eup %14444  ;;  %v9082_v21 = vmul.f32 %v14443_v45, %v9052_v60 }
0x235e   : > { %v13810_v41 = vpack.i.bf16 %v9084_v17, %v9083_v33  ;;  %v9081_v63 = vmul.f32 %v14445_v61, %v9047_v13 }
0x235f   : > { %v9086_v57 = vadd.f32 %v9082_v21, %v19451_v29 }
0x2360   : > { %v9085_v3 = vadd.f32 %v9081_v63, %v19454_v47  ;;  %13811 = vrot.lane.b32.xlu1 %v13810_v41, %s14454_s15 }
0x2362   : > { %v13815_v1 = vpack.i.bf16 %v9086_v57, %v9085_v3 }
0x2364   : > { %13816 = vrot.lane.b32.xlu0 %v13815_v1, %s14454_s15 }
0x23d2   : > { %v13812_v4 = vpop.permute.xlu1 %13811 }
0x23d3   : > { %v13814_v62 = vunpack.i.h.bf16 %v13812_v4  ;;  %v13813_v19 = vunpack.i.l.bf16 %v13812_v4 }
0x23d5   : > { %v9104_v18 = vsel %vm20148_vm4, 0.0, %v13814_v62  ;;  %v9103_v9 = vsel %vm20149_vm9, 0.0, %v13813_v19  ;;  %vm20163_vm4 = vmmov %vm20157_vm12 }
0x23d6   : > { %v9108_v38 = vsel %vm8471_vm7, %v9104_v18, 0.0  ;;  %v9107_v59 = vsel %vm8471_vm7, %v9103_v9, 0.0  ;;  %v12296_v48 = vpack.c.bf16 %v9104_v18, %v9103_v9  ;;  %v13817_v29 = vpop.permute.xlu0 %13816  ;;  %vm20164_vm9 = vmmov %vm20163_vm4 }
0x23d7   : > { %v13820_v49 = vpack.i.bf16 %v9108_v38, %v9107_v59  ;;  %v13819_v47 = vunpack.i.h.bf16 %v13817_v29  ;;  %v13818_v6 = vunpack.i.l.bf16 %v13817_v29 }
0x23d8   : > { %12298 = vmatprep.subr.msk.bf16.mxu0 %vm19320_vm8, %v12296_v48 }
0x23d9   : > { %v9106_v2 = vsel %vm20150_vm5, 0.0, %v13819_v47  ;;  %v9105_v42 = vsel %vm20151_vm10, 0.0, %v13818_v6  ;;  %12301 = vmatpush3.bf16.msk.msra.mxu0 %vm19320_vm8, %v12296_v48  ;;  %13821 = vrot.lane.b32.xlu1 %v13820_v49, %s14455_s16  ;;  %vm20165_vm5 = vmmov %vm20161_vm1 }
0x23da   : > { %v9110_v16 = vsel %vm8471_vm7, %v9106_v2, 0.0  ;;  %v9109_v46 = vsel %vm8471_vm7, %v9105_v42, 0.0  ;;  %v12302_v34 = vpack.c.bf16 %v9106_v2, %v9105_v42  ;;  %vm20153_vm7 = vmmov %vm20145_vm0 }
0x23db   : > { %v13825_v20 = vpack.i.bf16 %v9110_v16, %v9109_v46  ;;  %vm20166_vm10 = vmmov %vm20161_vm1 }
0x23dc   : > { %12304 = vmatprep.subr.msk.bf16.mxu0 %vm19320_vm8, %v12302_v34 }
0x23dd   : > { %13826 = vrot.lane.b32.xlu0 %v13825_v20, %s14455_s16  ;;  %12307 = vmatpush3.bf16.msk.msra.mxu0 %vm19320_vm8, %v12302_v34  ;;  %vm20154_vm8 = vmmov %vm20145_vm0 }
0x23de   : > { %13831 = vrot.lane.b32.xlu1 %v13820_v49, %s14457_s17  ;;  %vm19576_vm0 = vmpackc.low %vm20158_vm11, %vm20158_vm11 }
0x23df   : > { %vm20173_vm11 = vmmov %vm20161_vm1 }
0x23e1   : > { %13836 = vrot.lane.b32.xlu0 %v13825_v20, %s14457_s17 }
0x23e2   : > { %9151 = vperm.xlu1 %12399, %v10788_v32  }
0x23e5   : > { %9156 = vperm.xlu0 %12398, %v10789_v28   ;;  %v9396_v28 = vld [vmem:[%s19654_s8] sm:$0xff] }
0x23e6   : > { %9161 = vperm.xlu1 %12399, %v10790_v25   ;;  %v9392_v25 = vld [vmem:[%s19653_s7] sm:$0xff] }
0x23e9   : > { %9166 = vperm.xlu0 %12398, %v10791_v56   ;;  %v9398_v56 = vld [vmem:[%s19654_s8 + $0x10] sm:$0xff] }
0x244b   : > { %v13822_v15 = vpop.permute.xlu1 %13821 }
0x244c   : > { %v13824_v39 = vunpack.i.h.bf16 %v13822_v15  ;;  %v13823_v24 = vunpack.i.l.bf16 %v13822_v15  ;;  %v9397_v15 = vld [vmem:[%s19654_s8 + $0x8] sm:$0xff] }
0x244e   : > { %v12308_v35 = vpack.c.bf16 %v13824_v39, %v13823_v24  ;;  %v9399_v39 = vld [vmem:[%s19654_s8 + $0x18] sm:$0xff] }
0x244f   : > { %v13827_v12 = vpop.permute.xlu0 %13826 }
0x2450   : > { %v13829_v52 = vunpack.i.h.bf16 %v13827_v12  ;;  %v13828_v14 = vunpack.i.l.bf16 %v13827_v12  ;;  %v13832_v51 = vpop.permute.xlu1 %13831  ;;  %12309 = vmatprep.subr.bf16.mxu0 %v12308_v35 }
0x2451   : > { %v13834_v50 = vunpack.i.h.bf16 %v13832_v51  ;;  %v13833_v31 = vunpack.i.l.bf16 %v13832_v51  ;;  %12311 = vmatpush3.bf16.msra.mxu0 %v12308_v35 }
0x2452   : > { %v12312_v11 = vpack.c.bf16 %v13829_v52, %v13828_v14 }
0x2453   : > { %v13837_v60 = vpop.permute.xlu0 %13836  ;;  %v12316_v10 = vpack.c.bf16 %v13834_v50, %v13833_v31 }
0x2454   : > { %v13839_v13 = vunpack.i.h.bf16 %v13837_v60  ;;  %v13838_v37 = vunpack.i.l.bf16 %v13837_v60  ;;  %12313 = vmatprep.subr.bf16.mxu0 %v12312_v11 }
0x2455   : > { %12315 = vmatpush3.bf16.msra.mxu0 %v12312_v11 }
0x2456   : > { %12317 = vmatprep.subr.bf16.mxu0 %v12316_v10  ;;  %v12320_v7 = vpack.c.bf16 %v13839_v13, %v13838_v37 }
0x2459   : > { %12319 = vmatpush3.bf16.msra.mxu0 %v12316_v10 }
0x245a   : > { %12321 = vmatprep.subr.bf16.mxu0 %v12320_v7 }
0x245d   : > { %12323 = vmatpush3.bf16.msra.mxu0 %v12320_v7 }
0x2460   : > { %11240 = vmatmul.mubr.msk.f32.vlgmr.msra.gmra.mrb[94].mxu0 %vm20153_vm7, %v10785_v36  ;;  %vm20168_vm7 = vmmov %vm20155_vm6 }
0x2461   : > { %11242 = vmatprep.mubr.msk.f32.mxu0 %vm20154_vm8, %v10786_v5  ;;  %v9152_v58 = vpop.permute.xlu1 %9151  ;;  %vm20169_vm8 = vmmov %vm20155_vm6 }
0x2464   : > { %11243 = vmatmul.mubr.msk.f32.gmra.mrb[96].mxu0 %vm20155_vm6, %v10787_v30  ;;  %v9157_v53 = vpop.permute.xlu0 %9156  ;;  %v9393_v30 = vld [vmem:[%s19653_s7 + $0x8] sm:$0xff] }
0x2465   : > { %v9162_v17 = vpop.permute.xlu1 %9161  ;;  %11277 = vmatprep.mubr.msk.f32.mxu0 %vm20167_vm13, %v9392_v25 }
0x2468   : > { %v9167_v33 = vpop.permute.xlu0 %9166 }
0x2533   : > { %v11241_v22 = vpop.f32.mrb[94].mxu0 }
0x2534   : > { %v9247_v27 = vpop.f32.mrb[95].mxu0  ;;  %v9253_v54 = vadd.f32 %v11241_v22, %v9157_v53 }
0x2535   : > { %v9248_v0 = vadd.f32 %v9247_v27, %v9152_v58  ;;  %v9545_v58 = vmul.u32 2, %v17719_v44 }
0x2537   : > { %v11244_v8 = vpop.f32.mrb[96].mxu0  ;;  %11247 = vmatprep.mubr.msk.f32.mxu1 %vm9270_vm3, %v9248_v0  ;;  %vm9546_vm2 = vcmp.eq.s32.totalorder %v19979_v40, %v9545_v58 }
0x2538   : > { %v9257_v45 = vpop.f32.mrb[97].mxu0  ;;  %11248 = vmatmul.mubr.msk.f32.vlgmr.msra.gmra.mrb[146].mxu1 %vm9270_vm3, %v9253_v54  ;;  %v9263_v21 = vadd.f32 %v11244_v8, %v9167_v33  ;;  %v10814_v53 = vsel %vm9546_vm2, 1.0, %v19809_v26 }
0x2539   : > { %v9258_v61 = vadd.f32 %v9257_v45, %v9162_v17 }
0x253b   : > { %11250 = vmatprep.mubr.msk.f32.mxu1 %vm9270_vm3, %v9258_v61 }
0x253c   : > { %11251 = vmatmul.mubr.msk.f32.gmra.mrb[148].mxu1 %vm9270_vm3, %v9263_v21  ;;  %vm20170_vm3 = vcmask 1042432  }
0x253d   : > { %11283 = vmatprep.subr.msk.mxu1 %vm20170_vm3, %v10814_v53 }
0x260b   : > { %v11249_v41 = vpop.f32.mrb[146].mxu1 }
0x260c   : > { %v9349_v63 = vpop.f32.mrb[147].mxu1 }
0x260d   : > { %v13840_v57 = vpack.i.bf16 %v11249_v41, %v9349_v63 }
0x260f   : > { %13841 = vrot.lane.b32.xlu1 %v13840_v57, %s14459_s18  ;;  %v11252_v3 = vpop.f32.mrb[148].mxu1 }
0x2610   : > { %v9359_v1 = vpop.f32.mrb[149].mxu1 }
0x2611   : > { %v13845_v4 = vpack.i.bf16 %v11252_v3, %v9359_v1 }
0x2613   : > { %13846 = vrot.lane.b32.xlu0 %v13845_v4, %s14459_s18  ;;  %s329_s18 = scalar_lea.vmem %s19655_s9, %s10822_s20 }
0x2681   : > { %v13842_v62 = vpop.permute.xlu1 %13841 }
0x2682   : > { %v13844_v19 = vunpack.i.h.bf16 %v13842_v62  ;;  %v13843_v18 = vunpack.i.l.bf16 %v13842_v62 }
0x2684   : > { %v9385_v9 = vsel %vm20156_vm15, 0.0, %v13844_v19  ;;  %v9384_v38 = vsel %vm20157_vm12, 0.0, %v13843_v18  ;;  %vm20171_vm15 = vmmov %vm20170_vm3 }
0x2685   : > { %v9389_v48 = vsel %vm20161_vm1, %v9385_v9, 0.0  ;;  %v9388_v29 = vsel %vm20162_vm14, %v9384_v38, 0.0  ;;  %v12324_v49 = vpack.c.bf16 %v9385_v9, %v9384_v38  ;;  %v13847_v47 = vpop.permute.xlu0 %13846  ;;  %11284 = vmatpush3.msk.msra.mxu1 %vm20171_vm15, %v10814_v53  ;;  %vm20172_vm12 = vmmov %vm20161_vm1 }
0x2686   : > { %v13850_v6 = vpack.i.bf16 %v9389_v48, %v9388_v29  ;;  %v13849_v2 = vunpack.i.h.bf16 %v13847_v47  ;;  %v13848_v42 = vunpack.i.l.bf16 %v13847_v47  ;;  %vm20176_vm14 = vmmov %vm20163_vm4 }
0x2687   : > { %12326 = vmatprep.subr.msk.bf16.mxu0 %vm19576_vm0, %v12324_v49 }
0x2688   : > { %v9387_v16 = vsel %vm20163_vm4, 0.0, %v13849_v2  ;;  %v9386_v46 = vsel %vm20164_vm9, 0.0, %v13848_v42  ;;  %12329 = vmatpush3.bf16.msk.msra.mxu0 %vm19576_vm0, %v12324_v49  ;;  %13851 = vrot.lane.b32.xlu1 %v13850_v6, %s14455_s16  ;;  %vm20177_vm9 = vmmov %vm20163_vm4 }
0x2689   : > { %v9391_v34 = vsel %vm20165_vm5, %v9387_v16, 0.0  ;;  %v9390_v20 = vsel %vm20166_vm10, %v9386_v46, 0.0  ;;  %v12330_v55 = vpack.c.bf16 %v9387_v16, %v9386_v46  ;;  %vm20178_vm5 = vmmov %vm20163_vm4 }
0x268a   : > { %v13855_v32 = vpack.i.bf16 %v9391_v34, %v9390_v20 }
0x268b   : > { %12332 = vmatprep.subr.msk.bf16.mxu0 %vm19576_vm0, %v12330_v55 }
0x268c   : > { %13861 = vrot.lane.b32.xlu1 %v13850_v6, %s14457_s17  ;;  %12335 = vmatpush3.bf16.msk.msra.mxu0 %vm19576_vm0, %v12330_v55  ;;  %vm20174_vm0 = vmmov %vm20161_vm1 }
0x268d   : > { %13856 = vrot.lane.b32.xlu0 %v13855_v32, %s14455_s16  ;;  %vm20175_vm1 = vmmov %vm20174_vm0 }
0x2690   : > { %9430 = vperm.xlu1 %12399, %v9396_v28  }
0x2691   : > { %13866 = vrot.lane.b32.xlu0 %v13855_v32, %s14457_s17 }
0x2694   : > { %9440 = vperm.xlu1 %12399, %v9398_v56  }
0x2695   : > { %9435 = vperm.xlu0 %12398, %v9397_v15  }
0x2699   : > { %9445 = vperm.xlu0 %12398, %v9399_v39  }
0x26fa   : > { %v13852_v24 = vpop.permute.xlu1 %13851 }
0x26fb   : > { %v13854_v35 = vunpack.i.h.bf16 %v13852_v24  ;;  %v13853_v12 = vunpack.i.l.bf16 %v13852_v24 }
0x26fd   : > { %v12336_v52 = vpack.c.bf16 %v13854_v35, %v13853_v12 }
0x26fe   : > { %v13862_v14 = vpop.permute.xlu1 %13861 }
0x26ff   : > { %v13857_v51 = vpop.permute.xlu0 %13856  ;;  %12337 = vmatprep.subr.bf16.mxu0 %v12336_v52  ;;  %v13864_v50 = vunpack.i.h.bf16 %v13862_v14  ;;  %v13863_v31 = vunpack.i.l.bf16 %v13862_v14 }
0x2700   : > { %v13859_v11 = vunpack.i.h.bf16 %v13857_v51  ;;  %v13858_v60 = vunpack.i.l.bf16 %v13857_v51  ;;  %12339 = vmatpush3.bf16.msra.mxu0 %v12336_v52 }
0x2701   : > { %v12344_v37 = vpack.c.bf16 %v13864_v50, %v13863_v31 }
0x2702   : > { %v12340_v10 = vpack.c.bf16 %v13859_v11, %v13858_v60 }
0x2703   : > { %v13867_v13 = vpop.permute.xlu0 %13866 }
0x2704   : > { %v13869_v7 = vunpack.i.h.bf16 %v13867_v13  ;;  %v13868_v36 = vunpack.i.l.bf16 %v13867_v13  ;;  %12341 = vmatprep.subr.bf16.mxu0 %v12340_v10 }
0x2705   : > { %12343 = vmatpush3.bf16.msra.mxu0 %v12340_v10 }
0x2706   : > { %12345 = vmatprep.subr.bf16.mxu0 %v12344_v37  ;;  %v12348_v5 = vpack.c.bf16 %v13869_v7, %v13868_v36 }
0x2709   : > { %12347 = vmatpush3.bf16.msra.mxu0 %v12344_v37 }
0x270a   : > { %12349 = vmatprep.subr.bf16.mxu0 %v12348_v5 }
0x270d   : > { %12351 = vmatpush3.bf16.msra.mxu0 %v12348_v5 }
0x270f   : > { %v9431_v22 = vpop.permute.xlu1 %9430 }
0x2710   : > { %11278 = vmatmul.mubr.msk.f32.vlgmr.msra.gmra.mrb[98].mxu0 %vm20168_vm7, %v9393_v30 }
0x2711   : > { %11280 = vmatprep.mubr.msk.f32.mxu0 %vm20169_vm8, %v9394_v23 }
0x2713   : > { %v9441_v33 = vpop.permute.xlu1 %9440 }
0x2714   : > { %11281 = vmatmul.mubr.msk.f32.gmra.mrb[100].mxu0 %vm20155_vm6, %v9395_v43  ;;  %v9436_v27 = vpop.permute.xlu0 %9435 }
0x2718   : > { %v9446_v40 = vpop.permute.xlu0 %9445 }
0x27e3   : > { %v11279_v0 = vpop.f32.mrb[98].mxu0 }
0x27e4   : > { %v9526_v54 = vpop.f32.mrb[99].mxu0  ;;  %v9532_v17 = vadd.f32 %v11279_v0, %v9436_v27 }
0x27e5   : > { %v9527_v8 = vadd.f32 %v9526_v54, %v9431_v22 }
0x27e7   : > { %v11282_v45 = vpop.f32.mrb[100].mxu0  ;;  %11285 = vmatprep.mubr.msk.f32.mxu1 %vm20172_vm12, %v9527_v8 }
0x27e8   : > { %v9536_v44 = vpop.f32.mrb[101].mxu0  ;;  %11286 = vmatmul.mubr.msk.f32.vlgmr.msra.gmra.mrb[150].mxu1 %vm20173_vm11, %v9532_v17  ;;  %v9542_v61 = vadd.f32 %v11282_v45, %v9446_v40 }
0x27e9   : > { %v9537_v26 = vadd.f32 %v9536_v44, %v9441_v33 }
0x27eb   : > { %11288 = vmatprep.mubr.msk.f32.mxu1 %vm20174_vm0, %v9537_v26 }
0x27ec   : > { %11289 = vmatmul.mubr.msk.f32.gmra.mrb[152].mxu1 %vm20175_vm1, %v9542_v61 }
0x28bb   : > { %v11287_v21 = vpop.f32.mrb[150].mxu1 }
0x28bc   : > { %9650 = vst.msk [vmem:[%s329_s18 + $0x8] sm:$0xff] %vm20176_vm14, %v11287_v21  ;;  %v9630_v41 = vpop.f32.mrb[151].mxu1 }
0x28bd   : > { %9649 = vst.msk [vmem:[%s329_s18] sm:$0xff] %vm20163_vm4, %v9630_v41 }
0x28bf   : > { %v11290_v63 = vpop.f32.mrb[152].mxu1 }
0x28c0   : > { %9652 = vst.msk [vmem:[%s329_s18 + $0x18] sm:$0xff] %vm20177_vm9, %v11290_v63  ;;  %v9640_v57 = vpop.f32.mrb[153].mxu1 }
0x28c1   : > { %9651 = vst.msk [vmem:[%s329_s18 + $0x10] sm:$0xff] %vm20178_vm5, %v9640_v57 }
0x28c2 PF: > { %s19_s30 = sadd.s32 1, %s14452_s30  }
0x28c3   : > { %p16_p4 = scmp.ge.s32.totalorder %s19_s30, 4  }
0x28c5   :  { %18 = sbr.rel (!%p16_p4) target bundleno = 1 (0x1), region = 114 }

</bundles_post_ra>
